<compile_context>
chip_gen: v5e
topology: v5e:2x2
jax: 0.10.0
libtpu: 0.0.40
codegen_flags: <defaults>
</compile_context>

<pallas_src>
import jax
import jax.numpy as jnp
from jax.experimental import pallas as pl
from jax.experimental.pallas import tpu as pltpu

EPS = 1e-5
LANE = 128


def _round_up(x, m):
    return (x + m - 1) // m * m


# ----------------------------------------------------------------------------
# Conv (+ optional fused BN+ReLU of the previous layer) + BN partial sums
# ----------------------------------------------------------------------------
def _make_conv_kernel(D, H, W, Cin, Cp, fuse_bn_relu):
    """Kernel computing one (n, d) output plane of a 3x3x3 'same' conv.

    Inputs: three halo'd padded planes (depth indices d, d+1, d+2 of the
    zero-padded volume).  The 27 shifted patch views are built in-kernel as
    static window loads; bf16 MXU matmuls accumulate into an f32 (H*W, Cp)
    tile.  Per-channel sum / sum-of-squares partials come from the f32
    accumulator before the bf16 downcast of the raw conv output.

    If `fuse_bn_relu`, the previous layer's folded BatchNorm (scale/shift) and
    ReLU are applied to each loaded plane, with the zero-padding positions
    (H/W border, depth pad planes) forced back to zero so conv2 still sees
    zero padding.
    """
    Hp2, Wp2, HW = H + 2, W + 2, H * W

    def kernel(*refs):
        if fuse_bn_relu:
            x0, x1, x2, sc_ref, sh_ref, w_ref, y_ref, stat_ref, act_scr = refs
        else:
            x0, x1, x2, w_ref, y_ref, stat_ref = refs
        planes = (x0, x1, x2)
        d = pl.program_id(1)

        if fuse_bn_relu:
            # Static interior mask: zero the H/W halo after the fused BN+ReLU.
            hh = jax.lax.broadcasted_iota(jnp.int32, (Hp2, Wp2, Cin), 0)
            ww = jax.lax.broadcasted_iota(jnp.int32, (Hp2, Wp2, Cin), 1)
            interior = ((hh >= 1) & (hh <= H) &
                        (ww >= 1) & (ww <= W)).astype(jnp.float32)

        acc = jnp.zeros((HW, Cp), jnp.float32)
        for kd in range(3):
            if fuse_bn_relu:
                raw = planes[kd][0, 0].astype(jnp.float32)      # (Hp2, Wp2, Cin)
                a = jnp.maximum(raw * sc_ref[...] + sh_ref[...], 0.0) * interior
                # Depth pad planes (index 0 / D+1 of the padded volume) must
                # stay zero after the fused BN+ReLU.
                if kd == 0:
                    a = a * (d >= 1).astype(jnp.float32)
                elif kd == 2:
                    a = a * (d <= D - 2).astype(jnp.float32)
                act_scr[...] = a.astype(jnp.bfloat16)
            for kh in range(3):
                for kw in range(3):
                    if fuse_bn_relu:
                        win = act_scr[kh:kh + H, kw:kw + W, :]
                    else:
                        win = planes[kd][0, 0, kh:kh + H, kw:kw + W, :]
                    tap = (kd * 3 + kh) * 3 + kw
                    acc = acc + jnp.dot(win.reshape(HW, Cin), w_ref[tap],
                                        preferred_element_type=jnp.float32)

        # Per-step BN partials from the f32 accumulator (two plain row stores).
        stat_ref[0, 0, 0:1, :] = jnp.sum(acc, axis=0, keepdims=True)
        stat_ref[0, 0, 1:2, :] = jnp.sum(acc * acc, axis=0, keepdims=True)
        y_ref[...] = acc.reshape(1, 1, H, W, Cp).astype(y_ref.dtype)

    return kernel


def _conv3d_stats(xp, w_taps, scale=None, shift=None):
    """One conv layer: raw 3x3x3 'same' conv (bf16 out) + per-step BN partials.

    xp:     (N, D+2, H+2, W+2, Cin) bf16, spatially zero-padded, channels-last.
    w_taps: (27, Cin, Cp) bf16, tap-major (kd, kh, kw).
    scale/shift: optional (1, Cin) f32 folded BN of the previous layer, fused
                 with ReLU into the patch load.
    Returns y_raw (N, D, H, W, Cp) bf16 and stats (N, D, 2, Cp) f32.
    """
    N, Dp2, Hp2, Wp2, Cin = xp.shape
    D, H, W = Dp2 - 2, Hp2 - 2, Wp2 - 2
    Cp = w_taps.shape[-1]
    fused = scale is not None

    kernel = _make_conv_kernel(D, H, W, Cin, Cp, fused)

    # Three halo'd single-plane views of the same padded array: d, d+1, d+2.
    in_specs = [
        pl.BlockSpec((1, 1, Hp2, Wp2, Cin),
                     lambda n, d, kd=kd: (n, d + kd, 0, 0, 0))
        for kd in range(3)
    ]
    args = [xp, xp, xp]
    if fused:
        in_specs += [pl.BlockSpec((1, Cin), lambda n, d: (0, 0)),
                     pl.BlockSpec((1, Cin), lambda n, d: (0, 0))]
        args += [scale, shift]
    in_specs.append(pl.BlockSpec((27, Cin, Cp), lambda n, d: (0, 0, 0)))
    args.append(w_taps)

    flops = 2 * N * D * H * W * 27 * Cin * Cp
    bytes_accessed = (3 * xp.size * xp.dtype.itemsize
                      + w_taps.size * w_taps.dtype.itemsize
                      + N * D * H * W * Cp * 2
                      + N * D * 2 * Cp * 4)

    return pl.pallas_call(
        kernel,
        out_shape=(jax.ShapeDtypeStruct((N, D, H, W, Cp), jnp.bfloat16),
                   jax.ShapeDtypeStruct((N, D, 2, Cp), jnp.float32)),
        grid=(N, D),
        in_specs=in_specs,
        out_specs=(pl.BlockSpec((1, 1, H, W, Cp),
                                lambda n, d: (n, d, 0, 0, 0)),
                   pl.BlockSpec((1, 1, 2, Cp), lambda n, d: (n, d, 0, 0))),
        scratch_shapes=([pltpu.VMEM((Hp2, Wp2, Cin), jnp.bfloat16)]
                        if fused else []),
        compiler_params=pltpu.CompilerParams(
            dimension_semantics=("parallel", "parallel"),
            # Blocks are small; 48 MiB is safe on v7x (64 MiB physical) and
            # well under v5e/v6e's 128 MiB.
            vmem_limit_bytes=48 * 1024 * 1024),
        cost_estimate=pl.CostEstimate(flops=flops, transcendentals=0,
                                      bytes_accessed=bytes_accessed),
    )(*args)


# ----------------------------------------------------------------------------
# BatchNorm folding (XLA, tiny) and the final fused BN+ReLU epilogue
# ----------------------------------------------------------------------------
def _fold_bn(stats, gamma, beta, m):
    """Per-step partials -> folded (scale, shift): y_norm = y*scale + shift."""
    cp = stats.shape[-1]
    s = jnp.sum(stats[:, :, 0, :], axis=(0, 1))
    q = jnp.sum(stats[:, :, 1, :], axis=(0, 1))
    mean = s / m
    var = jnp.maximum(q / m - mean * mean, 0.0)          # biased (training mode)
    inv = jax.lax.rsqrt(var + EPS)
    g = jnp.pad(gamma.astype(jnp.float32), (0, cp - gamma.shape[0]))
    b = jnp.pad(beta.astype(jnp.float32), (0, cp - beta.shape[0]))
    scale = g * inv
    shift = b - mean * scale
    return scale.reshape(1, cp), shift.reshape(1, cp)


def _bn_relu_kernel(y_ref, sc_ref, sh_ref, o_ref):
    y = y_ref[...].astype(jnp.float32)
    o_ref[...] = jnp.maximum(y * sc_ref[...] + sh_ref[...], 0.0)


def _bn_relu(y, scale, shift):
    N, D, H, W, Cp = y.shape
    return pl.pallas_call(
        _bn_relu_kernel,
        out_shape=jax.ShapeDtypeStruct((N, D, H, W, Cp), jnp.float32),
        grid=(N,),
        in_specs=[pl.BlockSpec((1, D, H, W, Cp), lambda n: (n, 0, 0, 0, 0)),
                  pl.BlockSpec((1, Cp), lambda n: (0, 0)),
                  pl.BlockSpec((1, Cp), lambda n: (0, 0))],
        out_specs=pl.BlockSpec((1, D, H, W, Cp), lambda n: (n, 0, 0, 0, 0)),
        compiler_params=pltpu.CompilerParams(
            dimension_semantics=("parallel",),
            vmem_limit_bytes=48 * 1024 * 1024),
    )(y, scale, shift)


# ----------------------------------------------------------------------------
# Block wrapper (PyTorch NCDHW interface)
# ----------------------------------------------------------------------------
def _prep_weights(w_oidhw, cin_pad, cout_pad):
    """(Cout, Cin, 3, 3, 3) -> tap-major (27, cin_pad, cout_pad) bf16."""
    co, ci = w_oidhw.shape[0], w_oidhw.shape[1]
    w = jnp.transpose(w_oidhw, (2, 3, 4, 1, 0)).reshape(27, ci, co)
    w = jnp.pad(w, ((0, 0), (0, cin_pad - ci), (0, cout_pad - co)))
    return w.astype(jnp.bfloat16)


def conv_block_3d(x_ncdhw, w1, g1, b1, w2, g2, b2):
    """Pallas ConvBlock3D.forward: (N, Cin, D, H, W) -> (N, Cout, D, H, W)."""
    N, Cin, D, H, W = x_ncdhw.shape
    Cout1, Cout2 = w1.shape[0], w2.shape[0]
    Cp1, Cp2 = _round_up(Cout1, LANE), _round_up(Cout2, LANE)
    m = N * D * H * W

    # Channels-last once at the block boundary; spatial zero-pad; bf16 storage.
    x = jnp.transpose(x_ncdhw, (0, 2, 3, 4, 1))
    xp = jnp.pad(x, ((0, 0), (1, 1), (1, 1), (1, 1), (0, 0))).astype(jnp.bfloat16)

    w1t = _prep_weights(w1, Cin, Cp1)        # (27, Cin, Cp1)
    w2t = _prep_weights(w2, Cp1, Cp2)        # (27, Cp1, Cp2)

    # Layer 1: conv1 + BN partial sums (raw conv output stays bf16 in HBM).
    y1, stat1 = _conv3d_stats(xp, w1t)
    scale1, shift1 = _fold_bn(stat1, g1, b1, m)

    # Layer 2: BN1 + ReLU fused into conv2's patch load.
    y1p = jnp.pad(y1, ((0, 0), (1, 1), (1, 1), (1, 1), (0, 0)))
    y2, stat2 = _conv3d_stats(y1p, w2t, scale1, shift1)
    scale2, shift2 = _fold_bn(stat2, g2, b2, m)

    # Layer 2 BN + ReLU epilogue (f32 output), slice padded channels, NCDHW.
    out = _bn_relu(y2, scale2, shift2)[..., :Cout2]
    return jnp.transpose(out, (0, 4, 1, 2, 3))


# ----------------------------------------------------------------------------
# Pure-JAX reference (lax conv + training-mode batch norm + relu)
# ----------------------------------------------------------------------------
def reference_block(x, w1, g1, b1, w2, g2, b2):
    def conv(x, w):
        return jax.lax.conv_general_dilated(
            x, w, window_strides=(1, 1, 1),
            padding=[(1, 1), (1, 1), (1, 1)],
            dimension_numbers=("NCDHW", "OIDHW", "NCDHW"),
            precision=jax.lax.Precision.HIGHEST)

    def bn_relu(y, g, b):
        mean = y.mean(axis=(0, 2, 3, 4), keepdims=True)
        var = jnp.square(y - mean).mean(axis=(0, 2, 3, 4), keepdims=True)
        out = (y - mean) * jax.lax.rsqrt(var + EPS) \
            * g.reshape(1, -1, 1, 1, 1) + b.reshape(1, -1, 1, 1, 1)
        return jnp.maximum(out, 0.0)

    y = bn_relu(conv(x, w1), g1, b1)
    return bn_relu(conv(y, w2), g2, b2)


if __name__ == "__main__":
    N, Cin, Cout = 2, 4, 8
    D = H = W = 8
    key = jax.random.PRNGKey(0)
    kx, k1, k2 = jax.random.split(key, 3)

    x = jax.random.normal(kx, (N, Cin, D, H, W), dtype=jnp.float32)

    # Deterministic parameter init (synthetic; BN params at PyTorch defaults).
    w1 = jax.random.normal(k1, (Cout, Cin, 3, 3, 3), dtype=jnp.float32) * 0.1
    w2 = jax.random.normal(k2, (Cout, Cout, 3, 3, 3), dtype=jnp.float32) * 0.1
    g1 = jnp.ones((Cout,), jnp.float32)
    b1 = jnp.zeros((Cout,), jnp.float32)
    g2 = jnp.ones((Cout,), jnp.float32)
    b2 = jnp.zeros((Cout,), jnp.float32)

    fwd = jax.jit(conv_block_3d)
    out = jax.block_until_ready(fwd(x, w1, g1, b1, w2, g2, b2))

    ref = jax.block_until_ready(reference_block(x, w1, g1, b1, w2, g2, b2))
    assert out.shape == (N, Cout, D, H, W)
    # bf16 activations/weights on the MXU (f32 accumulation) vs an f32
    # HIGHEST-precision reference; outputs are ~O(1) after BatchNorm, so a
    # 5e-2 max-abs bound is a meaningful correctness check.
    max_err = float(jnp.max(jnp.abs(out - ref)))
    assert max_err < 5e-2, f"mismatch vs reference: {max_err}"

    print("KERNEL_OK")
</pallas_src>

<mosaic_0001>
module attributes {stable_mosaic.version = 11 : i64} {
  func.func @kernel(%arg0: i32, %arg1: i32, %arg2: memref<1x1x10x10x4xbf16, #tpu.memory_space<vmem>>, %arg3: memref<1x1x10x10x4xbf16, #tpu.memory_space<vmem>>, %arg4: memref<1x1x10x10x4xbf16, #tpu.memory_space<vmem>>, %arg5: memref<27x4x128xbf16, #tpu.memory_space<vmem>>, %arg6: memref<1x1x8x8x128xbf16, #tpu.memory_space<vmem>>, %arg7: memref<1x1x2x128xf32, #tpu.memory_space<vmem>>) attributes {dimension_semantics = [#tpu.dimension_semantics<parallel>, #tpu.dimension_semantics<parallel>], iteration_bounds = array<i64: 2, 8>, scalar_prefetch = 0 : i64, scratch_operands = 0 : i64, tpu.core_type = #tpu.core_type<tc>, window_params = [{transform_indices = @transform_0, window_bounds = array<i64: 1, 1, 10, 10, 4>}, {transform_indices = @transform_1, window_bounds = array<i64: 1, 1, 10, 10, 4>}, {transform_indices = @transform_2, window_bounds = array<i64: 1, 1, 10, 10, 4>}, {pipeline_mode = #tpu.pipeline_mode<synchronous>, transform_indices = @transform_3, window_bounds = array<i64: 27, 4, 128>}, {transform_indices = @transform_4, window_bounds = array<i64: 1, 1, 8, 8, 128>}, {transform_indices = @transform_5, window_bounds = array<i64: 1, 1, 2, 128>}]} {
    %cst = arith.constant 0.000000e+00 : f32
    %0 = vector.broadcast %cst : f32 to vector<64x128xf32>
    %c0 = arith.constant 0 : index
    %c0_0 = arith.constant 0 : index
    %c0_1 = arith.constant 0 : index
    %c0_2 = arith.constant 0 : index
    %c0_3 = arith.constant 0 : index
    %1 = vector.load %arg2[%c0, %c0_0, %c0_1, %c0_2, %c0_3] : memref<1x1x10x10x4xbf16, #tpu.memory_space<vmem>>, vector<1x1x8x8x4xbf16>
    %2 = vector.shape_cast %1 : vector<1x1x8x8x4xbf16> to vector<8x8x4xbf16>
    %3 = vector.shape_cast %2 : vector<8x8x4xbf16> to vector<64x4xbf16>
    %c0_4 = arith.constant 0 : index
    %c0_5 = arith.constant 0 : index
    %c0_6 = arith.constant 0 : index
    %4 = vector.load %arg5[%c0_4, %c0_5, %c0_6] : memref<27x4x128xbf16, #tpu.memory_space<vmem>>, vector<1x4x128xbf16>
    %5 = vector.shape_cast %4 : vector<1x4x128xbf16> to vector<4x128xbf16>
    %cst_7 = arith.constant dense<0.000000e+00> : vector<64x128xf32>
    %6 = tpu.matmul %3, %5, %cst_7 {dimension_numbers = #tpu.dot_dimension_numbers<[1], [0], [0], [1], [0, 0, 1, 1], [], []>} : vector<64x4xbf16>, vector<4x128xbf16>, vector<64x128xf32> -> vector<64x128xf32>
    %7 = arith.addf %0, %6 : vector<64x128xf32>
    %c0_8 = arith.constant 0 : index
    %c0_9 = arith.constant 0 : index
    %c0_10 = arith.constant 0 : index
    %c1 = arith.constant 1 : index
    %c0_11 = arith.constant 0 : index
    %8 = vector.load %arg2[%c0_8, %c0_9, %c0_10, %c1, %c0_11] : memref<1x1x10x10x4xbf16, #tpu.memory_space<vmem>>, vector<1x1x8x8x4xbf16>
    %9 = vector.shape_cast %8 : vector<1x1x8x8x4xbf16> to vector<8x8x4xbf16>
    %10 = vector.shape_cast %9 : vector<8x8x4xbf16> to vector<64x4xbf16>
    %c1_12 = arith.constant 1 : index
    %c0_13 = arith.constant 0 : index
    %c0_14 = arith.constant 0 : index
    %11 = vector.load %arg5[%c1_12, %c0_13, %c0_14] : memref<27x4x128xbf16, #tpu.memory_space<vmem>>, vector<1x4x128xbf16>
    %12 = vector.shape_cast %11 : vector<1x4x128xbf16> to vector<4x128xbf16>
    %cst_15 = arith.constant dense<0.000000e+00> : vector<64x128xf32>
    %13 = tpu.matmul %10, %12, %cst_15 {dimension_numbers = #tpu.dot_dimension_numbers<[1], [0], [0], [1], [0, 0, 1, 1], [], []>} : vector<64x4xbf16>, vector<4x128xbf16>, vector<64x128xf32> -> vector<64x128xf32>
    %14 = arith.addf %7, %13 : vector<64x128xf32>
    %c0_16 = arith.constant 0 : index
    %c0_17 = arith.constant 0 : index
    %c0_18 = arith.constant 0 : index
    %c2 = arith.constant 2 : index
    %c0_19 = arith.constant 0 : index
    %15 = vector.load %arg2[%c0_16, %c0_17, %c0_18, %c2, %c0_19] : memref<1x1x10x10x4xbf16, #tpu.memory_space<vmem>>, vector<1x1x8x8x4xbf16>
    %16 = vector.shape_cast %15 : vector<1x1x8x8x4xbf16> to vector<8x8x4xbf16>
    %17 = vector.shape_cast %16 : vector<8x8x4xbf16> to vector<64x4xbf16>
    %c2_20 = arith.constant 2 : index
    %c0_21 = arith.constant 0 : index
    %c0_22 = arith.constant 0 : index
    %18 = vector.load %arg5[%c2_20, %c0_21, %c0_22] : memref<27x4x128xbf16, #tpu.memory_space<vmem>>, vector<1x4x128xbf16>
    %19 = vector.shape_cast %18 : vector<1x4x128xbf16> to vector<4x128xbf16>
    %cst_23 = arith.constant dense<0.000000e+00> : vector<64x128xf32>
    %20 = tpu.matmul %17, %19, %cst_23 {dimension_numbers = #tpu.dot_dimension_numbers<[1], [0], [0], [1], [0, 0, 1, 1], [], []>} : vector<64x4xbf16>, vector<4x128xbf16>, vector<64x128xf32> -> vector<64x128xf32>
    %21 = arith.addf %14, %20 : vector<64x128xf32>
    %c0_24 = arith.constant 0 : index
    %c0_25 = arith.constant 0 : index
    %c1_26 = arith.constant 1 : index
    %c0_27 = arith.constant 0 : index
    %c0_28 = arith.constant 0 : index
    %22 = vector.load %arg2[%c0_24, %c0_25, %c1_26, %c0_27, %c0_28] : memref<1x1x10x10x4xbf16, #tpu.memory_space<vmem>>, vector<1x1x8x8x4xbf16>
    %23 = vector.shape_cast %22 : vector<1x1x8x8x4xbf16> to vector<8x8x4xbf16>
    %24 = vector.shape_cast %23 : vector<8x8x4xbf16> to vector<64x4xbf16>
    %c3 = arith.constant 3 : index
    %c0_29 = arith.constant 0 : index
    %c0_30 = arith.constant 0 : index
    %25 = vector.load %arg5[%c3, %c0_29, %c0_30] : memref<27x4x128xbf16, #tpu.memory_space<vmem>>, vector<1x4x128xbf16>
    %26 = vector.shape_cast %25 : vector<1x4x128xbf16> to vector<4x128xbf16>
    %cst_31 = arith.constant dense<0.000000e+00> : vector<64x128xf32>
    %27 = tpu.matmul %24, %26, %cst_31 {dimension_numbers = #tpu.dot_dimension_numbers<[1], [0], [0], [1], [0, 0, 1, 1], [], []>} : vector<64x4xbf16>, vector<4x128xbf16>, vector<64x128xf32> -> vector<64x128xf32>
    %28 = arith.addf %21, %27 : vector<64x128xf32>
    %c0_32 = arith.constant 0 : index
    %c0_33 = arith.constant 0 : index
    %c1_34 = arith.constant 1 : index
    %c1_35 = arith.constant 1 : index
    %c0_36 = arith.constant 0 : index
    %29 = vector.load %arg2[%c0_32, %c0_33, %c1_34, %c1_35, %c0_36] : memref<1x1x10x10x4xbf16, #tpu.memory_space<vmem>>, vector<1x1x8x8x4xbf16>
    %30 = vector.shape_cast %29 : vector<1x1x8x8x4xbf16> to vector<8x8x4xbf16>
    %31 = vector.shape_cast %30 : vector<8x8x4xbf16> to vector<64x4xbf16>
    %c4 = arith.constant 4 : index
    %c0_37 = arith.constant 0 : index
    %c0_38 = arith.constant 0 : index
    %32 = vector.load %arg5[%c4, %c0_37, %c0_38] : memref<27x4x128xbf16, #tpu.memory_space<vmem>>, vector<1x4x128xbf16>
    %33 = vector.shape_cast %32 : vector<1x4x128xbf16> to vector<4x128xbf16>
    %cst_39 = arith.constant dense<0.000000e+00> : vector<64x128xf32>
    %34 = tpu.matmul %31, %33, %cst_39 {dimension_numbers = #tpu.dot_dimension_numbers<[1], [0], [0], [1], [0, 0, 1, 1], [], []>} : vector<64x4xbf16>, vector<4x128xbf16>, vector<64x128xf32> -> vector<64x128xf32>
    %35 = arith.addf %28, %34 : vector<64x128xf32>
    %c0_40 = arith.constant 0 : index
    %c0_41 = arith.constant 0 : index
    %c1_42 = arith.constant 1 : index
    %c2_43 = arith.constant 2 : index
    %c0_44 = arith.constant 0 : index
    %36 = vector.load %arg2[%c0_40, %c0_41, %c1_42, %c2_43, %c0_44] : memref<1x1x10x10x4xbf16, #tpu.memory_space<vmem>>, vector<1x1x8x8x4xbf16>
    %37 = vector.shape_cast %36 : vector<1x1x8x8x4xbf16> to vector<8x8x4xbf16>
    %38 = vector.shape_cast %37 : vector<8x8x4xbf16> to vector<64x4xbf16>
    %c5 = arith.constant 5 : index
    %c0_45 = arith.constant 0 : index
    %c0_46 = arith.constant 0 : index
    %39 = vector.load %arg5[%c5, %c0_45, %c0_46] : memref<27x4x128xbf16, #tpu.memory_space<vmem>>, vector<1x4x128xbf16>
    %40 = vector.shape_cast %39 : vector<1x4x128xbf16> to vector<4x128xbf16>
    %cst_47 = arith.constant dense<0.000000e+00> : vector<64x128xf32>
    %41 = tpu.matmul %38, %40, %cst_47 {dimension_numbers = #tpu.dot_dimension_numbers<[1], [0], [0], [1], [0, 0, 1, 1], [], []>} : vector<64x4xbf16>, vector<4x128xbf16>, vector<64x128xf32> -> vector<64x128xf32>
    %42 = arith.addf %35, %41 : vector<64x128xf32>
    %c0_48 = arith.constant 0 : index
    %c0_49 = arith.constant 0 : index
    %c2_50 = arith.constant 2 : index
    %c0_51 = arith.constant 0 : index
    %c0_52 = arith.constant 0 : index
    %43 = vector.load %arg2[%c0_48, %c0_49, %c2_50, %c0_51, %c0_52] : memref<1x1x10x10x4xbf16, #tpu.memory_space<vmem>>, vector<1x1x8x8x4xbf16>
    %44 = vector.shape_cast %43 : vector<1x1x8x8x4xbf16> to vector<8x8x4xbf16>
    %45 = vector.shape_cast %44 : vector<8x8x4xbf16> to vector<64x4xbf16>
    %c6 = arith.constant 6 : index
    %c0_53 = arith.constant 0 : index
    %c0_54 = arith.constant 0 : index
    %46 = vector.load %arg5[%c6, %c0_53, %c0_54] : memref<27x4x128xbf16, #tpu.memory_space<vmem>>, vector<1x4x128xbf16>
    %47 = vector.shape_cast %46 : vector<1x4x128xbf16> to vector<4x128xbf16>
    %cst_55 = arith.constant dense<0.000000e+00> : vector<64x128xf32>
    %48 = tpu.matmul %45, %47, %cst_55 {dimension_numbers = #tpu.dot_dimension_numbers<[1], [0], [0], [1], [0, 0, 1, 1], [], []>} : vector<64x4xbf16>, vector<4x128xbf16>, vector<64x128xf32> -> vector<64x128xf32>
    %49 = arith.addf %42, %48 : vector<64x128xf32>
    %c0_56 = arith.constant 0 : index
    %c0_57 = arith.constant 0 : index
    %c2_58 = arith.constant 2 : index
    %c1_59 = arith.constant 1 : index
    %c0_60 = arith.constant 0 : index
    %50 = vector.load %arg2[%c0_56, %c0_57, %c2_58, %c1_59, %c0_60] : memref<1x1x10x10x4xbf16, #tpu.memory_space<vmem>>, vector<1x1x8x8x4xbf16>
    %51 = vector.shape_cast %50 : vector<1x1x8x8x4xbf16> to vector<8x8x4xbf16>
    %52 = vector.shape_cast %51 : vector<8x8x4xbf16> to vector<64x4xbf16>
    %c7 = arith.constant 7 : index
    %c0_61 = arith.constant 0 : index
    %c0_62 = arith.constant 0 : index
    %53 = vector.load %arg5[%c7, %c0_61, %c0_62] : memref<27x4x128xbf16, #tpu.memory_space<vmem>>, vector<1x4x128xbf16>
    %54 = vector.shape_cast %53 : vector<1x4x128xbf16> to vector<4x128xbf16>
    %cst_63 = arith.constant dense<0.000000e+00> : vector<64x128xf32>
    %55 = tpu.matmul %52, %54, %cst_63 {dimension_numbers = #tpu.dot_dimension_numbers<[1], [0], [0], [1], [0, 0, 1, 1], [], []>} : vector<64x4xbf16>, vector<4x128xbf16>, vector<64x128xf32> -> vector<64x128xf32>
    %56 = arith.addf %49, %55 : vector<64x128xf32>
    %c0_64 = arith.constant 0 : index
    %c0_65 = arith.constant 0 : index
    %c2_66 = arith.constant 2 : index
    %c2_67 = arith.constant 2 : index
    %c0_68 = arith.constant 0 : index
    %57 = vector.load %arg2[%c0_64, %c0_65, %c2_66, %c2_67, %c0_68] : memref<1x1x10x10x4xbf16, #tpu.memory_space<vmem>>, vector<1x1x8x8x4xbf16>
    %58 = vector.shape_cast %57 : vector<1x1x8x8x4xbf16> to vector<8x8x4xbf16>
    %59 = vector.shape_cast %58 : vector<8x8x4xbf16> to vector<64x4xbf16>
    %c8 = arith.constant 8 : index
    %c0_69 = arith.constant 0 : index
    %c0_70 = arith.constant 0 : index
    %60 = vector.load %arg5[%c8, %c0_69, %c0_70] : memref<27x4x128xbf16, #tpu.memory_space<vmem>>, vector<1x4x128xbf16>
    %61 = vector.shape_cast %60 : vector<1x4x128xbf16> to vector<4x128xbf16>
    %cst_71 = arith.constant dense<0.000000e+00> : vector<64x128xf32>
    %62 = tpu.matmul %59, %61, %cst_71 {dimension_numbers = #tpu.dot_dimension_numbers<[1], [0], [0], [1], [0, 0, 1, 1], [], []>} : vector<64x4xbf16>, vector<4x128xbf16>, vector<64x128xf32> -> vector<64x128xf32>
    %63 = arith.addf %56, %62 : vector<64x128xf32>
    %c0_72 = arith.constant 0 : index
    %c0_73 = arith.constant 0 : index
    %c0_74 = arith.constant 0 : index
    %c0_75 = arith.constant 0 : index
    %c0_76 = arith.constant 0 : index
    %64 = vector.load %arg3[%c0_72, %c0_73, %c0_74, %c0_75, %c0_76] : memref<1x1x10x10x4xbf16, #tpu.memory_space<vmem>>, vector<1x1x8x8x4xbf16>
    %65 = vector.shape_cast %64 : vector<1x1x8x8x4xbf16> to vector<8x8x4xbf16>
    %66 = vector.shape_cast %65 : vector<8x8x4xbf16> to vector<64x4xbf16>
    %c9 = arith.constant 9 : index
    %c0_77 = arith.constant 0 : index
    %c0_78 = arith.constant 0 : index
    %67 = vector.load %arg5[%c9, %c0_77, %c0_78] : memref<27x4x128xbf16, #tpu.memory_space<vmem>>, vector<1x4x128xbf16>
    %68 = vector.shape_cast %67 : vector<1x4x128xbf16> to vector<4x128xbf16>
    %cst_79 = arith.constant dense<0.000000e+00> : vector<64x128xf32>
    %69 = tpu.matmul %66, %68, %cst_79 {dimension_numbers = #tpu.dot_dimension_numbers<[1], [0], [0], [1], [0, 0, 1, 1], [], []>} : vector<64x4xbf16>, vector<4x128xbf16>, vector<64x128xf32> -> vector<64x128xf32>
    %70 = arith.addf %63, %69 : vector<64x128xf32>
    %c0_80 = arith.constant 0 : index
    %c0_81 = arith.constant 0 : index
    %c0_82 = arith.constant 0 : index
    %c1_83 = arith.constant 1 : index
    %c0_84 = arith.constant 0 : index
    %71 = vector.load %arg3[%c0_80, %c0_81, %c0_82, %c1_83, %c0_84] : memref<1x1x10x10x4xbf16, #tpu.memory_space<vmem>>, vector<1x1x8x8x4xbf16>
    %72 = vector.shape_cast %71 : vector<1x1x8x8x4xbf16> to vector<8x8x4xbf16>
    %73 = vector.shape_cast %72 : vector<8x8x4xbf16> to vector<64x4xbf16>
    %c10 = arith.constant 10 : index
    %c0_85 = arith.constant 0 : index
    %c0_86 = arith.constant 0 : index
    %74 = vector.load %arg5[%c10, %c0_85, %c0_86] : memref<27x4x128xbf16, #tpu.memory_space<vmem>>, vector<1x4x128xbf16>
    %75 = vector.shape_cast %74 : vector<1x4x128xbf16> to vector<4x128xbf16>
    %cst_87 = arith.constant dense<0.000000e+00> : vector<64x128xf32>
    %76 = tpu.matmul %73, %75, %cst_87 {dimension_numbers = #tpu.dot_dimension_numbers<[1], [0], [0], [1], [0, 0, 1, 1], [], []>} : vector<64x4xbf16>, vector<4x128xbf16>, vector<64x128xf32> -> vector<64x128xf32>
    %77 = arith.addf %70, %76 : vector<64x128xf32>
    %c0_88 = arith.constant 0 : index
    %c0_89 = arith.constant 0 : index
    %c0_90 = arith.constant 0 : index
    %c2_91 = arith.constant 2 : index
    %c0_92 = arith.constant 0 : index
    %78 = vector.load %arg3[%c0_88, %c0_89, %c0_90, %c2_91, %c0_92] : memref<1x1x10x10x4xbf16, #tpu.memory_space<vmem>>, vector<1x1x8x8x4xbf16>
    %79 = vector.shape_cast %78 : vector<1x1x8x8x4xbf16> to vector<8x8x4xbf16>
    %80 = vector.shape_cast %79 : vector<8x8x4xbf16> to vector<64x4xbf16>
    %c11 = arith.constant 11 : index
    %c0_93 = arith.constant 0 : index
    %c0_94 = arith.constant 0 : index
    %81 = vector.load %arg5[%c11, %c0_93, %c0_94] : memref<27x4x128xbf16, #tpu.memory_space<vmem>>, vector<1x4x128xbf16>
    %82 = vector.shape_cast %81 : vector<1x4x128xbf16> to vector<4x128xbf16>
    %cst_95 = arith.constant dense<0.000000e+00> : vector<64x128xf32>
    %83 = tpu.matmul %80, %82, %cst_95 {dimension_numbers = #tpu.dot_dimension_numbers<[1], [0], [0], [1], [0, 0, 1, 1], [], []>} : vector<64x4xbf16>, vector<4x128xbf16>, vector<64x128xf32> -> vector<64x128xf32>
    %84 = arith.addf %77, %83 : vector<64x128xf32>
    %c0_96 = arith.constant 0 : index
    %c0_97 = arith.constant 0 : index
    %c1_98 = arith.constant 1 : index
    %c0_99 = arith.constant 0 : index
    %c0_100 = arith.constant 0 : index
    %85 = vector.load %arg3[%c0_96, %c0_97, %c1_98, %c0_99, %c0_100] : memref<1x1x10x10x4xbf16, #tpu.memory_space<vmem>>, vector<1x1x8x8x4xbf16>
    %86 = vector.shape_cast %85 : vector<1x1x8x8x4xbf16> to vector<8x8x4xbf16>
    %87 = vector.shape_cast %86 : vector<8x8x4xbf16> to vector<64x4xbf16>
    %c12 = arith.constant 12 : index
    %c0_101 = arith.constant 0 : index
    %c0_102 = arith.constant 0 : index
    %88 = vector.load %arg5[%c12, %c0_101, %c0_102] : memref<27x4x128xbf16, #tpu.memory_space<vmem>>, vector<1x4x128xbf16>
    %89 = vector.shape_cast %88 : vector<1x4x128xbf16> to vector<4x128xbf16>
    %cst_103 = arith.constant dense<0.000000e+00> : vector<64x128xf32>
    %90 = tpu.matmul %87, %89, %cst_103 {dimension_numbers = #tpu.dot_dimension_numbers<[1], [0], [0], [1], [0, 0, 1, 1], [], []>} : vector<64x4xbf16>, vector<4x128xbf16>, vector<64x128xf32> -> vector<64x128xf32>
    %91 = arith.addf %84, %90 : vector<64x128xf32>
    %c0_104 = arith.constant 0 : index
    %c0_105 = arith.constant 0 : index
    %c1_106 = arith.constant 1 : index
    %c1_107 = arith.constant 1 : index
    %c0_108 = arith.constant 0 : index
    %92 = vector.load %arg3[%c0_104, %c0_105, %c1_106, %c1_107, %c0_108] : memref<1x1x10x10x4xbf16, #tpu.memory_space<vmem>>, vector<1x1x8x8x4xbf16>
    %93 = vector.shape_cast %92 : vector<1x1x8x8x4xbf16> to vector<8x8x4xbf16>
    %94 = vector.shape_cast %93 : vector<8x8x4xbf16> to vector<64x4xbf16>
    %c13 = arith.constant 13 : index
    %c0_109 = arith.constant 0 : index
    %c0_110 = arith.constant 0 : index
    %95 = vector.load %arg5[%c13, %c0_109, %c0_110] : memref<27x4x128xbf16, #tpu.memory_space<vmem>>, vector<1x4x128xbf16>
    %96 = vector.shape_cast %95 : vector<1x4x128xbf16> to vector<4x128xbf16>
    %cst_111 = arith.constant dense<0.000000e+00> : vector<64x128xf32>
    %97 = tpu.matmul %94, %96, %cst_111 {dimension_numbers = #tpu.dot_dimension_numbers<[1], [0], [0], [1], [0, 0, 1, 1], [], []>} : vector<64x4xbf16>, vector<4x128xbf16>, vector<64x128xf32> -> vector<64x128xf32>
    %98 = arith.addf %91, %97 : vector<64x128xf32>
    %c0_112 = arith.constant 0 : index
    %c0_113 = arith.constant 0 : index
    %c1_114 = arith.constant 1 : index
    %c2_115 = arith.constant 2 : index
    %c0_116 = arith.constant 0 : index
    %99 = vector.load %arg3[%c0_112, %c0_113, %c1_114, %c2_115, %c0_116] : memref<1x1x10x10x4xbf16, #tpu.memory_space<vmem>>, vector<1x1x8x8x4xbf16>
    %100 = vector.shape_cast %99 : vector<1x1x8x8x4xbf16> to vector<8x8x4xbf16>
    %101 = vector.shape_cast %100 : vector<8x8x4xbf16> to vector<64x4xbf16>
    %c14 = arith.constant 14 : index
    %c0_117 = arith.constant 0 : index
    %c0_118 = arith.constant 0 : index
    %102 = vector.load %arg5[%c14, %c0_117, %c0_118] : memref<27x4x128xbf16, #tpu.memory_space<vmem>>, vector<1x4x128xbf16>
    %103 = vector.shape_cast %102 : vector<1x4x128xbf16> to vector<4x128xbf16>
    %cst_119 = arith.constant dense<0.000000e+00> : vector<64x128xf32>
    %104 = tpu.matmul %101, %103, %cst_119 {dimension_numbers = #tpu.dot_dimension_numbers<[1], [0], [0], [1], [0, 0, 1, 1], [], []>} : vector<64x4xbf16>, vector<4x128xbf16>, vector<64x128xf32> -> vector<64x128xf32>
    %105 = arith.addf %98, %104 : vector<64x128xf32>
    %c0_120 = arith.constant 0 : index
    %c0_121 = arith.constant 0 : index
    %c2_122 = arith.constant 2 : index
    %c0_123 = arith.constant 0 : index
    %c0_124 = arith.constant 0 : index
    %106 = vector.load %arg3[%c0_120, %c0_121, %c2_122, %c0_123, %c0_124] : memref<1x1x10x10x4xbf16, #tpu.memory_space<vmem>>, vector<1x1x8x8x4xbf16>
    %107 = vector.shape_cast %106 : vector<1x1x8x8x4xbf16> to vector<8x8x4xbf16>
    %108 = vector.shape_cast %107 : vector<8x8x4xbf16> to vector<64x4xbf16>
    %c15 = arith.constant 15 : index
    %c0_125 = arith.constant 0 : index
    %c0_126 = arith.constant 0 : index
    %109 = vector.load %arg5[%c15, %c0_125, %c0_126] : memref<27x4x128xbf16, #tpu.memory_space<vmem>>, vector<1x4x128xbf16>
    %110 = vector.shape_cast %109 : vector<1x4x128xbf16> to vector<4x128xbf16>
    %cst_127 = arith.constant dense<0.000000e+00> : vector<64x128xf32>
    %111 = tpu.matmul %108, %110, %cst_127 {dimension_numbers = #tpu.dot_dimension_numbers<[1], [0], [0], [1], [0, 0, 1, 1], [], []>} : vector<64x4xbf16>, vector<4x128xbf16>, vector<64x128xf32> -> vector<64x128xf32>
    %112 = arith.addf %105, %111 : vector<64x128xf32>
    %c0_128 = arith.constant 0 : index
    %c0_129 = arith.constant 0 : index
    %c2_130 = arith.constant 2 : index
    %c1_131 = arith.constant 1 : index
    %c0_132 = arith.constant 0 : index
    %113 = vector.load %arg3[%c0_128, %c0_129, %c2_130, %c1_131, %c0_132] : memref<1x1x10x10x4xbf16, #tpu.memory_space<vmem>>, vector<1x1x8x8x4xbf16>
    %114 = vector.shape_cast %113 : vector<1x1x8x8x4xbf16> to vector<8x8x4xbf16>
    %115 = vector.shape_cast %114 : vector<8x8x4xbf16> to vector<64x4xbf16>
    %c16 = arith.constant 16 : index
    %c0_133 = arith.constant 0 : index
    %c0_134 = arith.constant 0 : index
    %116 = vector.load %arg5[%c16, %c0_133, %c0_134] : memref<27x4x128xbf16, #tpu.memory_space<vmem>>, vector<1x4x128xbf16>
    %117 = vector.shape_cast %116 : vector<1x4x128xbf16> to vector<4x128xbf16>
    %cst_135 = arith.constant dense<0.000000e+00> : vector<64x128xf32>
    %118 = tpu.matmul %115, %117, %cst_135 {dimension_numbers = #tpu.dot_dimension_numbers<[1], [0], [0], [1], [0, 0, 1, 1], [], []>} : vector<64x4xbf16>, vector<4x128xbf16>, vector<64x128xf32> -> vector<64x128xf32>
    %119 = arith.addf %112, %118 : vector<64x128xf32>
    %c0_136 = arith.constant 0 : index
    %c0_137 = arith.constant 0 : index
    %c2_138 = arith.constant 2 : index
    %c2_139 = arith.constant 2 : index
    %c0_140 = arith.constant 0 : index
    %120 = vector.load %arg3[%c0_136, %c0_137, %c2_138, %c2_139, %c0_140] : memref<1x1x10x10x4xbf16, #tpu.memory_space<vmem>>, vector<1x1x8x8x4xbf16>
    %121 = vector.shape_cast %120 : vector<1x1x8x8x4xbf16> to vector<8x8x4xbf16>
    %122 = vector.shape_cast %121 : vector<8x8x4xbf16> to vector<64x4xbf16>
    %c17 = arith.constant 17 : index
    %c0_141 = arith.constant 0 : index
    %c0_142 = arith.constant 0 : index
    %123 = vector.load %arg5[%c17, %c0_141, %c0_142] : memref<27x4x128xbf16, #tpu.memory_space<vmem>>, vector<1x4x128xbf16>
    %124 = vector.shape_cast %123 : vector<1x4x128xbf16> to vector<4x128xbf16>
    %cst_143 = arith.constant dense<0.000000e+00> : vector<64x128xf32>
    %125 = tpu.matmul %122, %124, %cst_143 {dimension_numbers = #tpu.dot_dimension_numbers<[1], [0], [0], [1], [0, 0, 1, 1], [], []>} : vector<64x4xbf16>, vector<4x128xbf16>, vector<64x128xf32> -> vector<64x128xf32>
    %126 = arith.addf %119, %125 : vector<64x128xf32>
    %c0_144 = arith.constant 0 : index
    %c0_145 = arith.constant 0 : index
    %c0_146 = arith.constant 0 : index
    %c0_147 = arith.constant 0 : index
    %c0_148 = arith.constant 0 : index
    %127 = vector.load %arg4[%c0_144, %c0_145, %c0_146, %c0_147, %c0_148] : memref<1x1x10x10x4xbf16, #tpu.memory_space<vmem>>, vector<1x1x8x8x4xbf16>
    %128 = vector.shape_cast %127 : vector<1x1x8x8x4xbf16> to vector<8x8x4xbf16>
    %129 = vector.shape_cast %128 : vector<8x8x4xbf16> to vector<64x4xbf16>
    %c18 = arith.constant 18 : index
    %c0_149 = arith.constant 0 : index
    %c0_150 = arith.constant 0 : index
    %130 = vector.load %arg5[%c18, %c0_149, %c0_150] : memref<27x4x128xbf16, #tpu.memory_space<vmem>>, vector<1x4x128xbf16>
    %131 = vector.shape_cast %130 : vector<1x4x128xbf16> to vector<4x128xbf16>
    %cst_151 = arith.constant dense<0.000000e+00> : vector<64x128xf32>
    %132 = tpu.matmul %129, %131, %cst_151 {dimension_numbers = #tpu.dot_dimension_numbers<[1], [0], [0], [1], [0, 0, 1, 1], [], []>} : vector<64x4xbf16>, vector<4x128xbf16>, vector<64x128xf32> -> vector<64x128xf32>
    %133 = arith.addf %126, %132 : vector<64x128xf32>
    %c0_152 = arith.constant 0 : index
    %c0_153 = arith.constant 0 : index
    %c0_154 = arith.constant 0 : index
    %c1_155 = arith.constant 1 : index
    %c0_156 = arith.constant 0 : index
    %134 = vector.load %arg4[%c0_152, %c0_153, %c0_154, %c1_155, %c0_156] : memref<1x1x10x10x4xbf16, #tpu.memory_space<vmem>>, vector<1x1x8x8x4xbf16>
    %135 = vector.shape_cast %134 : vector<1x1x8x8x4xbf16> to vector<8x8x4xbf16>
    %136 = vector.shape_cast %135 : vector<8x8x4xbf16> to vector<64x4xbf16>
    %c19 = arith.constant 19 : index
    %c0_157 = arith.constant 0 : index
    %c0_158 = arith.constant 0 : index
    %137 = vector.load %arg5[%c19, %c0_157, %c0_158] : memref<27x4x128xbf16, #tpu.memory_space<vmem>>, vector<1x4x128xbf16>
    %138 = vector.shape_cast %137 : vector<1x4x128xbf16> to vector<4x128xbf16>
    %cst_159 = arith.constant dense<0.000000e+00> : vector<64x128xf32>
    %139 = tpu.matmul %136, %138, %cst_159 {dimension_numbers = #tpu.dot_dimension_numbers<[1], [0], [0], [1], [0, 0, 1, 1], [], []>} : vector<64x4xbf16>, vector<4x128xbf16>, vector<64x128xf32> -> vector<64x128xf32>
    %140 = arith.addf %133, %139 : vector<64x128xf32>
    %c0_160 = arith.constant 0 : index
    %c0_161 = arith.constant 0 : index
    %c0_162 = arith.constant 0 : index
    %c2_163 = arith.constant 2 : index
    %c0_164 = arith.constant 0 : index
    %141 = vector.load %arg4[%c0_160, %c0_161, %c0_162, %c2_163, %c0_164] : memref<1x1x10x10x4xbf16, #tpu.memory_space<vmem>>, vector<1x1x8x8x4xbf16>
    %142 = vector.shape_cast %141 : vector<1x1x8x8x4xbf16> to vector<8x8x4xbf16>
    %143 = vector.shape_cast %142 : vector<8x8x4xbf16> to vector<64x4xbf16>
    %c20 = arith.constant 20 : index
    %c0_165 = arith.constant 0 : index
    %c0_166 = arith.constant 0 : index
    %144 = vector.load %arg5[%c20, %c0_165, %c0_166] : memref<27x4x128xbf16, #tpu.memory_space<vmem>>, vector<1x4x128xbf16>
    %145 = vector.shape_cast %144 : vector<1x4x128xbf16> to vector<4x128xbf16>
    %cst_167 = arith.constant dense<0.000000e+00> : vector<64x128xf32>
    %146 = tpu.matmul %143, %145, %cst_167 {dimension_numbers = #tpu.dot_dimension_numbers<[1], [0], [0], [1], [0, 0, 1, 1], [], []>} : vector<64x4xbf16>, vector<4x128xbf16>, vector<64x128xf32> -> vector<64x128xf32>
    %147 = arith.addf %140, %146 : vector<64x128xf32>
    %c0_168 = arith.constant 0 : index
    %c0_169 = arith.constant 0 : index
    %c1_170 = arith.constant 1 : index
    %c0_171 = arith.constant 0 : index
    %c0_172 = arith.constant 0 : index
    %148 = vector.load %arg4[%c0_168, %c0_169, %c1_170, %c0_171, %c0_172] : memref<1x1x10x10x4xbf16, #tpu.memory_space<vmem>>, vector<1x1x8x8x4xbf16>
    %149 = vector.shape_cast %148 : vector<1x1x8x8x4xbf16> to vector<8x8x4xbf16>
    %150 = vector.shape_cast %149 : vector<8x8x4xbf16> to vector<64x4xbf16>
    %c21 = arith.constant 21 : index
    %c0_173 = arith.constant 0 : index
    %c0_174 = arith.constant 0 : index
    %151 = vector.load %arg5[%c21, %c0_173, %c0_174] : memref<27x4x128xbf16, #tpu.memory_space<vmem>>, vector<1x4x128xbf16>
    %152 = vector.shape_cast %151 : vector<1x4x128xbf16> to vector<4x128xbf16>
    %cst_175 = arith.constant dense<0.000000e+00> : vector<64x128xf32>
    %153 = tpu.matmul %150, %152, %cst_175 {dimension_numbers = #tpu.dot_dimension_numbers<[1], [0], [0], [1], [0, 0, 1, 1], [], []>} : vector<64x4xbf16>, vector<4x128xbf16>, vector<64x128xf32> -> vector<64x128xf32>
    %154 = arith.addf %147, %153 : vector<64x128xf32>
    %c0_176 = arith.constant 0 : index
    %c0_177 = arith.constant 0 : index
    %c1_178 = arith.constant 1 : index
    %c1_179 = arith.constant 1 : index
    %c0_180 = arith.constant 0 : index
    %155 = vector.load %arg4[%c0_176, %c0_177, %c1_178, %c1_179, %c0_180] : memref<1x1x10x10x4xbf16, #tpu.memory_space<vmem>>, vector<1x1x8x8x4xbf16>
    %156 = vector.shape_cast %155 : vector<1x1x8x8x4xbf16> to vector<8x8x4xbf16>
    %157 = vector.shape_cast %156 : vector<8x8x4xbf16> to vector<64x4xbf16>
    %c22 = arith.constant 22 : index
    %c0_181 = arith.constant 0 : index
    %c0_182 = arith.constant 0 : index
    %158 = vector.load %arg5[%c22, %c0_181, %c0_182] : memref<27x4x128xbf16, #tpu.memory_space<vmem>>, vector<1x4x128xbf16>
    %159 = vector.shape_cast %158 : vector<1x4x128xbf16> to vector<4x128xbf16>
    %cst_183 = arith.constant dense<0.000000e+00> : vector<64x128xf32>
    %160 = tpu.matmul %157, %159, %cst_183 {dimension_numbers = #tpu.dot_dimension_numbers<[1], [0], [0], [1], [0, 0, 1, 1], [], []>} : vector<64x4xbf16>, vector<4x128xbf16>, vector<64x128xf32> -> vector<64x128xf32>
    %161 = arith.addf %154, %160 : vector<64x128xf32>
    %c0_184 = arith.constant 0 : index
    %c0_185 = arith.constant 0 : index
    %c1_186 = arith.constant 1 : index
    %c2_187 = arith.constant 2 : index
    %c0_188 = arith.constant 0 : index
    %162 = vector.load %arg4[%c0_184, %c0_185, %c1_186, %c2_187, %c0_188] : memref<1x1x10x10x4xbf16, #tpu.memory_space<vmem>>, vector<1x1x8x8x4xbf16>
    %163 = vector.shape_cast %162 : vector<1x1x8x8x4xbf16> to vector<8x8x4xbf16>
    %164 = vector.shape_cast %163 : vector<8x8x4xbf16> to vector<64x4xbf16>
    %c23 = arith.constant 23 : index
    %c0_189 = arith.constant 0 : index
    %c0_190 = arith.constant 0 : index
    %165 = vector.load %arg5[%c23, %c0_189, %c0_190] : memref<27x4x128xbf16, #tpu.memory_space<vmem>>, vector<1x4x128xbf16>
    %166 = vector.shape_cast %165 : vector<1x4x128xbf16> to vector<4x128xbf16>
    %cst_191 = arith.constant dense<0.000000e+00> : vector<64x128xf32>
    %167 = tpu.matmul %164, %166, %cst_191 {dimension_numbers = #tpu.dot_dimension_numbers<[1], [0], [0], [1], [0, 0, 1, 1], [], []>} : vector<64x4xbf16>, vector<4x128xbf16>, vector<64x128xf32> -> vector<64x128xf32>
    %168 = arith.addf %161, %167 : vector<64x128xf32>
    %c0_192 = arith.constant 0 : index
    %c0_193 = arith.constant 0 : index
    %c2_194 = arith.constant 2 : index
    %c0_195 = arith.constant 0 : index
    %c0_196 = arith.constant 0 : index
    %169 = vector.load %arg4[%c0_192, %c0_193, %c2_194, %c0_195, %c0_196] : memref<1x1x10x10x4xbf16, #tpu.memory_space<vmem>>, vector<1x1x8x8x4xbf16>
    %170 = vector.shape_cast %169 : vector<1x1x8x8x4xbf16> to vector<8x8x4xbf16>
    %171 = vector.shape_cast %170 : vector<8x8x4xbf16> to vector<64x4xbf16>
    %c24 = arith.constant 24 : index
    %c0_197 = arith.constant 0 : index
    %c0_198 = arith.constant 0 : index
    %172 = vector.load %arg5[%c24, %c0_197, %c0_198] : memref<27x4x128xbf16, #tpu.memory_space<vmem>>, vector<1x4x128xbf16>
    %173 = vector.shape_cast %172 : vector<1x4x128xbf16> to vector<4x128xbf16>
    %cst_199 = arith.constant dense<0.000000e+00> : vector<64x128xf32>
    %174 = tpu.matmul %171, %173, %cst_199 {dimension_numbers = #tpu.dot_dimension_numbers<[1], [0], [0], [1], [0, 0, 1, 1], [], []>} : vector<64x4xbf16>, vector<4x128xbf16>, vector<64x128xf32> -> vector<64x128xf32>
    %175 = arith.addf %168, %174 : vector<64x128xf32>
    %c0_200 = arith.constant 0 : index
    %c0_201 = arith.constant 0 : index
    %c2_202 = arith.constant 2 : index
    %c1_203 = arith.constant 1 : index
    %c0_204 = arith.constant 0 : index
    %176 = vector.load %arg4[%c0_200, %c0_201, %c2_202, %c1_203, %c0_204] : memref<1x1x10x10x4xbf16, #tpu.memory_space<vmem>>, vector<1x1x8x8x4xbf16>
    %177 = vector.shape_cast %176 : vector<1x1x8x8x4xbf16> to vector<8x8x4xbf16>
    %178 = vector.shape_cast %177 : vector<8x8x4xbf16> to vector<64x4xbf16>
    %c25 = arith.constant 25 : index
    %c0_205 = arith.constant 0 : index
    %c0_206 = arith.constant 0 : index
    %179 = vector.load %arg5[%c25, %c0_205, %c0_206] : memref<27x4x128xbf16, #tpu.memory_space<vmem>>, vector<1x4x128xbf16>
    %180 = vector.shape_cast %179 : vector<1x4x128xbf16> to vector<4x128xbf16>
    %cst_207 = arith.constant dense<0.000000e+00> : vector<64x128xf32>
    %181 = tpu.matmul %178, %180, %cst_207 {dimension_numbers = #tpu.dot_dimension_numbers<[1], [0], [0], [1], [0, 0, 1, 1], [], []>} : vector<64x4xbf16>, vector<4x128xbf16>, vector<64x128xf32> -> vector<64x128xf32>
    %182 = arith.addf %175, %181 : vector<64x128xf32>
    %c0_208 = arith.constant 0 : index
    %c0_209 = arith.constant 0 : index
    %c2_210 = arith.constant 2 : index
    %c2_211 = arith.constant 2 : index
    %c0_212 = arith.constant 0 : index
    %183 = vector.load %arg4[%c0_208, %c0_209, %c2_210, %c2_211, %c0_212] : memref<1x1x10x10x4xbf16, #tpu.memory_space<vmem>>, vector<1x1x8x8x4xbf16>
    %184 = vector.shape_cast %183 : vector<1x1x8x8x4xbf16> to vector<8x8x4xbf16>
    %185 = vector.shape_cast %184 : vector<8x8x4xbf16> to vector<64x4xbf16>
    %c26 = arith.constant 26 : index
    %c0_213 = arith.constant 0 : index
    %c0_214 = arith.constant 0 : index
    %186 = vector.load %arg5[%c26, %c0_213, %c0_214] : memref<27x4x128xbf16, #tpu.memory_space<vmem>>, vector<1x4x128xbf16>
    %187 = vector.shape_cast %186 : vector<1x4x128xbf16> to vector<4x128xbf16>
    %cst_215 = arith.constant dense<0.000000e+00> : vector<64x128xf32>
    %188 = tpu.matmul %185, %187, %cst_215 {dimension_numbers = #tpu.dot_dimension_numbers<[1], [0], [0], [1], [0, 0, 1, 1], [], []>} : vector<64x4xbf16>, vector<4x128xbf16>, vector<64x128xf32> -> vector<64x128xf32>
    %189 = arith.addf %182, %188 : vector<64x128xf32>
    %cst_216 = arith.constant dense<0.000000e+00> : vector<128xf32>
    %190 = vector.multi_reduction <add>, %189, %cst_216 [0] : vector<64x128xf32> to vector<128xf32>
    %191 = vector.shape_cast %190 : vector<128xf32> to vector<1x128xf32>
    %c0_217 = arith.constant 0 : index
    %c0_218 = arith.constant 0 : index
    %c0_219 = arith.constant 0 : index
    %c0_220 = arith.constant 0 : index
    %192 = vector.load %arg7[%c0_217, %c0_218, %c0_219, %c0_220] : memref<1x1x2x128xf32, #tpu.memory_space<vmem>>, vector<1x1x1x128xf32>
    %193 = vector.shape_cast %192 : vector<1x1x1x128xf32> to vector<1x128xf32>
    %194 = vector.shape_cast %191 : vector<1x128xf32> to vector<1x1x1x128xf32>
    tpu.vector_store %arg7[%c0_217, %c0_218, %c0_219, %c0_220], %194 {strides = array<i32>} : memref<1x1x2x128xf32, #tpu.memory_space<vmem>>, vector<1x1x1x128xf32>,
    %195 = arith.mulf %189, %189 : vector<64x128xf32>
    %cst_221 = arith.constant dense<0.000000e+00> : vector<128xf32>
    %196 = vector.multi_reduction <add>, %195, %cst_221 [0] : vector<64x128xf32> to vector<128xf32>
    %197 = vector.shape_cast %196 : vector<128xf32> to vector<1x128xf32>
    %c0_222 = arith.constant 0 : index
    %c0_223 = arith.constant 0 : index
    %c1_224 = arith.constant 1 : index
    %c0_225 = arith.constant 0 : index
    %198 = vector.load %arg7[%c0_222, %c0_223, %c1_224, %c0_225] : memref<1x1x2x128xf32, #tpu.memory_space<vmem>>, vector<1x1x1x128xf32>
    %199 = vector.shape_cast %198 : vector<1x1x1x128xf32> to vector<1x128xf32>
    %200 = vector.shape_cast %197 : vector<1x128xf32> to vector<1x1x1x128xf32>
    tpu.vector_store %arg7[%c0_222, %c0_223, %c1_224, %c0_225], %200 {strides = array<i32>} : memref<1x1x2x128xf32, #tpu.memory_space<vmem>>, vector<1x1x1x128xf32>,
    %201 = vector.shape_cast %189 : vector<64x128xf32> to vector<1x1x8x8x128xf32>
    %202 = arith.truncf %201 : vector<1x1x8x8x128xf32> to vector<1x1x8x8x128xbf16>
    %c0_226 = arith.constant 0 : index
    %c0_227 = arith.constant 0 : index
    %c0_228 = arith.constant 0 : index
    %c0_229 = arith.constant 0 : index
    %c0_230 = arith.constant 0 : index
    %203 = vector.load %arg6[%c0_226, %c0_227, %c0_228, %c0_229, %c0_230] : memref<1x1x8x8x128xbf16, #tpu.memory_space<vmem>>, vector<1x1x8x8x128xbf16>
    tpu.vector_store %arg6[%c0_226, %c0_227, %c0_228, %c0_229, %c0_230], %202 {strides = array<i32>} : memref<1x1x8x8x128xbf16, #tpu.memory_space<vmem>>, vector<1x1x8x8x128xbf16>,
    return
  }
  func.func @transform_0(%arg0: i32, %arg1: i32) -> (i32, i32, i32, i32, i32) {
    %c0_i32 = arith.constant 0 : i32
    %0 = arith.addi %arg1, %c0_i32 : i32
    %c0_i32_0 = arith.constant 0 : i32
    %c0_i32_1 = arith.constant 0 : i32
    %c0_i32_2 = arith.constant 0 : i32
    %c0_i32_3 = arith.constant 0 : i32
    return %arg0, %0, %c0_i32_0, %c0_i32_1, %c0_i32_2 : i32, i32, i32, i32, i32
  }
  func.func @transform_1(%arg0: i32, %arg1: i32) -> (i32, i32, i32, i32, i32) {
    %c1_i32 = arith.constant 1 : i32
    %0 = arith.addi %arg1, %c1_i32 : i32
    %c0_i32 = arith.constant 0 : i32
    %c0_i32_0 = arith.constant 0 : i32
    %c0_i32_1 = arith.constant 0 : i32
    %c0_i32_2 = arith.constant 0 : i32
    return %arg0, %0, %c0_i32, %c0_i32_0, %c0_i32_1 : i32, i32, i32, i32, i32
  }
  func.func @transform_2(%arg0: i32, %arg1: i32) -> (i32, i32, i32, i32, i32) {
    %c2_i32 = arith.constant 2 : i32
    %0 = arith.addi %arg1, %c2_i32 : i32
    %c0_i32 = arith.constant 0 : i32
    %c0_i32_0 = arith.constant 0 : i32
    %c0_i32_1 = arith.constant 0 : i32
    %c0_i32_2 = arith.constant 0 : i32
    return %arg0, %0, %c0_i32, %c0_i32_0, %c0_i32_1 : i32, i32, i32, i32, i32
  }
  func.func @transform_3(%arg0: i32, %arg1: i32) -> (i32, i32, i32) {
    %c0_i32 = arith.constant 0 : i32
    %c0_i32_0 = arith.constant 0 : i32
    %c0_i32_1 = arith.constant 0 : i32
    %c0_i32_2 = arith.constant 0 : i32
    return %c0_i32, %c0_i32_0, %c0_i32_1 : i32, i32, i32
  }
  func.func @transform_4(%arg0: i32, %arg1: i32) -> (i32, i32, i32, i32, i32) {
    %c0_i32 = arith.constant 0 : i32
    %c0_i32_0 = arith.constant 0 : i32
    %c0_i32_1 = arith.constant 0 : i32
    %c0_i32_2 = arith.constant 0 : i32
    return %arg0, %arg1, %c0_i32, %c0_i32_0, %c0_i32_1 : i32, i32, i32, i32, i32
  }
  func.func @transform_5(%arg0: i32, %arg1: i32) -> (i32, i32, i32, i32) {
    %c0_i32 = arith.constant 0 : i32
    %c0_i32_0 = arith.constant 0 : i32
    %c0_i32_1 = arith.constant 0 : i32
    return %arg0, %arg1, %c0_i32, %c0_i32_0 : i32, i32, i32, i32
  }
}

module attributes {stable_mosaic.version = 11 : i64} {
  func.func @kernel(%arg0: i32, %arg1: i32, %arg2: memref<1x1x10x10x128xbf16, #tpu.memory_space<vmem>>, %arg3: memref<1x1x10x10x128xbf16, #tpu.memory_space<vmem>>, %arg4: memref<1x1x10x10x128xbf16, #tpu.memory_space<vmem>>, %arg5: memref<1x128xf32, #tpu.memory_space<vmem>>, %arg6: memref<1x128xf32, #tpu.memory_space<vmem>>, %arg7: memref<27x128x128xbf16, #tpu.memory_space<vmem>>, %arg8: memref<1x1x8x8x128xbf16, #tpu.memory_space<vmem>>, %arg9: memref<1x1x2x128xf32, #tpu.memory_space<vmem>>, %arg10: memref<10x10x128xbf16, #tpu.memory_space<vmem>>) attributes {dimension_semantics = [#tpu.dimension_semantics<parallel>, #tpu.dimension_semantics<parallel>], iteration_bounds = array<i64: 2, 8>, scalar_prefetch = 0 : i64, scratch_operands = 1 : i64, tpu.core_type = #tpu.core_type<tc>, window_params = [{transform_indices = @transform_0, window_bounds = array<i64: 1, 1, 10, 10, 128>}, {transform_indices = @transform_1, window_bounds = array<i64: 1, 1, 10, 10, 128>}, {transform_indices = @transform_2, window_bounds = array<i64: 1, 1, 10, 10, 128>}, {pipeline_mode = #tpu.pipeline_mode<synchronous>, transform_indices = @transform_3, window_bounds = array<i64: 1, 128>}, {pipeline_mode = #tpu.pipeline_mode<synchronous>, transform_indices = @transform_4, window_bounds = array<i64: 1, 128>}, {pipeline_mode = #tpu.pipeline_mode<synchronous>, transform_indices = @transform_5, window_bounds = array<i64: 27, 128, 128>}, {transform_indices = @transform_6, window_bounds = array<i64: 1, 1, 8, 8, 128>}, {transform_indices = @transform_7, window_bounds = array<i64: 1, 1, 2, 128>}]} {
    %0 = tpu.iota {dimensions = array<i32: 0>} : vector<10x10x128xi32>
    %1 = tpu.iota {dimensions = array<i32: 1>} : vector<10x10x128xi32>
    %c1_i32 = arith.constant 1 : i32
    %2 = vector.broadcast %c1_i32 : i32 to vector<10x10x128xi32>
    %3 = arith.cmpi sge, %0, %2 : vector<10x10x128xi32>
    %c8_i32 = arith.constant 8 : i32
    %4 = vector.broadcast %c8_i32 : i32 to vector<10x10x128xi32>
    %5 = arith.cmpi sle, %0, %4 : vector<10x10x128xi32>
    %6 = arith.andi %3, %5 : vector<10x10x128xi1>
    %c1_i32_0 = arith.constant 1 : i32
    %7 = vector.broadcast %c1_i32_0 : i32 to vector<10x10x128xi32>
    %8 = arith.cmpi sge, %1, %7 : vector<10x10x128xi32>
    %9 = arith.andi %6, %8 : vector<10x10x128xi1>
    %c8_i32_1 = arith.constant 8 : i32
    %10 = vector.broadcast %c8_i32_1 : i32 to vector<10x10x128xi32>
    %11 = arith.cmpi sle, %1, %10 : vector<10x10x128xi32>
    %12 = arith.andi %9, %11 : vector<10x10x128xi1>
    %13 = arith.extui %12 : vector<10x10x128xi1> to vector<10x10x128xi32>
    %14 = arith.sitofp %13 : vector<10x10x128xi32> to vector<10x10x128xf32>
    %cst = arith.constant 0.000000e+00 : f32
    %15 = vector.broadcast %cst : f32 to vector<64x128xf32>
    %c0 = arith.constant 0 : index
    %c0_2 = arith.constant 0 : index
    %c0_3 = arith.constant 0 : index
    %c0_4 = arith.constant 0 : index
    %c0_5 = arith.constant 0 : index
    %16 = vector.load %arg2[%c0, %c0_2, %c0_3, %c0_4, %c0_5] : memref<1x1x10x10x128xbf16, #tpu.memory_space<vmem>>, vector<1x1x10x10x128xbf16>
    %17 = vector.shape_cast %16 : vector<1x1x10x10x128xbf16> to vector<10x10x128xbf16>
    %18 = arith.extf %17 : vector<10x10x128xbf16> to vector<10x10x128xf32>
    %c0_6 = arith.constant 0 : index
    %c0_7 = arith.constant 0 : index
    %19 = vector.load %arg5[%c0_6, %c0_7] : memref<1x128xf32, #tpu.memory_space<vmem>>, vector<1x128xf32>
    %20 = vector.shape_cast %19 : vector<1x128xf32> to vector<1x1x128xf32>
    %21 = vector.broadcast %20 : vector<1x1x128xf32> to vector<10x10x128xf32>
    %22 = arith.mulf %18, %21 : vector<10x10x128xf32>
    %c0_8 = arith.constant 0 : index
    %c0_9 = arith.constant 0 : index
    %23 = vector.load %arg6[%c0_8, %c0_9] : memref<1x128xf32, #tpu.memory_space<vmem>>, vector<1x128xf32>
    %24 = vector.shape_cast %23 : vector<1x128xf32> to vector<1x1x128xf32>
    %25 = vector.broadcast %24 : vector<1x1x128xf32> to vector<10x10x128xf32>
    %26 = arith.addf %22, %25 : vector<10x10x128xf32>
    %cst_10 = arith.constant 0.000000e+00 : f32
    %27 = vector.broadcast %cst_10 : f32 to vector<10x10x128xf32>
    %28 = arith.maximumf %26, %27 : vector<10x10x128xf32>
    %29 = arith.mulf %28, %14 : vector<10x10x128xf32>
    %c1_i32_11 = arith.constant 1 : i32
    %30 = arith.cmpi sge, %arg1, %c1_i32_11 : i32
    %31 = arith.extui %30 : i1 to i32
    %32 = arith.sitofp %31 : i32 to f32
    %33 = vector.broadcast %32 : f32 to vector<10x10x128xf32>
    %34 = arith.mulf %29, %33 : vector<10x10x128xf32>
    %35 = arith.truncf %34 : vector<10x10x128xf32> to vector<10x10x128xbf16>
    %c0_12 = arith.constant 0 : index
    %c0_13 = arith.constant 0 : index
    %c0_14 = arith.constant 0 : index
    %36 = vector.load %arg10[%c0_12, %c0_13, %c0_14] : memref<10x10x128xbf16, #tpu.memory_space<vmem>>, vector<10x10x128xbf16>
    tpu.vector_store %arg10[%c0_12, %c0_13, %c0_14], %35 {strides = array<i32>} : memref<10x10x128xbf16, #tpu.memory_space<vmem>>, vector<10x10x128xbf16>,
    %c0_15 = arith.constant 0 : index
    %c0_16 = arith.constant 0 : index
    %c0_17 = arith.constant 0 : index
    %37 = vector.load %arg10[%c0_15, %c0_16, %c0_17] : memref<10x10x128xbf16, #tpu.memory_space<vmem>>, vector<8x8x128xbf16>
    %38 = vector.shape_cast %37 : vector<8x8x128xbf16> to vector<64x128xbf16>
    %c0_18 = arith.constant 0 : index
    %c0_19 = arith.constant 0 : index
    %c0_20 = arith.constant 0 : index
    %39 = vector.load %arg7[%c0_18, %c0_19, %c0_20] : memref<27x128x128xbf16, #tpu.memory_space<vmem>>, vector<1x128x128xbf16>
    %40 = vector.shape_cast %39 : vector<1x128x128xbf16> to vector<128x128xbf16>
    %cst_21 = arith.constant dense<0.000000e+00> : vector<64x128xf32>
    %41 = tpu.matmul %38, %40, %cst_21 {dimension_numbers = #tpu.dot_dimension_numbers<[1], [0], [0], [1], [0, 0, 1, 1], [], []>} : vector<64x128xbf16>, vector<128x128xbf16>, vector<64x128xf32> -> vector<64x128xf32>
    %42 = arith.addf %15, %41 : vector<64x128xf32>
    %c0_22 = arith.constant 0 : index
    %c1 = arith.constant 1 : index
    %c0_23 = arith.constant 0 : index
    %43 = vector.load %arg10[%c0_22, %c1, %c0_23] : memref<10x10x128xbf16, #tpu.memory_space<vmem>>, vector<8x8x128xbf16>
    %44 = vector.shape_cast %43 : vector<8x8x128xbf16> to vector<64x128xbf16>
    %c1_24 = arith.constant 1 : index
    %c0_25 = arith.constant 0 : index
    %c0_26 = arith.constant 0 : index
    %45 = vector.load %arg7[%c1_24, %c0_25, %c0_26] : memref<27x128x128xbf16, #tpu.memory_space<vmem>>, vector<1x128x128xbf16>
    %46 = vector.shape_cast %45 : vector<1x128x128xbf16> to vector<128x128xbf16>
    %cst_27 = arith.constant dense<0.000000e+00> : vector<64x128xf32>
    %47 = tpu.matmul %44, %46, %cst_27 {dimension_numbers = #tpu.dot_dimension_numbers<[1], [0], [0], [1], [0, 0, 1, 1], [], []>} : vector<64x128xbf16>, vector<128x128xbf16>, vector<64x128xf32> -> vector<64x128xf32>
    %48 = arith.addf %42, %47 : vector<64x128xf32>
    %c0_28 = arith.constant 0 : index
    %c2 = arith.constant 2 : index
    %c0_29 = arith.constant 0 : index
    %49 = vector.load %arg10[%c0_28, %c2, %c0_29] : memref<10x10x128xbf16, #tpu.memory_space<vmem>>, vector<8x8x128xbf16>
    %50 = vector.shape_cast %49 : vector<8x8x128xbf16> to vector<64x128xbf16>
    %c2_30 = arith.constant 2 : index
    %c0_31 = arith.constant 0 : index
    %c0_32 = arith.constant 0 : index
    %51 = vector.load %arg7[%c2_30, %c0_31, %c0_32] : memref<27x128x128xbf16, #tpu.memory_space<vmem>>, vector<1x128x128xbf16>
    %52 = vector.shape_cast %51 : vector<1x128x128xbf16> to vector<128x128xbf16>
    %cst_33 = arith.constant dense<0.000000e+00> : vector<64x128xf32>
    %53 = tpu.matmul %50, %52, %cst_33 {dimension_numbers = #tpu.dot_dimension_numbers<[1], [0], [0], [1], [0, 0, 1, 1], [], []>} : vector<64x128xbf16>, vector<128x128xbf16>, vector<64x128xf32> -> vector<64x128xf32>
    %54 = arith.addf %48, %53 : vector<64x128xf32>
    %c1_34 = arith.constant 1 : index
    %c0_35 = arith.constant 0 : index
    %c0_36 = arith.constant 0 : index
    %55 = vector.load %arg10[%c1_34, %c0_35, %c0_36] : memref<10x10x128xbf16, #tpu.memory_space<vmem>>, vector<8x8x128xbf16>
    %56 = vector.shape_cast %55 : vector<8x8x128xbf16> to vector<64x128xbf16>
    %c3 = arith.constant 3 : index
    %c0_37 = arith.constant 0 : index
    %c0_38 = arith.constant 0 : index
    %57 = vector.load %arg7[%c3, %c0_37, %c0_38] : memref<27x128x128xbf16, #tpu.memory_space<vmem>>, vector<1x128x128xbf16>
    %58 = vector.shape_cast %57 : vector<1x128x128xbf16> to vector<128x128xbf16>
    %cst_39 = arith.constant dense<0.000000e+00> : vector<64x128xf32>
    %59 = tpu.matmul %56, %58, %cst_39 {dimension_numbers = #tpu.dot_dimension_numbers<[1], [0], [0], [1], [0, 0, 1, 1], [], []>} : vector<64x128xbf16>, vector<128x128xbf16>, vector<64x128xf32> -> vector<64x128xf32>
    %60 = arith.addf %54, %59 : vector<64x128xf32>
    %c1_40 = arith.constant 1 : index
    %c1_41 = arith.constant 1 : index
    %c0_42 = arith.constant 0 : index
    %61 = vector.load %arg10[%c1_40, %c1_41, %c0_42] : memref<10x10x128xbf16, #tpu.memory_space<vmem>>, vector<8x8x128xbf16>
    %62 = vector.shape_cast %61 : vector<8x8x128xbf16> to vector<64x128xbf16>
    %c4 = arith.constant 4 : index
    %c0_43 = arith.constant 0 : index
    %c0_44 = arith.constant 0 : index
    %63 = vector.load %arg7[%c4, %c0_43, %c0_44] : memref<27x128x128xbf16, #tpu.memory_space<vmem>>, vector<1x128x128xbf16>
    %64 = vector.shape_cast %63 : vector<1x128x128xbf16> to vector<128x128xbf16>
    %cst_45 = arith.constant dense<0.000000e+00> : vector<64x128xf32>
    %65 = tpu.matmul %62, %64, %cst_45 {dimension_numbers = #tpu.dot_dimension_numbers<[1], [0], [0], [1], [0, 0, 1, 1], [], []>} : vector<64x128xbf16>, vector<128x128xbf16>, vector<64x128xf32> -> vector<64x128xf32>
    %66 = arith.addf %60, %65 : vector<64x128xf32>
    %c1_46 = arith.constant 1 : index
    %c2_47 = arith.constant 2 : index
    %c0_48 = arith.constant 0 : index
    %67 = vector.load %arg10[%c1_46, %c2_47, %c0_48] : memref<10x10x128xbf16, #tpu.memory_space<vmem>>, vector<8x8x128xbf16>
    %68 = vector.shape_cast %67 : vector<8x8x128xbf16> to vector<64x128xbf16>
    %c5 = arith.constant 5 : index
    %c0_49 = arith.constant 0 : index
    %c0_50 = arith.constant 0 : index
    %69 = vector.load %arg7[%c5, %c0_49, %c0_50] : memref<27x128x128xbf16, #tpu.memory_space<vmem>>, vector<1x128x128xbf16>
    %70 = vector.shape_cast %69 : vector<1x128x128xbf16> to vector<128x128xbf16>
    %cst_51 = arith.constant dense<0.000000e+00> : vector<64x128xf32>
    %71 = tpu.matmul %68, %70, %cst_51 {dimension_numbers = #tpu.dot_dimension_numbers<[1], [0], [0], [1], [0, 0, 1, 1], [], []>} : vector<64x128xbf16>, vector<128x128xbf16>, vector<64x128xf32> -> vector<64x128xf32>
    %72 = arith.addf %66, %71 : vector<64x128xf32>
    %c2_52 = arith.constant 2 : index
    %c0_53 = arith.constant 0 : index
    %c0_54 = arith.constant 0 : index
    %73 = vector.load %arg10[%c2_52, %c0_53, %c0_54] : memref<10x10x128xbf16, #tpu.memory_space<vmem>>, vector<8x8x128xbf16>
    %74 = vector.shape_cast %73 : vector<8x8x128xbf16> to vector<64x128xbf16>
    %c6 = arith.constant 6 : index
    %c0_55 = arith.constant 0 : index
    %c0_56 = arith.constant 0 : index
    %75 = vector.load %arg7[%c6, %c0_55, %c0_56] : memref<27x128x128xbf16, #tpu.memory_space<vmem>>, vector<1x128x128xbf16>
    %76 = vector.shape_cast %75 : vector<1x128x128xbf16> to vector<128x128xbf16>
    %cst_57 = arith.constant dense<0.000000e+00> : vector<64x128xf32>
    %77 = tpu.matmul %74, %76, %cst_57 {dimension_numbers = #tpu.dot_dimension_numbers<[1], [0], [0], [1], [0, 0, 1, 1], [], []>} : vector<64x128xbf16>, vector<128x128xbf16>, vector<64x128xf32> -> vector<64x128xf32>
    %78 = arith.addf %72, %77 : vector<64x128xf32>
    %c2_58 = arith.constant 2 : index
    %c1_59 = arith.constant 1 : index
    %c0_60 = arith.constant 0 : index
    %79 = vector.load %arg10[%c2_58, %c1_59, %c0_60] : memref<10x10x128xbf16, #tpu.memory_space<vmem>>, vector<8x8x128xbf16>
    %80 = vector.shape_cast %79 : vector<8x8x128xbf16> to vector<64x128xbf16>
    %c7 = arith.constant 7 : index
    %c0_61 = arith.constant 0 : index
    %c0_62 = arith.constant 0 : index
    %81 = vector.load %arg7[%c7, %c0_61, %c0_62] : memref<27x128x128xbf16, #tpu.memory_space<vmem>>, vector<1x128x128xbf16>
    %82 = vector.shape_cast %81 : vector<1x128x128xbf16> to vector<128x128xbf16>
    %cst_63 = arith.constant dense<0.000000e+00> : vector<64x128xf32>
    %83 = tpu.matmul %80, %82, %cst_63 {dimension_numbers = #tpu.dot_dimension_numbers<[1], [0], [0], [1], [0, 0, 1, 1], [], []>} : vector<64x128xbf16>, vector<128x128xbf16>, vector<64x128xf32> -> vector<64x128xf32>
    %84 = arith.addf %78, %83 : vector<64x128xf32>
    %c2_64 = arith.constant 2 : index
    %c2_65 = arith.constant 2 : index
    %c0_66 = arith.constant 0 : index
    %85 = vector.load %arg10[%c2_64, %c2_65, %c0_66] : memref<10x10x128xbf16, #tpu.memory_space<vmem>>, vector<8x8x128xbf16>
    %86 = vector.shape_cast %85 : vector<8x8x128xbf16> to vector<64x128xbf16>
    %c8 = arith.constant 8 : index
    %c0_67 = arith.constant 0 : index
    %c0_68 = arith.constant 0 : index
    %87 = vector.load %arg7[%c8, %c0_67, %c0_68] : memref<27x128x128xbf16, #tpu.memory_space<vmem>>, vector<1x128x128xbf16>
    %88 = vector.shape_cast %87 : vector<1x128x128xbf16> to vector<128x128xbf16>
    %cst_69 = arith.constant dense<0.000000e+00> : vector<64x128xf32>
    %89 = tpu.matmul %86, %88, %cst_69 {dimension_numbers = #tpu.dot_dimension_numbers<[1], [0], [0], [1], [0, 0, 1, 1], [], []>} : vector<64x128xbf16>, vector<128x128xbf16>, vector<64x128xf32> -> vector<64x128xf32>
    %90 = arith.addf %84, %89 : vector<64x128xf32>
    %c0_70 = arith.constant 0 : index
    %c0_71 = arith.constant 0 : index
    %c0_72 = arith.constant 0 : index
    %c0_73 = arith.constant 0 : index
    %c0_74 = arith.constant 0 : index
    %91 = vector.load %arg3[%c0_70, %c0_71, %c0_72, %c0_73, %c0_74] : memref<1x1x10x10x128xbf16, #tpu.memory_space<vmem>>, vector<1x1x10x10x128xbf16>
    %92 = vector.shape_cast %91 : vector<1x1x10x10x128xbf16> to vector<10x10x128xbf16>
    %93 = arith.extf %92 : vector<10x10x128xbf16> to vector<10x10x128xf32>
    %c0_75 = arith.constant 0 : index
    %c0_76 = arith.constant 0 : index
    %94 = vector.load %arg5[%c0_75, %c0_76] : memref<1x128xf32, #tpu.memory_space<vmem>>, vector<1x128xf32>
    %95 = vector.shape_cast %94 : vector<1x128xf32> to vector<1x1x128xf32>
    %96 = vector.broadcast %95 : vector<1x1x128xf32> to vector<10x10x128xf32>
    %97 = arith.mulf %93, %96 : vector<10x10x128xf32>
    %c0_77 = arith.constant 0 : index
    %c0_78 = arith.constant 0 : index
    %98 = vector.load %arg6[%c0_77, %c0_78] : memref<1x128xf32, #tpu.memory_space<vmem>>, vector<1x128xf32>
    %99 = vector.shape_cast %98 : vector<1x128xf32> to vector<1x1x128xf32>
    %100 = vector.broadcast %99 : vector<1x1x128xf32> to vector<10x10x128xf32>
    %101 = arith.addf %97, %100 : vector<10x10x128xf32>
    %cst_79 = arith.constant 0.000000e+00 : f32
    %102 = vector.broadcast %cst_79 : f32 to vector<10x10x128xf32>
    %103 = arith.maximumf %101, %102 : vector<10x10x128xf32>
    %104 = arith.mulf %103, %14 : vector<10x10x128xf32>
    %105 = arith.truncf %104 : vector<10x10x128xf32> to vector<10x10x128xbf16>
    %c0_80 = arith.constant 0 : index
    %c0_81 = arith.constant 0 : index
    %c0_82 = arith.constant 0 : index
    %106 = vector.load %arg10[%c0_80, %c0_81, %c0_82] : memref<10x10x128xbf16, #tpu.memory_space<vmem>>, vector<10x10x128xbf16>
    tpu.vector_store %arg10[%c0_80, %c0_81, %c0_82], %105 {strides = array<i32>} : memref<10x10x128xbf16, #tpu.memory_space<vmem>>, vector<10x10x128xbf16>,
    %c0_83 = arith.constant 0 : index
    %c0_84 = arith.constant 0 : index
    %c0_85 = arith.constant 0 : index
    %107 = vector.load %arg10[%c0_83, %c0_84, %c0_85] : memref<10x10x128xbf16, #tpu.memory_space<vmem>>, vector<8x8x128xbf16>
    %108 = vector.shape_cast %107 : vector<8x8x128xbf16> to vector<64x128xbf16>
    %c9 = arith.constant 9 : index
    %c0_86 = arith.constant 0 : index
    %c0_87 = arith.constant 0 : index
    %109 = vector.load %arg7[%c9, %c0_86, %c0_87] : memref<27x128x128xbf16, #tpu.memory_space<vmem>>, vector<1x128x128xbf16>
    %110 = vector.shape_cast %109 : vector<1x128x128xbf16> to vector<128x128xbf16>
    %cst_88 = arith.constant dense<0.000000e+00> : vector<64x128xf32>
    %111 = tpu.matmul %108, %110, %cst_88 {dimension_numbers = #tpu.dot_dimension_numbers<[1], [0], [0], [1], [0, 0, 1, 1], [], []>} : vector<64x128xbf16>, vector<128x128xbf16>, vector<64x128xf32> -> vector<64x128xf32>
    %112 = arith.addf %90, %111 : vector<64x128xf32>
    %c0_89 = arith.constant 0 : index
    %c1_90 = arith.constant 1 : index
    %c0_91 = arith.constant 0 : index
    %113 = vector.load %arg10[%c0_89, %c1_90, %c0_91] : memref<10x10x128xbf16, #tpu.memory_space<vmem>>, vector<8x8x128xbf16>
    %114 = vector.shape_cast %113 : vector<8x8x128xbf16> to vector<64x128xbf16>
    %c10 = arith.constant 10 : index
    %c0_92 = arith.constant 0 : index
    %c0_93 = arith.constant 0 : index
    %115 = vector.load %arg7[%c10, %c0_92, %c0_93] : memref<27x128x128xbf16, #tpu.memory_space<vmem>>, vector<1x128x128xbf16>
    %116 = vector.shape_cast %115 : vector<1x128x128xbf16> to vector<128x128xbf16>
    %cst_94 = arith.constant dense<0.000000e+00> : vector<64x128xf32>
    %117 = tpu.matmul %114, %116, %cst_94 {dimension_numbers = #tpu.dot_dimension_numbers<[1], [0], [0], [1], [0, 0, 1, 1], [], []>} : vector<64x128xbf16>, vector<128x128xbf16>, vector<64x128xf32> -> vector<64x128xf32>
    %118 = arith.addf %112, %117 : vector<64x128xf32>
    %c0_95 = arith.constant 0 : index
    %c2_96 = arith.constant 2 : index
    %c0_97 = arith.constant 0 : index
    %119 = vector.load %arg10[%c0_95, %c2_96, %c0_97] : memref<10x10x128xbf16, #tpu.memory_space<vmem>>, vector<8x8x128xbf16>
    %120 = vector.shape_cast %119 : vector<8x8x128xbf16> to vector<64x128xbf16>
    %c11 = arith.constant 11 : index
    %c0_98 = arith.constant 0 : index
    %c0_99 = arith.constant 0 : index
    %121 = vector.load %arg7[%c11, %c0_98, %c0_99] : memref<27x128x128xbf16, #tpu.memory_space<vmem>>, vector<1x128x128xbf16>
    %122 = vector.shape_cast %121 : vector<1x128x128xbf16> to vector<128x128xbf16>
    %cst_100 = arith.constant dense<0.000000e+00> : vector<64x128xf32>
    %123 = tpu.matmul %120, %122, %cst_100 {dimension_numbers = #tpu.dot_dimension_numbers<[1], [0], [0], [1], [0, 0, 1, 1], [], []>} : vector<64x128xbf16>, vector<128x128xbf16>, vector<64x128xf32> -> vector<64x128xf32>
    %124 = arith.addf %118, %123 : vector<64x128xf32>
    %c1_101 = arith.constant 1 : index
    %c0_102 = arith.constant 0 : index
    %c0_103 = arith.constant 0 : index
    %125 = vector.load %arg10[%c1_101, %c0_102, %c0_103] : memref<10x10x128xbf16, #tpu.memory_space<vmem>>, vector<8x8x128xbf16>
    %126 = vector.shape_cast %125 : vector<8x8x128xbf16> to vector<64x128xbf16>
    %c12 = arith.constant 12 : index
    %c0_104 = arith.constant 0 : index
    %c0_105 = arith.constant 0 : index
    %127 = vector.load %arg7[%c12, %c0_104, %c0_105] : memref<27x128x128xbf16, #tpu.memory_space<vmem>>, vector<1x128x128xbf16>
    %128 = vector.shape_cast %127 : vector<1x128x128xbf16> to vector<128x128xbf16>
    %cst_106 = arith.constant dense<0.000000e+00> : vector<64x128xf32>
    %129 = tpu.matmul %126, %128, %cst_106 {dimension_numbers = #tpu.dot_dimension_numbers<[1], [0], [0], [1], [0, 0, 1, 1], [], []>} : vector<64x128xbf16>, vector<128x128xbf16>, vector<64x128xf32> -> vector<64x128xf32>
    %130 = arith.addf %124, %129 : vector<64x128xf32>
    %c1_107 = arith.constant 1 : index
    %c1_108 = arith.constant 1 : index
    %c0_109 = arith.constant 0 : index
    %131 = vector.load %arg10[%c1_107, %c1_108, %c0_109] : memref<10x10x128xbf16, #tpu.memory_space<vmem>>, vector<8x8x128xbf16>
    %132 = vector.shape_cast %131 : vector<8x8x128xbf16> to vector<64x128xbf16>
    %c13 = arith.constant 13 : index
    %c0_110 = arith.constant 0 : index
    %c0_111 = arith.constant 0 : index
    %133 = vector.load %arg7[%c13, %c0_110, %c0_111] : memref<27x128x128xbf16, #tpu.memory_space<vmem>>, vector<1x128x128xbf16>
    %134 = vector.shape_cast %133 : vector<1x128x128xbf16> to vector<128x128xbf16>
    %cst_112 = arith.constant dense<0.000000e+00> : vector<64x128xf32>
    %135 = tpu.matmul %132, %134, %cst_112 {dimension_numbers = #tpu.dot_dimension_numbers<[1], [0], [0], [1], [0, 0, 1, 1], [], []>} : vector<64x128xbf16>, vector<128x128xbf16>, vector<64x128xf32> -> vector<64x128xf32>
    %136 = arith.addf %130, %135 : vector<64x128xf32>
    %c1_113 = arith.constant 1 : index
    %c2_114 = arith.constant 2 : index
    %c0_115 = arith.constant 0 : index
    %137 = vector.load %arg10[%c1_113, %c2_114, %c0_115] : memref<10x10x128xbf16, #tpu.memory_space<vmem>>, vector<8x8x128xbf16>
    %138 = vector.shape_cast %137 : vector<8x8x128xbf16> to vector<64x128xbf16>
    %c14 = arith.constant 14 : index
    %c0_116 = arith.constant 0 : index
    %c0_117 = arith.constant 0 : index
    %139 = vector.load %arg7[%c14, %c0_116, %c0_117] : memref<27x128x128xbf16, #tpu.memory_space<vmem>>, vector<1x128x128xbf16>
    %140 = vector.shape_cast %139 : vector<1x128x128xbf16> to vector<128x128xbf16>
    %cst_118 = arith.constant dense<0.000000e+00> : vector<64x128xf32>
    %141 = tpu.matmul %138, %140, %cst_118 {dimension_numbers = #tpu.dot_dimension_numbers<[1], [0], [0], [1], [0, 0, 1, 1], [], []>} : vector<64x128xbf16>, vector<128x128xbf16>, vector<64x128xf32> -> vector<64x128xf32>
    %142 = arith.addf %136, %141 : vector<64x128xf32>
    %c2_119 = arith.constant 2 : index
    %c0_120 = arith.constant 0 : index
    %c0_121 = arith.constant 0 : index
    %143 = vector.load %arg10[%c2_119, %c0_120, %c0_121] : memref<10x10x128xbf16, #tpu.memory_space<vmem>>, vector<8x8x128xbf16>
    %144 = vector.shape_cast %143 : vector<8x8x128xbf16> to vector<64x128xbf16>
    %c15 = arith.constant 15 : index
    %c0_122 = arith.constant 0 : index
    %c0_123 = arith.constant 0 : index
    %145 = vector.load %arg7[%c15, %c0_122, %c0_123] : memref<27x128x128xbf16, #tpu.memory_space<vmem>>, vector<1x128x128xbf16>
    %146 = vector.shape_cast %145 : vector<1x128x128xbf16> to vector<128x128xbf16>
    %cst_124 = arith.constant dense<0.000000e+00> : vector<64x128xf32>
    %147 = tpu.matmul %144, %146, %cst_124 {dimension_numbers = #tpu.dot_dimension_numbers<[1], [0], [0], [1], [0, 0, 1, 1], [], []>} : vector<64x128xbf16>, vector<128x128xbf16>, vector<64x128xf32> -> vector<64x128xf32>
    %148 = arith.addf %142, %147 : vector<64x128xf32>
    %c2_125 = arith.constant 2 : index
    %c1_126 = arith.constant 1 : index
    %c0_127 = arith.constant 0 : index
    %149 = vector.load %arg10[%c2_125, %c1_126, %c0_127] : memref<10x10x128xbf16, #tpu.memory_space<vmem>>, vector<8x8x128xbf16>
    %150 = vector.shape_cast %149 : vector<8x8x128xbf16> to vector<64x128xbf16>
    %c16 = arith.constant 16 : index
    %c0_128 = arith.constant 0 : index
    %c0_129 = arith.constant 0 : index
    %151 = vector.load %arg7[%c16, %c0_128, %c0_129] : memref<27x128x128xbf16, #tpu.memory_space<vmem>>, vector<1x128x128xbf16>
    %152 = vector.shape_cast %151 : vector<1x128x128xbf16> to vector<128x128xbf16>
    %cst_130 = arith.constant dense<0.000000e+00> : vector<64x128xf32>
    %153 = tpu.matmul %150, %152, %cst_130 {dimension_numbers = #tpu.dot_dimension_numbers<[1], [0], [0], [1], [0, 0, 1, 1], [], []>} : vector<64x128xbf16>, vector<128x128xbf16>, vector<64x128xf32> -> vector<64x128xf32>
    %154 = arith.addf %148, %153 : vector<64x128xf32>
    %c2_131 = arith.constant 2 : index
    %c2_132 = arith.constant 2 : index
    %c0_133 = arith.constant 0 : index
    %155 = vector.load %arg10[%c2_131, %c2_132, %c0_133] : memref<10x10x128xbf16, #tpu.memory_space<vmem>>, vector<8x8x128xbf16>
    %156 = vector.shape_cast %155 : vector<8x8x128xbf16> to vector<64x128xbf16>
    %c17 = arith.constant 17 : index
    %c0_134 = arith.constant 0 : index
    %c0_135 = arith.constant 0 : index
    %157 = vector.load %arg7[%c17, %c0_134, %c0_135] : memref<27x128x128xbf16, #tpu.memory_space<vmem>>, vector<1x128x128xbf16>
    %158 = vector.shape_cast %157 : vector<1x128x128xbf16> to vector<128x128xbf16>
    %cst_136 = arith.constant dense<0.000000e+00> : vector<64x128xf32>
    %159 = tpu.matmul %156, %158, %cst_136 {dimension_numbers = #tpu.dot_dimension_numbers<[1], [0], [0], [1], [0, 0, 1, 1], [], []>} : vector<64x128xbf16>, vector<128x128xbf16>, vector<64x128xf32> -> vector<64x128xf32>
    %160 = arith.addf %154, %159 : vector<64x128xf32>
    %c0_137 = arith.constant 0 : index
    %c0_138 = arith.constant 0 : index
    %c0_139 = arith.constant 0 : index
    %c0_140 = arith.constant 0 : index
    %c0_141 = arith.constant 0 : index
    %161 = vector.load %arg4[%c0_137, %c0_138, %c0_139, %c0_140, %c0_141] : memref<1x1x10x10x128xbf16, #tpu.memory_space<vmem>>, vector<1x1x10x10x128xbf16>
    %162 = vector.shape_cast %161 : vector<1x1x10x10x128xbf16> to vector<10x10x128xbf16>
    %163 = arith.extf %162 : vector<10x10x128xbf16> to vector<10x10x128xf32>
    %c0_142 = arith.constant 0 : index
    %c0_143 = arith.constant 0 : index
    %164 = vector.load %arg5[%c0_142, %c0_143] : memref<1x128xf32, #tpu.memory_space<vmem>>, vector<1x128xf32>
    %165 = vector.shape_cast %164 : vector<1x128xf32> to vector<1x1x128xf32>
    %166 = vector.broadcast %165 : vector<1x1x128xf32> to vector<10x10x128xf32>
    %167 = arith.mulf %163, %166 : vector<10x10x128xf32>
    %c0_144 = arith.constant 0 : index
    %c0_145 = arith.constant 0 : index
    %168 = vector.load %arg6[%c0_144, %c0_145] : memref<1x128xf32, #tpu.memory_space<vmem>>, vector<1x128xf32>
    %169 = vector.shape_cast %168 : vector<1x128xf32> to vector<1x1x128xf32>
    %170 = vector.broadcast %169 : vector<1x1x128xf32> to vector<10x10x128xf32>
    %171 = arith.addf %167, %170 : vector<10x10x128xf32>
    %cst_146 = arith.constant 0.000000e+00 : f32
    %172 = vector.broadcast %cst_146 : f32 to vector<10x10x128xf32>
    %173 = arith.maximumf %171, %172 : vector<10x10x128xf32>
    %174 = arith.mulf %173, %14 : vector<10x10x128xf32>
    %c6_i32 = arith.constant 6 : i32
    %175 = arith.cmpi sle, %arg1, %c6_i32 : i32
    %176 = arith.extui %175 : i1 to i32
    %177 = arith.sitofp %176 : i32 to f32
    %178 = vector.broadcast %177 : f32 to vector<10x10x128xf32>
    %179 = arith.mulf %174, %178 : vector<10x10x128xf32>
    %180 = arith.truncf %179 : vector<10x10x128xf32> to vector<10x10x128xbf16>
    %c0_147 = arith.constant 0 : index
    %c0_148 = arith.constant 0 : index
    %c0_149 = arith.constant 0 : index
    %181 = vector.load %arg10[%c0_147, %c0_148, %c0_149] : memref<10x10x128xbf16, #tpu.memory_space<vmem>>, vector<10x10x128xbf16>
    tpu.vector_store %arg10[%c0_147, %c0_148, %c0_149], %180 {strides = array<i32>} : memref<10x10x128xbf16, #tpu.memory_space<vmem>>, vector<10x10x128xbf16>,
    %c0_150 = arith.constant 0 : index
    %c0_151 = arith.constant 0 : index
    %c0_152 = arith.constant 0 : index
    %182 = vector.load %arg10[%c0_150, %c0_151, %c0_152] : memref<10x10x128xbf16, #tpu.memory_space<vmem>>, vector<8x8x128xbf16>
    %183 = vector.shape_cast %182 : vector<8x8x128xbf16> to vector<64x128xbf16>
    %c18 = arith.constant 18 : index
    %c0_153 = arith.constant 0 : index
    %c0_154 = arith.constant 0 : index
    %184 = vector.load %arg7[%c18, %c0_153, %c0_154] : memref<27x128x128xbf16, #tpu.memory_space<vmem>>, vector<1x128x128xbf16>
    %185 = vector.shape_cast %184 : vector<1x128x128xbf16> to vector<128x128xbf16>
    %cst_155 = arith.constant dense<0.000000e+00> : vector<64x128xf32>
    %186 = tpu.matmul %183, %185, %cst_155 {dimension_numbers = #tpu.dot_dimension_numbers<[1], [0], [0], [1], [0, 0, 1, 1], [], []>} : vector<64x128xbf16>, vector<128x128xbf16>, vector<64x128xf32> -> vector<64x128xf32>
    %187 = arith.addf %160, %186 : vector<64x128xf32>
    %c0_156 = arith.constant 0 : index
    %c1_157 = arith.constant 1 : index
    %c0_158 = arith.constant 0 : index
    %188 = vector.load %arg10[%c0_156, %c1_157, %c0_158] : memref<10x10x128xbf16, #tpu.memory_space<vmem>>, vector<8x8x128xbf16>
    %189 = vector.shape_cast %188 : vector<8x8x128xbf16> to vector<64x128xbf16>
    %c19 = arith.constant 19 : index
    %c0_159 = arith.constant 0 : index
    %c0_160 = arith.constant 0 : index
    %190 = vector.load %arg7[%c19, %c0_159, %c0_160] : memref<27x128x128xbf16, #tpu.memory_space<vmem>>, vector<1x128x128xbf16>
    %191 = vector.shape_cast %190 : vector<1x128x128xbf16> to vector<128x128xbf16>
    %cst_161 = arith.constant dense<0.000000e+00> : vector<64x128xf32>
    %192 = tpu.matmul %189, %191, %cst_161 {dimension_numbers = #tpu.dot_dimension_numbers<[1], [0], [0], [1], [0, 0, 1, 1], [], []>} : vector<64x128xbf16>, vector<128x128xbf16>, vector<64x128xf32> -> vector<64x128xf32>
    %193 = arith.addf %187, %192 : vector<64x128xf32>
    %c0_162 = arith.constant 0 : index
    %c2_163 = arith.constant 2 : index
    %c0_164 = arith.constant 0 : index
    %194 = vector.load %arg10[%c0_162, %c2_163, %c0_164] : memref<10x10x128xbf16, #tpu.memory_space<vmem>>, vector<8x8x128xbf16>
    %195 = vector.shape_cast %194 : vector<8x8x128xbf16> to vector<64x128xbf16>
    %c20 = arith.constant 20 : index
    %c0_165 = arith.constant 0 : index
    %c0_166 = arith.constant 0 : index
    %196 = vector.load %arg7[%c20, %c0_165, %c0_166] : memref<27x128x128xbf16, #tpu.memory_space<vmem>>, vector<1x128x128xbf16>
    %197 = vector.shape_cast %196 : vector<1x128x128xbf16> to vector<128x128xbf16>
    %cst_167 = arith.constant dense<0.000000e+00> : vector<64x128xf32>
    %198 = tpu.matmul %195, %197, %cst_167 {dimension_numbers = #tpu.dot_dimension_numbers<[1], [0], [0], [1], [0, 0, 1, 1], [], []>} : vector<64x128xbf16>, vector<128x128xbf16>, vector<64x128xf32> -> vector<64x128xf32>
    %199 = arith.addf %193, %198 : vector<64x128xf32>
    %c1_168 = arith.constant 1 : index
    %c0_169 = arith.constant 0 : index
    %c0_170 = arith.constant 0 : index
    %200 = vector.load %arg10[%c1_168, %c0_169, %c0_170] : memref<10x10x128xbf16, #tpu.memory_space<vmem>>, vector<8x8x128xbf16>
    %201 = vector.shape_cast %200 : vector<8x8x128xbf16> to vector<64x128xbf16>
    %c21 = arith.constant 21 : index
    %c0_171 = arith.constant 0 : index
    %c0_172 = arith.constant 0 : index
    %202 = vector.load %arg7[%c21, %c0_171, %c0_172] : memref<27x128x128xbf16, #tpu.memory_space<vmem>>, vector<1x128x128xbf16>
    %203 = vector.shape_cast %202 : vector<1x128x128xbf16> to vector<128x128xbf16>
    %cst_173 = arith.constant dense<0.000000e+00> : vector<64x128xf32>
    %204 = tpu.matmul %201, %203, %cst_173 {dimension_numbers = #tpu.dot_dimension_numbers<[1], [0], [0], [1], [0, 0, 1, 1], [], []>} : vector<64x128xbf16>, vector<128x128xbf16>, vector<64x128xf32> -> vector<64x128xf32>
    %205 = arith.addf %199, %204 : vector<64x128xf32>
    %c1_174 = arith.constant 1 : index
    %c1_175 = arith.constant 1 : index
    %c0_176 = arith.constant 0 : index
    %206 = vector.load %arg10[%c1_174, %c1_175, %c0_176] : memref<10x10x128xbf16, #tpu.memory_space<vmem>>, vector<8x8x128xbf16>
    %207 = vector.shape_cast %206 : vector<8x8x128xbf16> to vector<64x128xbf16>
    %c22 = arith.constant 22 : index
    %c0_177 = arith.constant 0 : index
    %c0_178 = arith.constant 0 : index
    %208 = vector.load %arg7[%c22, %c0_177, %c0_178] : memref<27x128x128xbf16, #tpu.memory_space<vmem>>, vector<1x128x128xbf16>
    %209 = vector.shape_cast %208 : vector<1x128x128xbf16> to vector<128x128xbf16>
    %cst_179 = arith.constant dense<0.000000e+00> : vector<64x128xf32>
    %210 = tpu.matmul %207, %209, %cst_179 {dimension_numbers = #tpu.dot_dimension_numbers<[1], [0], [0], [1], [0, 0, 1, 1], [], []>} : vector<64x128xbf16>, vector<128x128xbf16>, vector<64x128xf32> -> vector<64x128xf32>
    %211 = arith.addf %205, %210 : vector<64x128xf32>
    %c1_180 = arith.constant 1 : index
    %c2_181 = arith.constant 2 : index
    %c0_182 = arith.constant 0 : index
    %212 = vector.load %arg10[%c1_180, %c2_181, %c0_182] : memref<10x10x128xbf16, #tpu.memory_space<vmem>>, vector<8x8x128xbf16>
    %213 = vector.shape_cast %212 : vector<8x8x128xbf16> to vector<64x128xbf16>
    %c23 = arith.constant 23 : index
    %c0_183 = arith.constant 0 : index
    %c0_184 = arith.constant 0 : index
    %214 = vector.load %arg7[%c23, %c0_183, %c0_184] : memref<27x128x128xbf16, #tpu.memory_space<vmem>>, vector<1x128x128xbf16>
    %215 = vector.shape_cast %214 : vector<1x128x128xbf16> to vector<128x128xbf16>
    %cst_185 = arith.constant dense<0.000000e+00> : vector<64x128xf32>
    %216 = tpu.matmul %213, %215, %cst_185 {dimension_numbers = #tpu.dot_dimension_numbers<[1], [0], [0], [1], [0, 0, 1, 1], [], []>} : vector<64x128xbf16>, vector<128x128xbf16>, vector<64x128xf32> -> vector<64x128xf32>
    %217 = arith.addf %211, %216 : vector<64x128xf32>
    %c2_186 = arith.constant 2 : index
    %c0_187 = arith.constant 0 : index
    %c0_188 = arith.constant 0 : index
    %218 = vector.load %arg10[%c2_186, %c0_187, %c0_188] : memref<10x10x128xbf16, #tpu.memory_space<vmem>>, vector<8x8x128xbf16>
    %219 = vector.shape_cast %218 : vector<8x8x128xbf16> to vector<64x128xbf16>
    %c24 = arith.constant 24 : index
    %c0_189 = arith.constant 0 : index
    %c0_190 = arith.constant 0 : index
    %220 = vector.load %arg7[%c24, %c0_189, %c0_190] : memref<27x128x128xbf16, #tpu.memory_space<vmem>>, vector<1x128x128xbf16>
    %221 = vector.shape_cast %220 : vector<1x128x128xbf16> to vector<128x128xbf16>
    %cst_191 = arith.constant dense<0.000000e+00> : vector<64x128xf32>
    %222 = tpu.matmul %219, %221, %cst_191 {dimension_numbers = #tpu.dot_dimension_numbers<[1], [0], [0], [1], [0, 0, 1, 1], [], []>} : vector<64x128xbf16>, vector<128x128xbf16>, vector<64x128xf32> -> vector<64x128xf32>
    %223 = arith.addf %217, %222 : vector<64x128xf32>
    %c2_192 = arith.constant 2 : index
    %c1_193 = arith.constant 1 : index
    %c0_194 = arith.constant 0 : index
    %224 = vector.load %arg10[%c2_192, %c1_193, %c0_194] : memref<10x10x128xbf16, #tpu.memory_space<vmem>>, vector<8x8x128xbf16>
    %225 = vector.shape_cast %224 : vector<8x8x128xbf16> to vector<64x128xbf16>
    %c25 = arith.constant 25 : index
    %c0_195 = arith.constant 0 : index
    %c0_196 = arith.constant 0 : index
    %226 = vector.load %arg7[%c25, %c0_195, %c0_196] : memref<27x128x128xbf16, #tpu.memory_space<vmem>>, vector<1x128x128xbf16>
    %227 = vector.shape_cast %226 : vector<1x128x128xbf16> to vector<128x128xbf16>
    %cst_197 = arith.constant dense<0.000000e+00> : vector<64x128xf32>
    %228 = tpu.matmul %225, %227, %cst_197 {dimension_numbers = #tpu.dot_dimension_numbers<[1], [0], [0], [1], [0, 0, 1, 1], [], []>} : vector<64x128xbf16>, vector<128x128xbf16>, vector<64x128xf32> -> vector<64x128xf32>
    %229 = arith.addf %223, %228 : vector<64x128xf32>
    %c2_198 = arith.constant 2 : index
    %c2_199 = arith.constant 2 : index
    %c0_200 = arith.constant 0 : index
    %230 = vector.load %arg10[%c2_198, %c2_199, %c0_200] : memref<10x10x128xbf16, #tpu.memory_space<vmem>>, vector<8x8x128xbf16>
    %231 = vector.shape_cast %230 : vector<8x8x128xbf16> to vector<64x128xbf16>
    %c26 = arith.constant 26 : index
    %c0_201 = arith.constant 0 : index
    %c0_202 = arith.constant 0 : index
    %232 = vector.load %arg7[%c26, %c0_201, %c0_202] : memref<27x128x128xbf16, #tpu.memory_space<vmem>>, vector<1x128x128xbf16>
    %233 = vector.shape_cast %232 : vector<1x128x128xbf16> to vector<128x128xbf16>
    %cst_203 = arith.constant dense<0.000000e+00> : vector<64x128xf32>
    %234 = tpu.matmul %231, %233, %cst_203 {dimension_numbers = #tpu.dot_dimension_numbers<[1], [0], [0], [1], [0, 0, 1, 1], [], []>} : vector<64x128xbf16>, vector<128x128xbf16>, vector<64x128xf32> -> vector<64x128xf32>
    %235 = arith.addf %229, %234 : vector<64x128xf32>
    %cst_204 = arith.constant dense<0.000000e+00> : vector<128xf32>
    %236 = vector.multi_reduction <add>, %235, %cst_204 [0] : vector<64x128xf32> to vector<128xf32>
    %237 = vector.shape_cast %236 : vector<128xf32> to vector<1x128xf32>
    %c0_205 = arith.constant 0 : index
    %c0_206 = arith.constant 0 : index
    %c0_207 = arith.constant 0 : index
    %c0_208 = arith.constant 0 : index
    %238 = vector.load %arg9[%c0_205, %c0_206, %c0_207, %c0_208] : memref<1x1x2x128xf32, #tpu.memory_space<vmem>>, vector<1x1x1x128xf32>
    %239 = vector.shape_cast %238 : vector<1x1x1x128xf32> to vector<1x128xf32>
    %240 = vector.shape_cast %237 : vector<1x128xf32> to vector<1x1x1x128xf32>
    tpu.vector_store %arg9[%c0_205, %c0_206, %c0_207, %c0_208], %240 {strides = array<i32>} : memref<1x1x2x128xf32, #tpu.memory_space<vmem>>, vector<1x1x1x128xf32>,
    %241 = arith.mulf %235, %235 : vector<64x128xf32>
    %cst_209 = arith.constant dense<0.000000e+00> : vector<128xf32>
    %242 = vector.multi_reduction <add>, %241, %cst_209 [0] : vector<64x128xf32> to vector<128xf32>
    %243 = vector.shape_cast %242 : vector<128xf32> to vector<1x128xf32>
    %c0_210 = arith.constant 0 : index
    %c0_211 = arith.constant 0 : index
    %c1_212 = arith.constant 1 : index
    %c0_213 = arith.constant 0 : index
    %244 = vector.load %arg9[%c0_210, %c0_211, %c1_212, %c0_213] : memref<1x1x2x128xf32, #tpu.memory_space<vmem>>, vector<1x1x1x128xf32>
    %245 = vector.shape_cast %244 : vector<1x1x1x128xf32> to vector<1x128xf32>
    %246 = vector.shape_cast %243 : vector<1x128xf32> to vector<1x1x1x128xf32>
    tpu.vector_store %arg9[%c0_210, %c0_211, %c1_212, %c0_213], %246 {strides = array<i32>} : memref<1x1x2x128xf32, #tpu.memory_space<vmem>>, vector<1x1x1x128xf32>,
    %247 = vector.shape_cast %235 : vector<64x128xf32> to vector<1x1x8x8x128xf32>
    %248 = arith.truncf %247 : vector<1x1x8x8x128xf32> to vector<1x1x8x8x128xbf16>
    %c0_214 = arith.constant 0 : index
    %c0_215 = arith.constant 0 : index
    %c0_216 = arith.constant 0 : index
    %c0_217 = arith.constant 0 : index
    %c0_218 = arith.constant 0 : index
    %249 = vector.load %arg8[%c0_214, %c0_215, %c0_216, %c0_217, %c0_218] : memref<1x1x8x8x128xbf16, #tpu.memory_space<vmem>>, vector<1x1x8x8x128xbf16>
    tpu.vector_store %arg8[%c0_214, %c0_215, %c0_216, %c0_217, %c0_218], %248 {strides = array<i32>} : memref<1x1x8x8x128xbf16, #tpu.memory_space<vmem>>, vector<1x1x8x8x128xbf16>,
    return
  }
  func.func @transform_0(%arg0: i32, %arg1: i32) -> (i32, i32, i32, i32, i32) {
    %c0_i32 = arith.constant 0 : i32
    %0 = arith.addi %arg1, %c0_i32 : i32
    %c0_i32_0 = arith.constant 0 : i32
    %c0_i32_1 = arith.constant 0 : i32
    %c0_i32_2 = arith.constant 0 : i32
    %c0_i32_3 = arith.constant 0 : i32
    return %arg0, %0, %c0_i32_0, %c0_i32_1, %c0_i32_2 : i32, i32, i32, i32, i32
  }
  func.func @transform_1(%arg0: i32, %arg1: i32) -> (i32, i32, i32, i32, i32) {
    %c1_i32 = arith.constant 1 : i32
    %0 = arith.addi %arg1, %c1_i32 : i32
    %c0_i32 = arith.constant 0 : i32
    %c0_i32_0 = arith.constant 0 : i32
    %c0_i32_1 = arith.constant 0 : i32
    %c0_i32_2 = arith.constant 0 : i32
    return %arg0, %0, %c0_i32, %c0_i32_0, %c0_i32_1 : i32, i32, i32, i32, i32
  }
  func.func @transform_2(%arg0: i32, %arg1: i32) -> (i32, i32, i32, i32, i32) {
    %c2_i32 = arith.constant 2 : i32
    %0 = arith.addi %arg1, %c2_i32 : i32
    %c0_i32 = arith.constant 0 : i32
    %c0_i32_0 = arith.constant 0 : i32
    %c0_i32_1 = arith.constant 0 : i32
    %c0_i32_2 = arith.constant 0 : i32
    return %arg0, %0, %c0_i32, %c0_i32_0, %c0_i32_1 : i32, i32, i32, i32, i32
  }
  func.func @transform_3(%arg0: i32, %arg1: i32) -> (i32, i32) {
    %c0_i32 = arith.constant 0 : i32
    %c0_i32_0 = arith.constant 0 : i32
    %c0_i32_1 = arith.constant 0 : i32
    return %c0_i32, %c0_i32_0 : i32, i32
  }
  func.func @transform_4(%arg0: i32, %arg1: i32) -> (i32, i32) {
    %c0_i32 = arith.constant 0 : i32
    %c0_i32_0 = arith.constant 0 : i32
    %c0_i32_1 = arith.constant 0 : i32
    return %c0_i32, %c0_i32_0 : i32, i32
  }
  func.func @transform_5(%arg0: i32, %arg1: i32) -> (i32, i32, i32) {
    %c0_i32 = arith.constant 0 : i32
    %c0_i32_0 = arith.constant 0 : i32
    %c0_i32_1 = arith.constant 0 : i32
    %c0_i32_2 = arith.constant 0 : i32
    return %c0_i32, %c0_i32_0, %c0_i32_1 : i32, i32, i32
  }
  func.func @transform_6(%arg0: i32, %arg1: i32) -> (i32, i32, i32, i32, i32) {
    %c0_i32 = arith.constant 0 : i32
    %c0_i32_0 = arith.constant 0 : i32
    %c0_i32_1 = arith.constant 0 : i32
    %c0_i32_2 = arith.constant 0 : i32
    return %arg0, %arg1, %c0_i32, %c0_i32_0, %c0_i32_1 : i32, i32, i32, i32, i32
  }
  func.func @transform_7(%arg0: i32, %arg1: i32) -> (i32, i32, i32, i32) {
    %c0_i32 = arith.constant 0 : i32
    %c0_i32_0 = arith.constant 0 : i32
    %c0_i32_1 = arith.constant 0 : i32
    return %arg0, %arg1, %c0_i32, %c0_i32_0 : i32, i32, i32, i32
  }
}

module attributes {stable_mosaic.version = 11 : i64} {
  func.func @_bn_relu_kernel(%arg0: i32, %arg1: memref<1x8x8x8x128xbf16, #tpu.memory_space<vmem>>, %arg2: memref<1x128xf32, #tpu.memory_space<vmem>>, %arg3: memref<1x128xf32, #tpu.memory_space<vmem>>, %arg4: memref<1x8x8x8x128xf32, #tpu.memory_space<vmem>>) attributes {dimension_semantics = [#tpu.dimension_semantics<parallel>], iteration_bounds = array<i64: 2>, scalar_prefetch = 0 : i64, scratch_operands = 0 : i64, tpu.core_type = #tpu.core_type<tc>, window_params = [{transform_indices = @transform_0, window_bounds = array<i64: 1, 8, 8, 8, 128>}, {pipeline_mode = #tpu.pipeline_mode<synchronous>, transform_indices = @transform_1, window_bounds = array<i64: 1, 128>}, {pipeline_mode = #tpu.pipeline_mode<synchronous>, transform_indices = @transform_2, window_bounds = array<i64: 1, 128>}, {transform_indices = @transform_3, window_bounds = array<i64: 1, 8, 8, 8, 128>}]} {
    %c0 = arith.constant 0 : index
    %c0_0 = arith.constant 0 : index
    %c0_1 = arith.constant 0 : index
    %c0_2 = arith.constant 0 : index
    %c0_3 = arith.constant 0 : index
    %0 = vector.load %arg1[%c0, %c0_0, %c0_1, %c0_2, %c0_3] : memref<1x8x8x8x128xbf16, #tpu.memory_space<vmem>>, vector<1x8x8x8x128xbf16>
    %1 = arith.extf %0 : vector<1x8x8x8x128xbf16> to vector<1x8x8x8x128xf32>
    %c0_4 = arith.constant 0 : index
    %c0_5 = arith.constant 0 : index
    %2 = vector.load %arg2[%c0_4, %c0_5] : memref<1x128xf32, #tpu.memory_space<vmem>>, vector<1x128xf32>
    %3 = vector.shape_cast %2 : vector<1x128xf32> to vector<1x1x1x1x128xf32>
    %4 = vector.broadcast %3 : vector<1x1x1x1x128xf32> to vector<1x8x8x8x128xf32>
    %5 = arith.mulf %1, %4 : vector<1x8x8x8x128xf32>
    %c0_6 = arith.constant 0 : index
    %c0_7 = arith.constant 0 : index
    %6 = vector.load %arg3[%c0_6, %c0_7] : memref<1x128xf32, #tpu.memory_space<vmem>>, vector<1x128xf32>
    %7 = vector.shape_cast %6 : vector<1x128xf32> to vector<1x1x1x1x128xf32>
    %8 = vector.broadcast %7 : vector<1x1x1x1x128xf32> to vector<1x8x8x8x128xf32>
    %9 = arith.addf %5, %8 : vector<1x8x8x8x128xf32>
    %cst = arith.constant 0.000000e+00 : f32
    %10 = vector.broadcast %cst : f32 to vector<1x8x8x8x128xf32>
    %11 = arith.maximumf %9, %10 : vector<1x8x8x8x128xf32>
    %c0_8 = arith.constant 0 : index
    %c0_9 = arith.constant 0 : index
    %c0_10 = arith.constant 0 : index
    %c0_11 = arith.constant 0 : index
    %c0_12 = arith.constant 0 : index
    %12 = vector.load %arg4[%c0_8, %c0_9, %c0_10, %c0_11, %c0_12] : memref<1x8x8x8x128xf32, #tpu.memory_space<vmem>>, vector<1x8x8x8x128xf32>
    tpu.vector_store %arg4[%c0_8, %c0_9, %c0_10, %c0_11, %c0_12], %11 {strides = array<i32>} : memref<1x8x8x8x128xf32, #tpu.memory_space<vmem>>, vector<1x8x8x8x128xf32>,
    return
  }
  func.func @transform_0(%arg0: i32) -> (i32, i32, i32, i32, i32) {
    %c0_i32 = arith.constant 0 : i32
    %c0_i32_0 = arith.constant 0 : i32
    %c0_i32_1 = arith.constant 0 : i32
    %c0_i32_2 = arith.constant 0 : i32
    %c0_i32_3 = arith.constant 0 : i32
    return %arg0, %c0_i32, %c0_i32_0, %c0_i32_1, %c0_i32_2 : i32, i32, i32, i32, i32
  }
  func.func @transform_1(%arg0: i32) -> (i32, i32) {
    %c0_i32 = arith.constant 0 : i32
    %c0_i32_0 = arith.constant 0 : i32
    %c0_i32_1 = arith.constant 0 : i32
    return %c0_i32, %c0_i32_0 : i32, i32
  }
  func.func @transform_2(%arg0: i32) -> (i32, i32) {
    %c0_i32 = arith.constant 0 : i32
    %c0_i32_0 = arith.constant 0 : i32
    %c0_i32_1 = arith.constant 0 : i32
    return %c0_i32, %c0_i32_0 : i32, i32
  }
  func.func @transform_3(%arg0: i32) -> (i32, i32, i32, i32, i32) {
    %c0_i32 = arith.constant 0 : i32
    %c0_i32_0 = arith.constant 0 : i32
    %c0_i32_1 = arith.constant 0 : i32
    %c0_i32_2 = arith.constant 0 : i32
    %c0_i32_3 = arith.constant 0 : i32
    return %arg0, %c0_i32, %c0_i32_0, %c0_i32_1, %c0_i32_2 : i32, i32, i32, i32, i32
  }
}

</mosaic_0001>

<bundles_post_ra>
// kernel: conv_block_3d.5
= control target key start
LH: loop header
LB: loop body
LE: loop exit
PB: predicated region body
PF: predicated region fallthrough
CT: control target
= control target key end

     0   :  { %s828_s12 = smov 0   ;;  %s1087_s0 = inlined_call_operand.vmem [shape: bf16[2,8,8,8,128], index: 0, kind: input, shape index: {}]   ;;  %s1088_s1 = inlined_call_operand.vmem [shape: f32[1,128], index: 1, kind: input, shape index: {}]   ;;  %s1089_s2 = inlined_call_operand.vmem [shape: f32[1,128], index: 2, kind: input, shape index: {}]   ;;  %s1090_s3 = inlined_call_operand.vmem [shape: f32[2,8,8,8,128], index: 3, kind: output, shape index: {}]  }
   0x1 LB: > { %s618_s13 = sadd.s32 4294967295, %s806_s12   ;;  %p622_p0 = scmp.ge.s32.totalorder %s806_s12, 1  ;;  %s806_s12 = sphi %s828_s12, %s13_s12  }
   0x2   : > { %p137_p1 = scmp.lt.s32.totalorder %s806_s12, 3 }
   0x4   : > { %p138_p2 = pnand %p622_p0, %p137_p1 }
   0x5   : > { %p161_p3 = scmp.lt.s32.totalorder (!%p138_p2), %s618_s13, 1 }
   0x6   : > { %141 = sbr.rel (%p138_p2) target bundleno = 87 (0x57), region = 32 }
   0xb   : > { %s1092_s13 = smov (!%p161_p3, %s618_s13), 1  ;;  %v847_v0 = vld [vmem:[%s1088_s1] ss:$0 sm:$0xff] }
   0xc   : > { %s629_s14 = sshll.u32 %s1092_s13, 8  ;;  %v855_v5 = vld [vmem:[%s1089_s2] ss:$0 sm:$0xff]  ;;  %s630_s22 = sshll.u32 %s1092_s13, 9 }
   0xd   : > { %s842_s17 = scalar_lea.vmem %s1087_s0, %s629_s14  ;;  %s874_s25 = scalar_lea.vmem %s1090_s3, %s630_s22 }
   0xe   : > { %v632_v1 = vld [vmem:[%s842_s17] sm:$0xff]   ;;  %v759_v2 = vld [vmem:[%s842_s17 + $0x8] sm:$0xff]   ;;  %v760_v3 = vld [vmem:[%s842_s17 + $0x10] sm:$0xff]  }
   0xf   : > { %v633_v4 = vunpack.c.l.bf16 %v632_v1  ;;  %v634_v6 = vunpack.c.h.bf16 %v632_v1  ;;  %v637_v7 = vunpack.c.l.bf16 %v759_v2  ;;  %v638_v8 = vunpack.c.h.bf16 %v759_v2  ;;  %v761_v9 = vld [vmem:[%s842_s17 + $0x18] sm:$0xff]   ;;  %v762_v30 = vld [vmem:[%s842_s17 + $0x20] sm:$0xff]   ;;  %v763_v31 = vld [vmem:[%s842_s17 + $0x28] sm:$0xff]  }
  0x10   : > { %v641_v10 = vunpack.c.l.bf16 %v760_v3  ;;  %v642_v11 = vunpack.c.h.bf16 %v760_v3  ;;  %v645_v12 = vunpack.c.l.bf16 %v761_v9  ;;  %v646_v13 = vunpack.c.h.bf16 %v761_v9  ;;  %v764_v36 = vld [vmem:[%s842_s17 + $0x30] sm:$0xff]   ;;  %v765_v37 = vld [vmem:[%s842_s17 + $0x38] sm:$0xff]   ;;  %v766_v3 = vld [vmem:[%s842_s17 + $0x40] sm:$0xff]  }
  0x11   : > { %v303_v14 = vmul.f32 %v847_v0, %v633_v4  ;;  %v304_v15 = vmul.f32 %v847_v0, %v634_v6  ;;  %v305_v16 = vmul.f32 %v847_v0, %v637_v7  ;;  %v306_v17 = vmul.f32 %v847_v0, %v638_v8  ;;  %v767_v4 = vld [vmem:[%s842_s17 + $0x48] sm:$0xff]   ;;  %v768_v6 = vld [vmem:[%s842_s17 + $0x50] sm:$0xff]  }
  0x12   : > { %v307_v18 = vmul.f32 %v847_v0, %v641_v10  ;;  %v308_v19 = vmul.f32 %v847_v0, %v642_v11  ;;  %v309_v20 = vmul.f32 %v847_v0, %v645_v12  ;;  %v310_v21 = vmul.f32 %v847_v0, %v646_v13  ;;  %v769_v11 = vld [vmem:[%s842_s17 + $0x58] sm:$0xff]  }
  0x13   : > { %v371_v22 = vadd.f32 %v855_v5, %v303_v14  ;;  %v372_v23 = vadd.f32 %v855_v5, %v304_v15  ;;  %v373_v24 = vadd.f32 %v855_v5, %v305_v16  ;;  %v374_v25 = vadd.f32 %v855_v5, %v306_v17 }
  0x14   : > { %v375_v26 = vadd.f32 %v855_v5, %v307_v18  ;;  %v376_v27 = vadd.f32 %v855_v5, %v308_v19  ;;  %v377_v28 = vadd.f32 %v855_v5, %v309_v20  ;;  %v378_v29 = vadd.f32 %v855_v5, %v310_v21 }
  0x15   : > { %v435_v32 = vmax.f32 %v371_v22, 0.0  ;;  %v436_v33 = vmax.f32 %v372_v23, 0.0  ;;  %v437_v34 = vmax.f32 %v373_v24, 0.0  ;;  %v438_v35 = vmax.f32 %v374_v25, 0.0 }
  0x16   : > { %v439_v38 = vmax.f32 %v375_v26, 0.0  ;;  %v440_v39 = vmax.f32 %v376_v27, 0.0  ;;  %v441_v40 = vmax.f32 %v377_v28, 0.0  ;;  %v442_v41 = vmax.f32 %v378_v29, 0.0 }
  0x17   : > { %499 = vst [vmem:[%s874_s25] sm:$0xff] %v435_v32  ;;  %v649_v42 = vunpack.c.l.bf16 %v762_v30  ;;  %v650_v43 = vunpack.c.h.bf16 %v762_v30  ;;  %v653_v44 = vunpack.c.l.bf16 %v763_v31  ;;  %v654_v45 = vunpack.c.h.bf16 %v763_v31 }
  0x18   : > { %500 = vst [vmem:[%s874_s25 + $0x8] sm:$0xff] %v436_v33  ;;  %v657_v46 = vunpack.c.l.bf16 %v764_v36  ;;  %v658_v47 = vunpack.c.h.bf16 %v764_v36  ;;  %v661_v48 = vunpack.c.l.bf16 %v765_v37  ;;  %v662_v49 = vunpack.c.h.bf16 %v765_v37 }
  0x19   : > { %501 = vst [vmem:[%s874_s25 + $0x10] sm:$0xff] %v437_v34  ;;  %v311_v50 = vmul.f32 %v847_v0, %v649_v42  ;;  %v312_v51 = vmul.f32 %v847_v0, %v650_v43  ;;  %v313_v52 = vmul.f32 %v847_v0, %v653_v44  ;;  %v314_v53 = vmul.f32 %v847_v0, %v654_v45  ;;  %v772_v42 = vld [vmem:[%s842_s17 + $0x70] sm:$0xff]  }
  0x1a   : > { %502 = vst [vmem:[%s874_s25 + $0x18] sm:$0xff] %v438_v35  ;;  %v315_v54 = vmul.f32 %v847_v0, %v657_v46  ;;  %v316_v55 = vmul.f32 %v847_v0, %v658_v47  ;;  %v317_v56 = vmul.f32 %v847_v0, %v661_v48  ;;  %v318_v57 = vmul.f32 %v847_v0, %v662_v49  ;;  %v773_v47 = vld [vmem:[%s842_s17 + $0x78] sm:$0xff]  }
  0x1b   : > { %503 = vst [vmem:[%s874_s25 + $0x20] sm:$0xff] %v439_v38  ;;  %v379_v58 = vadd.f32 %v855_v5, %v311_v50  ;;  %v380_v59 = vadd.f32 %v855_v5, %v312_v51  ;;  %v381_v60 = vadd.f32 %v855_v5, %v313_v52  ;;  %v382_v61 = vadd.f32 %v855_v5, %v314_v53 }
  0x1c   : > { %504 = vst [vmem:[%s874_s25 + $0x28] sm:$0xff] %v440_v39  ;;  %v383_v62 = vadd.f32 %v855_v5, %v315_v54  ;;  %v384_v63 = vadd.f32 %v855_v5, %v316_v55  ;;  %v385_v1 = vadd.f32 %v855_v5, %v317_v56  ;;  %v386_v2 = vadd.f32 %v855_v5, %v318_v57 }
  0x1d   : > { %505 = vst [vmem:[%s874_s25 + $0x30] sm:$0xff] %v441_v40  ;;  %v443_v7 = vmax.f32 %v379_v58, 0.0  ;;  %v444_v8 = vmax.f32 %v380_v59, 0.0  ;;  %v445_v9 = vmax.f32 %v381_v60, 0.0  ;;  %v446_v10 = vmax.f32 %v382_v61, 0.0  ;;  %v770_v40 = vld [vmem:[%s842_s17 + $0x60] sm:$0xff]  }
  0x1e   : > { %506 = vst [vmem:[%s874_s25 + $0x38] sm:$0xff] %v442_v41  ;;  %v447_v12 = vmax.f32 %v383_v62, 0.0  ;;  %v448_v13 = vmax.f32 %v384_v63, 0.0  ;;  %v449_v14 = vmax.f32 %v385_v1, 0.0  ;;  %v450_v15 = vmax.f32 %v386_v2, 0.0  ;;  %v771_v41 = vld [vmem:[%s842_s17 + $0x68] sm:$0xff]  }
  0x1f   : > { %507 = vst [vmem:[%s874_s25 + $0x40] sm:$0xff] %v443_v7  ;;  %v665_v16 = vunpack.c.l.bf16 %v766_v3  ;;  %v666_v17 = vunpack.c.h.bf16 %v766_v3  ;;  %v669_v18 = vunpack.c.l.bf16 %v767_v4  ;;  %v670_v19 = vunpack.c.h.bf16 %v767_v4 }
  0x20   : > { %508 = vst [vmem:[%s874_s25 + $0x48] sm:$0xff] %v444_v8  ;;  %v673_v20 = vunpack.c.l.bf16 %v768_v6  ;;  %v674_v21 = vunpack.c.h.bf16 %v768_v6  ;;  %v677_v22 = vunpack.c.l.bf16 %v769_v11  ;;  %v678_v23 = vunpack.c.h.bf16 %v769_v11 }
  0x21   : > { %509 = vst [vmem:[%s874_s25 + $0x50] sm:$0xff] %v445_v9  ;;  %v319_v24 = vmul.f32 %v847_v0, %v665_v16  ;;  %v320_v25 = vmul.f32 %v847_v0, %v666_v17  ;;  %v321_v26 = vmul.f32 %v847_v0, %v669_v18  ;;  %v322_v27 = vmul.f32 %v847_v0, %v670_v19  ;;  %v776_v16 = vld [vmem:[%s842_s17 + $0x90] sm:$0xff]  }
  0x22   : > { %510 = vst [vmem:[%s874_s25 + $0x58] sm:$0xff] %v446_v10  ;;  %v323_v28 = vmul.f32 %v847_v0, %v673_v20  ;;  %v324_v29 = vmul.f32 %v847_v0, %v674_v21  ;;  %v325_v30 = vmul.f32 %v847_v0, %v677_v22  ;;  %v326_v31 = vmul.f32 %v847_v0, %v678_v23  ;;  %v777_v21 = vld [vmem:[%s842_s17 + $0x98] sm:$0xff]  }
  0x23   : > { %511 = vst [vmem:[%s874_s25 + $0x60] sm:$0xff] %v447_v12  ;;  %v387_v32 = vadd.f32 %v855_v5, %v319_v24  ;;  %v388_v33 = vadd.f32 %v855_v5, %v320_v25  ;;  %v389_v34 = vadd.f32 %v855_v5, %v321_v26  ;;  %v390_v35 = vadd.f32 %v855_v5, %v322_v27 }
  0x24   : > { %512 = vst [vmem:[%s874_s25 + $0x68] sm:$0xff] %v448_v13  ;;  %v391_v36 = vadd.f32 %v855_v5, %v323_v28  ;;  %v392_v37 = vadd.f32 %v855_v5, %v324_v29  ;;  %v393_v38 = vadd.f32 %v855_v5, %v325_v30  ;;  %v394_v39 = vadd.f32 %v855_v5, %v326_v31 }
  0x25   : > { %513 = vst [vmem:[%s874_s25 + $0x70] sm:$0xff] %v449_v14  ;;  %v451_v43 = vmax.f32 %v387_v32, 0.0  ;;  %v452_v44 = vmax.f32 %v388_v33, 0.0  ;;  %v453_v45 = vmax.f32 %v389_v34, 0.0  ;;  %v454_v46 = vmax.f32 %v390_v35, 0.0  ;;  %v774_v14 = vld [vmem:[%s842_s17 + $0x80] sm:$0xff]  }
  0x26   : > { %514 = vst [vmem:[%s874_s25 + $0x78] sm:$0xff] %v450_v15  ;;  %v455_v48 = vmax.f32 %v391_v36, 0.0  ;;  %v456_v49 = vmax.f32 %v392_v37, 0.0  ;;  %v457_v50 = vmax.f32 %v393_v38, 0.0  ;;  %v458_v51 = vmax.f32 %v394_v39, 0.0  ;;  %v775_v15 = vld [vmem:[%s842_s17 + $0x88] sm:$0xff]  }
  0x27   : > { %515 = vst [vmem:[%s874_s25 + $0x80] sm:$0xff] %v451_v43  ;;  %v681_v52 = vunpack.c.l.bf16 %v770_v40  ;;  %v682_v53 = vunpack.c.h.bf16 %v770_v40  ;;  %v685_v54 = vunpack.c.l.bf16 %v771_v41  ;;  %v686_v55 = vunpack.c.h.bf16 %v771_v41 }
  0x28   : > { %516 = vst [vmem:[%s874_s25 + $0x88] sm:$0xff] %v452_v44  ;;  %v689_v56 = vunpack.c.l.bf16 %v772_v42  ;;  %v690_v57 = vunpack.c.h.bf16 %v772_v42  ;;  %v693_v58 = vunpack.c.l.bf16 %v773_v47  ;;  %v694_v59 = vunpack.c.h.bf16 %v773_v47 }
  0x29   : > { %517 = vst [vmem:[%s874_s25 + $0x90] sm:$0xff] %v453_v45  ;;  %v327_v60 = vmul.f32 %v847_v0, %v681_v52  ;;  %v328_v61 = vmul.f32 %v847_v0, %v682_v53  ;;  %v329_v62 = vmul.f32 %v847_v0, %v685_v54  ;;  %v330_v63 = vmul.f32 %v847_v0, %v686_v55  ;;  %v780_v52 = vld [vmem:[%s842_s17 + $0xb0] sm:$0xff]  }
  0x2a   : > { %518 = vst [vmem:[%s874_s25 + $0x98] sm:$0xff] %v454_v46  ;;  %v331_v1 = vmul.f32 %v847_v0, %v689_v56  ;;  %v332_v2 = vmul.f32 %v847_v0, %v690_v57  ;;  %v333_v3 = vmul.f32 %v847_v0, %v693_v58  ;;  %v334_v4 = vmul.f32 %v847_v0, %v694_v59  ;;  %v781_v57 = vld [vmem:[%s842_s17 + $0xb8] sm:$0xff]  }
  0x2b   : > { %519 = vst [vmem:[%s874_s25 + $0xa0] sm:$0xff] %v455_v48  ;;  %v395_v6 = vadd.f32 %v855_v5, %v327_v60  ;;  %v396_v7 = vadd.f32 %v855_v5, %v328_v61  ;;  %v397_v8 = vadd.f32 %v855_v5, %v329_v62  ;;  %v398_v9 = vadd.f32 %v855_v5, %v330_v63 }
  0x2c   : > { %520 = vst [vmem:[%s874_s25 + $0xa8] sm:$0xff] %v456_v49  ;;  %v399_v10 = vadd.f32 %v855_v5, %v331_v1  ;;  %v400_v11 = vadd.f32 %v855_v5, %v332_v2  ;;  %v401_v12 = vadd.f32 %v855_v5, %v333_v3  ;;  %v402_v13 = vadd.f32 %v855_v5, %v334_v4 }
  0x2d   : > { %521 = vst [vmem:[%s874_s25 + $0xb0] sm:$0xff] %v457_v50  ;;  %v459_v17 = vmax.f32 %v395_v6, 0.0  ;;  %v460_v18 = vmax.f32 %v396_v7, 0.0  ;;  %v461_v19 = vmax.f32 %v397_v8, 0.0  ;;  %v462_v20 = vmax.f32 %v398_v9, 0.0  ;;  %v778_v50 = vld [vmem:[%s842_s17 + $0xa0] sm:$0xff]  }
  0x2e   : > { %522 = vst [vmem:[%s874_s25 + $0xb8] sm:$0xff] %v458_v51  ;;  %v463_v22 = vmax.f32 %v399_v10, 0.0  ;;  %v464_v23 = vmax.f32 %v400_v11, 0.0  ;;  %v465_v24 = vmax.f32 %v401_v12, 0.0  ;;  %v466_v25 = vmax.f32 %v402_v13, 0.0  ;;  %v779_v51 = vld [vmem:[%s842_s17 + $0xa8] sm:$0xff]  }
  0x2f   : > { %523 = vst [vmem:[%s874_s25 + $0xc0] sm:$0xff] %v459_v17  ;;  %v697_v26 = vunpack.c.l.bf16 %v774_v14  ;;  %v698_v27 = vunpack.c.h.bf16 %v774_v14  ;;  %v701_v28 = vunpack.c.l.bf16 %v775_v15  ;;  %v702_v29 = vunpack.c.h.bf16 %v775_v15 }
  0x30   : > { %524 = vst [vmem:[%s874_s25 + $0xc8] sm:$0xff] %v460_v18  ;;  %v705_v30 = vunpack.c.l.bf16 %v776_v16  ;;  %v706_v31 = vunpack.c.h.bf16 %v776_v16  ;;  %v709_v32 = vunpack.c.l.bf16 %v777_v21  ;;  %v710_v33 = vunpack.c.h.bf16 %v777_v21 }
  0x31   : > { %525 = vst [vmem:[%s874_s25 + $0xd0] sm:$0xff] %v461_v19  ;;  %v335_v34 = vmul.f32 %v847_v0, %v697_v26  ;;  %v336_v35 = vmul.f32 %v847_v0, %v698_v27  ;;  %v337_v36 = vmul.f32 %v847_v0, %v701_v28  ;;  %v338_v37 = vmul.f32 %v847_v0, %v702_v29  ;;  %v784_v26 = vld [vmem:[%s842_s17 + $0xd0] sm:$0xff]  }
  0x32   : > { %526 = vst [vmem:[%s874_s25 + $0xd8] sm:$0xff] %v462_v20  ;;  %v339_v38 = vmul.f32 %v847_v0, %v705_v30  ;;  %v340_v39 = vmul.f32 %v847_v0, %v706_v31  ;;  %v341_v40 = vmul.f32 %v847_v0, %v709_v32  ;;  %v342_v41 = vmul.f32 %v847_v0, %v710_v33  ;;  %v785_v31 = vld [vmem:[%s842_s17 + $0xd8] sm:$0xff]  }
  0x33   : > { %527 = vst [vmem:[%s874_s25 + $0xe0] sm:$0xff] %v463_v22  ;;  %v403_v42 = vadd.f32 %v855_v5, %v335_v34  ;;  %v404_v43 = vadd.f32 %v855_v5, %v336_v35  ;;  %v405_v44 = vadd.f32 %v855_v5, %v337_v36  ;;  %v406_v45 = vadd.f32 %v855_v5, %v338_v37 }
  0x34   : > { %528 = vst [vmem:[%s874_s25 + $0xe8] sm:$0xff] %v464_v23  ;;  %v407_v46 = vadd.f32 %v855_v5, %v339_v38  ;;  %v408_v47 = vadd.f32 %v855_v5, %v340_v39  ;;  %v409_v48 = vadd.f32 %v855_v5, %v341_v40  ;;  %v410_v49 = vadd.f32 %v855_v5, %v342_v41 }
  0x35   : > { %529 = vst [vmem:[%s874_s25 + $0xf0] sm:$0xff] %v465_v24  ;;  %v467_v53 = vmax.f32 %v403_v42, 0.0  ;;  %v468_v54 = vmax.f32 %v404_v43, 0.0  ;;  %v469_v55 = vmax.f32 %v405_v44, 0.0  ;;  %v470_v56 = vmax.f32 %v406_v45, 0.0  ;;  %v782_v24 = vld [vmem:[%s842_s17 + $0xc0] sm:$0xff]  }
  0x36   : > { %530 = vst [vmem:[%s874_s25 + $0xf8] sm:$0xff] %v466_v25  ;;  %v471_v58 = vmax.f32 %v407_v46, 0.0  ;;  %v472_v59 = vmax.f32 %v408_v47, 0.0  ;;  %v473_v60 = vmax.f32 %v409_v48, 0.0  ;;  %v474_v61 = vmax.f32 %v410_v49, 0.0  ;;  %v783_v25 = vld [vmem:[%s842_s17 + $0xc8] sm:$0xff]  }
  0x37   : > { %531 = vst [vmem:[%s874_s25 + $0x100] sm:$0xff] %v467_v53  ;;  %v713_v62 = vunpack.c.l.bf16 %v778_v50  ;;  %v714_v63 = vunpack.c.h.bf16 %v778_v50  ;;  %v717_v1 = vunpack.c.l.bf16 %v779_v51  ;;  %v718_v2 = vunpack.c.h.bf16 %v779_v51 }
  0x38   : > { %532 = vst [vmem:[%s874_s25 + $0x108] sm:$0xff] %v468_v54  ;;  %v721_v3 = vunpack.c.l.bf16 %v780_v52  ;;  %v722_v4 = vunpack.c.h.bf16 %v780_v52  ;;  %v725_v6 = vunpack.c.l.bf16 %v781_v57  ;;  %v726_v7 = vunpack.c.h.bf16 %v781_v57 }
  0x39   : > { %533 = vst [vmem:[%s874_s25 + $0x110] sm:$0xff] %v469_v55  ;;  %v343_v8 = vmul.f32 %v847_v0, %v713_v62  ;;  %v344_v9 = vmul.f32 %v847_v0, %v714_v63  ;;  %v345_v10 = vmul.f32 %v847_v0, %v717_v1  ;;  %v346_v11 = vmul.f32 %v847_v0, %v718_v2  ;;  %v788_v62 = vld [vmem:[%s842_s17 + $0xf0] sm:$0xff]  }
  0x3a   : > { %534 = vst [vmem:[%s874_s25 + $0x118] sm:$0xff] %v470_v56  ;;  %v347_v12 = vmul.f32 %v847_v0, %v721_v3  ;;  %v348_v13 = vmul.f32 %v847_v0, %v722_v4  ;;  %v349_v14 = vmul.f32 %v847_v0, %v725_v6  ;;  %v350_v15 = vmul.f32 %v847_v0, %v726_v7  ;;  %v789_v4 = vld [vmem:[%s842_s17 + $0xf8] sm:$0xff]  }
  0x3b   : > { %535 = vst [vmem:[%s874_s25 + $0x120] sm:$0xff] %v471_v58  ;;  %v411_v16 = vadd.f32 %v855_v5, %v343_v8  ;;  %v412_v17 = vadd.f32 %v855_v5, %v344_v9  ;;  %v413_v18 = vadd.f32 %v855_v5, %v345_v10  ;;  %v414_v19 = vadd.f32 %v855_v5, %v346_v11 }
  0x3c   : > { %536 = vst [vmem:[%s874_s25 + $0x128] sm:$0xff] %v472_v59  ;;  %v415_v20 = vadd.f32 %v855_v5, %v347_v12  ;;  %v416_v21 = vadd.f32 %v855_v5, %v348_v13  ;;  %v417_v22 = vadd.f32 %v855_v5, %v349_v14  ;;  %v418_v23 = vadd.f32 %v855_v5, %v350_v15 }
  0x3d   : > { %537 = vst [vmem:[%s874_s25 + $0x130] sm:$0xff] %v473_v60  ;;  %v475_v27 = vmax.f32 %v411_v16, 0.0  ;;  %v476_v28 = vmax.f32 %v412_v17, 0.0  ;;  %v477_v29 = vmax.f32 %v413_v18, 0.0  ;;  %v478_v30 = vmax.f32 %v414_v19, 0.0  ;;  %v786_v60 = vld [vmem:[%s842_s17 + $0xe0] sm:$0xff]  }
  0x3e   : > { %538 = vst [vmem:[%s874_s25 + $0x138] sm:$0xff] %v474_v61  ;;  %v479_v32 = vmax.f32 %v415_v20, 0.0  ;;  %v480_v33 = vmax.f32 %v416_v21, 0.0  ;;  %v481_v34 = vmax.f32 %v417_v22, 0.0  ;;  %v482_v35 = vmax.f32 %v418_v23, 0.0  ;;  %v787_v61 = vld [vmem:[%s842_s17 + $0xe8] sm:$0xff]  }
  0x3f   : > { %539 = vst [vmem:[%s874_s25 + $0x140] sm:$0xff] %v475_v27  ;;  %v729_v36 = vunpack.c.l.bf16 %v782_v24  ;;  %v730_v37 = vunpack.c.h.bf16 %v782_v24  ;;  %v733_v38 = vunpack.c.l.bf16 %v783_v25  ;;  %v734_v39 = vunpack.c.h.bf16 %v783_v25 }
  0x40   : > { %540 = vst [vmem:[%s874_s25 + $0x148] sm:$0xff] %v476_v28  ;;  %v737_v40 = vunpack.c.l.bf16 %v784_v26  ;;  %v738_v41 = vunpack.c.h.bf16 %v784_v26  ;;  %v741_v42 = vunpack.c.l.bf16 %v785_v31  ;;  %v742_v43 = vunpack.c.h.bf16 %v785_v31 }
  0x41   : > { %541 = vst [vmem:[%s874_s25 + $0x150] sm:$0xff] %v477_v29  ;;  %v351_v44 = vmul.f32 %v847_v0, %v729_v36  ;;  %v352_v45 = vmul.f32 %v847_v0, %v730_v37  ;;  %v353_v46 = vmul.f32 %v847_v0, %v733_v38  ;;  %v354_v47 = vmul.f32 %v847_v0, %v734_v39 }
  0x42   : > { %542 = vst [vmem:[%s874_s25 + $0x158] sm:$0xff] %v478_v30  ;;  %v355_v48 = vmul.f32 %v847_v0, %v737_v40  ;;  %v356_v49 = vmul.f32 %v847_v0, %v738_v41  ;;  %v357_v50 = vmul.f32 %v847_v0, %v741_v42  ;;  %v358_v51 = vmul.f32 %v847_v0, %v742_v43 }
  0x43   : > { %543 = vst [vmem:[%s874_s25 + $0x160] sm:$0xff] %v479_v32  ;;  %v419_v52 = vadd.f32 %v855_v5, %v351_v44  ;;  %v420_v53 = vadd.f32 %v855_v5, %v352_v45  ;;  %v421_v54 = vadd.f32 %v855_v5, %v353_v46  ;;  %v422_v55 = vadd.f32 %v855_v5, %v354_v47 }
  0x44   : > { %544 = vst [vmem:[%s874_s25 + $0x168] sm:$0xff] %v480_v33  ;;  %v423_v56 = vadd.f32 %v855_v5, %v355_v48  ;;  %v424_v57 = vadd.f32 %v855_v5, %v356_v49  ;;  %v425_v58 = vadd.f32 %v855_v5, %v357_v50  ;;  %v426_v59 = vadd.f32 %v855_v5, %v358_v51 }
  0x45   : > { %545 = vst [vmem:[%s874_s25 + $0x170] sm:$0xff] %v481_v34  ;;  %v483_v63 = vmax.f32 %v419_v52, 0.0  ;;  %v484_v1 = vmax.f32 %v420_v53, 0.0  ;;  %v485_v2 = vmax.f32 %v421_v54, 0.0  ;;  %v486_v3 = vmax.f32 %v422_v55, 0.0 }
  0x46   : > { %546 = vst [vmem:[%s874_s25 + $0x178] sm:$0xff] %v482_v35  ;;  %v487_v6 = vmax.f32 %v423_v56, 0.0  ;;  %v488_v7 = vmax.f32 %v424_v57, 0.0  ;;  %v489_v8 = vmax.f32 %v425_v58, 0.0  ;;  %v490_v9 = vmax.f32 %v426_v59, 0.0 }
  0x47   : > { %547 = vst [vmem:[%s874_s25 + $0x180] sm:$0xff] %v483_v63  ;;  %v745_v10 = vunpack.c.l.bf16 %v786_v60  ;;  %v746_v11 = vunpack.c.h.bf16 %v786_v60  ;;  %v749_v12 = vunpack.c.l.bf16 %v787_v61  ;;  %v750_v13 = vunpack.c.h.bf16 %v787_v61 }
  0x48   : > { %548 = vst [vmem:[%s874_s25 + $0x188] sm:$0xff] %v484_v1  ;;  %v753_v14 = vunpack.c.l.bf16 %v788_v62  ;;  %v754_v15 = vunpack.c.h.bf16 %v788_v62  ;;  %v757_v16 = vunpack.c.l.bf16 %v789_v4  ;;  %v758_v17 = vunpack.c.h.bf16 %v789_v4 }
  0x49   : > { %549 = vst [vmem:[%s874_s25 + $0x190] sm:$0xff] %v485_v2  ;;  %v359_v18 = vmul.f32 %v847_v0, %v745_v10  ;;  %v360_v19 = vmul.f32 %v847_v0, %v746_v11  ;;  %v361_v20 = vmul.f32 %v847_v0, %v749_v12  ;;  %v362_v21 = vmul.f32 %v847_v0, %v750_v13 }
  0x4a   : > { %550 = vst [vmem:[%s874_s25 + $0x198] sm:$0xff] %v486_v3  ;;  %v363_v22 = vmul.f32 %v847_v0, %v753_v14  ;;  %v364_v23 = vmul.f32 %v847_v0, %v754_v15  ;;  %v365_v24 = vmul.f32 %v847_v0, %v757_v16  ;;  %v366_v25 = vmul.f32 %v847_v0, %v758_v17 }
  0x4b   : > { %551 = vst [vmem:[%s874_s25 + $0x1a0] sm:$0xff] %v487_v6  ;;  %v427_v26 = vadd.f32 %v855_v5, %v359_v18  ;;  %v428_v27 = vadd.f32 %v855_v5, %v360_v19  ;;  %v429_v28 = vadd.f32 %v855_v5, %v361_v20  ;;  %v430_v29 = vadd.f32 %v855_v5, %v362_v21 }
  0x4c   : > { %552 = vst [vmem:[%s874_s25 + $0x1a8] sm:$0xff] %v488_v7  ;;  %v431_v30 = vadd.f32 %v855_v5, %v363_v22  ;;  %v432_v31 = vadd.f32 %v855_v5, %v364_v23  ;;  %v434_v0 = vadd.f32 %v855_v5, %v366_v25  ;;  %v433_v35 = vadd.f32 %v855_v5, %v365_v24 }
  0x4d   : > { %553 = vst [vmem:[%s874_s25 + $0x1b0] sm:$0xff] %v489_v8  ;;  %v491_v32 = vmax.f32 %v427_v26, 0.0  ;;  %v492_v33 = vmax.f32 %v428_v27, 0.0  ;;  %v493_v34 = vmax.f32 %v429_v28, 0.0  ;;  %v494_v36 = vmax.f32 %v430_v29, 0.0 }
  0x4e   : > { %554 = vst [vmem:[%s874_s25 + $0x1b8] sm:$0xff] %v490_v9  ;;  %v495_v37 = vmax.f32 %v431_v30, 0.0  ;;  %v496_v38 = vmax.f32 %v432_v31, 0.0  ;;  %v497_v39 = vmax.f32 %v433_v35, 0.0  ;;  %v498_v40 = vmax.f32 %v434_v0, 0.0 }
  0x4f   : > { %555 = vst [vmem:[%s874_s25 + $0x1c0] sm:$0xff] %v491_v32 }
  0x50   : > { %556 = vst [vmem:[%s874_s25 + $0x1c8] sm:$0xff] %v492_v33 }
  0x51   : > { %557 = vst [vmem:[%s874_s25 + $0x1d0] sm:$0xff] %v493_v34 }
  0x52   : > { %558 = vst [vmem:[%s874_s25 + $0x1d8] sm:$0xff] %v494_v36 }
  0x53   : > { %559 = vst [vmem:[%s874_s25 + $0x1e0] sm:$0xff] %v495_v37 }
  0x54   : > { %560 = vst [vmem:[%s874_s25 + $0x1e8] sm:$0xff] %v496_v38 }
  0x55   : > { %561 = vst [vmem:[%s874_s25 + $0x1f0] sm:$0xff] %v497_v39 }
  0x56   : > { %562 = vst [vmem:[%s874_s25 + $0x1f8] sm:$0xff] %v498_v40 }
  0x57 PF: > { %s13_s12 = sadd.s32 1, %s806_s12  }
  0x58   : > { %p10_p4 = scmp.ge.s32.totalorder %s13_s12, 4  }
  0x5a   :  { %12 = sbr.rel (!%p10_p4) target bundleno = 1 (0x1), region = 62 }

// kernel: conv_block_3d.3
= control target key start
LH: loop header
LB: loop body
LE: loop exit
PB: predicated region body
PF: predicated region fallthrough
CT: control target
= control target key end

     0   :  { %s4905_s18 = smov 0   ;;  %s4907_s19 = smov 0   ;;  %s6371_s0 = inlined_call_operand.vmem [shape: bf16[2,10,10,10,4], index: 0, kind: input, shape index: {}, may-alias: {0,1,2}]   ;;  %s6372_s1 = inlined_call_operand.vmem [shape: bf16[2,10,10,10,4], index: 1, kind: input, shape index: {}, may-alias: {0,1,2}]   ;;  %s6373_s2 = inlined_call_operand.vmem [shape: bf16[2,10,10,10,4], index: 2, kind: input, shape index: {}, may-alias: {0,1,2}]   ;;  %s6374_s3 = inlined_call_operand.vmem [shape: bf16[27,4,128], index: 3, kind: input, shape index: {}]   ;;  %s6375_s4 = inlined_call_operand.vmem [shape: bf16[2,8,8,8,128], index: 4, kind: output, shape index: {0}]   ;;  %s6376_s5 = inlined_call_operand.vmem [shape: f32[2,8,2,128], index: 5, kind: output, shape index: {1}]  }
   0x1   :  { %s4909_s20 = smov 0   ;;  %s4911_s21 = smov 0  }
   0x2   :  { %s4913_s22 = smov 0  }
   0x3 LB: > { %s25_s23 = sadd.s32 1, %s4865_s20  ;;  %s28_s24 = sadd.s32 1, %s4869_s21  ;;  %s4873_s22 = sphi %s4913_s22, %s16_s22   ;;  %s4869_s21 = sphi %s4911_s21, %s6385_s21   ;;  %s4865_s20 = sphi %s4909_s20, %s6384_s20   ;;  %s4861_s19 = sphi %s4907_s19, %s6383_s19   ;;  %s4857_s18 = sphi %s4905_s18, %s6382_s18  }
   0x4   : > { %p26_p0 = scmp.ge.s32.totalorder %s25_s23, 8  ;;  %p4176_p1 = scmp.ge.s32.totalorder %s4873_s22, 1 }
   0x5   : > { %p252_p2 = scmp.lt.s32.totalorder %s4873_s22, 17 }
   0x6   : > { %s6387_s23 = smov (%p26_p0, %s25_s23), 0  ;;  %s6389_s24 = smov (!%p26_p0, %s28_s24), %s4869_s21 }
   0x7   : > { %p253_p3 = pnand %p4176_p1, %p252_p2  ;;  %p30_p4 = scmp.ge.s32.totalorder %s6389_s24, 2 }
   0x8   : > { %p316_p5 = scmp.lt.s32.totalorder (!%p253_p3), %s4861_s19, 1  ;;  %p318_p6 = scmp.lt.s32.totalorder (!%p253_p3), %s4857_s18, 9 }
   0x9   : > { %s6391_s24 = smov (%p30_p4, %s6389_s24), 0  ;;  %256 = sbr.rel (%p253_p3) target bundleno = 624 (0x270), region = 36 }
   0xa   : > { %s325_s13 = sadd.s32 (!%p253_p3), 1, %s4857_s18  ;;  %s336_s29 = sadd.s32 (!%p253_p3), 2, %s4857_s18 }
   0xb   : > { %p5136_p7 = scmp.lt.s32.totalorder (!%p253_p3), %s325_s13, 9  ;;  %p339_p8 = scmp.lt.s32.totalorder (!%p253_p3), %s336_s29, 9 }
   0xc   : > { %p349_p9 = scmp.lt.s32.totalorder (!%p253_p3), %s4857_s18, 7 }
   0xe   : > { %vm524_vm0 = vcmask 1041408   ;;  %v4218_v0 = vld [vmem:[%s6374_s3 + $0x4] sm:$0x3]  ;;  %v4185_v1 = vld [vmem:[%s6374_s3 + $0x2] sm:$0x3]  ;;  %s6393_s19 = smov (!%p316_p5, %s4861_s19), 1 }
   0xf   : > { %v4944_v2 = vsel %vm524_vm0, %v4218_v0, 0  ;;  %v526_v3 = vsel %vm524_vm0, %v4185_v1, 0  ;;  %v373_v4 = vld [vmem:[%s6374_s3] sm:$0x3]  ;;  %s319_s6 = scalar_select %p318_p6, %s4857_s18, 9  ;;  %vm645_vm1 = vcmask 1042432  }
  0x10   : > { %4790 = vmatpush.bf16.msra.mxu2 %v4944_v2  ;;  %535 = vmatpush.bf16.msra.mxu0 %v526_v3  ;;  %v590_v5 = vsel %vm524_vm0, %v373_v4, 0  ;;  %v4231_v6 = vld [vmem:[%s6374_s3 + $0x6] sm:$0x3]  ;;  %s4960_s9 = smul.u32 200, %s6393_s19  ;;  %v4302_v8 = vld [vmem:[%s6374_s3 + $0xc] sm:$0x3] }
  0x11   : > { %4788 = vmatpush.bf16.msra.mxu3 %v526_v3  ;;  %4789 = vmatpush.bf16.msra.mxu1 %v590_v5  ;;  %v790_v7 = vsel %vm524_vm0, %v4231_v6, 0  ;;  %s4791_s12 = smul.u32 20, %s319_s6  ;;  %v1189_v9 = vsel %vm524_vm0, %v4302_v8, 0  ;;  %v4289_v10 = vld [vmem:[%s6374_s3 + $0xa] sm:$0x3]  ;;  %vm646_vm2 = vcmask 1046532  }
  0x12   : > { %v1106_v11 = vsel %vm524_vm0, %v4289_v10, 0  ;;  %vm511_vm3 = vcmask 31744   ;;  %vm4977_vm4 = vmor %vm645_vm1, %vm646_vm2  ;;  %vm382_vm5 = vsmask.f32 3328  ;;  %vm383_vm6 = vsmask.f32 7440 }
  0x13   : > { %s322_s15 = sadd.s32 %s4960_s9, %s4791_s12  ;;  %vm5008_vm7 = vmor %vm382_vm5, %vm383_vm6  ;;  %s6395_s13 = smov (!%p5136_p7, %s325_s13), 9 }
  0x14   : > { %599 = vmatpush.bf16.msrb.mxu0 %v590_v5  ;;  %1198 = vmatpush.bf16.msrb.mxu2 %v1189_v9  ;;  %s4177_s16 = sshll.u32 %s322_s15, 2  ;;  %s4793_s15 = smul.u32 20, %s6395_s13 }
  0x15   : > { %799 = vmatpush.bf16.msrb.mxu3 %v790_v7  ;;  %1115 = vmatpush.bf16.msrb.mxu1 %v1106_v11  ;;  %s4975_s26 = scalar_lea.vmem %s6371_s0, %s4177_s16  ;;  %s6397_s29 = smov (!%p339_p8, %s336_s29), 9 }
  0x16   : > { %v376_v13 = vld [vmem:[%s4975_s26 + $0x14] sm:$0x1]  ;;  %v377_v14 = vld [vmem:[%s4975_s26 + $0x1c] sm:$0x1]  ;;  %v623_v15 = vld [vmem:[%s4975_s26 + $0x10] sm:$0xe]  ;;  %s332_s16 = sadd.s32 %s4793_s15, %s4960_s9 }
  0x17   : > { %v624_v16 = vld [vmem:[%s4975_s26 + $0x18] sm:$0xe]  ;;  %v4212_v17 = vrot.slane %v623_v15, 9  ;;  %v658_v18 = vrot.slane %v376_v13, 5  ;;  %v662_v19 = vrot.slane %v377_v14, 5  ;;  %v423_v20 = vshll.u32 %v376_v13, 16 }
  0x18   : > { %v4213_v21 = vrot.slane %v624_v16, 9  ;;  %v365_v22 = vld [vmem:[%s4975_s26] sm:$0xf]  ;;  %v366_v23 = vld [vmem:[%s4975_s26 + $0x8] sm:$0xf]  ;;  %v437_v24 = vshll.u32 %v377_v14, 16 }
  0x19   : > { %v659_v25 = vsel %vm4977_vm4, %v4212_v17, %v658_v18  ;;  %v4990_v26 = vld [vmem:[%s4975_s26 + $0x4] sm:$0x1]  ;;  %v4993_v27 = vld [vmem:[%s4975_s26 + $0xc] sm:$0x1]  ;;  %v386_v28 = vshrl.u32 %v365_v22, 16  ;;  %v389_v29 = vshll.u32 %v365_v22, 16 }
  0x1a   : > { %v663_v30 = vsel %vm4977_vm4, %v4213_v21, %v662_v19  ;;  %v684_v31 = vunpack.c.l.b16 %v659_v25  ;;  %v395_v32 = vshll.u32 %v4990_v26, 16  ;;  %v400_v33 = vshrl.u32 %v366_v23, 16  ;;  %v367_v38 = vld [vmem:[%s4975_s26 + $0x10] sm:$0xf]  ;;  %v368_v41 = vld [vmem:[%s4975_s26 + $0x18] sm:$0xf] }
  0x1b   : > { %v685_v34 = vunpack.c.l.b16 %v663_v30  ;;  %v388_v35 = vrot.slane %v386_v28, 4  ;;  %v391_v36 = vrot.slane %v389_v29, 5  ;;  %v403_v37 = vshll.u32 %v366_v23, 16  ;;  %v4196_v42 = vld [vmem:[%s4975_s26 + $0x10] sm:$0xf]  ;;  %s4178_s17 = sshll.u32 %s332_s16, 2 }
  0x1c   : > { %v402_v39 = vrot.slane %v400_v33, 4  ;;  %v409_v40 = vshll.u32 %v4993_v27, 16  ;;  %v397_v45 = vrot.slane %v395_v32, 5  ;;  %v4730_v47 = vld [vmem:[%s4975_s26 + $0x14] sm:$0xf0]  ;;  %v414_v51 = vshrl.u32 %v367_v38, 16  ;;  %s5173_s28 = scalar_lea.vmem %s6372_s1, %s4178_s17 }
  0x1d   : > { %v691_v43 = vpack.c.b16 %v685_v34, %v684_v31  ;;  %v392_v44 = vor.u32 %v391_v36, %v388_v35  ;;  %v405_v46 = vrot.slane %v403_v37, 5  ;;  %v5004_v48 = vld [vmem:[%s4975_s26 + $0x24] sm:$0x1]  ;;  %v417_v52 = vshll.u32 %v367_v38, 16  ;;  %v5013_v54 = vld [vmem:[%s4975_s26 + $0x2c] sm:$0x1] }
  0x1e   : > { %v411_v50 = vrot.slane %v409_v40, 5  ;;  %v425_v53 = vrot.slane %v423_v20, 5  ;;  %v428_v57 = vshrl.u32 %v368_v41, 16  ;;  %v431_v58 = vshll.u32 %v368_v41, 16  ;;  %v625_v59 = vld [vmem:[%s4975_s26 + $0x20] sm:$0xe] }
  0x1f   : > { %4220 = vmatmul.msk.bf16.vlgmr.msra.gmra.mxu2 %vm511_vm3, %v691_v43  ;;  %v393_v55 = vrot.slane %v392_v44, 4  ;;  %v406_v56 = vor.u32 %v405_v46, %v402_v39  ;;  %v416_v60 = vrot.slane %v414_v51, 4  ;;  %v419_v61 = vrot.slane %v417_v52, 5  ;;  %v626_v0 = vld [vmem:[%s4975_s26 + $0x28] sm:$0xe]  ;;  %s4794_s30 = smul.u32 20, %s6397_s29 }
  0x20   : > { %v439_v62 = vrot.slane %v437_v24, 5  ;;  %v4197_v63 = vor.u32 %v4730_v47, %v4196_v42  ;;  %v430_v4 = vrot.slane %v428_v57, 4  ;;  %v433_v5 = vrot.slane %v431_v58, 5  ;;  %v369_v6 = vld [vmem:[%s4975_s26 + $0x20] sm:$0xf]  ;;  %s6399_s18 = smov (!%p349_p9, %s4857_s18), 7 }
  0x21   : > { %v398_v1 = vsel %vm5008_vm7, %v393_v55, %v397_v45  ;;  %v407_v3 = vrot.slane %v406_v56, 4  ;;  %v420_v8 = vor.u32 %v419_v61, %v416_v60  ;;  %v4214_v9 = vrot.slane %v625_v59, 9  ;;  %v370_v22 = vld [vmem:[%s4975_s26 + $0x28] sm:$0xf]  ;;  %v4200_v44 = vld [vmem:[%s4975_s26 + $0x20] sm:$0xf]  ;;  %s5598_s8 = sadd.s32 %s4794_s30, %s4960_s9 }
  0x22   : > { %v499_v7 = vunpack.c.l.b16 %v398_v1  ;;  %4207 = vmatmul.msk.bf16.vlgmr.msra.gmra.mxu1 %vm511_vm3, %v4197_v63  ;;  %v666_v10 = vrot.slane %v5004_v48, 5  ;;  %v434_v13 = vor.u32 %v433_v5, %v430_v4  ;;  %v4215_v14 = vrot.slane %v626_v0, 9  ;;  %v4731_v45 = vld [vmem:[%s4975_s26 + $0x24] sm:$0xf0]  ;;  %v380_v46 = vld [vmem:[%s4975_s26 + $0x34] sm:$0x1] }
  0x23   : > { %v412_v11 = vsel %vm5008_vm7, %v407_v3, %v411_v50  ;;  %v670_v15 = vrot.slane %v5013_v54, 5  ;;  %v421_v17 = vrot.slane %v420_v8, 4  ;;  %v442_v19 = vshrl.u32 %v369_v6, 16  ;;  %v627_v51 = vld [vmem:[%s4975_s26 + $0x30] sm:$0xe]  ;;  %s4179_s9 = sshll.u32 %s5598_s8, 2 }
  0x24   : > { %v500_v16 = vunpack.c.l.b16 %v412_v11  ;;  %v667_v18 = vsel %vm4977_vm4, %v4214_v9, %v666_v10  ;;  %v435_v20 = vrot.slane %v434_v13, 4  ;;  %v445_v23 = vshll.u32 %v369_v6, 16  ;;  %v628_v52 = vld [vmem:[%s4975_s26 + $0x38] sm:$0xe]  ;;  %v4192_v58 = vld [vmem:[%s4975_s26] sm:$0xf]  ;;  %s5634_s17 = scalar_lea.vmem %s6373_s2, %s4179_s9 }
  0x25   : > { %v671_v21 = vsel %vm4977_vm4, %v4215_v14, %v670_v15  ;;  %v426_v25 = vsel %vm5008_vm7, %v421_v17, %v425_v53  ;;  %v686_v28 = vunpack.c.l.b16 %v667_v18  ;;  %v444_v29 = vrot.slane %v442_v19, 4  ;;  %v372_v57 = vld [vmem:[%s4975_s26 + $0x38] sm:$0xf]  ;;  %v4729_v63 = vld [vmem:[%s4975_s26 + $0x4] sm:$0xf0]  ;;  %s4180_s9 = sshll.u32 %s6399_s18, 3 }
  0x26   : > { %v507_v24 = vpack.c.b16 %v500_v16, %v499_v7  ;;  %v440_v30 = vsel %vm5008_vm7, %v435_v20, %v439_v62  ;;  %v501_v31 = vunpack.c.l.b16 %v426_v25  ;;  %v687_v32 = vunpack.c.l.b16 %v671_v21  ;;  %v4268_v10 = vld [vmem:[%s6374_s3 + $0x8] sm:$0x3]  ;;  %v621_v18 = vld [vmem:[%s4975_s26] sm:$0xe]  ;;  %s4181_s10 = sshll.u32 %s6393_s19, 6  ;;  %s4183_s15 = sshll.u32 %s6393_s19, 3 }
  0x27   : > { %v447_v33 = vrot.slane %v445_v23, 5  ;;  %v502_v34 = vunpack.c.l.b16 %v440_v30  ;;  %v451_v35 = vshll.u32 %v5004_v48, 16  ;;  %v456_v36 = vshrl.u32 %v370_v22, 16  ;;  %v622_v19 = vld [vmem:[%s4975_s26 + $0x8] sm:$0xe]  ;;  %s353_s11 = sadd.s32 %s4181_s10, %s4180_s9  ;;  %s361_s16 = sadd.s32 %s4183_s15, %s6399_s18 }
  0x28   : > { %4186 = vmatmul.msk.bf16.vlgmr.msra.gmra.mxu0 %vm511_vm3, %v507_v24  ;;  %v459_v37 = vshll.u32 %v370_v22, 16  ;;  %v465_v39 = vshll.u32 %v5013_v54, 16  ;;  %v692_v43 = vpack.c.b16 %v687_v32, %v686_v28  ;;  %v371_v54 = vld [vmem:[%s4975_s26 + $0x30] sm:$0xf]  ;;  %v4201_v56 = vor.u32 %v4731_v45, %v4200_v44  ;;  %v4252_v24 = vld [vmem:[%s4975_s26 + $0x8] sm:$0xf] }
  0x29   : > { %v448_v38 = vor.u32 %v447_v33, %v444_v29  ;;  %716 = vmatpush.bf16.msra.mxu0 %v4944_v2  ;;  %v508_v40 = vpack.c.b16 %v502_v34, %v501_v31  ;;  %v458_v41 = vrot.slane %v456_v36, 4  ;;  %v453_v48 = vrot.slane %v451_v35, 5  ;;  %v381_v2 = vld [vmem:[%s4975_s26 + $0x3c] sm:$0x1]  ;;  %v4254_v31 = vld [vmem:[%s4975_s26 + $0x10] sm:$0xf] }
  0x2a   : > { %v461_v42 = vrot.slane %v459_v37, 5  ;;  %v467_v53 = vrot.slane %v465_v39, 5  ;;  %v4216_v59 = vrot.slane %v627_v51, 9  ;;  %v674_v60 = vrot.slane %v380_v46, 5  ;;  %v4204_v36 = vld [vmem:[%s4975_s26 + $0x30] sm:$0xf] }
  0x2b   : > { %4187 = vmatmul.msk.bf16.vlgmr.msra.gmra.mxu3 %vm511_vm3, %v508_v40  ;;  %v449_v47 = vrot.slane %v448_v38, 4  ;;  %v4217_v61 = vrot.slane %v628_v52, 9  ;;  %v678_v0 = vrot.slane %v381_v2, 5  ;;  %v470_v1 = vshrl.u32 %v371_v54, 16  ;;  %v4386_v45 = vld [vmem:[%s6374_s3 + $0x14] sm:$0x3] }
  0x2c   : > { %v462_v50 = vor.u32 %v461_v42, %v458_v41  ;;  %v473_v3 = vshll.u32 %v371_v54, 16  ;;  %v484_v5 = vshrl.u32 %v372_v57, 16  ;;  %v487_v6 = vshll.u32 %v372_v57, 16  ;;  %v4365_v52 = vld [vmem:[%s6374_s3 + $0x12] sm:$0x3]  ;;  %s4182_s12 = sshll.u32 %s353_s11, 2 }
  0x2d   : > { %v454_v62 = vsel %vm5008_vm7, %v449_v47, %v453_v48  ;;  %v4193_v8 = vor.u32 %v4729_v63, %v4192_v58  ;;  %v675_v9 = vsel %vm4977_vm4, %v4216_v59, %v674_v60  ;;  %v679_v13 = vsel %vm4977_vm4, %v4217_v61, %v678_v0  ;;  %v4273_v59 = vld [vmem:[%s4975_s26 + $0x8] sm:$0xe]  ;;  %v4274_v63 = vld [vmem:[%s4975_s26 + $0x10] sm:$0xe]  ;;  %s6328_s14 = scalar_lea.vmem %s6375_s4, %s4182_s12 }
  0x2e   : > { %v463_v55 = vrot.slane %v462_v50, 4  ;;  %v503_v7 = vunpack.c.l.b16 %v454_v62  ;;  %v472_v14 = vrot.slane %v470_v1, 4  ;;  %v475_v15 = vrot.slane %v473_v3, 5  ;;  %v4253_v50 = vld [vmem:[%s4975_s26 + $0xc] sm:$0x1] }
  0x2f   : > { %4221 = vmatmul.msk.bf16.gmra.mxu2 %vm511_vm3, %v692_v43  ;;  %v486_v16 = vrot.slane %v484_v5, 4  ;;  %v489_v17 = vrot.slane %v487_v6, 5  ;;  %v984_v20 = vsel %vm524_vm0, %v4268_v10, 0  ;;  %v688_v21 = vunpack.c.l.b16 %v675_v9 }
  0x30   : > { %v468_v4 = vsel %vm5008_vm7, %v463_v55, %v467_v53  ;;  %v689_v22 = vunpack.c.l.b16 %v679_v13  ;;  %v479_v23 = vshll.u32 %v380_v46, 16  ;;  %v650_v25 = vrot.slane %v4990_v26, 5  ;;  %v4732_v26 = vld [vmem:[%s4975_s26 + $0x34] sm:$0xf0] }
  0x31   : > { %v504_v11 = vunpack.c.l.b16 %v468_v4  ;;  %v476_v29 = vor.u32 %v475_v15, %v472_v14  ;;  %v493_v30 = vshll.u32 %v381_v2, 16  ;;  %v654_v32 = vrot.slane %v4993_v27, 5  ;;  %v4339_v27 = vld [vmem:[%s6374_s3 + $0xe] sm:$0x3]  ;;  %v4255_v2 = vld [vmem:[%s4975_s26 + $0x14] sm:$0x1] }
  0x32   : > { %4208 = vmatmul.msk.bf16.gmra.mxu1 %vm511_vm3, %v4201_v56  ;;  %v490_v33 = vor.u32 %v489_v17, %v486_v16  ;;  %v4210_v34 = vrot.slane %v621_v18, 9  ;;  %v4211_v35 = vrot.slane %v622_v19, 9  ;;  %v846_v37 = vshrl.u32 %v4252_v24, 16  ;;  %v4305_v19 = vld [vmem:[%s4975_s26 + $0x10] sm:$0xf] }
  0x33   : > { %v509_v28 = vpack.c.b16 %v504_v11, %v503_v7  ;;  %v849_v38 = vshll.u32 %v4252_v24, 16  ;;  %v693_v39 = vpack.c.b16 %v689_v22, %v688_v21  ;;  %v481_v40 = vrot.slane %v479_v23, 5  ;;  %v4360_v11 = vld [vmem:[%s6374_s3 + $0x10] sm:$0x3] }
  0x34   : > { %v860_v41 = vshrl.u32 %v4254_v31, 16  ;;  %v863_v42 = vshll.u32 %v4254_v31, 16  ;;  %v477_v43 = vrot.slane %v476_v29, 4  ;;  %v495_v44 = vrot.slane %v493_v30, 5  ;;  %v4258_v29 = vld [vmem:[%s4975_s26 + $0x20] sm:$0xf] }
  0x35   : > { %v491_v46 = vrot.slane %v490_v33, 4  ;;  %v651_v47 = vsel %vm4977_vm4, %v4210_v34, %v650_v25  ;;  %v655_v48 = vsel %vm4977_vm4, %v4211_v35, %v654_v32  ;;  %v1383_v51 = vsel %vm524_vm0, %v4339_v27, 0  ;;  %v4275_v27 = vld [vmem:[%s4975_s26 + $0x18] sm:$0xe] }
  0x36   : > { %v4205_v53 = vor.u32 %v4732_v26, %v4204_v36  ;;  %v848_v54 = vrot.slane %v846_v37, 4  ;;  %v851_v55 = vrot.slane %v849_v38, 5  ;;  %1392 = vmatpush.bf16.msra.mxu3 %v1383_v51  ;;  %v1781_v56 = vsel %vm524_vm0, %v4386_v45, 0  ;;  %v4276_v45 = vld [vmem:[%s4975_s26 + $0x20] sm:$0xe] }
  0x37   : > { %v862_v57 = vrot.slane %v860_v41, 4  ;;  %v865_v58 = vrot.slane %v863_v42, 5  ;;  %v1587_v60 = vsel %vm524_vm0, %v4365_v52, 0  ;;  %v682_v61 = vunpack.c.l.b16 %v651_v47  ;;  %1790 = vmatpush.bf16.msra.mxu2 %v1781_v56  ;;  %v4259_v47 = vld [vmem:[%s4975_s26 + $0x24] sm:$0x1] }
  0x38   : > { %4206 = vmatmul.msk.bf16.vlgmr.msrb.gmra.mxu0 %vm511_vm3, %v4193_v8  ;;  %v683_v62 = vunpack.c.l.b16 %v655_v48  ;;  %1596 = vmatpush.bf16.msra.mxu1 %v1587_v60  ;;  %v482_v0 = vsel %vm5008_vm7, %v477_v43, %v481_v40  ;;  %v496_v1 = vsel %vm5008_vm7, %v491_v46, %v495_v44  ;;  %v852_v3 = vor.u32 %v851_v55, %v848_v54  ;;  %v4257_v46 = vld [vmem:[%s4975_s26 + $0x1c] sm:$0x1]  ;;  %v4733_v54 = vld [vmem:[%s4975_s26 + $0xc] sm:$0xf0] }
  0x39   : > { %993 = vmatpush.bf16.msrb.mxu0 %v984_v20  ;;  %v855_v4 = vshll.u32 %v4253_v50, 16  ;;  %v869_v5 = vshll.u32 %v4255_v2, 16  ;;  %v4281_v6 = vrot.slane %v4273_v59, 9  ;;  %v866_v7 = vor.u32 %v865_v58, %v862_v57  ;;  %v4737_v20 = vld [vmem:[%s4975_s26 + $0x14] sm:$0xf0] }
  0x3a   : > { %v1049_v8 = vrot.slane %v4253_v50, 5  ;;  %v4282_v9 = vrot.slane %v4274_v63, 9  ;;  %v1053_v10 = vrot.slane %v4255_v2, 5  ;;  %v505_v13 = vunpack.c.l.b16 %v482_v0  ;;  %v4234_v2 = vld [vmem:[%s4975_s26 + $0x8] sm:$0xf] }
  0x3b   : > { %4188 = vmatmul.msk.bf16.gmra.mxu3 %vm511_vm3, %v509_v28  ;;  %v506_v14 = vunpack.c.l.b16 %v496_v1  ;;  %v690_v15 = vpack.c.b16 %v683_v62, %v682_v61  ;;  %v857_v16 = vrot.slane %v855_v4, 5  ;;  %v871_v17 = vrot.slane %v869_v5, 5  ;;  %v4256_v28 = vld [vmem:[%s4975_s26 + $0x18] sm:$0xf]  ;;  %v4260_v59 = vld [vmem:[%s4975_s26 + $0x28] sm:$0xf] }
  0x3c   : > { %v1505_v18 = vsel %vm524_vm0, %v4360_v11, 0  ;;  %v853_v21 = vrot.slane %v852_v3, 4  ;;  %v867_v22 = vrot.slane %v866_v7, 4  ;;  %v1050_v23 = vsel %vm4977_vm4, %v4281_v6, %v1049_v8  ;;  %v4262_v60 = vld [vmem:[%s4975_s26 + $0x30] sm:$0xf] }
  0x3d   : > { %v1054_v24 = vsel %vm4977_vm4, %v4282_v9, %v1053_v10  ;;  %v510_v25 = vpack.c.b16 %v506_v14, %v505_v13  ;;  %v4306_v30 = vor.u32 %v4737_v20, %v4305_v19  ;;  %v1081_v31 = vunpack.c.l.b16 %v1050_v23  ;;  %v4309_v62 = vld [vmem:[%s4975_s26 + $0x20] sm:$0xf]  ;;  %v4738_v1 = vld [vmem:[%s4975_s26 + $0x24] sm:$0xf0]  ;;  %v4263_v23 = vld [vmem:[%s4975_s26 + $0x34] sm:$0x1] }
  0x3e   : > { %v1082_v32 = vunpack.c.l.b16 %v1054_v24  ;;  %v858_v33 = vsel %vm5008_vm7, %v853_v21, %v857_v16  ;;  %v872_v34 = vsel %vm5008_vm7, %v867_v22, %v871_v17  ;;  %v874_v35 = vshrl.u32 %v4256_v28, 16  ;;  %v4261_v22 = vld [vmem:[%s4975_s26 + $0x2c] sm:$0x1]  ;;  %v4277_v24 = vld [vmem:[%s4975_s26 + $0x28] sm:$0xe] }
  0x3f   : > { %4222 = vmatmul.msk.bf16.gmra.mxu2 %vm511_vm3, %v693_v39  ;;  %v877_v36 = vshll.u32 %v4256_v28, 16  ;;  %v888_v37 = vshrl.u32 %v4258_v29, 16  ;;  %v891_v38 = vshll.u32 %v4258_v29, 16  ;;  %v959_v39 = vunpack.c.l.b16 %v858_v33 }
  0x40   : > { %v960_v40 = vunpack.c.l.b16 %v872_v34  ;;  %v1089_v26 = vpack.c.b16 %v1082_v32, %v1081_v31  ;;  %v876_v41 = vrot.slane %v874_v35, 4  ;;  %v4283_v50 = vrot.slane %v4275_v27, 9 }
  0x41   : > { %v879_v42 = vrot.slane %v877_v36, 5  ;;  %v890_v43 = vrot.slane %v888_v37, 4  ;;  %v893_v44 = vrot.slane %v891_v38, 5  ;;  %v1057_v51 = vrot.slane %v4257_v46, 5  ;;  %v4238_v38 = vld [vmem:[%s4975_s26 + $0x18] sm:$0xf] }
  0x42   : > { %4209 = vmatmul.msk.bf16.gmra.mxu1 %vm511_vm3, %v4205_v53  ;;  %v967_v48 = vpack.c.b16 %v960_v40, %v959_v39  ;;  %v4284_v52 = vrot.slane %v4276_v45, 9  ;;  %v1061_v53 = vrot.slane %v4259_v47, 5  ;;  %v883_v56 = vshll.u32 %v4257_v46, 16  ;;  %v4734_v40 = vld [vmem:[%s4975_s26 + $0x1c] sm:$0xf0] }
  0x43   : > { %v880_v55 = vor.u32 %v879_v42, %v876_v41  ;;  %v894_v57 = vor.u32 %v893_v44, %v890_v43  ;;  %v897_v58 = vshll.u32 %v4259_v47, 16  ;;  %v4235_v61 = vor.u32 %v4733_v54, %v4234_v2  ;;  %v4264_v45 = vld [vmem:[%s4975_s26 + $0x38] sm:$0xf]  ;;  %v4266_v46 = vld [vmem:[%s4975_s26 + $0x40] sm:$0xf] }
  0x44   : > { %v1058_v63 = vsel %vm4977_vm4, %v4283_v50, %v1057_v51  ;;  %v1062_v0 = vsel %vm4977_vm4, %v4284_v52, %v1061_v53  ;;  %v885_v4 = vrot.slane %v883_v56, 5  ;;  %v902_v7 = vshrl.u32 %v4260_v59, 16  ;;  %v4739_v50 = vld [vmem:[%s4975_s26 + $0x34] sm:$0xf0] }
  0x45   : > { %v881_v3 = vrot.slane %v880_v55, 4  ;;  %v895_v5 = vrot.slane %v894_v57, 4  ;;  %v899_v6 = vrot.slane %v897_v58, 5  ;;  %v905_v8 = vshll.u32 %v4260_v59, 16 }
  0x46   : > { %v916_v9 = vshrl.u32 %v4262_v60, 16  ;;  %v919_v10 = vshll.u32 %v4262_v60, 16  ;;  %v1083_v11 = vunpack.c.l.b16 %v1058_v63  ;;  %v1084_v13 = vunpack.c.l.b16 %v1062_v0 }
  0x47   : > { %v4310_v14 = vor.u32 %v4738_v1, %v4309_v62  ;;  %v900_v16 = vsel %vm5008_vm7, %v895_v5, %v899_v6  ;;  %v904_v17 = vrot.slane %v902_v7, 4  ;;  %v911_v31 = vshll.u32 %v4261_v22, 16  ;;  %v4279_v5 = vld [vmem:[%s4975_s26 + $0x38] sm:$0xe]  ;;  %v4280_v6 = vld [vmem:[%s4975_s26 + $0x40] sm:$0xe] }
  0x48   : > { %4219 = vmatmul.msk.bf16.vlgmr.msra.gmra.mxu0 %vm511_vm3, %v690_v15  ;;  %v886_v15 = vsel %vm5008_vm7, %v881_v3, %v885_v4  ;;  %v918_v19 = vrot.slane %v916_v9, 4  ;;  %v921_v20 = vrot.slane %v919_v10, 5  ;;  %v1090_v21 = vpack.c.b16 %v1084_v13, %v1083_v11  ;;  %v4265_v3 = vld [vmem:[%s4975_s26 + $0x3c] sm:$0x1]  ;;  %v4267_v4 = vld [vmem:[%s4975_s26 + $0x44] sm:$0x1] }
  0x49   : > { %1514 = vmatpush.bf16.msra.mxu0 %v1505_v18  ;;  %v907_v18 = vrot.slane %v905_v8, 5  ;;  %v961_v28 = vunpack.c.l.b16 %v886_v15  ;;  %v962_v29 = vunpack.c.l.b16 %v900_v16  ;;  %v925_v33 = vshll.u32 %v4263_v23, 16  ;;  %v1626_v8 = vld [vmem:[%s5173_s28] sm:$0xf]  ;;  %v1628_v9 = vld [vmem:[%s5173_s28 + $0x8] sm:$0xf] }
  0x4a   : > { %v922_v32 = vor.u32 %v921_v20, %v918_v19  ;;  %v4285_v34 = vrot.slane %v4277_v24, 9  ;;  %v1065_v35 = vrot.slane %v4261_v22, 5  ;;  %v1069_v37 = vrot.slane %v4263_v23, 5  ;;  %v4242_v15 = vld [vmem:[%s4975_s26 + $0x28] sm:$0xf] }
  0x4b   : > { %4189 = vmatmul.msk.bf16.gmra.mxu3 %vm511_vm3, %v510_v25  ;;  %v4278_v25 = vld [vmem:[%s4975_s26 + $0x30] sm:$0xe]  ;;  %v968_v39 = vpack.c.b16 %v962_v29, %v961_v28  ;;  %v913_v41 = vrot.slane %v911_v31, 5  ;;  %v927_v43 = vrot.slane %v925_v33, 5  ;;  %v4239_v47 = vor.u32 %v4734_v40, %v4238_v38  ;;  %v4740_v28 = vld [vmem:[%s4975_s26 + $0x44] sm:$0xf0] }
  0x4c   : > { %v4286_v36 = vrot.slane %v4278_v25, 9  ;;  %v923_v42 = vrot.slane %v922_v32, 4  ;;  %v1066_v44 = vsel %vm4977_vm4, %v4285_v34, %v1065_v35  ;;  %v930_v54 = vshrl.u32 %v4264_v45, 16  ;;  %v4735_v20 = vld [vmem:[%s4975_s26 + $0x2c] sm:$0xf0] }
  0x4d   : > { %v1085_v53 = vunpack.c.l.b16 %v1066_v44  ;;  %v933_v55 = vshll.u32 %v4264_v45, 16  ;;  %v944_v56 = vshrl.u32 %v4266_v46, 16  ;;  %v947_v57 = vshll.u32 %v4266_v46, 16  ;;  %v4317_v25 = vld [vmem:[%s4975_s26 + $0x40] sm:$0xf] }
  0x4e   : > { %v1070_v27 = vsel %vm4977_vm4, %v4286_v36, %v1069_v37  ;;  %v928_v52 = vsel %vm5008_vm7, %v923_v42, %v927_v43  ;;  %v932_v62 = vrot.slane %v930_v54, 4  ;;  %v939_v11 = vshll.u32 %v4265_v3, 16  ;;  %v5192_v36 = vld [vmem:[%s5173_s28 + $0x4] sm:$0x1]  ;;  %v5195_v37 = vld [vmem:[%s5173_s28 + $0xc] sm:$0x1] }
  0x4f   : > { %4319 = vmatmul.msk.bf16.vlgmr.msrb.gmra.mxu2 %vm511_vm3, %v4306_v30  ;;  %v908_v30 = vor.u32 %v907_v18, %v904_v17  ;;  %v1086_v2 = vunpack.c.l.b16 %v1070_v27  ;;  %v964_v60 = vunpack.c.l.b16 %v928_v52  ;;  %v935_v63 = vrot.slane %v933_v55, 5  ;;  %v4470_v54 = vld [vmem:[%s6374_s3 + $0x1c] sm:$0x3]  ;;  %v4412_v55 = vld [vmem:[%s6374_s3 + $0x18] sm:$0x3] }
  0x50   : > { %v946_v0 = vrot.slane %v944_v56, 4  ;;  %v949_v1 = vrot.slane %v947_v57, 5  ;;  %v4287_v16 = vrot.slane %v4279_v5, 9  ;;  %v1073_v17 = vrot.slane %v4265_v3, 5 }
  0x51   : > { %v936_v10 = vor.u32 %v935_v63, %v932_v62  ;;  %v4288_v18 = vrot.slane %v4280_v6, 9  ;;  %v1077_v19 = vrot.slane %v4267_v4, 5  ;;  %v1646_v22 = vshll.u32 %v1626_v8, 16  ;;  %v4324_v63 = vld [vmem:[%s4975_s26 + $0x14] sm:$0x1] }
  0x52   : > { %4290 = vmatmul.msk.bf16.vlgmr.msrb.gmra.mxu1 %vm511_vm3, %v1089_v26  ;;  %v909_v26 = vrot.slane %v908_v30, 4  ;;  %v950_v13 = vor.u32 %v949_v1, %v946_v0  ;;  %v1657_v23 = vshrl.u32 %v1628_v9, 16  ;;  %v1660_v24 = vshll.u32 %v1628_v9, 16  ;;  %v1630_v1 = vld [vmem:[%s5173_s28 + $0x10] sm:$0xf] }
  0x53   : > { %v937_v29 = vrot.slane %v936_v10, 4  ;;  %v941_v30 = vrot.slane %v939_v11, 5  ;;  %v4243_v33 = vor.u32 %v4735_v20, %v4242_v15  ;;  %v1074_v34 = vsel %vm4977_vm4, %v4287_v16, %v1073_v17  ;;  %v4326_v10 = vld [vmem:[%s4975_s26 + $0x1c] sm:$0x1]  ;;  %v4736_v17 = vld [vmem:[%s4975_s26 + $0x3c] sm:$0xf0] }
  0x54   : > { %v914_v51 = vsel %vm5008_vm7, %v909_v26, %v913_v41  ;;  %v951_v31 = vrot.slane %v950_v13, 4  ;;  %v1078_v35 = vsel %vm4977_vm4, %v4288_v18, %v1077_v19  ;;  %v1659_v40 = vrot.slane %v1657_v23, 4  ;;  %v4323_v41 = vld [vmem:[%s4975_s26 + $0x10] sm:$0xf] }
  0x55   : > { %v963_v59 = vunpack.c.l.b16 %v914_v51  ;;  %v1662_v26 = vrot.slane %v1660_v24, 5  ;;  %v4318_v42 = vor.u32 %v4740_v28, %v4317_v25  ;;  %v942_v43 = vsel %vm5008_vm7, %v937_v29, %v941_v30  ;;  %v4344_v24 = vld [vmem:[%s4975_s26 + $0x10] sm:$0xe] }
  0x56   : > { %v1087_v27 = vunpack.c.l.b16 %v1074_v34  ;;  %v1088_v45 = vunpack.c.l.b16 %v1078_v35  ;;  %v1652_v46 = vshll.u32 %v5192_v36, 16  ;;  %v1248_v51 = vshll.u32 %v4323_v41, 16 }
  0x57   : > { %v969_v7 = vpack.c.b16 %v964_v60, %v963_v59  ;;  %v2302_v57 = vsel %vm524_vm0, %v4470_v54, 0  ;;  %v4449_v59 = vld [vmem:[%s6374_s3 + $0x1a] sm:$0x3]  ;;  %v965_v60 = vunpack.c.l.b16 %v942_v43  ;;  %v1671_v15 = vshrl.u32 %v1630_v1, 16 }
  0x58   : > { %4269 = vmatmul.msk.bf16.vlgmr.msrb.gmra.mxu0 %vm511_vm3, %v967_v48  ;;  %v4313_v48 = vld [vmem:[%s4975_s26 + $0x30] sm:$0xf]  ;;  %v1092_v62 = vpack.c.b16 %v1088_v45, %v1087_v27  ;;  %2311 = vmatpush.bf16.msrb.mxu2 %v2302_v57  ;;  %v2180_v0 = vsel %vm524_vm0, %v4449_v59, 0  ;;  %v1654_v3 = vrot.slane %v1652_v46, 5  ;;  %v1250_v11 = vrot.slane %v1248_v51, 5 }
  0x59   : > { %v4314_v58 = vor.u32 %v4739_v50, %v4313_v48  ;;  %v4325_v48 = vld [vmem:[%s4975_s26 + $0x18] sm:$0xf]  ;;  %v1245_v50 = vshrl.u32 %v4323_v41, 16  ;;  %2189 = vmatpush.bf16.msrb.mxu1 %v2180_v0  ;;  %v1674_v16 = vshll.u32 %v1630_v1, 16  ;;  %v1254_v18 = vshll.u32 %v4324_v63, 16 }
  0x5a   : > { %v1259_v6 = vshrl.u32 %v4325_v48, 16  ;;  %v1262_v13 = vshll.u32 %v4325_v48, 16  ;;  %v1268_v23 = vshll.u32 %v4326_v10, 16  ;;  %v1673_v34 = vrot.slane %v1671_v15, 4  ;;  %v5241_v27 = vld [vmem:[%s5173_s28 + $0x1c] sm:$0x1] }
  0x5b   : > { %4248 = vmatmul.msk.bf16.vlgmr.msrb.gmra.mxu3 %vm511_vm3, %v4235_v61  ;;  %v1091_v61 = vpack.c.b16 %v1086_v2, %v1085_v53  ;;  %v1663_v53 = vor.u32 %v1662_v26, %v1659_v40  ;;  %v4399_v2 = vld [vmem:[%s6374_s3 + $0x16] sm:$0x3]  ;;  %v1247_v5 = vrot.slane %v1245_v50, 4  ;;  %v1676_v35 = vrot.slane %v1674_v16, 5  ;;  %v4368_v57 = vld [vmem:[%s5173_s28] sm:$0xf] }
  0x5c   : > { %v1903_v56 = vsel %vm524_vm0, %v4399_v2, 0  ;;  %v1264_v30 = vrot.slane %v1262_v13, 5  ;;  %v1448_v43 = vrot.slane %v4324_v63, 5  ;;  %v4329_v2 = vld [vmem:[%s4975_s26 + $0x28] sm:$0xf] }
  0x5d   : > { %1912 = vmatpush.bf16.msrb.mxu3 %v1903_v56  ;;  %v1664_v9 = vrot.slane %v1663_v53, 4  ;;  %v1251_v29 = vor.u32 %v1250_v11, %v1247_v5  ;;  %v1677_v50 = vor.u32 %v1676_v35, %v1673_v34  ;;  %v4327_v53 = vld [vmem:[%s4975_s26 + $0x20] sm:$0xf]  ;;  %v4330_v15 = vld [vmem:[%s4975_s26 + $0x2c] sm:$0x1] }
  0x5e   : > { %v1273_v0 = vshrl.u32 %v4327_v53, 16  ;;  %v1276_v1 = vshll.u32 %v4327_v53, 16  ;;  %v1636_v16 = vld [vmem:[%s5173_s28 + $0x28] sm:$0xf]  ;;  %v5276_v53 = vld [vmem:[%s5173_s28 + $0x2c] sm:$0x1] }
  0x5f   : > { %4320 = vmatmul.msk.bf16.gmra.mxu2 %vm511_vm3, %v4310_v14  ;;  %v953_v14 = vshll.u32 %v4267_v4, 16  ;;  %v1252_v45 = vrot.slane %v1251_v29, 4  ;;  %v1678_v63 = vrot.slane %v1677_v50, 4 }
  0x61   : > { %v955_v32 = vrot.slane %v953_v14, 5  ;;  %v4246_v14 = vld [vmem:[%s4975_s26 + $0x38] sm:$0xf] }
  0x62   : > { %4291 = vmatmul.msk.bf16.gmra.mxu1 %vm511_vm3, %v1090_v21  ;;  %v1643_v21 = vshrl.u32 %v1626_v8, 16 }
  0x63   : > { %v956_v44 = vsel %vm5008_vm7, %v951_v31, %v955_v32  ;;  %v4247_v31 = vor.u32 %v4736_v17, %v4246_v14  ;;  %v4345_v32 = vld [vmem:[%s4975_s26 + $0x18] sm:$0xe]  ;;  %v4328_v14 = vld [vmem:[%s4975_s26 + $0x24] sm:$0x1] }
  0x64   : > { %v1645_v38 = vrot.slane %v1643_v21, 4  ;;  %v1282_v35 = vshll.u32 %v4328_v14, 16 }
  0x68   : > { %4270 = vmatmul.msk.bf16.gmra.mxu0 %vm511_vm3, %v968_v39  ;;  %v1648_v39 = vrot.slane %v1646_v22, 5  ;;  %v1261_v22 = vrot.slane %v1259_v6, 4 }
  0x6a   : > { %v1649_v52 = vor.u32 %v1648_v39, %v1645_v38  ;;  %v1256_v38 = vrot.slane %v1254_v18, 5  ;;  %v4352_v39 = vrot.slane %v4344_v24, 9  ;;  %v1265_v46 = vor.u32 %v1264_v30, %v1261_v22  ;;  %v4347_v24 = vld [vmem:[%s4975_s26 + $0x28] sm:$0xe] }
  0x6b   : > { %4249 = vmatmul.msk.bf16.gmra.mxu3 %vm511_vm3, %v4239_v47  ;;  %v1666_v47 = vshll.u32 %v5195_v37, 16  ;;  %v1275_v18 = vrot.slane %v1273_v0, 4 }
  0x6c   : > { %v1650_v8 = vrot.slane %v1649_v52, 4  ;;  %v1694_v52 = vshll.u32 %v5241_v27, 16  ;;  %v1449_v56 = vsel %vm4977_vm4, %v4352_v39, %v1448_v43  ;;  %v1257_v59 = vsel %vm5008_vm7, %v1252_v45, %v1256_v38 }
  0x6d   : > { %v1668_v4 = vrot.slane %v1666_v47, 5  ;;  %v4353_v47 = vrot.slane %v4345_v32, 9  ;;  %v1358_v13 = vunpack.c.l.b16 %v1257_v59  ;;  %v1716_v32 = vshll.u32 %v1636_v16, 16 }
  0x6e   : > { %v1655_v25 = vsel %vm5008_vm7, %v1650_v8, %v1654_v3  ;;  %v1287_v3 = vshrl.u32 %v4329_v2, 16  ;;  %v1696_v6 = vrot.slane %v1694_v52, 5  ;;  %v1480_v8 = vunpack.c.l.b16 %v1449_v56 }
  0x6f   : > { %4321 = vmatmul.msk.bf16.gmra.mxu2 %vm511_vm3, %v4314_v58  ;;  %v1986_v58 = vsel %vm524_vm0, %v4412_v55, 0  ;;  %v1669_v28 = vsel %vm5008_vm7, %v1664_v9, %v1668_v4  ;;  %v1756_v41 = vunpack.c.l.b16 %v1655_v25  ;;  %v1270_v55 = vrot.slane %v1268_v23, 5 }
  0x70   : > { %1995 = vmatpush.bf16.msrb.mxu0 %v1986_v58  ;;  %v4741_v58 = vld [vmem:[%s5173_s28 + $0x4] sm:$0xf0]  ;;  %v1296_v38 = vshll.u32 %v4330_v15, 16  ;;  %v1718_v50 = vrot.slane %v1716_v32, 5  ;;  %v1284_v52 = vrot.slane %v1282_v35, 5 }
  0x71   : > { %v4369_v4 = vor.u32 %v4741_v58, %v4368_v57  ;;  %v4333_v58 = vld [vmem:[%s4975_s26 + $0x38] sm:$0xf] }
  0x72   : > { %4292 = vmatmul.msk.bf16.gmra.mxu1 %vm511_vm3, %v1091_v61  ;;  %v966_v61 = vunpack.c.l.b16 %v956_v44  ;;  %v1452_v44 = vrot.slane %v4326_v10, 5  ;;  %v1634_v10 = vld [vmem:[%s5173_s28 + $0x20] sm:$0xf]  ;;  %v1298_v56 = vrot.slane %v1296_v38, 5  ;;  %v4348_v38 = vld [vmem:[%s4975_s26 + $0x30] sm:$0xe] }
  0x73   : > { %v1699_v25 = vshrl.u32 %v1634_v10, 16 }
  0x74   : > { %v970_v21 = vpack.c.b16 %v966_v61, %v965_v60  ;;  %v1266_v60 = vrot.slane %v1265_v46, 4  ;;  %v1453_v61 = vsel %vm4977_vm4, %v4353_v47, %v1452_v44  ;;  %v1460_v44 = vrot.slane %v4330_v15, 5  ;;  %v5272_v47 = vld [vmem:[%s5173_s28 + $0x24] sm:$0x1] }
  0x75   : > { %v1481_v9 = vunpack.c.l.b16 %v1453_v61  ;;  %v1701_v45 = vrot.slane %v1699_v25, 4  ;;  %v4372_v61 = vld [vmem:[%s5173_s28 + $0x10] sm:$0xf]  ;;  %v1708_v0 = vshll.u32 %v5272_v47, 16 }
  0x76   : > { %v1271_v11 = vsel %vm5008_vm7, %v1266_v60, %v1270_v55 }
  0x77   : > { %v1359_v29 = vunpack.c.l.b16 %v1271_v11  ;;  %v1488_v30 = vpack.c.b16 %v1481_v9, %v1480_v8  ;;  %v1710_v15 = vrot.slane %v1708_v0, 5  ;;  %v5315_v0 = vld [vmem:[%s5173_s28 + $0x34] sm:$0x1] }
  0x78   : > { %4271 = vmatmul.msk.bf16.gmra.mxu0 %vm511_vm3, %v969_v7  ;;  %v1632_v7 = vld [vmem:[%s5173_s28 + $0x18] sm:$0xf] }
  0x79   : > { %v1685_v19 = vshrl.u32 %v1632_v7, 16  ;;  %v1688_v20 = vshll.u32 %v1632_v7, 16  ;;  %v1290_v7 = vshll.u32 %v4329_v2, 16  ;;  %v4331_v2 = vld [vmem:[%s4975_s26 + $0x30] sm:$0xf] }
  0x7b   : > { %4250 = vmatmul.msk.bf16.gmra.mxu3 %vm511_vm3, %v4243_v33  ;;  %v5238_v33 = vld [vmem:[%s5173_s28 + $0x14] sm:$0x1]  ;;  %v1687_v40 = vrot.slane %v1685_v19, 4  ;;  %v1690_v26 = vrot.slane %v1688_v20, 5  ;;  %v1278_v19 = vrot.slane %v1276_v1, 5  ;;  %v1289_v20 = vrot.slane %v1287_v3, 4 }
  0x7c   : > { %v1680_v48 = vshll.u32 %v5238_v33, 16  ;;  %v1292_v23 = vrot.slane %v1290_v7, 5  ;;  %v1722_v3 = vshll.u32 %v5276_v53, 16  ;;  %v1318_v7 = vshll.u32 %v4333_v58, 16 }
  0x7d   : > { %v1691_v51 = vor.u32 %v1690_v26, %v1687_v40  ;;  %v1279_v26 = vor.u32 %v1278_v19, %v1275_v18 }
  0x7e   : > { %v1293_v43 = vor.u32 %v1292_v23, %v1289_v20  ;;  %v1724_v19 = vrot.slane %v1722_v3, 5  ;;  %v1320_v23 = vrot.slane %v1318_v7, 5 }
  0x7f   : > { %4322 = vmatmul.msk.bf16.gmra.mxu2 %vm511_vm3, %v4318_v42  ;;  %v1757_v42 = vunpack.c.l.b16 %v1669_v28  ;;  %v1692_v5 = vrot.slane %v1691_v51, 4  ;;  %v1702_v28 = vshll.u32 %v1634_v10, 16  ;;  %v1366_v51 = vpack.c.b16 %v1359_v29, %v1358_v13  ;;  %v4334_v29 = vld [vmem:[%s4975_s26 + $0x3c] sm:$0x1] }
  0x80   : > { %v1280_v55 = vrot.slane %v1279_v26, 4  ;;  %v1294_v59 = vrot.slane %v1293_v43, 4  ;;  %v4349_v26 = vld [vmem:[%s4975_s26 + $0x38] sm:$0xe] }
  0x81   : > { %v1764_v54 = vpack.c.b16 %v1757_v42, %v1756_v41  ;;  %v1697_v22 = vsel %vm5008_vm7, %v1692_v5, %v1696_v6  ;;  %v1456_v41 = vrot.slane %v4328_v14, 5  ;;  %v4355_v42 = vrot.slane %v4347_v24, 9  ;;  %v1638_v24 = vld [vmem:[%s5173_s28 + $0x30] sm:$0xf] }
  0x82   : > { %4293 = vmatmul.msk.bf16.gmra.mxu1 %vm511_vm3, %v1092_v62  ;;  %v1682_v62 = vrot.slane %v1680_v48, 5  ;;  %v1759_v40 = vunpack.c.l.b16 %v1697_v22  ;;  %v1704_v46 = vrot.slane %v1702_v28, 5  ;;  %v1304_v5 = vshll.u32 %v4331_v2, 16 }
  0x83   : > { %v1461_v60 = vsel %vm4977_vm4, %v4355_v42, %v1460_v44  ;;  %v1315_v6 = vshrl.u32 %v4333_v58, 16  ;;  %v1285_v8 = vsel %vm5008_vm7, %v1280_v55, %v1284_v52  ;;  %v1299_v11 = vsel %vm5008_vm7, %v1294_v59, %v1298_v56 }
  0x84   : > { %v1683_v17 = vsel %vm5008_vm7, %v1678_v63, %v1682_v62  ;;  %v4742_v62 = vld [vmem:[%s5173_s28 + $0x14] sm:$0xf0]  ;;  %v1705_v63 = vor.u32 %v1704_v46, %v1701_v45  ;;  %v1483_v13 = vunpack.c.l.b16 %v1461_v60  ;;  %v1360_v25 = vunpack.c.l.b16 %v1285_v8  ;;  %v4335_v8 = vld [vmem:[%s4975_s26 + $0x40] sm:$0xf] }
  0x85   : > { %v1758_v34 = vunpack.c.l.b16 %v1683_v17  ;;  %v4373_v10 = vor.u32 %v4742_v62, %v4372_v61  ;;  %v1317_v22 = vrot.slane %v1315_v6, 4  ;;  %v1361_v28 = vunpack.c.l.b16 %v1299_v11  ;;  %v4376_v11 = vld [vmem:[%s5173_s28 + $0x20] sm:$0xf] }
  0x86   : > { %v1706_v14 = vrot.slane %v1705_v63, 4  ;;  %v1730_v42 = vshll.u32 %v1638_v24, 16  ;;  %v1324_v44 = vshll.u32 %v4334_v29, 16  ;;  %v4356_v52 = vrot.slane %v4348_v38, 9 }
  0x87   : > { %v1321_v43 = vor.u32 %v1320_v23, %v1317_v22  ;;  %v4357_v56 = vrot.slane %v4349_v26, 9  ;;  %v1468_v59 = vrot.slane %v4334_v29, 5  ;;  %v1329_v22 = vshrl.u32 %v4335_v8, 16 }
  0x88   : > { %4272 = vmatmul.msk.bf16.gmra.mxu0 %vm511_vm3, %v970_v21  ;;  %v4346_v21 = vld [vmem:[%s4975_s26 + $0x20] sm:$0xe]  ;;  %v1711_v35 = vsel %vm5008_vm7, %v1706_v14, %v1710_v15  ;;  %v1732_v61 = vrot.slane %v1730_v42, 5  ;;  %v1326_v63 = vrot.slane %v1324_v44, 5  ;;  %v1736_v15 = vshll.u32 %v5315_v0, 16 }
  0x89   : > { %v4354_v39 = vrot.slane %v4346_v21, 9  ;;  %v1306_v21 = vrot.slane %v1304_v5, 5  ;;  %v1322_v62 = vrot.slane %v1321_v43, 4  ;;  %v1332_v23 = vshll.u32 %v4335_v8, 16 }
  0x8a   : > { %v1738_v38 = vrot.slane %v1736_v15, 5  ;;  %v1331_v43 = vrot.slane %v1329_v22, 4 }
  0x8b   : > { %4251 = vmatmul.msk.bf16.gmra.mxu3 %vm511_vm3, %v4247_v31  ;;  %v1713_v31 = vshrl.u32 %v1636_v16, 16  ;;  %v1457_v57 = vsel %vm4977_vm4, %v4354_v39, %v1456_v41  ;;  %v4332_v16 = vld [vmem:[%s4975_s26 + $0x34] sm:$0x1]  ;;  %v1727_v41 = vshrl.u32 %v1638_v24, 16  ;;  %v1334_v44 = vrot.slane %v1332_v23, 5 }
  0x8c   : > { %v1482_v9 = vunpack.c.l.b16 %v1457_v57  ;;  %v1464_v55 = vrot.slane %v4332_v16, 5 }
  0x8d   : > { %v1715_v48 = vrot.slane %v1713_v31, 4  ;;  %v1640_v31 = vld [vmem:[%s5173_s28 + $0x38] sm:$0xf]  ;;  %v1729_v60 = vrot.slane %v1727_v41, 4 }
  0x8e   : > { %v1489_v32 = vpack.c.b16 %v1483_v13, %v1482_v9  ;;  %v1741_v45 = vshrl.u32 %v1640_v31, 16  ;;  %v1744_v46 = vshll.u32 %v1640_v31, 16  ;;  %v1465_v7 = vsel %vm4977_vm4, %v4356_v52, %v1464_v55  ;;  %v4743_v13 = vld [vmem:[%s5173_s28 + $0x24] sm:$0xf0] }
  0x8f   : > { %4387 = vmatmul.msk.bf16.vlgmr.msra.gmra.mxu2 %vm511_vm3, %v1764_v54  ;;  %v1765_v54 = vpack.c.b16 %v1759_v40, %v1758_v34  ;;  %v1719_v1 = vor.u32 %v1718_v50, %v1715_v48  ;;  %v1367_v50 = vpack.c.b16 %v1361_v28, %v1360_v25  ;;  %v1733_v14 = vor.u32 %v1732_v61, %v1729_v60  ;;  %v4435_v60 = vld [vmem:[%s5173_s28 + $0x10] sm:$0xf] }
  0x90   : > { %v1746_v3 = vrot.slane %v1744_v46, 5  ;;  %v1484_v25 = vunpack.c.l.b16 %v1465_v7  ;;  %v4377_v29 = vor.u32 %v4743_v13, %v4376_v11  ;;  %v4336_v46 = vld [vmem:[%s4975_s26 + $0x44] sm:$0x1]  ;;  %v2056_v15 = vshrl.u32 %v4435_v60, 16 }
  0x91   : > { %v1720_v18 = vrot.slane %v1719_v1, 4  ;;  %v1743_v1 = vrot.slane %v1741_v45, 4 }
  0x92   : > { %4382 = vmatmul.msk.bf16.vlgmr.msra.gmra.mxu1 %vm511_vm3, %v4369_v4  ;;  %v1301_v4 = vshrl.u32 %v4331_v2, 16  ;;  %v1760_v2 = vunpack.c.l.b16 %v1711_v35  ;;  %v1734_v35 = vrot.slane %v1733_v14, 4  ;;  %v1472_v14 = vrot.slane %v4336_v46, 5 }
  0x93   : > { %v1725_v39 = vsel %vm5008_vm7, %v1720_v18, %v1724_v19  ;;  %v1747_v18 = vor.u32 %v1746_v3, %v1743_v1  ;;  %v4351_v1 = vld [vmem:[%s4975_s26 + $0x48] sm:$0xe] }
  0x94   : > { %v1303_v20 = vrot.slane %v1301_v4, 4  ;;  %v5318_v4 = vld [vmem:[%s5173_s28 + $0x3c] sm:$0x1] }
  0x95   : > { %v1750_v19 = vshll.u32 %v5318_v4, 16  ;;  %v1748_v26 = vrot.slane %v1747_v18, 4 }
  0x96   : > { %v1307_v40 = vor.u32 %v1306_v21, %v1303_v20  ;;  %v4337_v20 = vld [vmem:[%s4975_s26 + $0x48] sm:$0xf] }
  0x97   : > { %v1752_v41 = vrot.slane %v1750_v19, 5  ;;  %v1346_v42 = vshll.u32 %v4337_v20, 16  ;;  %v4359_v19 = vrot.slane %v4351_v1, 9 }
  0x98   : > { %4361 = vmatmul.msk.bf16.vlgmr.msra.gmra.mxu0 %vm511_vm3, %v1488_v30  ;;  %v1310_v30 = vshll.u32 %v4332_v16, 16  ;;  %v1308_v58 = vrot.slane %v1307_v40, 4  ;;  %v1327_v16 = vsel %vm5008_vm7, %v1322_v62, %v1326_v63  ;;  %v1335_v62 = vor.u32 %v1334_v44, %v1331_v43  ;;  %v4436_v44 = vld [vmem:[%s5173_s28 + $0x14] sm:$0x1] }
  0x99   : > { %v1338_v63 = vshll.u32 %v4336_v46, 16 }
  0x9b   : > { %4340 = vmatmul.msk.bf16.vlgmr.msra.gmra.mxu3 %vm511_vm3, %v1366_v51  ;;  %v1312_v51 = vrot.slane %v1310_v30, 5 }
  0x9d   : > { %v1313_v9 = vsel %vm5008_vm7, %v1308_v58, %v1312_v51 }
  0x9e   : > { %v5339_v24 = vunpack.c.l.b16 %v1313_v9 }
  0x9f   : > { %4388 = vmatmul.msk.bf16.gmra.mxu2 %vm511_vm3, %v1765_v54  ;;  %v5295_v17 = vpop.f32.mrf.mxu1  ;;  %v1761_v54 = vunpack.c.l.b16 %v1725_v39  ;;  %v1343_v39 = vshrl.u32 %v4337_v20, 16 }
  0xa1   : > { %v1766_v6 = vpack.c.b16 %v1761_v54, %v1760_v2  ;;  %v4338_v2 = vld [vmem:[%s4975_s26 + $0x4c] sm:$0x1]  ;;  %v4350_v54 = vld [vmem:[%s4975_s26 + $0x40] sm:$0xe]  ;;  %v1345_v58 = vrot.slane %v1343_v39, 4  ;;  %v2058_v39 = vrot.slane %v2056_v15, 4 }
  0xa2   : > { %v5300_v34 = vpop.f32.mrf.mxu2  ;;  %4383 = vmatmul.msk.bf16.gmra.mxu1 %vm511_vm3, %v4373_v10  ;;  %v1469_v10 = vsel %vm4977_vm4, %v4357_v56, %v1468_v59  ;;  %v1753_v56 = vsel %vm5008_vm7, %v1748_v26, %v1752_v41  ;;  %v1348_v59 = vrot.slane %v1346_v42, 5  ;;  %v1352_v8 = vshll.u32 %v4338_v2, 16 }
  0xa3   : > { %v1485_v28 = vunpack.c.l.b16 %v1469_v10  ;;  %v4358_v9 = vrot.slane %v4350_v54, 9  ;;  %v1763_v13 = vunpack.c.l.b16 %v1753_v56  ;;  %v1476_v20 = vrot.slane %v4338_v2, 5 }
  0xa4   : > { %v1354_v41 = vrot.slane %v1352_v8, 5  ;;  %v2065_v54 = vshll.u32 %v4436_v44, 16  ;;  %v2249_v8 = vrot.slane %v4436_v44, 5 }
  0xa5   : > { %v5309_v48 = vpop.f32.mrf.mxu0  ;;  %v1490_v52 = vpack.c.b16 %v1485_v28, %v1484_v25  ;;  %v1336_v25 = vrot.slane %v1335_v62, 4  ;;  %v1340_v28 = vrot.slane %v1338_v63, 5  ;;  %v1473_v42 = vsel %vm4977_vm4, %v4358_v9, %v1472_v14 }
  0xa6   : > { %v1477_v43 = vsel %vm4977_vm4, %v4359_v19, %v1476_v20  ;;  %v1486_v1 = vunpack.c.l.b16 %v1473_v42 }
  0xa7   : > { %v5311_v57 = vpop.f32.mrf.mxu1  ;;  %v1341_v63 = vsel %vm5008_vm7, %v1336_v25, %v1340_v28  ;;  %v4437_v25 = vld [vmem:[%s5173_s28 + $0x18] sm:$0xf] }
  0xa8   : > { %4362 = vmatmul.msk.bf16.gmra.mxu0 %vm511_vm3, %v1489_v32  ;;  %v1363_v32 = vunpack.c.l.b16 %v1327_v16  ;;  %v2059_v16 = vshll.u32 %v4435_v60, 16  ;;  %v1854_v60 = vrot.slane %v5238_v33, 5  ;;  %v1364_v28 = vunpack.c.l.b16 %v1341_v63 }
  0xaa   : > { %v5320_v5 = vpop.f32.mrf.mxu2  ;;  %v1368_v55 = vpack.c.b16 %v1363_v32, %v5339_v24 }
  0xab   : > { %4341 = vmatmul.msk.bf16.gmra.mxu3 %vm511_vm3, %v1367_v50  ;;  %v4433_v50 = vld [vmem:[%s5173_s28 + $0x8] sm:$0xf] }
  0xac   : > { %v2045_v3 = vshll.u32 %v4433_v50, 16 }
  0xad   : > { %v5337_v21 = vpop.f32.mrf.mxu0 }
  0xae   : > { %v542_v30 = vpop.f32.mrf.mxu3  ;;  %v2047_v23 = vrot.slane %v2045_v3, 5 }
  0xaf   : > { %4389 = vmatmul.msk.bf16.gmra.mxu2 %vm511_vm3, %v1766_v6  ;;  %v5342_v31 = vpop.f32.mrf.mxu1  ;;  %v607_v40 = vadd.f32 %v5295_v17, %v542_v30  ;;  %v1739_v17 = vsel %vm5008_vm7, %v1734_v35, %v1738_v38  ;;  %v4744_v30 = vld [vmem:[%s5173_s28 + $0x34] sm:$0xf0]  ;;  %v4454_v38 = vld [vmem:[%s5173_s28 + $0x8] sm:$0xe] }
  0xb0   : > { %v1762_v7 = vunpack.c.l.b16 %v1739_v17 }
  0xb1   : > { %v5351_v51 = vadd.f32 %v5300_v34, %v607_v40  ;;  %v2042_v34 = vshrl.u32 %v4433_v50, 16  ;;  %v2061_v40 = vrot.slane %v2059_v16, 5  ;;  %v4455_v50 = vld [vmem:[%s5173_s28 + $0x10] sm:$0xe]  ;;  %v4520_v16 = vld [vmem:[%s6374_s3 + $0x20] sm:$0x3] }
  0xb2   : > { %v5345_v45 = vpop.f32.mrf.mxu2  ;;  %4384 = vmatmul.msk.bf16.gmra.mxu1 %vm511_vm3, %v4377_v29  ;;  %v4380_v29 = vld [vmem:[%s5173_s28 + $0x30] sm:$0xf]  ;;  %v1767_v35 = vpack.c.b16 %v1763_v13, %v1762_v7  ;;  %v4463_v7 = vrot.slane %v4455_v50, 9  ;;  %v2067_v13 = vrot.slane %v2065_v54, 5 }
  0xb3   : > { %v2044_v22 = vrot.slane %v2042_v34, 4  ;;  %v4381_v56 = vor.u32 %v4744_v30, %v4380_v29  ;;  %v2062_v34 = vor.u32 %v2061_v40, %v2058_v39  ;;  %v1820_v40 = vld [vmem:[%s5173_s28] sm:$0xe] }
  0xb5   : > { %v601_v61 = vpop.f32.mrf.mxu0  ;;  %v2048_v17 = vor.u32 %v2047_v23, %v2044_v22  ;;  %v2063_v19 = vrot.slane %v2062_v34, 4  ;;  %v2579_v22 = vsel %vm524_vm0, %v4520_v16, 0  ;;  %v4456_v16 = vld [vmem:[%s5173_s28 + $0x18] sm:$0xe] }
  0xb6   : > { %v5363_v6 = vadd.f32 %v601_v61, %v5309_v48  ;;  %v544_v10 = vpop.f32.mrf.mxu3  ;;  %v1349_v48 = vor.u32 %v1348_v59, %v1345_v58  ;;  %v4462_v58 = vrot.slane %v4454_v38, 9  ;;  %2588 = vmatpush.bf16.msra.mxu0 %v2579_v22  ;;  %v4440_v22 = vld [vmem:[%s5173_s28 + $0x24] sm:$0x1] }
  0xb7   : > { %v5365_v11 = vpop.f32.mrf.mxu1  ;;  %v609_v18 = vadd.f32 %v5311_v57, %v544_v10  ;;  %v4434_v57 = vld [vmem:[%s5173_s28 + $0xc] sm:$0x1]  ;;  %v2049_v33 = vrot.slane %v2048_v17, 4  ;;  %v2068_v17 = vsel %vm5008_vm7, %v2063_v19, %v2067_v13  ;;  %v1846_v13 = vrot.slane %v5192_v36, 5 }
  0xb8   : > { %4363 = vmatmul.msk.bf16.gmra.mxu0 %vm511_vm3, %v1490_v52  ;;  %v1350_v26 = vrot.slane %v1349_v48, 4  ;;  %v2051_v2 = vshll.u32 %v4434_v57, 16  ;;  %v2245_v59 = vrot.slane %v4434_v57, 5  ;;  %v1858_v57 = vrot.slane %v5241_v27, 5 }
  0xb9   : > { %v5374_v32 = vadd.f32 %v5320_v5, %v609_v18  ;;  %v4483_v5 = vld [vmem:[%s6374_s3 + $0x1e] sm:$0x3]  ;;  %v4541_v18 = vld [vmem:[%s6374_s3 + $0x22] sm:$0x3] }
  0xba   : > { %v5369_v24 = vpop.f32.mrf.mxu2  ;;  %v2385_v52 = vsel %vm524_vm0, %v4483_v5, 0  ;;  %v1355_v9 = vsel %vm5008_vm7, %v1350_v26, %v1354_v41  ;;  %v2053_v10 = vrot.slane %v2051_v2, 5  ;;  %v2246_v15 = vsel %vm4977_vm4, %v4462_v58, %v2245_v59  ;;  %v1822_v41 = vld [vmem:[%s5173_s28 + $0x10] sm:$0xe]  ;;  %v1821_v59 = vld [vmem:[%s5173_s28 + $0x8] sm:$0xe] }
  0xbb   : > { %4342 = vmatmul.msk.bf16.gmra.mxu3 %vm511_vm3, %v1368_v55  ;;  %v2701_v23 = vsel %vm524_vm0, %v4541_v18, 0  ;;  %v1365_v29 = vunpack.c.l.b16 %v1355_v9  ;;  %v2277_v39 = vunpack.c.l.b16 %v2246_v15  ;;  %v4393_v44 = vrot.slane %v1822_v41, 9 }
  0xbc   : > { %2394 = vmatpush.bf16.msra.mxu3 %v2385_v52  ;;  %v2054_v26 = vsel %vm5008_vm7, %v2049_v33, %v2053_v10  ;;  %2710 = vmatpush.bf16.msra.mxu1 %v2701_v23  ;;  %v2070_v5 = vshrl.u32 %v4437_v25, 16  ;;  %v4392_v15 = vrot.slane %v1821_v59, 9  ;;  %v4457_v23 = vld [vmem:[%s5173_s28 + $0x20] sm:$0xe] }
  0xbd   : > { %v603_v46 = vpop.f32.mrf.mxu0  ;;  %v1369_v58 = vpack.c.b16 %v1365_v29, %v1364_v28  ;;  %v2155_v63 = vunpack.c.l.b16 %v2054_v26 }
  0xbe   : > { %v5390_v55 = vadd.f32 %v603_v46, %v5337_v21  ;;  %v547_v61 = vpop.f32.mrf.mxu3  ;;  %v1487_v21 = vunpack.c.l.b16 %v1477_v43  ;;  %v1823_v43 = vld [vmem:[%s5173_s28 + $0x18] sm:$0xe]  ;;  %v2073_v46 = vshll.u32 %v4437_v25, 16 }
  0xbf   : > { %4390 = vmatmul.msk.bf16.gmra.mxu2 %vm511_vm3, %v1767_v35  ;;  %v5394_v62 = vpop.f32.mrf.mxu1  ;;  %v612_v3 = vadd.f32 %v5342_v31, %v547_v61  ;;  %v4546_v31 = vld [vmem:[%s6374_s3 + $0x24] sm:$0x3]  ;;  %v2250_v35 = vsel %vm4977_vm4, %v4463_v7, %v2249_v8  ;;  %v4394_v2 = vrot.slane %v1823_v43, 9  ;;  %v4391_v61 = vrot.slane %v1820_v40, 9  ;;  %v4415_v43 = vld [vmem:[%s5173_s28 + $0x8] sm:$0xf] }
  0xc0   : > { %v2783_v20 = vsel %vm524_vm0, %v4546_v31, 0  ;;  %v1491_v30 = vpack.c.b16 %v1487_v21, %v1486_v1  ;;  %v2278_v27 = vunpack.c.l.b16 %v2250_v35  ;;  %v2156_v21 = vunpack.c.l.b16 %v2068_v17  ;;  %v4438_v31 = vld [vmem:[%s5173_s28 + $0x1c] sm:$0x1] }
  0xc1   : > { %v5416_v48 = vadd.f32 %v5345_v45, %v612_v3  ;;  %2792 = vmatpush.bf16.msra.mxu2 %v2783_v20  ;;  %v4439_v45 = vld [vmem:[%s5173_s28 + $0x20] sm:$0xf]  ;;  %v1859_v1 = vsel %vm4977_vm4, %v4394_v2, %v1858_v57  ;;  %v2072_v7 = vrot.slane %v2070_v5, 4  ;;  %v2075_v8 = vrot.slane %v2073_v46, 5 }
  0xc2   : > { %v5401_v14 = vpop.f32.mrf.mxu2  ;;  %4385 = vmatmul.msk.bf16.gmra.mxu1 %vm511_vm3, %v4381_v56  ;;  %v2084_v54 = vshrl.u32 %v4439_v45, 16  ;;  %v2285_v9 = vpack.c.b16 %v2278_v27, %v2277_v39  ;;  %v1850_v20 = vrot.slane %v5195_v37, 5  ;;  %v2253_v57 = vrot.slane %v4438_v31, 5  ;;  %v4441_v27 = vld [vmem:[%s5173_s28 + $0x28] sm:$0xf] }
  0xc3   : > { %v2076_v29 = vor.u32 %v2075_v8, %v2072_v7  ;;  %v4465_v40 = vrot.slane %v4457_v23, 9  ;;  %v1847_v26 = vsel %vm4977_vm4, %v4391_v61, %v1846_v13  ;;  %v1862_v5 = vrot.slane %v5272_v47, 5  ;;  %v4443_v47 = vld [vmem:[%s5173_s28 + $0x30] sm:$0xf] }
  0xc4   : > { %v2086_v33 = vrot.slane %v2084_v54, 4  ;;  %v1851_v41 = vsel %vm4977_vm4, %v4392_v15, %v1850_v20  ;;  %v1866_v2 = vrot.slane %v5276_v53, 5  ;;  %v2098_v7 = vshrl.u32 %v4441_v27, 16 }
  0xc5   : > { %v718_v38 = vpop.f32.mrf.mxu0  ;;  %v1879_v59 = vunpack.c.l.b16 %v1851_v41  ;;  %v2101_v8 = vshll.u32 %v4441_v27, 16 }
  0xc6   : > { %v5431_v42 = vadd.f32 %v718_v38, %v5363_v6  ;;  %v549_v50 = vpop.f32.mrf.mxu3  ;;  %v1855_v6 = vsel %vm4977_vm4, %v4393_v44, %v1854_v60  ;;  %v2087_v60 = vshll.u32 %v4439_v45, 16  ;;  %v4464_v45 = vrot.slane %v4456_v16, 9  ;;  %v4745_v44 = vld [vmem:[%s5173_s28 + $0xc] sm:$0xf0] }
  0xc7   : > { %v5434_v52 = vpop.f32.mrf.mxu1  ;;  %v614_v56 = vadd.f32 %v5365_v11, %v549_v50  ;;  %v1880_v34 = vunpack.c.l.b16 %v1855_v6  ;;  %v1881_v11 = vunpack.c.l.b16 %v1859_v1  ;;  %v2093_v38 = vshll.u32 %v4440_v22, 16  ;;  %v1824_v1 = vld [vmem:[%s5173_s28 + $0x20] sm:$0xe] }
  0xc8   : > { %4364 = vmatmul.msk.bf16.gmra.mxu0 %vm511_vm3, %v1491_v30  ;;  %v2089_v25 = vrot.slane %v2087_v60, 5  ;;  %v2079_v30 = vshll.u32 %v4438_v31, 16  ;;  %v2254_v54 = vsel %vm4977_vm4, %v4464_v45, %v2253_v57  ;;  %v1878_v6 = vunpack.c.l.b16 %v1847_v26  ;;  %v4458_v26 = vld [vmem:[%s5173_s28 + $0x28] sm:$0xe] }
  0xc9   : > { %v5448_v10 = vadd.f32 %v5369_v24, %v614_v56  ;;  %v5454_v18 = vpack.c.b16 %v1881_v11, %v1880_v34  ;;  %v2163_v24 = vpack.c.b16 %v2156_v21, %v2155_v63  ;;  %v4416_v61 = vor.u32 %v4745_v44, %v4415_v43  ;;  %v1825_v34 = vld [vmem:[%s5173_s28 + $0x28] sm:$0xe]  ;;  %v4459_v44 = vld [vmem:[%s5173_s28 + $0x30] sm:$0xe] }
  0xca   : > { %v5445_v3 = vpop.f32.mrf.mxu2  ;;  %v2090_v37 = vor.u32 %v2089_v25, %v2086_v33  ;;  %v2081_v50 = vrot.slane %v2079_v30, 5  ;;  %v4395_v11 = vrot.slane %v1824_v1, 9  ;;  %v2279_v53 = vunpack.c.l.b16 %v2254_v54 }
  0xcb   : > { %4343 = vmatmul.msk.bf16.gmra.mxu3 %vm511_vm3, %v1369_v58  ;;  %v2095_v58 = vrot.slane %v2093_v38, 5  ;;  %v2112_v33 = vshrl.u32 %v4443_v47, 16  ;;  %v2103_v30 = vrot.slane %v2101_v8, 5  ;;  %v2115_v38 = vshll.u32 %v4443_v47, 16  ;;  %v4419_v47 = vld [vmem:[%s5173_s28 + $0x18] sm:$0xf] }
  0xcc   : > { %v2091_v56 = vrot.slane %v2090_v37, 4  ;;  %v1863_v16 = vsel %vm4977_vm4, %v4395_v11, %v1862_v5 }
  0xcd   : > { %v720_v19 = vpop.f32.mrf.mxu0  ;;  %v1882_v23 = vunpack.c.l.b16 %v1863_v16  ;;  %v2114_v37 = vrot.slane %v2112_v33, 4  ;;  %v2117_v41 = vrot.slane %v2115_v38, 5 }
  0xce   : > { %v5460_v28 = vadd.f32 %v720_v19, %v5390_v55  ;;  %v552_v36 = vpop.f32.mrf.mxu3  ;;  %v2257_v55 = vrot.slane %v4440_v22, 5  ;;  %v2096_v31 = vsel %vm5008_vm7, %v2091_v56, %v2095_v58  ;;  %v1886_v22 = vpack.c.b16 %v1879_v59, %v1878_v6 }
  0xcf   : > { %4471 = vmatmul.msk.bf16.vlgmr.msrb.gmra.mxu2 %vm511_vm3, %v2285_v9  ;;  %v5463_v35 = vpop.f32.mrf.mxu1  ;;  %v617_v39 = vadd.f32 %v5394_v62, %v552_v36  ;;  %v2077_v62 = vrot.slane %v2076_v29, 4  ;;  %v2100_v29 = vrot.slane %v2098_v7, 4  ;;  %v2158_v45 = vunpack.c.l.b16 %v2096_v31  ;;  %v4447_v31 = vld [vmem:[%s5173_s28 + $0x40] sm:$0xf] }
  0xd0   : > { %v2258_v63 = vsel %vm4977_vm4, %v4465_v40, %v2257_v55  ;;  %v4444_v55 = vld [vmem:[%s5173_s28 + $0x34] sm:$0x1]  ;;  %v4467_v59 = vrot.slane %v4459_v44, 9  ;;  %v2140_v38 = vshrl.u32 %v4447_v31, 16 }
  0xd1   : > { %v5478_v17 = vadd.f32 %v5401_v14, %v617_v39  ;;  %v4396_v14 = vrot.slane %v1825_v34, 9  ;;  %v2082_v9 = vsel %vm5008_vm7, %v2077_v62, %v2081_v50  ;;  %v2280_v15 = vunpack.c.l.b16 %v2258_v63  ;;  %v4746_v63 = vld [vmem:[%s5173_s28 + $0x1c] sm:$0xf0] }
  0xd2   : > { %v5473_v46 = vpop.f32.mrf.mxu2  ;;  %4450 = vmatmul.msk.bf16.vlgmr.msrb.gmra.mxu1 %vm511_vm3, %v2163_v24  ;;  %v2157_v24 = vunpack.c.l.b16 %v2082_v9  ;;  %v2104_v5 = vor.u32 %v2103_v30, %v2100_v29  ;;  %v2121_v50 = vshll.u32 %v4444_v55, 16  ;;  %v1874_v9 = vrot.slane %v5318_v4, 5 }
  0xd3   : > { %v1867_v19 = vsel %vm4977_vm4, %v4396_v14, %v1866_v2  ;;  %v2286_v39 = vpack.c.b16 %v2280_v15, %v2279_v53  ;;  %v2118_v2 = vor.u32 %v2117_v41, %v2114_v37  ;;  %v1870_v53 = vrot.slane %v5315_v0, 5  ;;  %v1827_v0 = vld [vmem:[%s5173_s28 + $0x38] sm:$0xe] }
  0xd4   : > { %v1883_v25 = vunpack.c.l.b16 %v1867_v19  ;;  %v2164_v27 = vpack.c.b16 %v2158_v45, %v2157_v24  ;;  %v2105_v1 = vrot.slane %v2104_v5, 4  ;;  %v2123_v14 = vrot.slane %v2121_v50, 5 }
  0xd5   : > { %v995_v21 = vpop.f32.mrf.mxu0  ;;  %v2119_v11 = vrot.slane %v2118_v2, 4  ;;  %v4420_v33 = vor.u32 %v4746_v63, %v4419_v47  ;;  %v4448_v63 = vld [vmem:[%s5173_s28 + $0x44] sm:$0x1] }
  0xd6   : > { %v554_v60 = vpop.f32.mrf.mxu3  ;;  %v5502_v57 = vpack.c.b16 %v1883_v25, %v1882_v23  ;;  %v4398_v23 = vrot.slane %v1827_v0, 9 }
  0xd7   : > { %v5490_v13 = vpop.f32.mrf.mxu1  ;;  %v619_v20 = vadd.f32 %v5434_v52, %v554_v60  ;;  %v4442_v52 = vld [vmem:[%s5173_s28 + $0x2c] sm:$0x1]  ;;  %v2124_v19 = vsel %vm5008_vm7, %v2119_v11, %v2123_v14 }
  0xd8   : > { %4429 = vmatmul.msk.bf16.vlgmr.msrb.gmra.mxu0 %vm511_vm3, %v4416_v61  ;;  %v2107_v62 = vshll.u32 %v4442_v52, 16  ;;  %v2261_v6 = vrot.slane %v4442_v52, 5  ;;  %v2265_v61 = vrot.slane %v4444_v55, 5 }
  0xd9   : > { %v5506_v40 = vadd.f32 %v5445_v3, %v619_v20  ;;  %v4466_v3 = vrot.slane %v4458_v26, 9  ;;  %v1826_v20 = vld [vmem:[%s5173_s28 + $0x30] sm:$0xe]  ;;  %v2160_v26 = vunpack.c.l.b16 %v2124_v19 }
  0xda   : > { %v5500_v36 = vpop.f32.mrf.mxu2  ;;  %v2109_v34 = vrot.slane %v2107_v62, 5  ;;  %v2266_v15 = vsel %vm4977_vm4, %v4467_v59, %v2265_v61  ;;  %v4397_v4 = vrot.slane %v1826_v20, 9  ;;  %v4446_v61 = vld [vmem:[%s5173_s28 + $0x3c] sm:$0x1] }
  0xdb   : > { %4400 = vmatmul.msk.bf16.vlgmr.msrb.gmra.mxu3 %vm511_vm3, %v1886_v22  ;;  %v2262_v60 = vsel %vm4977_vm4, %v4466_v3, %v2261_v6  ;;  %v2282_v37 = vunpack.c.l.b16 %v2266_v15  ;;  %v2142_v3 = vrot.slane %v2140_v38, 4  ;;  %v2135_v14 = vshll.u32 %v4446_v61, 16 }
  0xdc   : > { %v2281_v45 = vunpack.c.l.b16 %v2262_v60  ;;  %v1871_v52 = vsel %vm4977_vm4, %v4397_v4, %v1870_v53  ;;  %v2273_v15 = vrot.slane %v4448_v63, 5 }
  0xdd   : > { %v997_v43 = vpop.f32.mrf.mxu0  ;;  %v1884_v41 = vunpack.c.l.b16 %v1871_v52  ;;  %v2137_v0 = vrot.slane %v2135_v14, 5  ;;  %v4525_v14 = vld [vmem:[%s5173_s28 + $0x10] sm:$0xe] }
  0xde   : > { %v801_v54 = vpop.f32.mrf.mxu3  ;;  %v2287_v2 = vpack.c.b16 %v2282_v37, %v2281_v45 }
  0xdf   : > { %4472 = vmatmul.msk.bf16.gmra.mxu2 %vm511_vm3, %v2286_v39  ;;  %v5513_v56 = vpop.f32.mrf.mxu1  ;;  %v821_v58 = vadd.f32 %v801_v54, %v5431_v42  ;;  %v4445_v42 = vld [vmem:[%s5173_s28 + $0x38] sm:$0xf] }
  0xe0   : > { %v2126_v25 = vshrl.u32 %v4445_v42, 16  ;;  %v2129_v24 = vshll.u32 %v4445_v42, 16  ;;  %v2149_v42 = vshll.u32 %v4448_v63, 16 }
  0xe1   : > { %v1015_v7 = vadd.f32 %v995_v21, %v821_v58  ;;  %v2110_v21 = vsel %vm5008_vm7, %v2105_v1, %v2109_v34  ;;  %v4460_v58 = vld [vmem:[%s5173_s28 + $0x38] sm:$0xe]  ;;  %v4461_v1 = vld [vmem:[%s5173_s28 + $0x40] sm:$0xe] }
  0xe2   : > { %v5518_v8 = vpop.f32.mrf.mxu2  ;;  %4451 = vmatmul.msk.bf16.gmra.mxu1 %vm511_vm3, %v2164_v27  ;;  %v2159_v55 = vunpack.c.l.b16 %v2110_v21  ;;  %v2131_v50 = vrot.slane %v2129_v24, 5  ;;  %v2143_v27 = vshll.u32 %v4447_v31, 16  ;;  %v4468_v53 = vrot.slane %v4460_v58, 9  ;;  %v4423_v31 = vld [vmem:[%s5173_s28 + $0x28] sm:$0xf] }
  0xe3   : > { %v1137_v22 = vadd.f32 %v5463_v35, %v1015_v7  ;;  %v1875_v35 = vsel %vm4977_vm4, %v4398_v23, %v1874_v9  ;;  %v4469_v60 = vrot.slane %v4461_v1, 9  ;;  %v4747_v21 = vld [vmem:[%s5173_s28 + $0x2c] sm:$0xf0]  ;;  %v2151_v4 = vrot.slane %v2149_v42, 5  ;;  %v4567_v58 = vld [vmem:[%s6374_s3 + $0x26] sm:$0x3] }
  0xe4   : > { %v1885_v44 = vunpack.c.l.b16 %v1875_v35  ;;  %v2145_v47 = vrot.slane %v2143_v27, 5  ;;  %v2165_v34 = vpack.c.b16 %v2160_v26, %v2159_v55  ;;  %v4424_v23 = vor.u32 %v4747_v21, %v4423_v31  ;;  %v4506_v26 = vld [vmem:[%s5173_s28 + $0x18] sm:$0xf] }
  0xe5   : > { %v1000_v16 = vpop.f32.mrf.mxu0  ;;  %v5552_v6 = vadd.f32 %v5473_v46, %v1137_v22  ;;  %v2455_v27 = vshrl.u32 %v4506_v26, 16  ;;  %v2977_v1 = vsel %vm524_vm0, %v4567_v58, 0  ;;  %v4533_v31 = vrot.slane %v4525_v14, 9 }
  0xe6   : > { %v803_v29 = vpop.f32.mrf.mxu3  ;;  %v5546_v54 = vpack.c.b16 %v1885_v44, %v1884_v41  ;;  %2986 = vmatpush.bf16.msrb.mxu3 %v2977_v1 }
  0xe7   : > { %v5536_v30 = vpop.f32.mrf.mxu1  ;;  %v822_v39 = vadd.f32 %v803_v29, %v5460_v28  ;;  %v2128_v28 = vrot.slane %v2126_v25, 4  ;;  %v2274_v25 = vsel %vm4977_vm4, %v4469_v60, %v2273_v15  ;;  %v4748_v60 = vld [vmem:[%s5173_s28 + $0x3c] sm:$0xf0] }
  0xe8   : > { %4430 = vmatmul.msk.bf16.gmra.mxu0 %vm511_vm3, %v4420_v33  ;;  %v2269_v33 = vrot.slane %v4446_v61, 5  ;;  %v2284_v35 = vunpack.c.l.b16 %v2274_v25  ;;  %v4507_v61 = vld [vmem:[%s5173_s28 + $0x1c] sm:$0x1] }
  0xe9   : > { %v1016_v5 = vadd.f32 %v997_v43, %v822_v39  ;;  %v2132_v11 = vor.u32 %v2131_v50, %v2128_v28  ;;  %v2464_v15 = vshll.u32 %v4507_v61, 16 }
  0xea   : > { %v5544_v62 = vpop.f32.mrf.mxu2 }
  0xeb   : > { %4401 = vmatmul.msk.bf16.gmra.mxu3 %vm511_vm3, %v5454_v18  ;;  %v1138_v43 = vadd.f32 %v5490_v13, %v1016_v5  ;;  %v2146_v13 = vor.u32 %v2145_v47, %v2142_v3  ;;  %v2133_v20 = vrot.slane %v2132_v11, 4 }
  0xed   : > { %v1002_v59 = vpop.f32.mrf.mxu0  ;;  %v5560_v7 = vadd.f32 %v5500_v36, %v1138_v43  ;;  %v2147_v22 = vrot.slane %v2146_v13, 4  ;;  %v2138_v45 = vsel %vm5008_vm7, %v2133_v20, %v2137_v0 }
  0xee   : > { %v806_v18 = vpop.f32.mrf.mxu3  ;;  %v2161_v44 = vunpack.c.l.b16 %v2138_v45 }
  0xef   : > { %4473 = vmatmul.msk.bf16.gmra.mxu2 %vm511_vm3, %v2287_v2  ;;  %v5563_v46 = vpop.f32.mrf.mxu1  ;;  %v823_v9 = vadd.f32 %v806_v18, %v5351_v51  ;;  %v2270_v51 = vsel %vm4977_vm4, %v4468_v53, %v2269_v33  ;;  %v2152_v55 = vsel %vm5008_vm7, %v2147_v22, %v2151_v4  ;;  %v2458_v2 = vshll.u32 %v4506_v26, 16  ;;  %v4526_v18 = vld [vmem:[%s5173_s28 + $0x18] sm:$0xe]  ;;  %v4630_v4 = vld [vmem:[%s6374_s3 + $0x2c] sm:$0x3] }
  0xf0   : > { %v2283_v52 = vunpack.c.l.b16 %v2270_v51  ;;  %v2162_v50 = vunpack.c.l.b16 %v2152_v55  ;;  %v2648_v51 = vrot.slane %v4507_v61, 5  ;;  %v3376_v25 = vsel %vm524_vm0, %v4630_v4, 0 }
  0xf1   : > { %v1017_v19 = vadd.f32 %v1000_v16, %v823_v9  ;;  %v4504_v16 = vld [vmem:[%s5173_s28 + $0x10] sm:$0xf]  ;;  %v2460_v11 = vrot.slane %v2458_v2, 5  ;;  %v4427_v9 = vld [vmem:[%s5173_s28 + $0x38] sm:$0xf]  ;;  %3385 = vmatpush.bf16.msrb.mxu2 %v3376_v25 }
  0xf2   : > { %v5568_v36 = vpop.f32.mrf.mxu2  ;;  %4452 = vmatmul.msk.bf16.gmra.mxu1 %vm511_vm3, %v2165_v34  ;;  %v2441_v41 = vshrl.u32 %v4504_v16, 16  ;;  %v2288_v3 = vpack.c.b16 %v2284_v35, %v2283_v52  ;;  %v2166_v34 = vpack.c.b16 %v2162_v50, %v2161_v44  ;;  %v4549_v50 = vld [vmem:[%s5634_s17] sm:$0xf] }
  0xf3   : > { %v1139_v24 = vadd.f32 %v5513_v56, %v1017_v19  ;;  %v4534_v19 = vrot.slane %v4526_v18, 9  ;;  %v4508_v2 = vld [vmem:[%s5173_s28 + $0x20] sm:$0xf] }
  0xf4   : > { %v2472_v1 = vshll.u32 %v4508_v2, 16 }
  0xf5   : > { %v1005_v29 = vpop.f32.mrf.mxu0  ;;  %v5580_v37 = vadd.f32 %v5518_v8, %v1139_v24  ;;  %v2444_v8 = vshll.u32 %v4504_v16, 16  ;;  %v4428_v16 = vor.u32 %v4748_v60, %v4427_v9  ;;  %v4527_v60 = vld [vmem:[%s5173_s28 + $0x20] sm:$0xe] }
  0xf6   : > { %v808_v38 = vpop.f32.mrf.mxu3  ;;  %v4535_v4 = vrot.slane %v4527_v60, 9 }
  0xf7   : > { %v5582_v39 = vpop.f32.mrf.mxu1  ;;  %v824_v56 = vadd.f32 %v808_v38, %v5374_v32  ;;  %v2443_v32 = vrot.slane %v2441_v41, 4  ;;  %v2446_v63 = vrot.slane %v2444_v8, 5  ;;  %v2466_v41 = vrot.slane %v2464_v15, 5 }
  0xf8   : > { %4431 = vmatmul.msk.bf16.gmra.mxu0 %vm511_vm3, %v4424_v23  ;;  %v4593_v23 = vld [vmem:[%s6374_s3 + $0x2a] sm:$0x3]  ;;  %v2649_v8 = vsel %vm4977_vm4, %v4534_v19, %v2648_v51 }
  0xf9   : > { %v1018_v5 = vadd.f32 %v1002_v59, %v824_v56  ;;  %v4505_v59 = vld [vmem:[%s5173_s28 + $0x14] sm:$0x1]  ;;  %v4528_v19 = vld [vmem:[%s5173_s28 + $0x28] sm:$0xe] }
  0xfa   : > { %v5589_v28 = vpop.f32.mrf.mxu2  ;;  %v2450_v33 = vshll.u32 %v4505_v59, 16  ;;  %v2644_v21 = vrot.slane %v4505_v59, 5  ;;  %v4536_v51 = vrot.slane %v4528_v19, 9  ;;  %v4513_v19 = vld [vmem:[%s5173_s28 + $0x34] sm:$0x1] }
  0xfb   : > { %4402 = vmatmul.msk.bf16.gmra.mxu3 %vm511_vm3, %v5502_v57  ;;  %v1140_v47 = vadd.f32 %v5536_v30, %v1018_v5  ;;  %v2457_v57 = vrot.slane %v2455_v27, 4  ;;  %v4753_v27 = vld [vmem:[%s5634_s17 + $0x4] sm:$0xf0] }
  0xfc   : > { %v2452_v35 = vrot.slane %v2450_v33, 5  ;;  %v2645_v44 = vsel %vm4977_vm4, %v4533_v31, %v2644_v21  ;;  %v4550_v59 = vor.u32 %v4753_v27, %v4549_v50  ;;  %v4553_v50 = vld [vmem:[%s5634_s17 + $0x10] sm:$0xf] }
  0xfd   : > { %v1007_v43 = vpop.f32.mrf.mxu0  ;;  %v5606_v53 = vadd.f32 %v5544_v62, %v1140_v47  ;;  %v2447_v62 = vor.u32 %v2446_v63, %v2443_v32  ;;  %v2461_v22 = vor.u32 %v2460_v11, %v2457_v57  ;;  %v2676_v58 = vunpack.c.l.b16 %v2645_v44 }
  0xfe   : > { %v811_v30 = vpop.f32.mrf.mxu3  ;;  %v2677_v47 = vunpack.c.l.b16 %v2649_v8 }
  0xff   : > { %4474 = vmatmul.msk.bf16.gmra.mxu2 %vm511_vm3, %v2288_v3  ;;  %v5609_v13 = vpop.f32.mrf.mxu1  ;;  %v825_v42 = vadd.f32 %v811_v30, %v5416_v48  ;;  %v4580_v48 = vld [vmem:[%s6374_s3 + $0x28] sm:$0x3]  ;;  %v2448_v52 = vrot.slane %v2447_v62, 4 }
 0x100   : > { %v3099_v24 = vsel %vm524_vm0, %v4580_v48, 0  ;;  %v2684_v14 = vpack.c.b16 %v2677_v47, %v2676_v58 }
 0x101   : > { %v1019_v20 = vadd.f32 %v1005_v29, %v825_v42  ;;  %v3182_v29 = vsel %vm524_vm0, %v4593_v23, 0  ;;  %3108 = vmatpush.bf16.msrb.mxu0 %v3099_v24  ;;  %v2453_v61 = vsel %vm5008_vm7, %v2448_v52, %v2452_v35  ;;  %v4749_v24 = vld [vmem:[%s5173_s28 + $0x14] sm:$0xf0] }
 0x102   : > { %v5615_v0 = vpop.f32.mrf.mxu2  ;;  %4453 = vmatmul.msk.bf16.gmra.mxu1 %vm511_vm3, %v2166_v34  ;;  %v2554_v9 = vunpack.c.l.b16 %v2453_v61 }
 0x103   : > { %v1141_v45 = vadd.f32 %v5563_v46, %v1019_v20  ;;  %3191 = vmatpush.bf16.msrb.mxu1 %v3182_v29  ;;  %v2462_v46 = vrot.slane %v2461_v22, 4  ;;  %v4511_v22 = vld [vmem:[%s5173_s28 + $0x2c] sm:$0x1] }
 0x104   : > { %v2656_v25 = vrot.slane %v4511_v22, 5  ;;  %v2492_v35 = vshll.u32 %v4511_v22, 16 }
 0x105   : > { %v1010_v38 = vpop.f32.mrf.mxu0  ;;  %v5637_v55 = vadd.f32 %v5568_v36, %v1141_v45  ;;  %v4510_v36 = vld [vmem:[%s5173_s28 + $0x28] sm:$0xf]  ;;  %v2467_v63 = vsel %vm5008_vm7, %v2462_v46, %v2466_v41  ;;  %v4512_v46 = vld [vmem:[%s5173_s28 + $0x30] sm:$0xf] }
 0x106   : > { %v813_v26 = vpop.f32.mrf.mxu3  ;;  %v2483_v34 = vshrl.u32 %v4510_v36, 16  ;;  %v2486_v57 = vshll.u32 %v4510_v36, 16  ;;  %v2657_v27 = vsel %vm4977_vm4, %v4536_v51, %v2656_v25  ;;  %v4754_v36 = vld [vmem:[%s5634_s17 + $0x14] sm:$0xf0]  ;;  %v2497_v61 = vshrl.u32 %v4512_v46, 16 }
 0x107   : > { %v5639_v56 = vpop.f32.mrf.mxu1  ;;  %v826_v5 = vadd.f32 %v813_v26, %v5448_v10  ;;  %v2469_v10 = vshrl.u32 %v4508_v2, 16  ;;  %v4514_v2 = vld [vmem:[%s5173_s28 + $0x38] sm:$0xf] }
 0x108   : > { %4432 = vmatmul.msk.bf16.gmra.mxu0 %vm511_vm3, %v4428_v16  ;;  %v2485_v31 = vrot.slane %v2483_v34, 4  ;;  %v2488_v21 = vrot.slane %v2486_v57, 5  ;;  %v2679_v34 = vunpack.c.l.b16 %v2657_v27  ;;  %v2511_v57 = vshrl.u32 %v4514_v2, 16 }
 0x109   : > { %v1020_v3 = vadd.f32 %v1007_v43, %v826_v5  ;;  %v2471_v33 = vrot.slane %v2469_v10, 4 }
 0x10a   : > { %v5651_v32 = vpop.f32.mrf.mxu2  ;;  %v2489_v45 = vor.u32 %v2488_v21, %v2485_v31 }
 0x10b   : > { %4403 = vmatmul.msk.bf16.gmra.mxu3 %vm511_vm3, %v5546_v54  ;;  %v1142_v43 = vadd.f32 %v5582_v39, %v1020_v3  ;;  %v2555_v54 = vunpack.c.l.b16 %v2467_v63  ;;  %v2474_v39 = vrot.slane %v2472_v1, 5  ;;  %v2500_v63 = vshll.u32 %v4512_v46, 16  ;;  %v4516_v46 = vld [vmem:[%s5173_s28 + $0x40] sm:$0xf] }
 0x10c   : > { %v2490_v47 = vrot.slane %v2489_v45, 4  ;;  %v2660_v45 = vrot.slane %v4513_v19, 5  ;;  %v2525_v27 = vshrl.u32 %v4516_v46, 16 }
 0x10d   : > { %v1012_v11 = vpop.f32.mrf.mxu0  ;;  %v5661_v18 = vadd.f32 %v5589_v28, %v1142_v43  ;;  %v4509_v28 = vld [vmem:[%s5173_s28 + $0x24] sm:$0x1]  ;;  %v2562_v23 = vpack.c.b16 %v2555_v54, %v2554_v9  ;;  %v2475_v29 = vor.u32 %v2474_v39, %v2471_v33  ;;  %v2514_v43 = vshll.u32 %v4514_v2, 16 }
 0x10e   : > { %v816_v30 = vpop.f32.mrf.mxu3  ;;  %v2652_v48 = vrot.slane %v4509_v28, 5  ;;  %v2478_v16 = vshll.u32 %v4509_v28, 16  ;;  %v2499_v54 = vrot.slane %v2497_v61, 4  ;;  %v2502_v33 = vrot.slane %v2500_v63, 5  ;;  %v4515_v28 = vld [vmem:[%s5173_s28 + $0x3c] sm:$0x1] }
 0x10f   : > { %4563 = vmatmul.msk.bf16.vlgmr.msra.gmra.mxu2 %vm511_vm3, %v4550_v59  ;;  %v5664_v42 = vpop.f32.mrf.mxu1  ;;  %v827_v15 = vadd.f32 %v816_v30, %v5478_v17  ;;  %v4486_v17 = vld [vmem:[%s5173_s28 + $0x10] sm:$0xf]  ;;  %v2476_v3 = vrot.slane %v2475_v29, 4  ;;  %v2494_v59 = vrot.slane %v2492_v35, 5  ;;  %v2516_v39 = vrot.slane %v2514_v43, 5 }
 0x110   : > { %v2653_v26 = vsel %vm4977_vm4, %v4535_v4, %v2652_v48  ;;  %v4487_v8 = vor.u32 %v4749_v24, %v4486_v17  ;;  %v2480_v58 = vrot.slane %v2478_v16, 5  ;;  %v4529_v48 = vld [vmem:[%s5173_s28 + $0x30] sm:$0xe]  ;;  %v2503_v51 = vor.u32 %v2502_v33, %v2499_v54  ;;  %v4490_v35 = vld [vmem:[%s5173_s28 + $0x20] sm:$0xf] }
 0x111   : > { %v1021_v20 = vadd.f32 %v1010_v38, %v827_v15  ;;  %v2513_v15 = vrot.slane %v2511_v57, 4  ;;  %v2506_v17 = vshll.u32 %v4513_v19, 16  ;;  %v2520_v29 = vshll.u32 %v4515_v28, 16  ;;  %v4755_v57 = vld [vmem:[%s5634_s17 + $0x24] sm:$0xf0] }
 0x112   : > { %v5670_v62 = vpop.f32.mrf.mxu2  ;;  %4542 = vmatmul.msk.bf16.vlgmr.msra.gmra.mxu1 %vm511_vm3, %v2684_v14  ;;  %v4554_v14 = vor.u32 %v4754_v36, %v4553_v50  ;;  %v2481_v9 = vsel %vm5008_vm7, %v2476_v3, %v2480_v58  ;;  %v4537_v16 = vrot.slane %v4529_v48, 9  ;;  %v4750_v50 = vld [vmem:[%s5173_s28 + $0x24] sm:$0xf0]  ;;  %v2528_v2 = vshll.u32 %v4516_v46, 16 }
 0x113   : > { %v1143_v38 = vadd.f32 %v5609_v13, %v1021_v20  ;;  %v2556_v22 = vunpack.c.l.b16 %v2481_v9  ;;  %v2517_v24 = vor.u32 %v2516_v39, %v2513_v15  ;;  %v2508_v36 = vrot.slane %v2506_v17, 5 }
 0x115   : > { %v1516_v52 = vpop.f32.mrf.mxu0  ;;  %v5681_v41 = vadd.f32 %v5615_v0, %v1143_v38  ;;  %v2678_v0 = vunpack.c.l.b16 %v2653_v26  ;;  %v2664_v38 = vrot.slane %v4515_v28, 5  ;;  %v4517_v28 = vld [vmem:[%s5173_s28 + $0x44] sm:$0x1] }
 0x116   : > { %v818_v44 = vpop.f32.mrf.mxu3 }
 0x117   : > { %v5683_v5 = vpop.f32.mrf.mxu1  ;;  %v828_v13 = vadd.f32 %v818_v44, %v5506_v40  ;;  %v2685_v60 = vpack.c.b16 %v2679_v34, %v2678_v0  ;;  %v2522_v0 = vrot.slane %v2520_v29, 5  ;;  %v4557_v34 = vld [vmem:[%s5634_s17 + $0x20] sm:$0xf] }
 0x118   : > { %4521 = vmatmul.msk.bf16.vlgmr.msra.gmra.mxu0 %vm511_vm3, %v2562_v23  ;;  %v4530_v23 = vld [vmem:[%s5173_s28 + $0x38] sm:$0xe] }
 0x119   : > { %v1022_v10 = vadd.f32 %v1012_v11, %v828_v13  ;;  %v2495_v11 = vsel %vm5008_vm7, %v2490_v47, %v2494_v59  ;;  %v2504_v13 = vrot.slane %v2503_v51, 4  ;;  %v2518_v59 = vrot.slane %v2517_v24, 4  ;;  %v4531_v51 = vld [vmem:[%s5173_s28 + $0x40] sm:$0xe] }
 0x11a   : > { %v5692_v1 = vpop.f32.mrf.mxu2  ;;  %v2557_v4 = vunpack.c.l.b16 %v2495_v11 }
 0x11b   : > { %4500 = vmatmul.msk.bf16.vlgmr.msra.gmra.mxu3 %vm511_vm3, %v4487_v8  ;;  %v1144_v40 = vadd.f32 %v5639_v56, %v1022_v10  ;;  %v4491_v10 = vor.u32 %v4750_v50, %v4490_v35  ;;  %v2523_v15 = vsel %vm5008_vm7, %v2518_v59, %v2522_v0  ;;  %v4539_v35 = vrot.slane %v4531_v51, 9  ;;  %v4494_v59 = vld [vmem:[%s5173_s28 + $0x30] sm:$0xf] }
 0x11c   : > { %v2563_v26 = vpack.c.b16 %v2557_v4, %v2556_v22  ;;  %v2559_v48 = vunpack.c.l.b16 %v2523_v15 }
 0x11d   : > { %v1518_v30 = vpop.f32.mrf.mxu0  ;;  %v5701_v31 = vadd.f32 %v5651_v32, %v1144_v40  ;;  %v2530_v40 = vrot.slane %v2528_v2, 5  ;;  %v4616_v2 = vld [vmem:[%s5634_s17 + $0x10] sm:$0xf] }
 0x11e   : > { %v1394_v21 = vpop.f32.mrf.mxu3 }
 0x11f   : > { %4564 = vmatmul.msk.bf16.gmra.mxu2 %vm511_vm3, %v4554_v14  ;;  %v5704_v56 = vpop.f32.mrf.mxu1  ;;  %v1414_v20 = vadd.f32 %v1394_v21, %v5552_v6  ;;  %v4538_v6 = vrot.slane %v4530_v23, 9  ;;  %v2527_v14 = vrot.slane %v2525_v27, 4  ;;  %v4614_v27 = vld [vmem:[%s5634_s17 + $0x8] sm:$0xf] }
 0x121   : > { %v1536_v25 = vadd.f32 %v1516_v52, %v1414_v20  ;;  %v4518_v52 = vld [vmem:[%s5173_s28 + $0x48] sm:$0xf]  ;;  %v2665_v61 = vsel %vm4977_vm4, %v4538_v6, %v2664_v38  ;;  %v4519_v20 = vld [vmem:[%s5173_s28 + $0x4c] sm:$0x1]  ;;  %v2531_v22 = vor.u32 %v2530_v40, %v2527_v14  ;;  %v5769_v40 = vld [vmem:[%s5634_s17 + $0x14] sm:$0x1] }
 0x122   : > { %v5711_v32 = vpop.f32.mrf.mxu2  ;;  %4543 = vmatmul.msk.bf16.gmra.mxu1 %vm511_vm3, %v2685_v60  ;;  %v2542_v43 = vshll.u32 %v4518_v52, 16  ;;  %v2681_v33 = vunpack.c.l.b16 %v2665_v61  ;;  %v4558_v60 = vor.u32 %v4755_v57, %v4557_v34  ;;  %v2548_v6 = vshll.u32 %v4519_v20, 16  ;;  %v5766_v14 = vld [vmem:[%s5634_s17 + $0xc] sm:$0x1] }
 0x123   : > { %v1618_v44 = vadd.f32 %v5664_v42, %v1536_v25  ;;  %v2661_v42 = vsel %vm4977_vm4, %v4537_v16, %v2660_v45  ;;  %v2534_v16 = vshll.u32 %v4517_v28, 16  ;;  %v5753_v38 = vrot.slane %v2531_v22, 4 }
 0x124   : > { %v2680_v54 = vunpack.c.l.b16 %v2661_v42  ;;  %v2544_v21 = vrot.slane %v2542_v43, 5  ;;  %v2550_v42 = vrot.slane %v2548_v6, 5  ;;  %v3261_v22 = vshll.u32 %v5769_v40, 16 }
 0x125   : > { %v1521_v8 = vpop.f32.mrf.mxu0  ;;  %v5720_v3 = vadd.f32 %v5670_v62, %v1618_v44  ;;  %v2539_v62 = vshrl.u32 %v4518_v52, 16  ;;  %v2672_v52 = vrot.slane %v4519_v20, 5  ;;  %v2536_v0 = vrot.slane %v2534_v16, 5 }
 0x126   : > { %v1396_v58 = vpop.f32.mrf.mxu3  ;;  %v2686_v23 = vpack.c.b16 %v2681_v33, %v2680_v54 }
 0x127   : > { %v5722_v47 = vpop.f32.mrf.mxu1  ;;  %v1415_v63 = vadd.f32 %v1396_v58, %v5560_v7  ;;  %v2509_v7 = vsel %vm5008_vm7, %v2504_v13, %v2508_v36  ;;  %v2541_v39 = vrot.slane %v2539_v62, 4  ;;  %v3241_v13 = vshll.u32 %v4614_v27, 16 }
 0x128   : > { %4522 = vmatmul.msk.bf16.gmra.mxu0 %vm511_vm3, %v2563_v26  ;;  %v2558_v4 = vunpack.c.l.b16 %v2509_v7  ;;  %v2668_v26 = vrot.slane %v4517_v28, 5  ;;  %v3252_v36 = vshrl.u32 %v4616_v2, 16  ;;  %v3255_v58 = vshll.u32 %v4616_v2, 16  ;;  %v4756_v7 = vld [vmem:[%s5634_s17 + $0x34] sm:$0xf0] }
 0x129   : > { %v1537_v9 = vadd.f32 %v1518_v30, %v1415_v63  ;;  %v2545_v45 = vor.u32 %v2544_v21, %v2541_v39  ;;  %v3243_v57 = vrot.slane %v3241_v13, 5 }
 0x12a   : > { %v5732_v11 = vpop.f32.mrf.mxu2  ;;  %v2564_v46 = vpack.c.b16 %v2559_v48, %v2558_v4  ;;  %v3254_v62 = vrot.slane %v3252_v36, 4  ;;  %v3257_v43 = vrot.slane %v3255_v58, 5  ;;  %v2669_v15 = vsel %vm4977_vm4, %v4539_v35, %v2668_v26  ;;  %v2824_v4 = vld [vmem:[%s5634_s17 + $0x8] sm:$0xf]  ;;  %v5807_v36 = vld [vmem:[%s5634_s17 + $0x4] sm:$0x1] }
 0x12b   : > { %4501 = vmatmul.msk.bf16.gmra.mxu3 %vm511_vm3, %v4491_v10  ;;  %v1619_v19 = vadd.f32 %v5683_v5, %v1537_v9  ;;  %v4532_v5 = vld [vmem:[%s5173_s28 + $0x48] sm:$0xe]  ;;  %v4751_v10 = vld [vmem:[%s5173_s28 + $0x34] sm:$0xf0]  ;;  %v2822_v9 = vld [vmem:[%s5634_s17] sm:$0xf] }
 0x12c   : > { %v4540_v50 = vrot.slane %v4532_v5, 9  ;;  %v4495_v20 = vor.u32 %v4751_v10, %v4494_v59  ;;  %v2839_v48 = vshrl.u32 %v2822_v9, 16  ;;  %v2853_v26 = vshrl.u32 %v2824_v4, 16  ;;  %v5810_v58 = vld [vmem:[%s5634_s17 + $0xc] sm:$0x1] }
 0x12d   : > { %v5740_v30 = vpop.f32.mrf.mxu0  ;;  %v5746_v25 = vadd.f32 %v5692_v1, %v1619_v19  ;;  %v3247_v19 = vshll.u32 %v5766_v14, 16 }
 0x12e   : > { %v1399_v17 = vpop.f32.mrf.mxu3  ;;  %v2673_v39 = vsel %vm4977_vm4, %v4540_v50, %v2672_v52  ;;  %v3263_v50 = vrot.slane %v3261_v22, 5  ;;  %v2841_v52 = vrot.slane %v2839_v48, 4 }
 0x12f   : > { %4565 = vmatmul.msk.bf16.gmra.mxu2 %vm511_vm3, %v4558_v60  ;;  %v5749_v24 = vpop.f32.mrf.mxu1  ;;  %v1416_v29 = vadd.f32 %v1399_v17, %v5580_v37  ;;  %v3238_v37 = vshrl.u32 %v4614_v27, 16  ;;  %v2683_v16 = vunpack.c.l.b16 %v2673_v39  ;;  %v3249_v35 = vrot.slane %v3247_v19, 5  ;;  %v4722_v19 = vld [vmem:[%s6374_s3 + $0x34] sm:$0x3] }
 0x130   : > { %v3897_v22 = vsel %vm524_vm0, %v4722_v19, 0  ;;  %v4757_v19 = vld [vmem:[%s5634_s17 + $0xc] sm:$0xf0] }
 0x131   : > { %v1538_v1 = vadd.f32 %v1521_v8, %v1416_v29  ;;  %v2546_v8 = vrot.slane %v2545_v45, 4  ;;  %v3240_v34 = vrot.slane %v3238_v37, 4  ;;  %v2682_v29 = vunpack.c.l.b16 %v2669_v15  ;;  %v3016_v15 = vld [vmem:[%s5634_s17] sm:$0xe]  ;;  %3906 = vmatpush.bf16.msra.mxu2 %v3897_v22 }
 0x132   : > { %v5755_v44 = vpop.f32.mrf.mxu2  ;;  %4544 = vmatmul.msk.bf16.gmra.mxu1 %vm511_vm3, %v2686_v23  ;;  %v2842_v23 = vshll.u32 %v2822_v9, 16 }
 0x133   : > { %v1620_v61 = vadd.f32 %v5704_v56, %v1538_v1  ;;  %v4561_v56 = vld [vmem:[%s5634_s17 + $0x30] sm:$0xf]  ;;  %v3244_v21 = vor.u32 %v3243_v57, %v3240_v34  ;;  %v2551_v45 = vsel %vm5008_vm7, %v2546_v8, %v2550_v42  ;;  %v4651_v1 = vld [vmem:[%s6374_s3 + $0x2e] sm:$0x3]  ;;  %v2687_v13 = vpack.c.b16 %v2683_v16, %v2682_v29  ;;  %v5816_v8 = vld [vmem:[%s5173_s28 + $0x40] sm:$0xf] }
 0x134   : > { %v4562_v5 = vor.u32 %v4756_v7, %v4561_v56  ;;  %v2844_v27 = vrot.slane %v2842_v23, 5  ;;  %v5804_v37 = vunpack.c.l.b16 %v2551_v45  ;;  %v5819_v42 = vld [vmem:[%s5173_s28 + $0x44] sm:$0xf0]  ;;  %v3498_v10 = vsel %vm524_vm0, %v4651_v1, 0  ;;  %v4618_v23 = vld [vmem:[%s5634_s17 + $0x18] sm:$0xf] }
 0x135   : > { %v5762_v63 = vpop.f32.mrf.mxu0  ;;  %v5773_v54 = vadd.f32 %v5711_v32, %v1620_v61  ;;  %v3258_v32 = vor.u32 %v3257_v43, %v3254_v62  ;;  %v3245_v6 = vrot.slane %v3244_v21, 4  ;;  %v2855_v57 = vrot.slane %v2853_v26, 4  ;;  %3507 = vmatpush.bf16.msra.mxu3 %v3498_v10  ;;  %v3017_v29 = vld [vmem:[%s5634_s17 + $0x8] sm:$0xe]  ;;  %v4620_v16 = vld [vmem:[%s5634_s17 + $0x20] sm:$0xf] }
 0x136   : > { %v1401_v33 = vpop.f32.mrf.mxu3  ;;  %v2848_v56 = vshll.u32 %v5807_v36, 16  ;;  %v2862_v7 = vshll.u32 %v5810_v58, 16  ;;  %v3269_v45 = vshll.u32 %v4618_v23, 16  ;;  %v3280_v26 = vshrl.u32 %v4620_v16, 16 }
 0x137   : > { %v5775_v60 = vpop.f32.mrf.mxu1  ;;  %v1417_v28 = vadd.f32 %v1401_v33, %v5606_v53  ;;  %v2537_v53 = vsel %vm5008_vm7, %v5753_v38, %v2536_v0  ;;  %v3259_v38 = vrot.slane %v3258_v32, 4  ;;  %v3250_v61 = vsel %vm5008_vm7, %v3245_v6, %v3249_v35 }
 0x138   : > { %4523 = vmatmul.msk.bf16.gmra.mxu0 %vm511_vm3, %v2564_v46  ;;  %v5802_v2 = vunpack.c.l.b16 %v2537_v53  ;;  %v2845_v33 = vor.u32 %v2844_v27, %v2841_v52  ;;  %v5851_v32 = vunpack.c.l.b16 %v3250_v61  ;;  %v3266_v53 = vshrl.u32 %v4618_v23, 16  ;;  %v2826_v52 = vld [vmem:[%s5634_s17 + $0x10] sm:$0xf] }
 0x139   : > { %v1539_v51 = vadd.f32 %v5740_v30, %v1417_v28  ;;  %v2856_v30 = vshll.u32 %v2824_v4, 16  ;;  %v3264_v9 = vsel %vm5008_vm7, %v3259_v38, %v3263_v50  ;;  %v4701_v28 = vld [vmem:[%s6374_s3 + $0x32] sm:$0x3]  ;;  %v4572_v35 = vrot.slane %v3016_v15, 9 }
 0x13a   : > { %v5789_v17 = vpop.f32.mrf.mxu2  ;;  %v2565_v21 = vpack.c.b16 %v5804_v37, %v5802_v2  ;;  %v3775_v48 = vsel %vm524_vm0, %v4701_v28, 0  ;;  %v2846_v6 = vrot.slane %v2845_v33, 4  ;;  %v3042_v1 = vrot.slane %v5807_v36, 5 }
 0x13b   : > { %4502 = vmatmul.msk.bf16.gmra.mxu3 %vm511_vm3, %v4495_v20  ;;  %v2858_v62 = vrot.slane %v2856_v30, 5  ;;  %v1621_v43 = vadd.f32 %v5722_v47, %v1539_v51  ;;  %v3352_v51 = vunpack.c.l.b16 %v3264_v9  ;;  %3784 = vmatpush.bf16.msra.mxu1 %v3775_v48  ;;  %v3283_v30 = vshll.u32 %v4620_v16, 16 }
 0x13c   : > { %v3268_v38 = vrot.slane %v3266_v53, 4  ;;  %v3271_v50 = vrot.slane %v3269_v45, 5  ;;  %v2850_v10 = vrot.slane %v2848_v56, 5  ;;  %v2870_v9 = vshll.u32 %v2826_v52, 16 }
 0x13d   : > { %v5800_v46 = vpop.f32.mrf.mxu0  ;;  %v5849_v20 = vadd.f32 %v5732_v11, %v1621_v43  ;;  %v3285_v61 = vrot.slane %v3283_v30, 5  ;;  %v2867_v43 = vshrl.u32 %v2826_v52, 16  ;;  %v3359_v15 = vpack.c.b16 %v3352_v51, %v5851_v32 }
 0x13e   : > { %v1404_v59 = vpop.f32.mrf.mxu3  ;;  %v3043_v56 = vsel %vm4977_vm4, %v4572_v35, %v3042_v1 }
 0x13f   : > { %4566 = vmatmul.msk.bf16.gmra.mxu2 %vm511_vm3, %v4562_v5  ;;  %v5813_v0 = vpop.f32.mrf.mxu1  ;;  %v1418_v34 = vadd.f32 %v1404_v59, %v5637_v55  ;;  %v4499_v55 = vor.u32 %v5819_v42, %v5816_v8  ;;  %v2859_v5 = vor.u32 %v2858_v62, %v2855_v57  ;;  %v3046_v59 = vrot.slane %v5810_v58, 5  ;;  %v5868_v8 = vld [vmem:[%s5634_s17 + $0x1c] sm:$0x1]  ;;  %v2828_v62 = vld [vmem:[%s5634_s17 + $0x18] sm:$0xf] }
 0x140   : > { %v3282_v42 = vrot.slane %v3280_v26, 4  ;;  %v2864_v57 = vrot.slane %v2862_v7, 5  ;;  %v2881_v22 = vshrl.u32 %v2828_v62, 16  ;;  %v2869_v51 = vrot.slane %v2867_v43, 4  ;;  %v4624_v43 = vld [vmem:[%s5634_s17 + $0x30] sm:$0xf] }
 0x141   : > { %v1540_v39 = vadd.f32 %v5762_v63, %v1418_v34  ;;  %v4664_v63 = vld [vmem:[%s6374_s3 + $0x30] sm:$0x3]  ;;  %v2860_v34 = vrot.slane %v2859_v5, 4  ;;  %v2872_v5 = vrot.slane %v2870_v9, 5 }
 0x142   : > { %v5836_v47 = vpop.f32.mrf.mxu2  ;;  %4545 = vmatmul.msk.bf16.gmra.mxu1 %vm511_vm3, %v2687_v13  ;;  %v3581_v4 = vsel %vm524_vm0, %v4664_v63, 0  ;;  %v4573_v13 = vrot.slane %v3017_v29, 9  ;;  %v3272_v63 = vor.u32 %v3271_v50, %v3268_v38  ;;  %v3074_v29 = vunpack.c.l.b16 %v3043_v56  ;;  %v5906_v50 = vld [vmem:[%s5634_s17 + $0x1c] sm:$0x1] }
 0x143   : > { %3590 = vmatpush.bf16.msra.mxu0 %v3581_v4  ;;  %v1622_v27 = vadd.f32 %v5749_v24, %v1540_v39  ;;  %v5873_v24 = vld [vmem:[%s5634_s17 + $0x24] sm:$0x1]  ;;  %v4596_v39 = vld [vmem:[%s5634_s17 + $0x8] sm:$0xf]  ;;  %v2865_v32 = vsel %vm5008_vm7, %v2860_v34, %v2864_v57  ;;  %v2884_v4 = vshll.u32 %v2828_v62, 16 }
 0x144   : > { %v3047_v7 = vsel %vm4977_vm4, %v4573_v13, %v3046_v59  ;;  %v3289_v28 = vshll.u32 %v5873_v24, 16  ;;  %v4597_v23 = vor.u32 %v4757_v19, %v4596_v39  ;;  %v3273_v53 = vrot.slane %v3272_v63, 4 }
 0x145   : > { %v5859_v11 = vpop.f32.mrf.mxu0  ;;  %v3075_v16 = vunpack.c.l.b16 %v3047_v7  ;;  %v5903_v30 = vunpack.c.l.b16 %v2865_v32  ;;  %v2886_v13 = vrot.slane %v2884_v4, 5  ;;  %v5910_v59 = vadd.f32 %v5755_v44, %v1622_v27  ;;  %v4622_v27 = vld [vmem:[%s5634_s17 + $0x28] sm:$0xf] }
 0x146   : > { %v1406_v2 = vpop.f32.mrf.mxu3  ;;  %v3291_v38 = vrot.slane %v3289_v28, 5  ;;  %v2890_v44 = vshll.u32 %v5906_v50, 16  ;;  %v3311_v19 = vshll.u32 %v4624_v43, 16  ;;  %v3019_v28 = vld [vmem:[%s5634_s17 + $0x18] sm:$0xe] }
 0x147   : > { %v5864_v37 = vpop.f32.mrf.mxu1  ;;  %v1419_v36 = vadd.f32 %v1406_v2, %v5661_v18  ;;  %v3275_v18 = vshll.u32 %v5868_v8, 16  ;;  %v2883_v2 = vrot.slane %v2881_v22, 4  ;;  %v3082_v57 = vpack.c.b16 %v3075_v16, %v3074_v29 }
 0x148   : > { %4524 = vmatmul.msk.bf16.gmra.mxu0 %vm511_vm3, %v2565_v21  ;;  %v3286_v21 = vor.u32 %v3285_v61, %v3282_v42  ;;  %v2873_v42 = vor.u32 %v2872_v5, %v2869_v51  ;;  %v2892_v32 = vrot.slane %v2890_v44, 5 }
 0x149   : > { %v1541_v58 = vadd.f32 %v5800_v46, %v1419_v36  ;;  %v2851_v46 = vsel %vm5008_vm7, %v2846_v6, %v2850_v10  ;;  %v3277_v45 = vrot.slane %v3275_v18, 5  ;;  %v3018_v36 = vld [vmem:[%s5634_s17 + $0x10] sm:$0xe]  ;;  %v2887_v39 = vor.u32 %v2886_v13, %v2883_v2 }
 0x14a   : > { %v5877_v33 = vpop.f32.mrf.mxu2  ;;  %v5901_v26 = vunpack.c.l.b16 %v2851_v46  ;;  %v3287_v1 = vrot.slane %v3286_v21, 4  ;;  %v2874_v7 = vrot.slane %v2873_v42, 4  ;;  %v4574_v46 = vrot.slane %v3018_v36, 9 }
 0x14b   : > { %4503 = vmatmul.msk.bf16.gmra.mxu3 %vm511_vm3, %v4499_v55  ;;  %v5896_v55 = vld [vmem:[%s5634_s17 + $0x14] sm:$0x1]  ;;  %v1623_v10 = vadd.f32 %v5775_v60, %v1541_v58  ;;  %v3297_v60 = vshll.u32 %v4622_v27, 16 }
 0x14c   : > { %v2876_v61 = vshll.u32 %v5896_v55, 16  ;;  %v2960_v9 = vpack.c.b16 %v5903_v30, %v5901_v26  ;;  %v3292_v58 = vsel %vm5008_vm7, %v3287_v1, %v3291_v38  ;;  %v3050_v16 = vrot.slane %v5896_v55, 5  ;;  %v5946_v38 = vld [vmem:[%s5634_s17 + $0x34] sm:$0x1] }
 0x14d   : > { %v5893_v48 = vpop.f32.mrf.mxu0  ;;  %v5929_v63 = vadd.f32 %v5789_v17, %v1623_v10  ;;  %v3299_v4 = vrot.slane %v3297_v60, 5  ;;  %v3354_v17 = vunpack.c.l.b16 %v3292_v58  ;;  %v2888_v30 = vrot.slane %v2887_v39, 4 }
 0x14e   : > { %v1409_v35 = vpop.f32.mrf.mxu3  ;;  %v2878_v21 = vrot.slane %v2876_v61, 5  ;;  %v4575_v1 = vrot.slane %v3019_v28, 9  ;;  %v3051_v10 = vsel %vm4977_vm4, %v4574_v46, %v3050_v16 }
 0x14f   : > { %4631 = vmatmul.msk.bf16.vlgmr.msrb.gmra.mxu2 %vm511_vm3, %v3359_v15  ;;  %v5899_v6 = vpop.f32.mrf.mxu1  ;;  %v1420_v52 = vadd.f32 %v1409_v35, %v5681_v41  ;;  %v3278_v41 = vsel %vm5008_vm7, %v3273_v53, %v3277_v45  ;;  %v3294_v15 = vshrl.u32 %v4622_v27, 16  ;;  %v5940_v53 = vld [vmem:[%s5634_s17 + $0x2c] sm:$0x1]  ;;  %v3313_v35 = vrot.slane %v3311_v19, 5 }
 0x150   : > { %v3353_v56 = vunpack.c.l.b16 %v3278_v41  ;;  %v2879_v42 = vsel %vm5008_vm7, %v2874_v7, %v2878_v21  ;;  %v3303_v61 = vshll.u32 %v5940_v53, 16  ;;  %v3317_v41 = vshll.u32 %v5946_v38, 16  ;;  %v5970_v7 = vld [vmem:[%s5634_s17 + $0x24] sm:$0x1] }
 0x151   : > { %v1542_v34 = vadd.f32 %v5859_v11, %v1420_v52  ;;  %v3308_v11 = vshrl.u32 %v4624_v43, 16  ;;  %v3296_v22 = vrot.slane %v3294_v15, 4  ;;  %v5966_v43 = vunpack.c.l.b16 %v2879_v42  ;;  %v2832_v15 = vld [vmem:[%s5634_s17 + $0x28] sm:$0xf] }
 0x152   : > { %v5916_v62 = vpop.f32.mrf.mxu2  ;;  %4610 = vmatmul.msk.bf16.vlgmr.msrb.gmra.mxu1 %vm511_vm3, %v4597_v23  ;;  %v2830_v23 = vld [vmem:[%s5634_s17 + $0x20] sm:$0xf]  ;;  %v3360_v36 = vpack.c.b16 %v3354_v17, %v3353_v56  ;;  %v3076_v58 = vunpack.c.l.b16 %v3051_v10  ;;  %v3305_v56 = vrot.slane %v3303_v61, 5  ;;  %v2912_v17 = vshll.u32 %v2832_v15, 16 }
 0x153   : > { %v1624_v51 = vadd.f32 %v5813_v0, %v1542_v34  ;;  %v3310_v45 = vrot.slane %v3308_v11, 4  ;;  %v3054_v0 = vrot.slane %v5906_v50, 5  ;;  %v2895_v52 = vshrl.u32 %v2830_v23, 16  ;;  %v4600_v50 = vld [vmem:[%s5634_s17 + $0x18] sm:$0xf] }
 0x154   : > { %v2898_v2 = vshll.u32 %v2830_v23, 16  ;;  %v4758_v34 = vld [vmem:[%s5634_s17 + $0x1c] sm:$0xf0] }
 0x155   : > { %v5931_v18 = vpop.f32.mrf.mxu0  ;;  %v3055_v44 = vsel %vm4977_vm4, %v4575_v1, %v3054_v0  ;;  %v2897_v60 = vrot.slane %v2895_v52, 4  ;;  %v4601_v39 = vor.u32 %v4758_v34, %v4600_v50  ;;  %v5982_v16 = vadd.f32 %v5836_v47, %v1624_v51  ;;  %v3020_v52 = vld [vmem:[%s5634_s17 + $0x20] sm:$0xe]  ;;  %v3021_v50 = vld [vmem:[%s5634_s17 + $0x28] sm:$0xe] }
 0x156   : > { %v1411_v5 = vpop.f32.mrf.mxu3  ;;  %v2900_v11 = vrot.slane %v2898_v2, 5  ;;  %v3077_v46 = vunpack.c.l.b16 %v3055_v44  ;;  %v4576_v34 = vrot.slane %v3020_v52, 9  ;;  %v4628_v44 = vld [vmem:[%s5634_s17 + $0x40] sm:$0xf] }
 0x157   : > { %v5936_v29 = vpop.f32.mrf.mxu1  ;;  %v1421_v26 = vadd.f32 %v1411_v5, %v5701_v31  ;;  %v3300_v31 = vor.u32 %v3299_v4, %v3296_v22  ;;  %v3319_v22 = vrot.slane %v3317_v41, 5  ;;  %v5978_v4 = vld [vmem:[%s5634_s17 + $0x2c] sm:$0x1]  ;;  %v2909_v5 = vshrl.u32 %v2832_v15, 16 }
 0x158   : > { %4581 = vmatmul.msk.bf16.vlgmr.msrb.gmra.mxu0 %vm511_vm3, %v3082_v57  ;;  %v3314_v57 = vor.u32 %v3313_v35, %v3310_v45  ;;  %v2901_v45 = vor.u32 %v2900_v11, %v2897_v60  ;;  %v2904_v35 = vshll.u32 %v5970_v7, 16  ;;  %v2918_v0 = vshll.u32 %v5978_v4, 16 }
 0x159   : > { %v1543_v55 = vadd.f32 %v5893_v48, %v1421_v26  ;;  %v2893_v48 = vsel %vm5008_vm7, %v2888_v30, %v2892_v32  ;;  %v3301_v19 = vrot.slane %v3300_v31, 4  ;;  %v3083_v47 = vpack.c.b16 %v3077_v46, %v3076_v58 }
 0x15a   : > { %v5949_v13 = vpop.f32.mrf.mxu2  ;;  %v5975_v28 = vunpack.c.l.b16 %v2893_v48  ;;  %v3315_v32 = vrot.slane %v3314_v57, 4  ;;  %v2911_v2 = vrot.slane %v2909_v5, 4  ;;  %v6006_v10 = vrot.slane %v2904_v35, 5  ;;  %v4626_v48 = vld [vmem:[%s5634_s17 + $0x38] sm:$0xf] }
 0x15b   : > { %4568 = vmatmul.msk.bf16.vlgmr.msrb.gmra.mxu3 %vm511_vm3, %v2960_v9  ;;  %v1625_v26 = vadd.f32 %v5864_v37, %v1543_v55  ;;  %v2914_v55 = vrot.slane %v2912_v17, 5  ;;  %v6009_v41 = vrot.slane %v2918_v0, 5  ;;  %v3322_v60 = vshrl.u32 %v4626_v48, 16  ;;  %v6027_v17 = vld [vmem:[%s5634_s17 + $0x3c] sm:$0x1] }
 0x15c   : > { %v3320_v51 = vsel %vm5008_vm7, %v3315_v32, %v3319_v22  ;;  %v3325_v11 = vshll.u32 %v4626_v48, 16  ;;  %v3336_v58 = vshrl.u32 %v4628_v44, 16  ;;  %v2836_v0 = vld [vmem:[%s5634_s17 + $0x38] sm:$0xf] }
 0x15d   : > { %v5964_v27 = vpop.f32.mrf.mxu0  ;;  %v5997_v37 = vadd.f32 %v5877_v33, %v1625_v26  ;;  %v3356_v57 = vunpack.c.l.b16 %v3320_v51  ;;  %v3058_v33 = vrot.slane %v5970_v7, 5  ;;  %v4577_v7 = vrot.slane %v3021_v50, 9 }
 0x15e   : > { %v1914_v9 = vpop.f32.mrf.mxu3  ;;  %v3327_v46 = vrot.slane %v3325_v11, 5  ;;  %v3338_v32 = vrot.slane %v3336_v58, 4 }
 0x15f   : > { %4632 = vmatmul.msk.bf16.gmra.mxu2 %vm511_vm3, %v3360_v36  ;;  %v5973_v21 = vpop.f32.mrf.mxu1  ;;  %v1934_v23 = vadd.f32 %v1914_v9, %v5720_v3  ;;  %v3306_v3 = vsel %vm5008_vm7, %v3301_v19, %v3305_v56  ;;  %v6004_v36 = vrot.slane %v2901_v45, 4  ;;  %v2915_v56 = vor.u32 %v2914_v55, %v2911_v2  ;;  %v4604_v9 = vld [vmem:[%s5634_s17 + $0x28] sm:$0xf]  ;;  %v2834_v45 = vld [vmem:[%s5634_s17 + $0x30] sm:$0xf] }
 0x160   : > { %v3355_v61 = vunpack.c.l.b16 %v3306_v3  ;;  %v3059_v26 = vsel %vm4977_vm4, %v4576_v34, %v3058_v33  ;;  %v3331_v3 = vshll.u32 %v6027_v17, 16  ;;  %v2923_v55 = vshrl.u32 %v2834_v45, 16 }
 0x161   : > { %v2017_v30 = vadd.f32 %v5931_v18, %v1934_v23  ;;  %v2961_v18 = vpack.c.b16 %v5975_v28, %v5966_v43  ;;  %v3324_v28 = vrot.slane %v3322_v60, 4  ;;  %v2916_v52 = vrot.slane %v2915_v56, 4 }
 0x162   : > { %v5987_v1 = vpop.f32.mrf.mxu2  ;;  %4611 = vmatmul.msk.bf16.gmra.mxu1 %vm511_vm3, %v4601_v39  ;;  %v3339_v39 = vshll.u32 %v4628_v44, 16  ;;  %v3361_v35 = vpack.c.b16 %v3356_v57, %v3355_v61  ;;  %v2907_v61 = vsel %vm5008_vm7, %v6004_v36, %v6006_v10  ;;  %v3078_v50 = vunpack.c.l.b16 %v3059_v26 }
 0x163   : > { %v2211_v42 = vadd.f32 %v5899_v6, %v2017_v30  ;;  %v3328_v30 = vor.u32 %v3327_v46, %v3324_v28  ;;  %v2940_v60 = vshll.u32 %v2836_v0, 16  ;;  %v2921_v36 = vsel %vm5008_vm7, %v2916_v52, %v6009_v41 }
 0x164   : > { %v3341_v22 = vrot.slane %v3339_v39, 5  ;;  %v2835_v39 = vld [vmem:[%s5634_s17 + $0x34] sm:$0x1]  ;;  %v2925_v56 = vrot.slane %v2923_v55, 4 }
 0x165   : > { %v6002_v31 = vpop.f32.mrf.mxu0  ;;  %v6015_v43 = vadd.f32 %v5916_v62, %v2211_v42  ;;  %v3062_v62 = vrot.slane %v5978_v4, 5  ;;  %v4759_v4 = vld [vmem:[%s5634_s17 + $0x2c] sm:$0xf0]  ;;  %v2926_v42 = vshll.u32 %v2834_v45, 16  ;;  %v3329_v44 = vrot.slane %v3328_v30, 4 }
 0x166   : > { %v1916_v6 = vpop.f32.mrf.mxu3  ;;  %v4605_v34 = vor.u32 %v4759_v4, %v4604_v9  ;;  %v2956_v9 = vunpack.c.l.b16 %v2907_v61  ;;  %v2957_v45 = vunpack.c.l.b16 %v2921_v36  ;;  %v2932_v26 = vshll.u32 %v2835_v39, 16 }
 0x167   : > { %v6017_v15 = vpop.f32.mrf.mxu1  ;;  %v1935_v19 = vadd.f32 %v1916_v6, %v5746_v25  ;;  %v6030_v25 = vld [vmem:[%s5634_s17 + $0x44] sm:$0x1]  ;;  %v3333_v6 = vrot.slane %v3331_v3, 5 }
 0x168   : > { %4582 = vmatmul.msk.bf16.gmra.mxu0 %vm511_vm3, %v3083_v47  ;;  %v3342_v47 = vor.u32 %v3341_v22, %v3338_v32  ;;  %v3345_v51 = vshll.u32 %v6030_v25, 16  ;;  %v2942_v32 = vrot.slane %v2940_v60, 5  ;;  %v3023_v22 = vld [vmem:[%s5634_s17 + $0x38] sm:$0xe] }
 0x169   : > { %v2018_v23 = vadd.f32 %v5964_v27, %v1935_v19  ;;  %v3063_v27 = vsel %vm4977_vm4, %v4577_v7, %v3062_v62  ;;  %v2837_v19 = vld [vmem:[%s5634_s17 + $0x3c] sm:$0x1]  ;;  %v2928_v7 = vrot.slane %v2926_v42, 5  ;;  %v3334_v41 = vsel %vm5008_vm7, %v3329_v44, %v3333_v6 }
 0x16a   : > { %v6024_v5 = vpop.f32.mrf.mxu2  ;;  %v3079_v48 = vunpack.c.l.b16 %v3063_v27  ;;  %v3343_v10 = vrot.slane %v3342_v47, 4  ;;  %v3347_v58 = vrot.slane %v3345_v51, 5  ;;  %v2946_v30 = vshll.u32 %v2837_v19, 16 }
 0x16b   : > { %4569 = vmatmul.msk.bf16.gmra.mxu3 %vm511_vm3, %v2961_v18  ;;  %v2937_v18 = vshrl.u32 %v2836_v0, 16  ;;  %v2929_v52 = vor.u32 %v2928_v7, %v2925_v56  ;;  %v3066_v47 = vrot.slane %v2835_v39, 5  ;;  %v4579_v51 = vrot.slane %v3023_v22, 9  ;;  %v4686_v39 = vld [vmem:[%s5634_s17 + $0x14] sm:$0x1] }
 0x16c   : > { %v3348_v4 = vsel %vm5008_vm7, %v3343_v10, %v3347_v58  ;;  %v3070_v42 = vrot.slane %v2837_v19, 5  ;;  %v4608_v10 = vld [vmem:[%s5634_s17 + $0x38] sm:$0xf]  ;;  %v4760_v58 = vld [vmem:[%s5634_s17 + $0x3c] sm:$0xf0] }
 0x16d   : > { %v2004_v2 = vpop.f32.mrf.mxu0  ;;  %v2939_v46 = vrot.slane %v2937_v18, 4  ;;  %v4706_v19 = vld [vmem:[%s5634_s17 + $0x10] sm:$0xe]  ;;  %v4688_v56 = vld [vmem:[%s5634_s17 + $0x1c] sm:$0x1]  ;;  %v4609_v22 = vor.u32 %v4760_v58, %v4608_v10 }
 0x16e   : > { %v1919_v57 = vpop.f32.mrf.mxu3  ;;  %v3071_v36 = vsel %vm4977_vm4, %v4579_v51, %v3070_v42  ;;  %v3646_v51 = vshll.u32 %v4686_v39, 16  ;;  %v4635_v58 = vld [vmem:[%s5634_s17 + $0x8] sm:$0xe] }
 0x16f   : > { %4633 = vmatmul.msk.bf16.gmra.mxu2 %vm511_vm3, %v3361_v35  ;;  %v6047_v33 = vpop.f32.mrf.mxu1  ;;  %v1936_v11 = vadd.f32 %v1919_v57, %v5773_v54  ;;  %v3022_v54 = vld [vmem:[%s5634_s17 + $0x30] sm:$0xe]  ;;  %v3084_v35 = vpack.c.b16 %v3079_v48, %v3078_v50  ;;  %v2943_v55 = vor.u32 %v2942_v32, %v2939_v46  ;;  %v2962_v57 = vpack.c.b16 %v2957_v45, %v2956_v9 }
 0x170   : > { %v4578_v27 = vrot.slane %v3022_v54, 9  ;;  %v2934_v48 = vrot.slane %v2932_v26, 5  ;;  %v3081_v32 = vunpack.c.l.b16 %v3071_v36  ;;  %v4714_v45 = vrot.slane %v4706_v19, 9  ;;  %v4687_v26 = vld [vmem:[%s5634_s17 + $0x18] sm:$0xf] }
 0x171   : > { %v2019_v62 = vadd.f32 %v6002_v31, %v1936_v11  ;;  %v2212_v31 = vadd.f32 %v5936_v29, %v2018_v23  ;;  %v3357_v29 = vunpack.c.l.b16 %v3334_v41  ;;  %v2944_v60 = vrot.slane %v2943_v55, 4  ;;  %v4685_v41 = vld [vmem:[%s5634_s17 + $0x10] sm:$0xf] }
 0x172   : > { %v6056_v28 = vpop.f32.mrf.mxu2  ;;  %4612 = vmatmul.msk.bf16.gmra.mxu1 %vm511_vm3, %v4605_v34  ;;  %v3067_v11 = vsel %vm4977_vm4, %v4578_v27, %v3066_v47  ;;  %v3640_v47 = vshll.u32 %v4685_v41, 16 }
 0x173   : > { %v2213_v3 = vadd.f32 %v5973_v21, %v2019_v62  ;;  %v6068_v61 = vadd.f32 %v5949_v13, %v2212_v31  ;;  %v3358_v21 = vunpack.c.l.b16 %v3348_v4  ;;  %v2930_v13 = vrot.slane %v2929_v52, 4 }
 0x174   : > { %v3080_v46 = vunpack.c.l.b16 %v3067_v11  ;;  %v3844_v31 = vrot.slane %v4688_v56, 5 }
 0x175   : > { %v2007_v0 = vpop.f32.mrf.mxu0  ;;  %v6071_v50 = vadd.f32 %v5987_v1, %v2213_v3  ;;  %v2948_v1 = vrot.slane %v2946_v30, 5  ;;  %v2935_v9 = vsel %vm5008_vm7, %v2930_v13, %v2934_v48  ;;  %v3637_v3 = vshrl.u32 %v4685_v41, 16 }
 0x176   : > { %v1921_v34 = vpop.f32.mrf.mxu3  ;;  %v2958_v27 = vunpack.c.l.b16 %v2935_v9  ;;  %v3085_v42 = vpack.c.b16 %v3081_v32, %v3080_v46  ;;  %v3642_v13 = vrot.slane %v3640_v47, 5  ;;  %v3654_v48 = vshll.u32 %v4687_v26, 16  ;;  %v4708_v47 = vld [vmem:[%s5634_s17 + $0x20] sm:$0xe] }
 0x177   : > { %v6073_v18 = vpop.f32.mrf.mxu1  ;;  %v1937_v23 = vadd.f32 %v1921_v34, %v5849_v20  ;;  %v3362_v20 = vpack.c.b16 %v3358_v21, %v3357_v29  ;;  %v2949_v54 = vsel %vm5008_vm7, %v2944_v60, %v2948_v1  ;;  %v3639_v34 = vrot.slane %v3637_v3, 4 }
 0x178   : > { %4583 = vmatmul.msk.bf16.gmra.mxu0 %vm511_vm3, %v3084_v35  ;;  %v3840_v35 = vrot.slane %v4686_v39, 5  ;;  %v2959_v55 = vunpack.c.l.b16 %v2949_v54  ;;  %v3651_v29 = vshrl.u32 %v4687_v26, 16  ;;  %v3656_v36 = vrot.slane %v3654_v48, 5  ;;  %v4689_v48 = vld [vmem:[%s5634_s17 + $0x20] sm:$0xf] }
 0x179   : > { %v2020_v44 = vadd.f32 %v2004_v2, %v1937_v23  ;;  %v4707_v2 = vld [vmem:[%s5634_s17 + $0x18] sm:$0xe]  ;;  %v3643_v11 = vor.u32 %v3642_v13, %v3639_v34  ;;  %v3445_v41 = vrot.slane %v5769_v40, 5  ;;  %v4709_v34 = vld [vmem:[%s5634_s17 + $0x28] sm:$0xe] }
 0x17a   : > { %v6077_v6 = vpop.f32.mrf.mxu2  ;;  %v3653_v1 = vrot.slane %v3651_v29, 4  ;;  %v4761_v40 = vld [vmem:[%s5634_s17 + $0x14] sm:$0xf0] }
 0x17b   : > { %4570 = vmatmul.msk.bf16.gmra.mxu3 %vm511_vm3, %v2962_v57  ;;  %v2214_v7 = vadd.f32 %v6017_v15, %v2020_v44  ;;  %v4715_v15 = vrot.slane %v4707_v2, 9  ;;  %v3841_v57 = vsel %vm4977_vm4, %v4714_v45, %v3840_v35  ;;  %v3660_v44 = vshll.u32 %v4688_v56, 16 }
 0x17c   : > { %v3644_v39 = vrot.slane %v3643_v11, 4  ;;  %v3657_v19 = vor.u32 %v3656_v36, %v3653_v1  ;;  %v3872_v56 = vunpack.c.l.b16 %v3841_v57  ;;  %v4643_v45 = vrot.slane %v4635_v58, 9 }
 0x17d   : > { %v2009_v62 = vpop.f32.mrf.mxu0  ;;  %v6109_v60 = vadd.f32 %v6024_v5, %v2214_v7  ;;  %v3662_v2 = vrot.slane %v3660_v44, 5  ;;  %v4636_v5 = vld [vmem:[%s5634_s17 + $0x10] sm:$0xe]  ;;  %v3441_v35 = vrot.slane %v5766_v14, 5  ;;  %v4716_v57 = vrot.slane %v4708_v47, 9 }
 0x17e   : > { %v1924_v4 = vpop.f32.mrf.mxu3  ;;  %v4667_v14 = vld [vmem:[%s5634_s17 + $0x10] sm:$0xf]  ;;  %v3665_v11 = vshrl.u32 %v4689_v48, 16 }
 0x17f   : > { %4634 = vmatmul.msk.bf16.gmra.mxu2 %vm511_vm3, %v3362_v20  ;;  %v6098_v30 = vpop.f32.mrf.mxu1  ;;  %v1938_v52 = vadd.f32 %v1924_v4, %v5910_v59  ;;  %v3845_v59 = vsel %vm4977_vm4, %v4715_v15, %v3844_v31  ;;  %v4668_v44 = vor.u32 %v4761_v40, %v4667_v14 }
 0x180   : > { %v3873_v54 = vunpack.c.l.b16 %v3845_v59 }
 0x181   : > { %v2021_v21 = vadd.f32 %v2007_v0, %v1938_v52  ;;  %v3648_v0 = vrot.slane %v3646_v51, 5 }
 0x182   : > { %v6101_v23 = vpop.f32.mrf.mxu2  ;;  %4613 = vmatmul.msk.bf16.gmra.mxu1 %vm511_vm3, %v4609_v22  ;;  %v2963_v22 = vpack.c.b16 %v2959_v55, %v2958_v27  ;;  %v3880_v3 = vpack.c.b16 %v3873_v54, %v3872_v56  ;;  %v4690_v27 = vld [vmem:[%s5634_s17 + $0x24] sm:$0x1]  ;;  %v3442_v55 = vsel %vm4977_vm4, %v4643_v45, %v3441_v35 }
 0x183   : > { %v2215_v10 = vadd.f32 %v6047_v33, %v2021_v21  ;;  %v3649_v33 = vsel %vm5008_vm7, %v3644_v39, %v3648_v0  ;;  %v3848_v13 = vrot.slane %v4690_v27, 5  ;;  %v3668_v0 = vshll.u32 %v4689_v48, 16 }
 0x184   : > { %v3750_v31 = vunpack.c.l.b16 %v3649_v33  ;;  %v3674_v39 = vshll.u32 %v4690_v27, 16 }
 0x185   : > { %v2012_v20 = vpop.f32.mrf.mxu0  ;;  %v6114_v9 = vadd.f32 %v6056_v28, %v2215_v10  ;;  %v3658_v28 = vrot.slane %v3657_v19, 4  ;;  %v4717_v10 = vrot.slane %v4709_v34, 9  ;;  %v3473_v19 = vunpack.c.l.b16 %v3442_v55 }
 0x186   : > { %v1926_v46 = vpop.f32.mrf.mxu3  ;;  %v3670_v56 = vrot.slane %v3668_v0, 5  ;;  %v4694_v0 = vld [vmem:[%s5634_s17 + $0x34] sm:$0x1] }
 0x187   : > { %v6116_v32 = vpop.f32.mrf.mxu1  ;;  %v1939_v7 = vadd.f32 %v1926_v46, %v5929_v63  ;;  %v4644_v63 = vrot.slane %v4636_v5, 9  ;;  %v3663_v15 = vsel %vm5008_vm7, %v3658_v28, %v3662_v2  ;;  %v3667_v46 = vrot.slane %v3665_v11, 4 }
 0x188   : > { %4584 = vmatmul.msk.bf16.gmra.mxu0 %vm511_vm3, %v3085_v42  ;;  %v3751_v52 = vunpack.c.l.b16 %v3663_v15  ;;  %v4692_v42 = vld [vmem:[%s5634_s17 + $0x2c] sm:$0x1]  ;;  %v3676_v28 = vrot.slane %v3674_v39, 5  ;;  %v4696_v39 = vld [vmem:[%s5634_s17 + $0x3c] sm:$0x1] }
 0x189   : > { %v2022_v26 = vadd.f32 %v2009_v62, %v1939_v7  ;;  %v3446_v29 = vsel %vm4977_vm4, %v4644_v63, %v3445_v41  ;;  %v3852_v58 = vrot.slane %v4692_v42, 5  ;;  %v3849_v7 = vsel %vm4977_vm4, %v4716_v57, %v3848_v13 }
 0x18a   : > { %v6125_v4 = vpop.f32.mrf.mxu2  ;;  %v3758_v21 = vpack.c.b16 %v3751_v52, %v3750_v31  ;;  %v3474_v2 = vunpack.c.l.b16 %v3446_v29  ;;  %v3688_v45 = vshll.u32 %v4692_v42, 16  ;;  %v4638_v52 = vld [vmem:[%s5634_s17 + $0x20] sm:$0xe] }
 0x18b   : > { %4571 = vmatmul.msk.bf16.gmra.mxu3 %vm511_vm3, %v2963_v22  ;;  %v2216_v62 = vadd.f32 %v6073_v18, %v2022_v26  ;;  %v4691_v18 = vld [vmem:[%s5634_s17 + $0x28] sm:$0xf]  ;;  %v4646_v57 = vrot.slane %v4638_v52, 9 }
 0x18c   : > { %v3679_v22 = vshrl.u32 %v4691_v18, 16  ;;  %v3682_v33 = vshll.u32 %v4691_v18, 16  ;;  %v3690_v47 = vrot.slane %v3688_v45, 5  ;;  %v3481_v34 = vpack.c.b16 %v3474_v2, %v3473_v19  ;;  %v4711_v19 = vld [vmem:[%s5634_s17 + $0x38] sm:$0xe] }
 0x18d   : > { %v2014_v51 = vpop.f32.mrf.mxu0  ;;  %v6153_v35 = vadd.f32 %v6077_v6, %v2216_v62  ;;  %v3874_v6 = vunpack.c.l.b16 %v3849_v7  ;;  %v4693_v7 = vld [vmem:[%s5634_s17 + $0x30] sm:$0xf] }
 0x18e   : > { %v1929_v59 = vpop.f32.mrf.mxu3  ;;  %v3681_v41 = vrot.slane %v3679_v22, 4  ;;  %v3684_v26 = vrot.slane %v3682_v33, 5  ;;  %v3696_v45 = vshll.u32 %v4693_v7, 16 }
 0x18f   : > { %4723 = vmatmul.msk.bf16.vlgmr.msra.gmra.mxu2 %vm511_vm3, %v3880_v3  ;;  %v6143_v1 = vpop.f32.mrf.mxu1  ;;  %v1940_v36 = vadd.f32 %v1929_v59, %v5982_v16  ;;  %v3671_v16 = vor.u32 %v3670_v56, %v3667_v46  ;;  %v4637_v3 = vld [vmem:[%s5634_s17 + $0x18] sm:$0xe]  ;;  %v3453_v59 = vrot.slane %v5873_v24, 5 }
 0x190   : > { %v3685_v27 = vor.u32 %v3684_v26, %v3681_v41  ;;  %v4719_v41 = vrot.slane %v4711_v19, 9  ;;  %v3860_v26 = vrot.slane %v4696_v39, 5  ;;  %v3457_v19 = vrot.slane %v5940_v53, 5  ;;  %v4675_v53 = vld [vmem:[%s5634_s17 + $0x30] sm:$0xf] }
 0x191   : > { %v2023_v54 = vadd.f32 %v2012_v20, %v1940_v36  ;;  %v3853_v20 = vsel %vm4977_vm4, %v4717_v10, %v3852_v58  ;;  %v3672_v31 = vrot.slane %v3671_v16, 4  ;;  %v4710_v36 = vld [vmem:[%s5634_s17 + $0x30] sm:$0xe]  ;;  %v4762_v10 = vld [vmem:[%s5634_s17 + $0x24] sm:$0xf0]  ;;  %v3454_v2 = vsel %vm4977_vm4, %v4646_v57, %v3453_v59 }
 0x192   : > { %v6147_v5 = vpop.f32.mrf.mxu2  ;;  %4702 = vmatmul.msk.bf16.vlgmr.msra.gmra.mxu1 %vm511_vm3, %v3758_v21  ;;  %v3875_v62 = vunpack.c.l.b16 %v3853_v20  ;;  %v3686_v29 = vrot.slane %v3685_v27, 4  ;;  %v3449_v21 = vrot.slane %v5868_v8, 5  ;;  %v4671_v8 = vld [vmem:[%s5634_s17 + $0x20] sm:$0xf]  ;;  %v4718_v56 = vrot.slane %v4710_v36, 9 }
 0x193   : > { %v2217_v63 = vadd.f32 %v6098_v30, %v2023_v54  ;;  %v3677_v42 = vsel %vm5008_vm7, %v3672_v31, %v3676_v28  ;;  %v3856_v54 = vrot.slane %v4694_v0, 5  ;;  %v4672_v16 = vor.u32 %v4762_v10, %v4671_v8 }
 0x194   : > { %v3752_v18 = vunpack.c.l.b16 %v3677_v42  ;;  %v3881_v11 = vpack.c.b16 %v3875_v62, %v3874_v6  ;;  %v3693_v28 = vshrl.u32 %v4693_v7, 16  ;;  %v3698_v27 = vrot.slane %v3696_v45, 5  ;;  %v4763_v45 = vld [vmem:[%s5634_s17 + $0x34] sm:$0xf0] }
 0x195   : > { %v2590_v15 = vpop.f32.mrf.mxu0  ;;  %v6161_v14 = vadd.f32 %v6101_v23, %v2217_v63  ;;  %v4645_v23 = vrot.slane %v4637_v3, 9  ;;  %v3702_v63 = vshll.u32 %v4694_v0, 16  ;;  %v3476_v3 = vunpack.c.l.b16 %v3454_v2 }
 0x196   : > { %v1931_v40 = vpop.f32.mrf.mxu3  ;;  %v3695_v52 = vrot.slane %v3693_v28, 4  ;;  %v3857_v6 = vsel %vm4977_vm4, %v4718_v56, %v3856_v54  ;;  %v3461_v54 = vrot.slane %v5946_v38, 5  ;;  %v4712_v28 = vld [vmem:[%s5634_s17 + $0x40] sm:$0xe] }
 0x197   : > { %v6163_v55 = vpop.f32.mrf.mxu1  ;;  %v1941_v30 = vadd.f32 %v1931_v40, %v5997_v37  ;;  %v3691_v37 = vsel %vm5008_vm7, %v3686_v29, %v3690_v47  ;;  %v3450_v24 = vsel %vm4977_vm4, %v4645_v23, %v3449_v21 }
 0x198   : > { %4681 = vmatmul.msk.bf16.vlgmr.msra.gmra.mxu0 %vm511_vm3, %v4668_v44  ;;  %v3753_v44 = vunpack.c.l.b16 %v3691_v37  ;;  %v3475_v31 = vunpack.c.l.b16 %v3450_v24  ;;  %v4639_v37 = vld [vmem:[%s5634_s17 + $0x28] sm:$0xe] }
 0x199   : > { %v2024_v13 = vadd.f32 %v2014_v51, %v1941_v30  ;;  %v3704_v30 = vrot.slane %v3702_v63, 5 }
 0x19a   : > { %v6170_v48 = vpop.f32.mrf.mxu2  ;;  %v3759_v46 = vpack.c.b16 %v3753_v44, %v3752_v18  ;;  %v4640_v18 = vld [vmem:[%s5634_s17 + $0x30] sm:$0xe]  ;;  %v3482_v24 = vpack.c.b16 %v3476_v3, %v3475_v31  ;;  %v4720_v3 = vrot.slane %v4712_v28, 9 }
 0x19b   : > { %4652 = vmatmul.msk.bf16.vlgmr.msra.gmra.mxu3 %vm511_vm3, %v3481_v34  ;;  %v2218_v51 = vadd.f32 %v6116_v32, %v2024_v13  ;;  %v4695_v32 = vld [vmem:[%s5634_s17 + $0x38] sm:$0xf]  ;;  %v3716_v34 = vshll.u32 %v4696_v39, 16  ;;  %v4648_v2 = vrot.slane %v4640_v18, 9 }
 0x19c   : > { %v3707_v62 = vshrl.u32 %v4695_v32, 16  ;;  %v3710_v42 = vshll.u32 %v4695_v32, 16  ;;  %v4698_v32 = vld [vmem:[%s5634_s17 + $0x44] sm:$0x1] }
 0x19d   : > { %v2592_v58 = vpop.f32.mrf.mxu0  ;;  %v6199_v29 = vadd.f32 %v6125_v4, %v2218_v51  ;;  %v3718_v44 = vrot.slane %v3716_v34, 5  ;;  %v3876_v4 = vunpack.c.l.b16 %v3857_v6  ;;  %v3462_v63 = vsel %vm4977_vm4, %v4648_v2, %v3461_v54 }
 0x19e   : > { %v2396_v22 = vpop.f32.mrf.mxu3  ;;  %v3709_v23 = vrot.slane %v3707_v62, 4  ;;  %v3712_v21 = vrot.slane %v3710_v42, 5  ;;  %v4676_v62 = vor.u32 %v4763_v45, %v4675_v53 }
 0x19f   : > { %4724 = vmatmul.msk.bf16.gmra.mxu2 %vm511_vm3, %v3881_v11  ;;  %v6189_v33 = vpop.f32.mrf.mxu1  ;;  %v2416_v20 = vadd.f32 %v2396_v22, %v6015_v43  ;;  %v3699_v43 = vor.u32 %v3698_v27, %v3695_v52  ;;  %v3864_v52 = vrot.slane %v4698_v32, 5  ;;  %v4697_v27 = vld [vmem:[%s5634_s17 + $0x40] sm:$0xf] }
 0x1a0   : > { %v3713_v11 = vor.u32 %v3712_v21, %v3709_v23  ;;  %v3721_v42 = vshrl.u32 %v4697_v27, 16  ;;  %v3730_v23 = vshll.u32 %v4698_v32, 16 }
 0x1a1   : > { %v2610_v47 = vadd.f32 %v2590_v15, %v2416_v20  ;;  %v3861_v15 = vsel %vm4977_vm4, %v4719_v41, %v3860_v26  ;;  %v3700_v59 = vrot.slane %v3699_v43, 4  ;;  %v4700_v41 = vld [vmem:[%s5634_s17 + $0x4c] sm:$0x1]  ;;  %v4713_v26 = vld [vmem:[%s5634_s17 + $0x48] sm:$0xe]  ;;  %v3724_v43 = vshll.u32 %v4697_v27, 16 }
 0x1a2   : > { %v6193_v40 = vpop.f32.mrf.mxu2  ;;  %4703 = vmatmul.msk.bf16.gmra.mxu1 %vm511_vm3, %v3759_v46  ;;  %v3877_v10 = vunpack.c.l.b16 %v3861_v15  ;;  %v3714_v39 = vrot.slane %v3713_v11, 4  ;;  %v4721_v34 = vrot.slane %v4713_v26, 9  ;;  %v3868_v15 = vrot.slane %v4700_v41, 5 }
 0x1a3   : > { %v2732_v57 = vadd.f32 %v6143_v1, %v2610_v47  ;;  %v3705_v51 = vsel %vm5008_vm7, %v3700_v59, %v3704_v30  ;;  %v3723_v59 = vrot.slane %v3721_v42, 4  ;;  %v3465_v27 = vrot.slane %v6027_v17, 5  ;;  %v4679_v17 = vld [vmem:[%s5634_s17 + $0x40] sm:$0xf] }
 0x1a4   : > { %v3754_v7 = vunpack.c.l.b16 %v3705_v51  ;;  %v3882_v22 = vpack.c.b16 %v3877_v10, %v3876_v4  ;;  %v3732_v51 = vrot.slane %v3730_v23, 5 }
 0x1a5   : > { %v2595_v13 = vpop.f32.mrf.mxu0  ;;  %v6207_v0 = vadd.f32 %v6147_v5, %v2732_v57  ;;  %v4647_v5 = vrot.slane %v4639_v37, 9  ;;  %v3478_v57 = vunpack.c.l.b16 %v3462_v63  ;;  %v3726_v37 = vrot.slane %v3724_v43, 5 }
 0x1a6   : > { %v2398_v36 = vpop.f32.mrf.mxu3 }
 0x1a7   : > { %v6209_v8 = vpop.f32.mrf.mxu1  ;;  %v2417_v1 = vadd.f32 %v2398_v36, %v6068_v61  ;;  %v3719_v61 = vsel %vm5008_vm7, %v3714_v39, %v3718_v44  ;;  %v3458_v38 = vsel %vm4977_vm4, %v4647_v5, %v3457_v19  ;;  %v3865_v44 = vsel %vm4977_vm4, %v4720_v3, %v3864_v52 }
 0x1a8   : > { %4682 = vmatmul.msk.bf16.gmra.mxu0 %vm511_vm3, %v4672_v16  ;;  %v3755_v16 = vunpack.c.l.b16 %v3719_v61  ;;  %v3477_v21 = vunpack.c.l.b16 %v3458_v38  ;;  %v3727_v10 = vor.u32 %v3726_v37, %v3723_v59  ;;  %v4641_v38 = vld [vmem:[%s5634_s17 + $0x38] sm:$0xe] }
 0x1a9   : > { %v2611_v46 = vadd.f32 %v2592_v58, %v2417_v1  ;;  %v3744_v1 = vshll.u32 %v4700_v41, 16  ;;  %v4642_v41 = vld [vmem:[%s5634_s17 + $0x40] sm:$0xe]  ;;  %v4649_v52 = vrot.slane %v4641_v38, 9 }
 0x1aa   : > { %v6216_v56 = vpop.f32.mrf.mxu2  ;;  %v3760_v31 = vpack.c.b16 %v3755_v16, %v3754_v7  ;;  %v3728_v2 = vrot.slane %v3727_v10, 4  ;;  %v3483_v53 = vpack.c.b16 %v3478_v57, %v3477_v21 }
 0x1ab   : > { %4653 = vmatmul.msk.bf16.gmra.mxu3 %vm511_vm3, %v3482_v24  ;;  %v2733_v58 = vadd.f32 %v6163_v55, %v2611_v46  ;;  %v4699_v55 = vld [vmem:[%s5634_s17 + $0x48] sm:$0xf]  ;;  %v3869_v24 = vsel %vm4977_vm4, %v4721_v34, %v3868_v15  ;;  %v3746_v54 = vrot.slane %v3744_v1, 5 }
 0x1ac   : > { %v3735_v36 = vshrl.u32 %v4699_v55, 16  ;;  %v3738_v4 = vshll.u32 %v4699_v55, 16  ;;  %v3879_v16 = vunpack.c.l.b16 %v3869_v24  ;;  %v3733_v32 = vsel %vm5008_vm7, %v3728_v2, %v3732_v51  ;;  %v4764_v34 = vld [vmem:[%s5634_s17 + $0x44] sm:$0xf0]  ;;  %s4184_s17 = sshll.u32 %s361_s16, 1 }
 0x1ad   : > { %v2597_v20 = vpop.f32.mrf.mxu0  ;;  %v3756_v26 = vunpack.c.l.b16 %v3733_v32  ;;  %v4680_v21 = vor.u32 %v4764_v34, %v4679_v17  ;;  %s363_s28 = scalar_lea.vmem %s6376_s5, %s4184_s17 }
 0x1ae   : > { %v2401_v47 = vpop.f32.mrf.mxu3  ;;  %v3737_v39 = vrot.slane %v3735_v36, 4  ;;  %v3740_v5 = vrot.slane %v3738_v4, 5 }
 0x1af   : > { %4725 = vmatmul.msk.bf16.gmra.mxu2 %vm511_vm3, %v3882_v22  ;;  %v6235_v6 = vpop.f32.mrf.mxu1  ;;  %v2418_v30 = vadd.f32 %v2401_v47, %v6071_v50  ;;  %v6243_v50 = vadd.f32 %v6170_v48, %v2733_v58  ;;  %v3878_v48 = vunpack.c.l.b16 %v3865_v44  ;;  %v3469_v47 = vrot.slane %v6030_v25, 5 }
 0x1b0   : > { %v3741_v46 = vor.u32 %v3740_v5, %v3737_v39 }
 0x1b1   : > { %v2612_v18 = vadd.f32 %v2595_v13, %v2418_v30  ;;  %v3883_v63 = vpack.c.b16 %v3879_v16, %v3878_v48 }
 0x1b2   : > { %v2804_v11 = vpop.f32.mrf.mxu2  ;;  %4704 = vmatmul.msk.bf16.gmra.mxu1 %vm511_vm3, %v3760_v31 }
 0x1b3   : > { %v2734_v13 = vadd.f32 %v6189_v33, %v2612_v18  ;;  %v3742_v33 = vrot.slane %v3741_v46, 4 }
 0x1b5   : > { %v2600_v19 = vpop.f32.mrf.mxu0  ;;  %v6249_v61 = vadd.f32 %v6193_v40, %v2734_v13  ;;  %v3747_v40 = vsel %vm5008_vm7, %v3742_v33, %v3746_v54 }
 0x1b6   : > { %v2403_v7 = vpop.f32.mrf.mxu3  ;;  %v3757_v31 = vunpack.c.l.b16 %v3747_v40 }
 0x1b7   : > { %v2724_v22 = vpop.f32.mrf.mxu1  ;;  %v2419_v28 = vadd.f32 %v2403_v7, %v6109_v60 }
 0x1b8   : > { %4683 = vmatmul.msk.bf16.gmra.mxu0 %vm511_vm3, %v4676_v62  ;;  %v3761_v62 = vpack.c.b16 %v3757_v31, %v3756_v26 }
 0x1b9   : > { %v2613_v45 = vadd.f32 %v2597_v20, %v2419_v28  ;;  %v4650_v20 = vrot.slane %v4642_v41, 9 }
 0x1ba   : > { %v2806_v58 = vpop.f32.mrf.mxu2 }
 0x1bb   : > { %4654 = vmatmul.msk.bf16.gmra.mxu3 %vm511_vm3, %v3483_v53  ;;  %v2735_v60 = vadd.f32 %v6209_v8, %v2613_v45  ;;  %v3466_v8 = vsel %vm4977_vm4, %v4649_v52, %v3465_v27  ;;  %v3470_v30 = vsel %vm4977_vm4, %v4650_v20, %v3469_v47 }
 0x1bc   : > { %v3480_v23 = vunpack.c.l.b16 %v3470_v30 }
 0x1bd   : > { %v2602_v3 = vpop.f32.mrf.mxu0  ;;  %v6264_v49 = vadd.f32 %v6216_v56, %v2735_v60  ;;  %v3479_v56 = vunpack.c.l.b16 %v3466_v8 }
 0x1be   : > { %v2406_v55 = vpop.f32.mrf.mxu3 }
 0x1bf   : > { %4726 = vmatmul.msk.bf16.gmra.mxu2 %vm511_vm3, %v3883_v63  ;;  %v2727_v42 = vpop.f32.mrf.mxu1  ;;  %v2420_v43 = vadd.f32 %v2406_v55, %v6114_v9  ;;  %v3484_v36 = vpack.c.b16 %v3480_v23, %v3479_v56 }
 0x1c1   : > { %v2614_v15 = vadd.f32 %v2600_v19, %v2420_v43 }
 0x1c2   : > { %v2809_v25 = vpop.f32.mrf.mxu2  ;;  %4705 = vmatmul.msk.bf16.gmra.mxu1 %vm511_vm3, %v3761_v62 }
 0x1c3   : > { %v2736_v57 = vadd.f32 %v6235_v6, %v2614_v15 }
 0x1c5   : > { %v2605_v59 = vpop.f32.mrf.mxu0  ;;  %v2818_v37 = vadd.f32 %v2804_v11, %v2736_v57 }
 0x1c6   : > { %v2408_v9 = vpop.f32.mrf.mxu3 }
 0x1c7   : > { %v2729_v18 = vpop.f32.mrf.mxu1  ;;  %v2421_v44 = vadd.f32 %v2408_v9, %v6153_v35 }
 0x1c8   : > { %4684 = vmatmul.msk.bf16.gmra.mxu0 %vm511_vm3, %v4680_v21 }
 0x1c9   : > { %v2615_v12 = vadd.f32 %v2602_v3, %v2421_v44 }
 0x1ca   : > { %v2811_v4 = vpop.f32.mrf.mxu2 }
 0x1cb   : > { %4655 = vmatmul.msk.bf16.gmra.mxu3 %vm511_vm3, %v3484_v36  ;;  %v2737_v10 = vadd.f32 %v2724_v22, %v2615_v12 }
 0x1cd   : > { %v2607_v51 = vpop.f32.mrf.mxu0  ;;  %v6279_v1 = vadd.f32 %v2806_v58, %v2737_v10 }
 0x1ce   : > { %v2411_v24 = vpop.f32.mrf.mxu3 }
 0x1cf   : > { %v3193_v39 = vpop.f32.mrf.mxu1  ;;  %v2422_v6 = vadd.f32 %v2411_v24, %v6161_v14 }
 0x1d1   : > { %v2616_v11 = vadd.f32 %v2605_v59, %v2422_v6 }
 0x1d2   : > { %v3387_v5 = vpop.f32.mrf.mxu2 }
 0x1d3   : > { %v2738_v13 = vadd.f32 %v2727_v42, %v2616_v11 }
 0x1d5   : > { %v3110_v19 = vpop.f32.mrf.mxu0  ;;  %v6282_v35 = vadd.f32 %v2809_v25, %v2738_v13 }
 0x1d6   : > { %v2413_v2 = vpop.f32.mrf.mxu3 }
 0x1d7   : > { %v3195_v46 = vpop.f32.mrf.mxu1  ;;  %v2423_v54 = vadd.f32 %v2413_v2, %v6199_v29 }
 0x1d9   : > { %v2617_v7 = vadd.f32 %v2607_v51, %v2423_v54 }
 0x1da   : > { %v3389_v48 = vpop.f32.mrf.mxu2 }
 0x1db   : > { %v2739_v22 = vadd.f32 %v2729_v18, %v2617_v7 }
 0x1dd   : > { %v3112_v16 = vpop.f32.mrf.mxu0  ;;  %v6285_v32 = vadd.f32 %v2811_v4, %v2739_v22 }
 0x1de   : > { %v2988_v28 = vpop.f32.mrf.mxu3 }
 0x1df   : > { %v3198_v53 = vpop.f32.mrf.mxu1  ;;  %v3008_v14 = vadd.f32 %v2988_v28, %v6207_v0 }
 0x1e1   : > { %v3130_v33 = vadd.f32 %v3110_v19, %v3008_v14 }
 0x1e2   : > { %v3392_v45 = vpop.f32.mrf.mxu2 }
 0x1e3   : > { %v3213_v58 = vadd.f32 %v3193_v39, %v3130_v33 }
 0x1e5   : > { %v3115_v38 = vpop.f32.mrf.mxu0  ;;  %v3407_v41 = vadd.f32 %v3387_v5, %v3213_v58 }
 0x1e6   : > { %v2990_v40 = vpop.f32.mrf.mxu3 }
 0x1e7   : > { %v6288_v26 = vpop.f32.mrf.mxu1  ;;  %v3009_v12 = vadd.f32 %v2990_v40, %v6243_v50 }
 0x1e9   : > { %v3131_v10 = vadd.f32 %v3112_v16, %v3009_v12 }
 0x1ea   : > { %v6290_v63 = vpop.f32.mrf.mxu2 }
 0x1eb   : > { %v3214_v11 = vadd.f32 %v3195_v46, %v3131_v10 }
 0x1ed   : > { %v3117_v29 = vpop.f32.mrf.mxu0  ;;  %v3408_v13 = vadd.f32 %v3389_v48, %v3214_v11 }
 0x1ee   : > { %v2993_v31 = vpop.f32.mrf.mxu3 }
 0x1ef   : > { %v3203_v60 = vpop.f32.mrf.mxu1  ;;  %v3010_v3 = vadd.f32 %v2993_v31, %v6249_v61 }
 0x1f1   : > { %v3132_v52 = vadd.f32 %v3115_v38, %v3010_v3 }
 0x1f2   : > { %v3397_v27 = vpop.f32.mrf.mxu2 }
 0x1f3   : > { %v3215_v20 = vadd.f32 %v3198_v53, %v3132_v52 }
 0x1f5   : > { %v3120_v47 = vpop.f32.mrf.mxu0  ;;  %v3409_v0 = vadd.f32 %v3392_v45, %v3215_v20 }
 0x1f6   : > { %v2995_v62 = vpop.f32.mrf.mxu3 }
 0x1f7   : > { %v6293_v55 = vpop.f32.mrf.mxu1  ;;  %v3011_v22 = vadd.f32 %v2995_v62, %v6264_v49 }
 0x1f9   : > { %v3133_v33 = vadd.f32 %v3117_v29, %v3011_v22 }
 0x1fa   : > { %v6295_v42 = vpop.f32.mrf.mxu2 }
 0x1fb   : > { %v3216_v3 = vadd.f32 %v6288_v26, %v3133_v33 }
 0x1fd   : > { %v6297_v43 = vpop.f32.mrf.mxu0 }
 0x1fe   : > { %v2998_v8 = vpop.f32.mrf.mxu3 }
 0x1ff   : > { %v3012_v30 = vadd.f32 %v2998_v8, %v2818_v37  ;;  %v6299_v17 = vpop.f32.mrf.mxu1 }
 0x201   : > { %v3134_v34 = vadd.f32 %v3120_v47, %v3012_v30  ;;  %v3410_v47 = vadd.f32 %v6290_v63, %v3216_v3 }
 0x202   : > { %v6301_v15 = vpop.f32.mrf.mxu2 }
 0x203   : > { %v3217_v61 = vadd.f32 %v3203_v60, %v3134_v34 }
 0x205   : > { %v6303_v25 = vpop.f32.mrf.mxu0  ;;  %v6305_v56 = vadd.f32 %v3397_v27, %v3217_v61 }
 0x206   : > { %v3000_v23 = vpop.f32.mrf.mxu3 }
 0x207   : > { %v6307_v21 = vpop.f32.mrf.mxu1  ;;  %v3013_v61 = vadd.f32 %v3000_v23, %v6279_v1 }
 0x209   : > { %v3135_v26 = vadd.f32 %v6297_v43, %v3013_v61 }
 0x20a   : > { %v6311_v59 = vpop.f32.mrf.mxu2 }
 0x20d   : > { %v6309_v57 = vpop.f32.mrf.mxu0 }
 0x20e   : > { %v6313_v37 = vpop.f32.mrf.mxu3 }
 0x20f   : > { %v3786_v18 = vpop.f32.mrf.mxu1  ;;  %v3014_v11 = vadd.f32 %v6313_v37, %v6282_v35 }
 0x211   : > { %v3136_v43 = vadd.f32 %v6303_v25, %v3014_v11 }
 0x212   : > { %v3908_v36 = vpop.f32.mrf.mxu2 }
 0x215   : > { %v3592_v9 = vpop.f32.mrf.mxu0 }
 0x216   : > { %v6315_v44 = vpop.f32.mrf.mxu3 }
 0x217   : > { %v3788_v24 = vpop.f32.mrf.mxu1  ;;  %v3015_v35 = vadd.f32 %v6315_v44, %v6285_v32 }
 0x219   : > { %v3137_v25 = vadd.f32 %v6309_v57, %v3015_v35 }
 0x21a   : > { %v3910_v6 = vpop.f32.mrf.mxu2 }
 0x21b   : > { %v3220_v44 = vadd.f32 %v6307_v21, %v3137_v25 }
 0x21d   : > { %v3594_v4 = vpop.f32.mrf.mxu0  ;;  %v3414_v57 = vadd.f32 %v6311_v59, %v3220_v44 }
 0x21e   : > { %v3509_v51 = vpop.f32.mrf.mxu3 }
 0x21f   : > { %v3529_v39 = vadd.f32 %v3509_v51, %v3407_v41  ;;  %v3791_v50 = vpop.f32.mrf.mxu1 }
 0x221   : > { %v3612_v5 = vadd.f32 %v3592_v9, %v3529_v39 }
 0x222   : > { %v3913_v53 = vpop.f32.mrf.mxu2 }
 0x223   : > { %v3806_v19 = vadd.f32 %v3786_v18, %v3612_v5  ;;  %v3218_v5 = vadd.f32 %v6293_v55, %v3135_v26  ;;  %v3219_v55 = vadd.f32 %v6299_v17, %v3136_v43 }
 0x225   : > { %v3597_v54 = vpop.f32.mrf.mxu0  ;;  %v3928_v28 = vadd.f32 %v3908_v36, %v3806_v19 }
 0x226   : > { %v3511_v2 = vpop.f32.mrf.mxu3 }
 0x227   : > { %v3530_v7 = vadd.f32 %v3511_v2, %v3408_v13  ;;  %v3950_v46 = vmul.f32 %v3928_v28, %v3928_v28  ;;  %v3793_v29 = vpop.f32.mrf.mxu1 }
 0x229   : > { %v3613_v16 = vadd.f32 %v3594_v4, %v3530_v7 }
 0x22a   : > { %v3915_v27 = vpop.f32.mrf.mxu2 }
 0x22b   : > { %v3807_v14 = vadd.f32 %v3788_v24, %v3613_v16 }
 0x22d   : > { %v3929_v45 = vadd.f32 %v3910_v6, %v3807_v14  ;;  %v3599_v49 = vpop.f32.mrf.mxu0 }
 0x22e   : > { %v3514_v48 = vpop.f32.mrf.mxu3 }
 0x22f   : > { %v3936_v58 = vadd.f32 %v3929_v45, %v3928_v28  ;;  %v3951_v38 = vmul.f32 %v3929_v45, %v3929_v45  ;;  %v4768_v41 = vpack.c.bf16 %v3929_v45, %v3928_v28  ;;  %v3531_v40 = vadd.f32 %v3514_v48, %v3409_v0  ;;  %v3796_v12 = vpop.f32.mrf.mxu1 }
 0x231   : > { %v3958_v31 = vadd.f32 %v3951_v38, %v3950_v46  ;;  %4769 = vst [vmem:[%s6328_s14] sm:$0xff] %v4768_v41   ;;  %v3614_v60 = vadd.f32 %v3597_v54, %v3531_v40  ;;  %v3412_v54 = vadd.f32 %v6295_v42, %v3218_v5  ;;  %v3413_v42 = vadd.f32 %v6301_v15, %v3219_v55 }
 0x232   : > { %v3918_v10 = vpop.f32.mrf.mxu2 }
 0x233   : > { %v3808_v52 = vadd.f32 %v3791_v50, %v3614_v60 }
 0x235   : > { %v3930_v20 = vadd.f32 %v3913_v53, %v3808_v52  ;;  %v3602_v18 = vpop.f32.mrf.mxu0 }
 0x236   : > { %v3516_v62 = vpop.f32.mrf.mxu3 }
 0x237   : > { %v3937_v8 = vadd.f32 %v3936_v58, %v3930_v20  ;;  %v3952_v30 = vmul.f32 %v3930_v20, %v3930_v20  ;;  %v3532_v34 = vadd.f32 %v3516_v62, %v3410_v47  ;;  %v3798_v7 = vpop.f32.mrf.mxu1 }
 0x239   : > { %v3959_v0 = vadd.f32 %v3958_v31, %v3952_v30  ;;  %v3615_v9 = vadd.f32 %v3599_v49, %v3532_v34 }
 0x23a   : > { %v3920_v28 = vpop.f32.mrf.mxu2 }
 0x23b   : > { %v3809_v36 = vadd.f32 %v3793_v29, %v3615_v9 }
 0x23d   : > { %v3931_v4 = vadd.f32 %v3915_v27, %v3809_v36  ;;  %v3604_v19 = vpop.f32.mrf.mxu0 }
 0x23e   : > { %v3519_v51 = vpop.f32.mrf.mxu3 }
 0x23f   : > { %v3938_v24 = vadd.f32 %v3937_v8, %v3931_v4  ;;  %v3953_v39 = vmul.f32 %v3931_v4, %v3931_v4  ;;  %v4773_v63 = vpack.c.bf16 %v3931_v4, %v3930_v20  ;;  %v3533_v6 = vadd.f32 %v3519_v51, %v6305_v56  ;;  %v3801_v40 = vpop.f32.mrf.mxu1 }
 0x241   : > { %v3960_v1 = vadd.f32 %v3959_v0, %v3953_v39  ;;  %4785 = vst [vmem:[%s6328_s14 + $0x8] sm:$0xff] %v4773_v63   ;;  %v3616_v23 = vadd.f32 %v3602_v18, %v3533_v6 }
 0x242   : > { %v3923_v31 = vpop.f32.mrf.mxu2 }
 0x243   : > { %v3810_v13 = vadd.f32 %v3796_v12, %v3616_v23 }
 0x245   : > { %v3932_v2 = vadd.f32 %v3918_v10, %v3810_v13  ;;  %v3607_v45 = vpop.f32.mrf.mxu0 }
 0x246   : > { %v3521_v50 = vpop.f32.mrf.mxu3 }
 0x247   : > { %v3939_v22 = vadd.f32 %v3938_v24, %v3932_v2  ;;  %v3954_v16 = vmul.f32 %v3932_v2, %v3932_v2  ;;  %v3534_v56 = vadd.f32 %v3521_v50, %v3412_v54  ;;  %v3803_v62 = vpop.f32.mrf.mxu1 }
 0x249   : > { %v3961_v37 = vadd.f32 %v3960_v1, %v3954_v16  ;;  %v3617_v53 = vadd.f32 %v3604_v19, %v3534_v56 }
 0x24a   : > { %v3925_v30 = vpop.f32.mrf.mxu2 }
 0x24b   : > { %v3811_v14 = vadd.f32 %v3798_v7, %v3617_v53 }
 0x24d   : > { %v3933_v33 = vadd.f32 %v3920_v28, %v3811_v14  ;;  %v3609_v27 = vpop.f32.mrf.mxu0 }
 0x24e   : > { %v3524_v46 = vpop.f32.mrf.mxu3 }
 0x24f   : > { %v3940_v48 = vadd.f32 %v3939_v22, %v3933_v33  ;;  %v3955_v58 = vmul.f32 %v3933_v33, %v3933_v33  ;;  %v4778_v38 = vpack.c.bf16 %v3933_v33, %v3932_v2  ;;  %v3535_v41 = vadd.f32 %v3524_v46, %v3413_v42 }
 0x251   : > { %v3962_v49 = vadd.f32 %v3961_v37, %v3955_v58  ;;  %4786 = vst [vmem:[%s6328_s14 + $0x10] sm:$0xff] %v4778_v38   ;;  %v3618_v32 = vadd.f32 %v3607_v45, %v3535_v41 }
 0x253   : > { %v3812_v17 = vadd.f32 %v3801_v40, %v3618_v32 }
 0x255   : > { %v3934_v60 = vadd.f32 %v3923_v31, %v3812_v17 }
 0x256   : > { %v3526_v3 = vpop.f32.mrf.mxu3 }
 0x257   : > { %v3941_v15 = vadd.f32 %v3940_v48, %v3934_v60  ;;  %v3956_v29 = vmul.f32 %v3934_v60, %v3934_v60  ;;  %v3536_v52 = vadd.f32 %v3526_v3, %v3414_v57 }
 0x259   : > { %v3963_v20 = vadd.f32 %v3962_v49, %v3956_v29  ;;  %v3619_v47 = vadd.f32 %v3609_v27, %v3536_v52 }
 0x25b   : > { %v3813_v8 = vadd.f32 %v3803_v62, %v3619_v47 }
 0x25d   : > { %v3935_v34 = vadd.f32 %v3925_v30, %v3813_v8 }
 0x25f   : > { %v3942_v21 = vadd.f32 %v3941_v15, %v3935_v34  ;;  %v3957_v61 = vmul.f32 %v3935_v34, %v3935_v34  ;;  %v4783_v0 = vpack.c.bf16 %v3935_v34, %v3934_v60 }
 0x261   : > { %v3943_v9 = vrot.slane %v3942_v21, 4  ;;  %v3964_v18 = vadd.f32 %v3963_v20, %v3957_v61  ;;  %4787 = vst [vmem:[%s6328_s14 + $0x18] sm:$0xff] %v4783_v0  }
 0x263   : > { %v3944_v59 = vadd.f32 %v3943_v9, %v3942_v21  ;;  %v3965_v36 = vrot.slane %v3964_v18, 4 }
 0x265   : > { %v3945_v12 = vrot.slane %v3944_v59, 2  ;;  %v3966_v26 = vadd.f32 %v3965_v36, %v3964_v18 }
 0x267   : > { %v3946_v4 = vadd.f32 %v3945_v12, %v3944_v59  ;;  %v3967_v10 = vrot.slane %v3966_v26, 2 }
 0x269   : > { %v3947_v51 = vrot.slane %v3946_v4, 1  ;;  %v3968_v24 = vadd.f32 %v3967_v10, %v3966_v26 }
 0x26b   : > { %v3948_v39 = vadd.f32 %v3947_v51, %v3946_v4  ;;  %v3969_v63 = vrot.slane %v3968_v24, 1 }
 0x26d   : > { %3949 = vst [vmem:[%s363_s28] sm:$0x1] %v3948_v39  ;;  %v3970_v6 = vadd.f32 %v3969_v63, %v3968_v24 }
 0x26f   : > { %3971 = vst [vmem:[%s363_s28 + $0x1] sm:$0x1] %v3970_v6 }
 0x270 PF: > { %s16_s22 = sadd.s32 1, %s4873_s22   ;;  %s6382_s18 = smov %s4865_s20 }
 0x271   : > { %p13_p10 = scmp.ge.s32.totalorder %s16_s22, 18   ;;  %s6383_s19 = smov %s4869_s21 }
 0x272   : > { %s6384_s20 = smov %s6387_s23  ;;  %s6385_s21 = smov %s6391_s24 }
 0x273   :  { %15 = sbr.rel (!%p13_p10) target bundleno = 3 (0x3), region = 116 }

// kernel: conv_block_3d.4
= control target key start
LH: loop header
LB: loop body
LE: loop exit
PB: predicated region body
PF: predicated region fallthrough
CT: control target
= control target key end

     0   :  { %s8154_s24 = smov 0   ;;  %s8156_s25 = smov 0   ;;  %s10577_s0 = inlined_call_operand.vmem [shape: bf16[2,10,10,10,128], index: 0, kind: input, shape index: {}, may-alias: {0,1,2}]   ;;  %s10578_s1 = inlined_call_operand.vmem [shape: bf16[2,10,10,10,128], index: 1, kind: input, shape index: {}, may-alias: {0,1,2}]   ;;  %s10579_s2 = inlined_call_operand.vmem [shape: bf16[2,10,10,10,128], index: 2, kind: input, shape index: {}, may-alias: {0,1,2}]   ;;  %s10580_s3 = inlined_call_operand.vmem [shape: f32[1,128], index: 3, kind: input, shape index: {}]   ;;  %s10581_s4 = inlined_call_operand.vmem [shape: f32[1,128], index: 4, kind: input, shape index: {}]   ;;  %s10582_s5 = inlined_call_operand.vmem [shape: bf16[27,128,128], index: 5, kind: input, shape index: {}]   ;;  %s10583_s6 = inlined_call_operand.vmem [shape: bf16[2,8,8,8,128], index: 6, kind: output, shape index: {0}]   ;;  %s10584_s7 = inlined_call_operand.vmem [shape: f32[2,8,2,128], index: 7, kind: output, shape index: {1}]  }
   0x1   :  { %s8158_s26 = smov 0   ;;  %s8160_s27 = smov 0  }
   0x2   :  { %s8162_s28 = smov 0  }
   0x3 LB: > { %s27_s29 = sadd.s32 1, %s8103_s26  ;;  %s30_s30 = sadd.s32 1, %s8107_s27  ;;  %s8111_s28 = sphi %s8162_s28, %s18_s28   ;;  %s8107_s27 = sphi %s8160_s27, %s10593_s27   ;;  %s8103_s26 = sphi %s8158_s26, %s10592_s26   ;;  %s8099_s25 = sphi %s8156_s25, %s10591_s25   ;;  %s8095_s24 = sphi %s8154_s24, %s10590_s24  }
   0x4   : > { %p28_p0 = scmp.ge.s32.totalorder %s27_s29, 8  ;;  %p6202_p1 = scmp.ge.s32.totalorder %s8111_s28, 1 }
   0x5   : > { %p302_p2 = scmp.lt.s32.totalorder %s8111_s28, 17 }
   0x6   : > { %s10595_s29 = smov (%p28_p0, %s27_s29), 0  ;;  %s10597_s30 = smov (!%p28_p0, %s30_s30), %s8107_s27 }
   0x7   : > { %p303_p3 = pnand %p6202_p1, %p302_p2  ;;  %p32_p4 = scmp.ge.s32.totalorder %s10597_s30, 2 }
   0x8   : > { %p370_p5 = scmp.lt.s32.totalorder (!%p303_p3), %s8099_s25, 1  ;;  %p372_p6 = scmp.lt.s32.totalorder (!%p303_p3), %s8095_s24, 9 }
   0x9   : > { %s10599_s30 = smov (%p32_p4, %s10597_s30), 0  ;;  %306 = sbr.rel (%p303_p3) target bundleno = 660 (0x294), region = 44 }
   0xa   : > { %s379_s14 = sadd.s32 (!%p303_p3), 1, %s8095_s24  ;;  %p569_p8 = scmp.ge.s32.totalorder (!%p303_p3), %s8095_s24, 1 }
   0xb   : > { %p382_p7 = scmp.lt.s32.totalorder (!%p303_p3), %s379_s14, 9  ;;  %s390_s16 = sadd.s32 (!%p303_p3), 2, %s8095_s24 }
   0xc   : > { %p8258_p9 = scmp.lt.s32.totalorder (!%p303_p3), %s390_s16, 9  ;;  %p4236_p10 = scmp.le.s32.totalorder (!%p303_p3), %s8095_s24, 6 }
   0xd   : > { %p403_p11 = scmp.lt.s32.totalorder (!%p303_p3), %s8095_s24, 7 }
   0xe   : > { %v7722_v0 = vld [vmem:[%s10582_s5 + $0x38] sm:$0xff]  ;;  %v418_v2 = vlaneseq  ;;  %v7721_v4 = vld [vmem:[%s10582_s5 + $0x30] sm:$0xff]  ;;  %s10601_s25 = smov (!%p370_p5, %s8099_s25), 1  ;;  %v7720_v8 = vld [vmem:[%s10582_s5 + $0x28] sm:$0xff]  ;;  %s10603_s14 = smov (!%p382_p7, %s379_s14), 9  ;;  %v8113_v37 = vmov 0.0  }
   0xf   : > { %v7738_v1 = vld [vmem:[%s10582_s5 + $0xb8] sm:$0xff]  ;;  %962 = vmatpush.bf16.msra.mxu1 %v7722_v0  ;;  %v7737_v5 = vld [vmem:[%s10582_s5 + $0xb0] sm:$0xff]  ;;  %s373_s21 = scalar_select %p372_p6, %s8095_s24, 9  ;;  %v7736_v9 = vld [vmem:[%s10582_s5 + $0xa8] sm:$0xff]  ;;  %vm1015_vm2 = vcmask 1042432   ;;  %vm1016_vm3 = vcmask 1046532  }
  0x10   : > { %v7730_v3 = vld [vmem:[%s10582_s5 + $0x78] sm:$0xff]  ;;  %1131 = vmatpush.bf16.msra.mxu2 %v7738_v1  ;;  %v7729_v6 = vld [vmem:[%s10582_s5 + $0x70] sm:$0xff]  ;;  %s8210_s22 = smul.u32 200, %s10601_s25  ;;  %v419_v7 = vshrl.u32 %v418_v2, 7  ;;  %v7728_v10 = vld [vmem:[%s10582_s5 + $0x68] sm:$0xff]  ;;  %s10605_s16 = smov (!%p8258_p9, %s390_s16), 9 }
  0x11   : > { %861 = vmatpush.bf16.msra.mxu0 %v7730_v3  ;;  %7986 = vmatpush.bf16.msra.mxu3 %v7730_v3  ;;  %s8010_s23 = smul.u32 20, %s373_s21  ;;  %v7719_v11 = vld [vmem:[%s10582_s5 + $0x20] sm:$0xff]  ;;  %v7718_v23 = vld [vmem:[%s10582_s5 + $0x18] sm:$0xff]  ;;  %v7717_v53 = vld [vmem:[%s10582_s5 + $0x10] sm:$0xff]  ;;  %vm665_vm4 = vsmask.f32 3328 }
  0x12   : > { %v7735_v12 = vld [vmem:[%s10582_s5 + $0xa0] sm:$0xff]  ;;  %s8012_s8 = smul.u32 20, %s10603_s14  ;;  %v420_v13 = vadd.s32 8, %v419_v7  ;;  %vm421_vm0 = vcmp.ge.s32.totalorder %v419_v7, 1  ;;  %v7734_v31 = vld [vmem:[%s10582_s5 + $0x98] sm:$0xff]  ;;  %v7733_v54 = vld [vmem:[%s10582_s5 + $0x90] sm:$0xff] }
  0x13   : > { %963 = vmatpush.bf16.msra.mxu1 %v7721_v4  ;;  %s376_s15 = sadd.s32 %s8210_s22, %s8010_s23  ;;  %v7727_v14 = vld [vmem:[%s10582_s5 + $0x60] sm:$0xff]  ;;  %v7726_v36 = vld [vmem:[%s10582_s5 + $0x58] sm:$0xff]  ;;  %v8300_v38 = vsel %vm421_vm0, 1.0, %v8113_v37  ;;  %s8013_s9 = smul.u32 20, %s10605_s16  ;;  %v7725_v59 = vld [vmem:[%s10582_s5 + $0x50] sm:$0xff] }
  0x14   : > { %1132 = vmatpush.bf16.msra.mxu2 %v7737_v5  ;;  %s6203_s21 = sshll.u32 %s376_s15, 2  ;;  %v8241_v15 = vld [vmem:[%s10580_s3] ss:$0 sm:$0xff]  ;;  %s386_s14 = sadd.s32 %s8012_s8, %s8210_s22  ;;  %vm428_vm1 = vcmp.le.s32.totalorder %v420_v13, 8  ;;  %vm666_vm5 = vsmask.f32 7440  ;;  %vm8433_vm6 = vmor %vm1015_vm2, %vm1016_vm3 }
  0x15   : > { %862 = vmatpush.bf16.msra.mxu0 %v7729_v6  ;;  %7987 = vmatpush.bf16.msra.mxu3 %v7729_v6  ;;  %s8236_s12 = scalar_lea.vmem %s10577_s0, %s6203_s21  ;;  %v8249_v18 = vld [vmem:[%s10581_s4] ss:$0 sm:$0xff]  ;;  %s6204_s19 = sshll.u32 %s386_s14, 2  ;;  %v8310_v43 = vsel %vm428_vm1, 1.0, %v8113_v37  ;;  %vm8480_vm7 = vmor %vm665_vm4, %vm666_vm5 }
  0x16   : > { %v441_v16 = vld [vmem:[%s8236_s12] sm:$0xf]  ;;  %v443_v17 = vld [vmem:[%s8236_s12 + $0x8] sm:$0xf]  ;;  %v442_v22 = vld [vmem:[%s8236_s12 + $0x4] sm:$0x1]  ;;  %s8269_s13 = scalar_lea.vmem %s10578_s1, %s6204_s19  ;;  %s397_s14 = sadd.s32 %s8013_s9, %s8210_s22 }
  0x17   : > { %964 = vmatpush.bf16.msra.mxu1 %v7720_v8  ;;  %v461_v19 = vunpack.c.l.bf16 %v441_v16  ;;  %v463_v20 = vunpack.c.l.bf16 %v443_v17  ;;  %v8254_v21 = vld [vmem:[%s10580_s3] ss:$0 sm:$0xff]  ;;  %v444_v24 = vld [vmem:[%s8236_s12 + $0xc] sm:$0x1]  ;;  %v462_v25 = vunpack.c.l.bf16 %v442_v22  ;;  %s8277_s17 = scalar_select %p569_p8, 1, 0 }
  0x18   : > { %1133 = vmatpush.bf16.msra.mxu2 %v7736_v9  ;;  %v2278_v28 = vld [vmem:[%s8269_s13] sm:$0xf]  ;;  %v464_v29 = vunpack.c.l.bf16 %v444_v24  ;;  %v2279_v30 = vld [vmem:[%s8269_s13 + $0x4] sm:$0x1]  ;;  %s8324_s10 = scalar_select %p4236_p10, 1, 0 }
  0x19   : > { %863 = vmatpush.bf16.msra.mxu0 %v7728_v10  ;;  %7988 = vmatpush.bf16.msra.mxu3 %v7728_v10  ;;  %v485_v26 = vmul.f32 %v8241_v15, %v461_v19  ;;  %v487_v27 = vmul.f32 %v8241_v15, %v463_v20  ;;  %v2298_v32 = vunpack.c.l.bf16 %v2278_v28  ;;  %v8287_v33 = vld [vmem:[%s10581_s4] ss:$0 sm:$0xff]  ;;  %v486_v34 = vmul.f32 %v8241_v15, %v462_v25  ;;  %s571_s8 = scvt.s32.f32 %s8277_s17  ;;  %v8317_v47 = vld [vmem:[%s8236_s12 + $0x24] sm:$0x1]  ;;  %v451_v52 = vld [vmem:[%s8236_s12 + $0x28] sm:$0xf] }
  0x1a   : > { %v2299_v35 = vunpack.c.l.bf16 %v2279_v30  ;;  %v488_v41 = vmul.f32 %v8241_v15, %v464_v29  ;;  %v8307_v42 = vld [vmem:[%s8236_s12 + $0x20] sm:$0xf]  ;;  %s6205_s19 = sshll.u32 %s397_s14, 2  ;;  %s4238_s20 = scvt.s32.f32 %s8324_s10  ;;  %v470_v63 = vunpack.c.l.bf16 %v8317_v47  ;;  %v452_v3 = vld [vmem:[%s8236_s12 + $0x2c] sm:$0x1]  ;;  %v471_v4 = vunpack.c.l.bf16 %v451_v52 }
  0x1b   : > { %965 = vmatpush.bf16.msra.mxu1 %v7719_v11  ;;  %v509_v39 = vadd.f32 %v8249_v18, %v485_v26  ;;  %v511_v40 = vadd.f32 %v8249_v18, %v487_v27  ;;  %v2322_v44 = vmul.f32 %v8254_v21, %v2298_v32  ;;  %v510_v45 = vadd.f32 %v8249_v18, %v486_v34  ;;  %v7716_v10 = vld [vmem:[%s10582_s5 + $0x8] sm:$0xff]  ;;  %v8059_v17 = vld [vmem:[%s10580_s3] ss:$0 sm:$0xff]  ;;  %v445_v25 = vld [vmem:[%s8236_s12 + $0x10] sm:$0xf]  ;;  %s10607_s24 = smov (!%p403_p11, %s8095_s24), 7 }
  0x1c   : > { %1134 = vmatpush.bf16.msra.mxu2 %v7735_v12  ;;  %v2323_v46 = vmul.f32 %v8254_v21, %v2299_v35  ;;  %v8319_v50 = vstv %s571_s8  ;;  %v512_v51 = vadd.f32 %v8249_v18, %v488_v41  ;;  %v469_v58 = vunpack.c.l.bf16 %v8307_v42  ;;  %s8346_s8 = scalar_lea.vmem %s10579_s2, %s6205_s19  ;;  %v7732_v11 = vld [vmem:[%s10582_s5 + $0x88] sm:$0xff]  ;;  %v447_v26 = vld [vmem:[%s8236_s12 + $0x18] sm:$0xf]  ;;  %v7715_v37 = vld [vmem:[%s10582_s5] sm:$0xff]  ;;  %s6206_s10 = sshll.u32 %s10607_s24, 3 }
  0x1d   : > { %864 = vmatpush.bf16.msra.mxu0 %v7727_v14  ;;  %7989 = vmatpush.bf16.msra.mxu3 %v7727_v14  ;;  %v529_v48 = vmax.f32 %v509_v39, 0.0  ;;  %v531_v49 = vmax.f32 %v511_v40, 0.0  ;;  %v2346_v55 = vadd.f32 %v8287_v33, %v2322_v44  ;;  %v530_v56 = vmax.f32 %v510_v45, 0.0  ;;  %v4109_v8 = vld [vmem:[%s8346_s8 + $0x4] sm:$0x1]  ;;  %v7724_v22 = vld [vmem:[%s10582_s5 + $0x48] sm:$0xff] }
  0x1e   : > { %v2347_v57 = vadd.f32 %v8287_v33, %v2323_v46  ;;  %v532_v62 = vmax.f32 %v512_v51, 0.0  ;;  %v8353_v9 = vstv %s4238_s20  ;;  %v4129_v16 = vunpack.c.l.bf16 %v4109_v8  ;;  %v7731_v39 = vld [vmem:[%s10582_s5 + $0x80] sm:$0xff]  ;;  %v446_v45 = vld [vmem:[%s8236_s12 + $0x14] sm:$0x1]  ;;  %s6209_s14 = sshll.u32 %s10601_s25, 3 }
  0x1f   : > { %966 = vmatpush.bf16.msra.mxu1 %v7718_v23  ;;  %v549_v60 = vmul.f32 0.0, %v529_v48  ;;  %v551_v61 = vmul.f32 %v8300_v38, %v531_v49  ;;  %v2366_v0 = vmax.f32 %v2346_v55, 0.0  ;;  %v550_v1 = vmul.f32 0.0, %v530_v56  ;;  %v7723_v46 = vld [vmem:[%s10582_s5 + $0x40] sm:$0xff]  ;;  %v448_v55 = vld [vmem:[%s8236_s12 + $0x1c] sm:$0x1]  ;;  %s415_s15 = sadd.s32 %s6209_s14, %s10607_s24 }
  0x20   : > { %1135 = vmatpush.bf16.msra.mxu2 %v7734_v31  ;;  %v2367_v2 = vmax.f32 %v2347_v57, 0.0  ;;  %v552_v7 = vmul.f32 %v8310_v43, %v532_v62  ;;  %v472_v24 = vunpack.c.l.bf16 %v452_v3  ;;  %v4153_v30 = vmul.f32 %v8059_v17, %v4129_v16  ;;  %v8060_v31 = vld [vmem:[%s10581_s4] ss:$0 sm:$0xff]  ;;  %s6210_s18 = sshll.u32 %s415_s15, 1 }
  0x21   : > { %865 = vmatpush.bf16.msra.mxu0 %v7726_v36  ;;  %7990 = vmatpush.bf16.msra.mxu3 %v7726_v36  ;;  %v573_v5 = vmul.f32 %v8319_v50, %v549_v60  ;;  %v575_v6 = vmul.f32 %v8319_v50, %v551_v61  ;;  %v8361_v12 = vmul.f32 0.0, %v2366_v0  ;;  %v574_v13 = vmul.f32 %v8319_v50, %v550_v1  ;;  %v8404_v60 = vld [vmem:[%s8236_s12 + $0x30] sm:$0xf]  ;;  %s417_s20 = scalar_lea.vmem %s10584_s7, %s6210_s18 }
  0x22   : > { %v8364_v14 = vmul.f32 0.0, %v2367_v2  ;;  %v576_v23 = vmul.f32 %v8319_v50, %v552_v7  ;;  %v493_v34 = vmul.f32 %v8241_v15, %v469_v58  ;;  %v494_v35 = vmul.f32 %v8241_v15, %v470_v63 }
  0x23   : > { %967 = vmatpush.bf16.msra.mxu1 %v7717_v53  ;;  %v593_v19 = vpack.c.bf16 %v573_v5, %v573_v5  ;;  %v595_v20 = vpack.c.bf16 %v575_v6, %v575_v6  ;;  %v2406_v27 = vpack.c.bf16 %v8361_v12, %v8361_v12  ;;  %v594_v28 = vpack.c.bf16 %v574_v13, %v574_v13 }
  0x24   : > { %1136 = vmatpush.bf16.msra.mxu2 %v7733_v54  ;;  %v2407_v29 = vpack.c.bf16 %v8364_v14, %v8364_v14  ;;  %v596_v32 = vpack.c.bf16 %v576_v23, %v576_v23  ;;  %v495_v36 = vmul.f32 %v8241_v15, %v471_v4  ;;  %v4177_v40 = vadd.f32 %v8060_v31, %v4153_v30 }
  0x25   : > { %866 = vmatpush.bf16.msra.mxu0 %v7725_v59  ;;  %7991 = vmatpush.bf16.msra.mxu3 %v7725_v59  ;;  %613 = vst [vmem:[#allocation2] sm:$0xf] %v593_v19  ;;  %v496_v41 = vmul.f32 %v8241_v15, %v472_v24  ;;  %v465_v42 = vunpack.c.l.bf16 %v445_v25  ;;  %v467_v44 = vunpack.c.l.bf16 %v447_v26  ;;  %v517_v47 = vadd.f32 %v8249_v18, %v493_v34 }
  0x26   : > { %615 = vst [vmem:[#allocation2 + $0x8] sm:$0xf] %v595_v20  ;;  %v518_v48 = vadd.f32 %v8249_v18, %v494_v35  ;;  %v519_v49 = vadd.f32 %v8249_v18, %v495_v36  ;;  %v4197_v51 = vmax.f32 %v4177_v40, 0.0  ;;  %v466_v59 = vunpack.c.l.bf16 %v446_v45 }
  0x27   : > { %968 = vmatpush.bf16.msra.mxu1 %v7716_v10  ;;  %614 = vst [vmem:[#allocation2 + $0x4] sm:$0x1] %v594_v28  ;;  %v520_v52 = vadd.f32 %v8249_v18, %v496_v41  ;;  %v489_v53 = vmul.f32 %v8241_v15, %v465_v42  ;;  %v491_v54 = vmul.f32 %v8241_v15, %v467_v44  ;;  %v537_v56 = vmax.f32 %v517_v47, 0.0  ;;  %v7758_v42 = vld [vmem:[%s10582_s5 + $0x138] sm:$0xff] }
  0x28   : > { %1137 = vmatpush.bf16.msra.mxu2 %v7732_v11  ;;  %616 = vst [vmem:[#allocation2 + $0xc] sm:$0x1] %v596_v32  ;;  %v538_v57 = vmax.f32 %v518_v48, 0.0  ;;  %v539_v58 = vmax.f32 %v519_v49, 0.0  ;;  %v4217_v61 = vmul.f32 0.0, %v4197_v51  ;;  %v468_v4 = vunpack.c.l.bf16 %v448_v55  ;;  %v7750_v44 = vld [vmem:[%s10582_s5 + $0xf8] sm:$0xff] }
  0x29   : > { %867 = vmatpush.bf16.msra.mxu0 %v7724_v22  ;;  %7992 = vmatpush.bf16.msra.mxu3 %v7724_v22  ;;  %v540_v62 = vmax.f32 %v520_v52, 0.0  ;;  %v8407_v63 = vadd.f32 %v8249_v18, %v489_v53  ;;  %v8410_v0 = vadd.f32 %v8249_v18, %v491_v54  ;;  %v557_v1 = vmul.f32 %v8300_v38, %v537_v56  ;;  %v7757_v52 = vld [vmem:[%s10582_s5 + $0x130] sm:$0xff]  ;;  %v7778_v53 = vld [vmem:[%s10582_s5 + $0x1b8] sm:$0xff] }
  0x2a   : > { %v558_v2 = vmul.f32 %v8310_v43, %v538_v57  ;;  %v559_v3 = vmul.f32 %v8300_v38, %v539_v58  ;;  %v8416_v8 = vmul.f32 %v8353_v9, %v4217_v61  ;;  %v8420_v11 = vmul.f32 %v8241_v15, %v466_v59  ;;  %v7749_v54 = vld [vmem:[%s10582_s5 + $0xf0] sm:$0xff]  ;;  %v7766_v59 = vld [vmem:[%s10582_s5 + $0x178] sm:$0xff] }
  0x2b   : > { %969 = vmatpush.bf16.msra.mxu1 %v7715_v37  ;;  %v560_v10 = vmul.f32 %v8310_v43, %v540_v62  ;;  %v473_v12 = vunpack.c.l.bf16 %v8404_v60  ;;  %v581_v17 = vmul.f32 %v8319_v50, %v557_v1  ;;  %v8429_v22 = vmul.f32 %v8241_v15, %v468_v4  ;;  %v8468_v61 = vld [vmem:[%s8236_s12 + $0x34] sm:$0x1] }
  0x2c   : > { %1138 = vmatpush.bf16.msra.mxu2 %v7731_v39  ;;  %v633_v5 = vld [vmem:[#allocation2] sm:$0xf]  ;;  %v582_v19 = vmul.f32 %v8319_v50, %v558_v2  ;;  %v8426_v20 = vmul.f32 %v8319_v50, %v559_v3  ;;  %v4261_v28 = vpack.c.bf16 %v8416_v8, %v8416_v8  ;;  %v7777_v4 = vld [vmem:[%s10582_s5 + $0x1b0] sm:$0xff] }
  0x2d   : > { %868 = vmatpush.bf16.msra.mxu0 %v7723_v46  ;;  %7993 = vmatpush.bf16.msra.mxu3 %v7723_v46  ;;  %v6263_v6 = vld [vmem:[#allocation2] sm:$0xf]  ;;  %v7711_v13 = vld [vmem:[#allocation2 + $0x4] sm:$0xf0]  ;;  %v669_v34 = vshrl.u32 %v633_v5, 16  ;;  %v8443_v35 = vmul.f32 %v8319_v50, %v560_v10  ;;  %v601_v36 = vpack.c.bf16 %v581_v17, %v581_v17  ;;  %v672_v39 = vshll.u32 %v633_v5, 16 }
  0x2e   : > { %v991_v7 = vld [vmem:[#allocation2] sm:$0xe]  ;;  %v992_v16 = vld [vmem:[#allocation2 + $0x8] sm:$0xe]  ;;  %v6264_v23 = vor.u32 %v7711_v13, %v6263_v6  ;;  %v657_v24 = vld [vmem:[#allocation2 + $0x4] sm:$0x1]  ;;  %v602_v1 = vpack.c.bf16 %v582_v19, %v582_v19  ;;  %v603_v2 = vpack.c.bf16 %v8426_v20, %v8426_v20 }
  0x2f   : > { %2426 = vst [vmem:[#allocation2] sm:$0xf] %v2406_v27  ;;  %v6309_v26 = vrot.slane %v991_v7, 9  ;;  %v6310_v27 = vrot.slane %v992_v16, 9  ;;  %v634_v30 = vld [vmem:[#allocation2 + $0x8] sm:$0xf]  ;;  %v604_v3 = vpack.c.bf16 %v8443_v35, %v8443_v35  ;;  %1686 = vmatpush.bf16.msrb.mxu1 %v7766_v59 }
  0x30   : > { %v658_v31 = vld [vmem:[#allocation2 + $0xc] sm:$0x1]  ;;  %v1020_v32 = vrot.slane %v657_v24, 5  ;;  %2427 = vst [vmem:[#allocation2 + $0x4] sm:$0x1] %v2407_v29  ;;  %970 = vmatmul.bf16.vlgmr.msra.gmra.mxu1 %v6264_v23  ;;  %v678_v40 = vshll.u32 %v657_v24, 16  ;;  %1821 = vmatpush.bf16.msrb.mxu2 %v7778_v53  ;;  %v474_v24 = vunpack.c.l.bf16 %v8468_v61 }
  0x31   : > { %v1024_v37 = vrot.slane %v658_v31, 5  ;;  %v683_v41 = vshrl.u32 %v634_v30, 16  ;;  %v671_v29 = vrot.slane %v669_v34, 4  ;;  %v686_v45 = vshll.u32 %v634_v30, 16  ;;  %621 = vst [vmem:[#allocation2 + $0x20] sm:$0xf] %v601_v36  ;;  %1512 = vmatpush.bf16.msrb.mxu0 %v7758_v42  ;;  %1266 = vmatpush.bf16.msrb.mxu3 %v7750_v44 }
  0x32   : > { %v1021_v14 = vsel %vm8433_vm6, %v6309_v26, %v1020_v32  ;;  %v692_v46 = vshll.u32 %v658_v31, 16  ;;  %v674_v49 = vrot.slane %v672_v39, 5  ;;  %v680_v51 = vrot.slane %v678_v40, 5  ;;  %v455_v5 = vld [vmem:[%s8236_s12 + $0x38] sm:$0xf]  ;;  %v7756_v16 = vld [vmem:[%s10582_s5 + $0x128] sm:$0xff] }
  0x33   : > { %v1025_v47 = vsel %vm8433_vm6, %v6310_v27, %v1024_v37  ;;  %v1067_v48 = vunpack.c.l.b16 %v1021_v14  ;;  %v685_v56 = vrot.slane %v683_v41, 4  ;;  %v688_v57 = vrot.slane %v686_v45, 5  ;;  %v456_v17 = vld [vmem:[%s8236_s12 + $0x3c] sm:$0x1]  ;;  %622 = vst [vmem:[#allocation2 + $0x24] sm:$0x1] %v602_v1 }
  0x34   : > { %v1068_v55 = vunpack.c.l.b16 %v1025_v47  ;;  %v694_v58 = vrot.slane %v692_v46, 5  ;;  %v675_v62 = vor.u32 %v674_v49, %v671_v29  ;;  %v533_v10 = vmax.f32 %v8407_v63, 0.0  ;;  %v7748_v23 = vld [vmem:[%s10582_s5 + $0xe8] sm:$0xff]  ;;  %623 = vst [vmem:[#allocation2 + $0x28] sm:$0xf] %v603_v2  ;;  %1822 = vmatpush.bf16.msrb.mxu2 %v7777_v4  ;;  %v7747_v14 = vld [vmem:[%s10582_s5 + $0xe0] sm:$0xff] }
  0x35   : > { %v689_v8 = vor.u32 %v688_v57, %v685_v56  ;;  %v535_v13 = vmax.f32 %v8410_v0, 0.0  ;;  %1513 = vmatpush.bf16.msrb.mxu0 %v7757_v52  ;;  %1267 = vmatpush.bf16.msrb.mxu3 %v7749_v54  ;;  %v514_v63 = vadd.f32 %v8249_v18, %v8420_v11  ;;  %v516_v0 = vadd.f32 %v8249_v18, %v8429_v22  ;;  %v7755_v47 = vld [vmem:[%s10582_s5 + $0x120] sm:$0xff] }
  0x36   : > { %v1075_v6 = vpack.c.b16 %v1068_v55, %v1067_v48  ;;  %v676_v20 = vrot.slane %v675_v62, 4  ;;  %v553_v27 = vmul.f32 %v8300_v38, %v533_v10  ;;  %v475_v31 = vunpack.c.l.bf16 %v455_v5  ;;  %624 = vst [vmem:[#allocation2 + $0x2c] sm:$0x1] %v604_v3 }
  0x37   : > { %v8490_v19 = vld [vmem:[#allocation2 + $0x4] sm:$0x1]  ;;  %v690_v26 = vrot.slane %v689_v8, 4  ;;  %v555_v30 = vmul.f32 %v8300_v38, %v535_v13  ;;  %v534_v35 = vmax.f32 %v514_v63, 0.0  ;;  %v536_v11 = vmax.f32 %v516_v0, 0.0 }
  0x38   : > { %1139 = vmatmul.bf16.vlgmr.msra.gmra.mxu2 %v1075_v6  ;;  %4281 = vst [vmem:[#allocation2 + $0x4] sm:$0x1] %v4261_v28  ;;  %v681_v32 = vsel %vm8480_vm7, %v676_v20, %v680_v51  ;;  %v637_v34 = vld [vmem:[#allocation2 + $0x20] sm:$0xf]  ;;  %v476_v36 = vunpack.c.l.bf16 %v456_v17  ;;  %v577_v41 = vmul.f32 %v8319_v50, %v553_v27  ;;  %v497_v48 = vmul.f32 %v8241_v15, %v473_v12 }
  0x39   : > { %v695_v22 = vsel %vm8480_vm7, %v690_v26, %v694_v58  ;;  %v797_v37 = vunpack.c.l.b16 %v681_v32  ;;  %v725_v28 = vshrl.u32 %v637_v34, 16  ;;  %v728_v39 = vshll.u32 %v637_v34, 16  ;;  %1514 = vmatpush.bf16.msrb.mxu0 %v7756_v16  ;;  %1268 = vmatpush.bf16.msrb.mxu3 %v7748_v23 }
  0x3a   : > { %v798_v40 = vunpack.c.l.b16 %v695_v22  ;;  %v579_v42 = vmul.f32 %v8319_v50, %v555_v30  ;;  %v554_v44 = vmul.f32 %v8310_v43, %v534_v35  ;;  %v556_v46 = vmul.f32 %v8310_v43, %v536_v11  ;;  %v8520_v54 = vld [vmem:[#allocation2 + $0x24] sm:$0x1] }
  0x3b   : > { %v727_v29 = vrot.slane %v725_v28, 4  ;;  %v730_v45 = vrot.slane %v728_v39, 5  ;;  %v597_v51 = vpack.c.bf16 %v577_v41, %v577_v41  ;;  %v498_v57 = vmul.f32 %v8241_v15, %v474_v24  ;;  %v638_v61 = vld [vmem:[#allocation2 + $0x28] sm:$0xf] }
  0x3c   : > { %v805_v49 = vpack.c.b16 %v798_v40, %v797_v37  ;;  %v599_v52 = vpack.c.bf16 %v579_v42, %v579_v42  ;;  %v578_v53 = vmul.f32 %v8319_v50, %v554_v44  ;;  %v580_v56 = vmul.f32 %v8319_v50, %v556_v46 }
  0x3d   : > { %v731_v55 = vor.u32 %v730_v45, %v727_v29  ;;  %v499_v58 = vmul.f32 %v8241_v15, %v475_v31  ;;  %v734_v59 = vshll.u32 %v8520_v54, 16  ;;  %617 = vst [vmem:[#allocation2 + $0x10] sm:$0xf] %v597_v51  ;;  %1269 = vmatpush.bf16.msrb.mxu3 %v7747_v14  ;;  %v500_v12 = vmul.f32 %v8241_v15, %v476_v36  ;;  %v8529_v4 = vld [vmem:[#allocation2 + $0x2c] sm:$0x1] }
  0x3e   : > { %869 = vmatmul.bf16.vlgmr.msra.gmra.mxu0 %v805_v49  ;;  %v598_v60 = vpack.c.bf16 %v578_v53, %v578_v53  ;;  %619 = vst [vmem:[#allocation2 + $0x18] sm:$0xf] %v599_v52  ;;  %v600_v1 = vpack.c.bf16 %v580_v56, %v580_v56  ;;  %v521_v2 = vadd.f32 %v8249_v18, %v497_v48  ;;  %v739_v6 = vshrl.u32 %v638_v61, 16  ;;  %v7753_v56 = vld [vmem:[%s10582_s5 + $0x110] sm:$0xff] }
  0x3f   : > { %v732_v62 = vrot.slane %v731_v55, 4  ;;  %1515 = vmatpush.bf16.msrb.mxu0 %v7755_v47  ;;  %v522_v3 = vadd.f32 %v8249_v18, %v498_v57  ;;  %v736_v5 = vrot.slane %v734_v59, 5  ;;  %v742_v8 = vshll.u32 %v638_v61, 16  ;;  %v7754_v47 = vld [vmem:[%s10582_s5 + $0x118] sm:$0xff]  ;;  %v7765_v61 = vld [vmem:[%s10582_s5 + $0x170] sm:$0xff] }
  0x40   : > { %v523_v10 = vadd.f32 %v8249_v18, %v499_v58  ;;  %v748_v13 = vshll.u32 %v8529_v4, 16  ;;  %618 = vst [vmem:[#allocation2 + $0x14] sm:$0x1] %v598_v60  ;;  %v524_v15 = vadd.f32 %v8249_v18, %v500_v12  ;;  %v541_v16 = vmax.f32 %v521_v2, 0.0  ;;  %v7746_v55 = vld [vmem:[%s10582_s5 + $0xd8] sm:$0xff]  ;;  %1687 = vmatpush.bf16.msrb.mxu1 %v7765_v61 }
  0x41   : > { %v542_v17 = vmax.f32 %v522_v3, 0.0  ;;  %v737_v20 = vsel %vm8480_vm7, %v732_v62, %v736_v5  ;;  %v741_v23 = vrot.slane %v739_v6, 4  ;;  %v744_v63 = vrot.slane %v742_v8, 5  ;;  %620 = vst [vmem:[#allocation2 + $0x1c] sm:$0x1] %v600_v1  ;;  %1270 = vmatpush.bf16.msrb.mxu3 %v7746_v55  ;;  %v7776_v5 = vld [vmem:[%s10582_s5 + $0x1a8] sm:$0xff] }
  0x42   : > { %v543_v0 = vmax.f32 %v523_v10, 0.0  ;;  %v544_v24 = vmax.f32 %v524_v15, 0.0  ;;  %v561_v26 = vmul.f32 %v8300_v38, %v541_v16  ;;  %v750_v30 = vrot.slane %v748_v13, 5  ;;  %v7745_v6 = vld [vmem:[%s10582_s5 + $0xd0] sm:$0xff]  ;;  %1823 = vmatpush.bf16.msrb.mxu2 %v7776_v5 }
  0x43   : > { %v745_v27 = vor.u32 %v744_v63, %v741_v23  ;;  %v562_v31 = vmul.f32 %v8310_v43, %v542_v17  ;;  %v801_v34 = vunpack.c.l.b16 %v737_v20  ;;  %1516 = vmatpush.bf16.msrb.mxu0 %v7754_v47  ;;  %v7752_v63 = vld [vmem:[%s10582_s5 + $0x108] sm:$0xff] }
  0x44   : > { %v563_v32 = vmul.f32 %v8300_v38, %v543_v0  ;;  %v6267_v18 = vld [vmem:[#allocation2 + $0x10] sm:$0xf]  ;;  %v564_v36 = vmul.f32 %v8310_v43, %v544_v24  ;;  %v8541_v22 = vmul.f32 %v8319_v50, %v561_v26  ;;  %v995_v0 = vld [vmem:[#allocation2 + $0x20] sm:$0xe] }
  0x45   : > { %v993_v35 = vld [vmem:[#allocation2 + $0x10] sm:$0xe]  ;;  %v746_v37 = vrot.slane %v745_v27, 4  ;;  %v7712_v28 = vld [vmem:[#allocation2 + $0x14] sm:$0xf0]  ;;  %v8544_v41 = vmul.f32 %v8319_v50, %v562_v31  ;;  %1271 = vmatpush.bf16.msrb.mxu3 %v7745_v6 }
  0x46   : > { %v635_v11 = vld [vmem:[#allocation2 + $0x10] sm:$0xf]  ;;  %v994_v39 = vld [vmem:[#allocation2 + $0x18] sm:$0xe]  ;;  %v6311_v40 = vrot.slane %v993_v35, 9  ;;  %v8547_v42 = vmul.f32 %v8319_v50, %v563_v32  ;;  %v6268_v44 = vor.u32 %v7712_v28, %v6267_v18  ;;  %v8555_v53 = vmul.f32 %v8319_v50, %v564_v36  ;;  %v7764_v32 = vld [vmem:[%s10582_s5 + $0x168] sm:$0xff] }
  0x47   : > { %v6312_v14 = vrot.slane %v994_v39, 9  ;;  %v636_v29 = vld [vmem:[#allocation2 + $0x18] sm:$0xf]  ;;  %v697_v45 = vshrl.u32 %v635_v11, 16  ;;  %v700_v46 = vshll.u32 %v635_v11, 16  ;;  %v751_v48 = vsel %vm8480_vm7, %v746_v37, %v750_v30  ;;  %1517 = vmatpush.bf16.msrb.mxu0 %v7753_v56  ;;  %1688 = vmatpush.bf16.msrb.mxu1 %v7764_v32 }
  0x48   : > { %v659_v49 = vld [vmem:[#allocation2 + $0x14] sm:$0x1]  ;;  %v711_v51 = vshrl.u32 %v636_v29, 16  ;;  %v714_v52 = vshll.u32 %v636_v29, 16  ;;  %v802_v57 = vunpack.c.l.b16 %v751_v48  ;;  %975 = vmatmul.bf16.gmra.mxu1 %v6268_v44  ;;  %v660_v58 = vld [vmem:[#allocation2 + $0x1c] sm:$0x1]  ;;  %v605_v30 = vpack.c.bf16 %v8541_v22, %v8541_v22 }
  0x49   : > { %v1028_v59 = vrot.slane %v659_v49, 5  ;;  %v699_v60 = vrot.slane %v697_v45, 4  ;;  %v702_v12 = vrot.slane %v700_v46, 5  ;;  %v1032_v62 = vrot.slane %v660_v58, 5  ;;  %v996_v31 = vld [vmem:[#allocation2 + $0x28] sm:$0xe] }
  0x4a   : > { %v706_v1 = vshll.u32 %v659_v49, 16  ;;  %v713_v2 = vrot.slane %v711_v51, 4  ;;  %v716_v3 = vrot.slane %v714_v52, 5  ;;  %v807_v8 = vpack.c.b16 %v802_v57, %v801_v34  ;;  %v7775_v34 = vld [vmem:[%s10582_s5 + $0x1a0] sm:$0xff]  ;;  %v7744_v22 = vld [vmem:[%s10582_s5 + $0xc8] sm:$0xff] }
  0x4b   : > { %v1029_v10 = vsel %vm8433_vm6, %v6311_v40, %v1028_v59  ;;  %v703_v13 = vor.u32 %v702_v12, %v699_v60  ;;  %v720_v15 = vshll.u32 %v660_v58, 16  ;;  %v1033_v16 = vsel %vm8433_vm6, %v6312_v14, %v1032_v62  ;;  %625 = vst [vmem:[#allocation2 + $0x30] sm:$0xf] %v605_v30  ;;  %v1303_v40 = vld [vmem:[#allocation2 + $0x8] sm:$0xf]  ;;  %1824 = vmatpush.bf16.msrb.mxu2 %v7775_v34 }
  0x4c   : > { %v1069_v17 = vunpack.c.l.b16 %v1029_v10  ;;  %v708_v20 = vrot.slane %v706_v1, 5  ;;  %v717_v23 = vor.u32 %v716_v3, %v713_v2  ;;  %879 = vmatmul.bf16.vlgmr.msra.gmra.mxu3 %v807_v8  ;;  %v1070_v24 = vunpack.c.l.b16 %v1033_v16  ;;  %v6271_v44 = vld [vmem:[#allocation2 + $0x20] sm:$0xf]  ;;  %v7713_v14 = vld [vmem:[#allocation2 + $0x24] sm:$0xf0]  ;;  %1518 = vmatpush.bf16.msrb.mxu0 %v7752_v63 }
  0x4d   : > { %v704_v26 = vrot.slane %v703_v13, 4  ;;  %v722_v27 = vrot.slane %v720_v15, 5  ;;  %v606_v35 = vpack.c.bf16 %v8544_v41, %v8544_v41  ;;  %v607_v11 = vpack.c.bf16 %v8547_v42, %v8547_v42  ;;  %v8601_v46 = vld [vmem:[#allocation2 + $0xc] sm:$0x1]  ;;  %v1305_v49 = vld [vmem:[#allocation2 + $0x10] sm:$0xf]  ;;  %1272 = vmatpush.bf16.msrb.mxu3 %v7744_v22 }
  0x4e   : > { %v718_v18 = vrot.slane %v717_v23, 4  ;;  %v608_v36 = vpack.c.bf16 %v8555_v53, %v8555_v53  ;;  %v1076_v37 = vpack.c.b16 %v1070_v24, %v1069_v17  ;;  %v6313_v39 = vrot.slane %v995_v0, 9  ;;  %v7743_v53 = vld [vmem:[%s10582_s5 + $0xc0] sm:$0xff]  ;;  %v8615_v58 = vld [vmem:[#allocation2 + $0x14] sm:$0x1]  ;;  %v7794_v13 = vld [vmem:[%s10582_s5 + $0x238] sm:$0xff] }
  0x4f   : > { %v709_v28 = vsel %vm8480_vm7, %v704_v26, %v708_v20  ;;  %626 = vst [vmem:[#allocation2 + $0x34] sm:$0x1] %v606_v35  ;;  %v1036_v29 = vrot.slane %v8520_v54, 5  ;;  %v6314_v45 = vrot.slane %v996_v31, 9  ;;  %v1040_v48 = vrot.slane %v8529_v4, 5  ;;  %v7751_v54 = vld [vmem:[%s10582_s5 + $0x100] sm:$0xff] }
  0x50   : > { %v723_v41 = vsel %vm8480_vm7, %v718_v18, %v722_v27  ;;  %v799_v42 = vunpack.c.l.b16 %v709_v28  ;;  %1144 = vmatmul.bf16.gmra.mxu2 %v1076_v37  ;;  %627 = vst [vmem:[#allocation2 + $0x38] sm:$0xf] %v607_v11  ;;  %v1320_v51 = vshrl.u32 %v1303_v40, 16  ;;  %v1323_v55 = vshll.u32 %v1303_v40, 16  ;;  %1519 = vmatpush.bf16.msrb.mxu0 %v7751_v54  ;;  %v2281_v26 = vld [vmem:[%s8269_s13 + $0xc] sm:$0x1] }
  0x51   : > { %v800_v47 = vunpack.c.l.b16 %v723_v41  ;;  %628 = vst [vmem:[#allocation2 + $0x3c] sm:$0x1] %v608_v36  ;;  %v1037_v52 = vsel %vm8433_vm6, %v6313_v39, %v1036_v29  ;;  %v1329_v56 = vshll.u32 %v8601_v46, 16  ;;  %v1041_v4 = vsel %vm8433_vm6, %v6314_v45, %v1040_v48  ;;  %1273 = vmatpush.bf16.msrb.mxu3 %v7743_v53  ;;  %v2283_v22 = vld [vmem:[%s8269_s13 + $0x14] sm:$0x1]  ;;  %v7763_v37 = vld [vmem:[%s10582_s5 + $0x160] sm:$0xff] }
  0x52   : > { %v1322_v59 = vrot.slane %v1320_v51, 4  ;;  %v1071_v60 = vunpack.c.l.b16 %v1037_v52  ;;  %v1072_v12 = vunpack.c.l.b16 %v1041_v4  ;;  %v1325_v61 = vrot.slane %v1323_v55, 5  ;;  %v639_v3 = vld [vmem:[#allocation2 + $0x30] sm:$0xf]  ;;  %v7774_v28 = vld [vmem:[%s10582_s5 + $0x198] sm:$0xff]  ;;  %1689 = vmatpush.bf16.msrb.mxu1 %v7763_v37 }
  0x53   : > { %v806_v57 = vpack.c.b16 %v800_v47, %v799_v42  ;;  %v1334_v62 = vshrl.u32 %v1305_v49, 16  ;;  %v6272_v1 = vor.u32 %v7713_v14, %v6271_v44  ;;  %v1337_v2 = vshll.u32 %v1305_v49, 16  ;;  %1825 = vmatpush.bf16.msrb.mxu2 %v7774_v28  ;;  %v7762_v47 = vld [vmem:[%s10582_s5 + $0x158] sm:$0xff]  ;;  %v7793_v49 = vld [vmem:[%s10582_s5 + $0x230] sm:$0xff]  ;;  %v1549_v37 = vld [vmem:[#allocation2 + $0x8] sm:$0xe] }
  0x54   : > { %v1326_v5 = vor.u32 %v1325_v61, %v1322_v59  ;;  %v1331_v6 = vrot.slane %v1329_v56, 5  ;;  %v1343_v10 = vshll.u32 %v8615_v58, 16  ;;  %v753_v16 = vshrl.u32 %v639_v3, 16  ;;  %2241 = vmatpush.bf16.msra.mxu0 %v7794_v13  ;;  %v7786_v48 = vld [vmem:[%s10582_s5 + $0x1f8] sm:$0xff]  ;;  %v997_v53 = vld [vmem:[#allocation2 + $0x30] sm:$0xe] }
  0x55   : > { %874 = vmatmul.bf16.gmra.mxu0 %v806_v57  ;;  %v1336_v8 = vrot.slane %v1334_v62, 4  ;;  %v756_v17 = vshll.u32 %v639_v3, 16  ;;  %v1339_v20 = vrot.slane %v1337_v2, 5  ;;  %v1077_v0 = vpack.c.b16 %v1072_v12, %v1071_v60  ;;  %2067 = vmatpush.bf16.msra.mxu3 %v7786_v48  ;;  %v7773_v12 = vld [vmem:[%s10582_s5 + $0x190] sm:$0xff]  ;;  %v1307_v13 = vld [vmem:[#allocation2 + $0x18] sm:$0xf] }
  0x56   : > { %v8621_v15 = vld [vmem:[#allocation2 + $0x34] sm:$0x1]  ;;  %v1327_v24 = vrot.slane %v1326_v5, 4  ;;  %v755_v30 = vrot.slane %v753_v16, 4  ;;  %v1345_v36 = vrot.slane %v1343_v10, 5  ;;  %v2301_v29 = vunpack.c.l.bf16 %v2281_v26  ;;  %1690 = vmatpush.bf16.msrb.mxu1 %v7762_v47 }
  0x57   : > { %v640_v23 = vld [vmem:[#allocation2 + $0x38] sm:$0xf]  ;;  %v762_v63 = vshll.u32 %v8621_v15, 16  ;;  %v758_v31 = vrot.slane %v756_v17, 5  ;;  %v1340_v11 = vor.u32 %v1339_v20, %v1336_v8  ;;  %v2303_v45 = vunpack.c.l.bf16 %v2283_v22  ;;  %v8656_v2 = vld [vmem:[#allocation2 + $0x30] sm:$0xf]  ;;  %1826 = vmatpush.bf16.msrb.mxu2 %v7773_v12 }
  0x58   : > { %v8625_v27 = vld [vmem:[#allocation2 + $0x3c] sm:$0x1]  ;;  %v767_v32 = vshrl.u32 %v640_v23, 16  ;;  %v770_v34 = vshll.u32 %v640_v23, 16  ;;  %980 = vmatmul.bf16.gmra.mxu1 %v6272_v1  ;;  %v1332_v35 = vsel %vm8480_vm7, %v1327_v24, %v1331_v6  ;;  %v998_v55 = vld [vmem:[#allocation2 + $0x38] sm:$0xe]  ;;  %v2325_v4 = vmul.f32 %v8254_v21, %v2301_v29  ;;  %2242 = vmatpush.bf16.msra.mxu0 %v7793_v49 }
  0x59   : > { %v776_v18 = vshll.u32 %v8625_v27, 16  ;;  %v759_v39 = vor.u32 %v758_v31, %v755_v30  ;;  %v764_v40 = vrot.slane %v762_v63, 5  ;;  %v1341_v14 = vrot.slane %v1340_v11, 4  ;;  %v8658_v3 = vld [vmem:[#allocation2 + $0x34] sm:$0xf0]  ;;  %v7761_v10 = vld [vmem:[%s10582_s5 + $0x150] sm:$0xff] }
  0x5a   : > { %v769_v41 = vrot.slane %v767_v32, 4  ;;  %v772_v42 = vrot.slane %v770_v34, 5  ;;  %v1448_v54 = vunpack.c.l.b16 %v1332_v35  ;;  %v1044_v56 = vrot.slane %v8621_v15, 5  ;;  %v8665_v15 = vld [vmem:[#allocation2 + $0x1c] sm:$0x1]  ;;  %1691 = vmatpush.bf16.msrb.mxu1 %v7761_v10 }
  0x5b   : > { %v778_v44 = vrot.slane %v776_v18, 5  ;;  %v760_v51 = vrot.slane %v759_v39, 4  ;;  %v1346_v57 = vsel %vm8480_vm7, %v1341_v14, %v1345_v36  ;;  %v2327_v59 = vmul.f32 %v8254_v21, %v2303_v45  ;;  %v1309_v30 = vld [vmem:[#allocation2 + $0x20] sm:$0xf]  ;;  %v7760_v36 = vld [vmem:[%s10582_s5 + $0x148] sm:$0xff] }
  0x5c   : > { %v773_v52 = vor.u32 %v772_v42, %v769_v41  ;;  %v6315_v60 = vrot.slane %v997_v53, 9  ;;  %v1449_v1 = vunpack.c.l.b16 %v1346_v57  ;;  %v6316_v5 = vrot.slane %v998_v55, 9  ;;  %v8687_v22 = vld [vmem:[#allocation2 + $0x24] sm:$0x1]  ;;  %v1550_v42 = vld [vmem:[#allocation2 + $0x10] sm:$0xe] }
  0x5d   : > { %v765_v61 = vsel %vm8480_vm7, %v760_v51, %v764_v40  ;;  %v2349_v21 = vadd.f32 %v8287_v33, %v2325_v4  ;;  %v2351_v8 = vadd.f32 %v8287_v33, %v2327_v59  ;;  %v1048_v33 = vrot.slane %v8625_v27, 5  ;;  %v8692_v14 = vld [vmem:[#allocation2 + $0xc] sm:$0xf0]  ;;  %v8694_v29 = vld [vmem:[#allocation2 + $0x14] sm:$0x1]  ;;  %v7792_v57 = vld [vmem:[%s10582_s5 + $0x228] sm:$0xff] }
  0x5e   : > { %v774_v62 = vrot.slane %v773_v52, 4  ;;  %v803_v6 = vunpack.c.l.b16 %v765_v61  ;;  %v1456_v17 = vpack.c.b16 %v1449_v1, %v1448_v54  ;;  %v8671_v20 = vsel %vm8433_vm6, %v6315_v60, %v1044_v56  ;;  %v2285_v51 = vld [vmem:[%s8269_s13 + $0x1c] sm:$0x1]  ;;  %v7785_v52 = vld [vmem:[%s10582_s5 + $0x1f0] sm:$0xff]  ;;  %v7759_v4 = vld [vmem:[%s10582_s5 + $0x140] sm:$0xff]  ;;  %1692 = vmatpush.bf16.msrb.mxu1 %v7760_v36  ;;  %2243 = vmatpush.bf16.msra.mxu0 %v7792_v57 }
  0x5f   : > { %v2369_v63 = vmax.f32 %v2349_v21, 0.0  ;;  %v2371_v24 = vmax.f32 %v2351_v8, 0.0  ;;  %v6276_v26 = vor.u32 %v8658_v3, %v8656_v2  ;;  %v8678_v31 = vsel %vm8433_vm6, %v6316_v5, %v1048_v33  ;;  %v7772_v59 = vld [vmem:[%s10582_s5 + $0x188] sm:$0xff]  ;;  %2068 = vmatpush.bf16.msra.mxu3 %v7785_v52  ;;  %v457_v1 = vld [vmem:[%s8236_s12 + $0x40] sm:$0xf] }
  0x60   : > { %v779_v16 = vsel %vm8480_vm7, %v774_v62, %v778_v44  ;;  %1149 = vmatmul.bf16.gmra.mxu2 %v1077_v0  ;;  %v1348_v32 = vshrl.u32 %v1307_v13, 16  ;;  %v1351_v0 = vshll.u32 %v1307_v13, 16  ;;  %v1357_v34 = vshll.u32 %v8665_v15, 16  ;;  %v8690_v44 = vld [vmem:[#allocation2 + $0x8] sm:$0xf]  ;;  %v7771_v21 = vld [vmem:[%s10582_s5 + $0x180] sm:$0xff] }
  0x61   : > { %v804_v23 = vunpack.c.l.b16 %v779_v16  ;;  %v2389_v35 = vmul.f32 %v8310_v43, %v2369_v63  ;;  %v2391_v27 = vmul.f32 %v8310_v43, %v2371_v24  ;;  %v1073_v11 = vunpack.c.l.b16 %v8671_v20  ;;  %v8715_v3 = vld [vmem:[%s10580_s3] ss:$0 sm:$0xff]  ;;  %1827 = vmatpush.bf16.msrb.mxu2 %v7772_v59  ;;  %v2280_v10 = vld [vmem:[%s8269_s13 + $0x8] sm:$0xf] }
  0x62   : > { %v1074_v28 = vunpack.c.l.b16 %v8678_v31  ;;  %v1350_v39 = vrot.slane %v1348_v32, 4  ;;  %v1353_v40 = vrot.slane %v1351_v0, 5  ;;  %v1362_v41 = vshrl.u32 %v1309_v30, 16  ;;  %v7784_v13 = vld [vmem:[%s10582_s5 + $0x1e8] sm:$0xff]  ;;  %v7791_v16 = vld [vmem:[%s10582_s5 + $0x220] sm:$0xff]  ;;  %1693 = vmatpush.bf16.msrb.mxu1 %v7759_v4 }
  0x63   : > { %v808_v18 = vpack.c.b16 %v804_v23, %v803_v6  ;;  %v2409_v45 = vpack.c.bf16 %v2389_v35, %v2389_v35  ;;  %v2411_v47 = vpack.c.bf16 %v2391_v27, %v2391_v27  ;;  %v1359_v48 = vrot.slane %v1357_v34, 5  ;;  %v8736_v20 = vld [vmem:[%s10581_s4] ss:$0 sm:$0xff]  ;;  %2069 = vmatpush.bf16.msra.mxu3 %v7784_v13  ;;  %v1311_v31 = vld [vmem:[#allocation2 + $0x28] sm:$0xf]  ;;  %2244 = vmatpush.bf16.msra.mxu0 %v7791_v16 }
  0x64   : > { %v1365_v49 = vshll.u32 %v1309_v30, 16  ;;  %v1354_v54 = vor.u32 %v1353_v40, %v1350_v39  ;;  %v1364_v53 = vrot.slane %v1362_v41, 4  ;;  %v1371_v55 = vshll.u32 %v8687_v22, 16  ;;  %v1313_v34 = vld [vmem:[#allocation2 + $0x30] sm:$0xf] }
  0x65   : > { %1520 = vmatmul.bf16.vlgmr.msrb.gmra.mxu0 %v1456_v17  ;;  %884 = vmatmul.bf16.gmra.mxu3 %v808_v18  ;;  %v2305_v56 = vunpack.c.l.bf16 %v2285_v51  ;;  %2429 = vst [vmem:[#allocation2 + $0xc] sm:$0x1] %v2409_v45  ;;  %v6477_v12 = vrot.slane %v1549_v37, 9  ;;  %v1575_v61 = vrot.slane %v8601_v46, 5  ;;  %v6478_v62 = vrot.slane %v1550_v42, 9 }
  0x66   : > { %v1367_v60 = vrot.slane %v1365_v49, 5  ;;  %2431 = vst [vmem:[#allocation2 + $0x14] sm:$0x1] %v2411_v47  ;;  %v1355_v2 = vrot.slane %v1354_v54, 4  ;;  %v1579_v6 = vrot.slane %v8615_v58, 5  ;;  %v1373_v8 = vrot.slane %v1371_v55, 5  ;;  %1828 = vmatpush.bf16.msrb.mxu2 %v7771_v21 }
  0x67   : > { %v2329_v5 = vmul.f32 %v8715_v3, %v2305_v56  ;;  %v6384_v17 = vor.u32 %v8692_v14, %v8690_v44  ;;  %v1576_v23 = vsel %vm8433_vm6, %v6477_v12, %v1575_v61  ;;  %v1078_v63 = vpack.c.b16 %v1074_v28, %v1073_v11  ;;  %v8746_v37 = vld [vmem:[#allocation2 + $0x2c] sm:$0x1]  ;;  %v8748_v28 = vld [vmem:[#allocation2 + $0x34] sm:$0x1]  ;;  %v458_v49 = vld [vmem:[%s8236_s12 + $0x44] sm:$0x1] }
  0x68   : > { %985 = vmatmul.bf16.gmra.mxu1 %v6276_v26  ;;  %v1368_v46 = vor.u32 %v1367_v60, %v1364_v53  ;;  %v1360_v58 = vsel %vm8480_vm7, %v1355_v2, %v1359_v48  ;;  %v1580_v26 = vsel %vm8433_vm6, %v6478_v62, %v1579_v6  ;;  %v2300_v30 = vunpack.c.l.bf16 %v2280_v10  ;;  %v8755_v55 = vld [vmem:[#allocation2 + $0x1c] sm:$0x1]  ;;  %v8760_v60 = vld [vmem:[%s10580_s3] ss:$0 sm:$0xff]  ;;  %v1551_v21 = vld [vmem:[#allocation2 + $0x18] sm:$0xe] }
  0x69   : > { %v2353_v33 = vadd.f32 %v8736_v20, %v2329_v5  ;;  %v1450_v32 = vunpack.c.l.b16 %v1360_v58  ;;  %v1376_v18 = vshrl.u32 %v1311_v31, 16  ;;  %v477_v35 = vunpack.c.l.bf16 %v457_v1 }
  0x6a   : > { %v1369_v24 = vrot.slane %v1368_v46, 4  ;;  %v1622_v36 = vunpack.c.l.b16 %v1576_v23  ;;  %v2324_v11 = vmul.f32 %v8715_v3, %v2300_v30  ;;  %v1379_v39 = vshll.u32 %v1311_v31, 16  ;;  %v1552_v46 = vld [vmem:[#allocation2 + $0x20] sm:$0xe]  ;;  %v7790_v23 = vld [vmem:[%s10582_s5 + $0x218] sm:$0xff]  ;;  %v7789_v30 = vld [vmem:[%s10582_s5 + $0x210] sm:$0xff] }
  0x6b   : > { %v2373_v0 = vmax.f32 %v2353_v33, 0.0  ;;  %v1623_v42 = vunpack.c.l.b16 %v1580_v26  ;;  %v1378_v44 = vrot.slane %v1376_v18, 4  ;;  %v1390_v47 = vshrl.u32 %v1313_v34, 16  ;;  %v7783_v33 = vld [vmem:[%s10582_s5 + $0x1e0] sm:$0xff]  ;;  %2245 = vmatpush.bf16.msra.mxu0 %v7790_v23  ;;  %v7806_v31 = vld [vmem:[%s10582_s5 + $0x278] sm:$0xff] }
  0x6c   : > { %v1374_v27 = vsel %vm8480_vm7, %v1369_v24, %v1373_v8  ;;  %v2348_v14 = vadd.f32 %v8736_v20, %v2324_v11  ;;  %v1381_v45 = vrot.slane %v1379_v39, 5  ;;  %v1393_v48 = vshll.u32 %v1313_v34, 16  ;;  %v8767_v8 = vld [vmem:[%s10581_s4] ss:$0 sm:$0xff]  ;;  %2070 = vmatpush.bf16.msra.mxu3 %v7783_v33  ;;  %v6551_v11 = vld [vmem:[#allocation2 + $0x10] sm:$0xf]  ;;  %2543 = vmatpush.bf16.msra.mxu1 %v7806_v31 }
  0x6d   : > { %v1451_v40 = vunpack.c.l.b16 %v1374_v27  ;;  %v2393_v41 = vmul.f32 %v8310_v43, %v2373_v0  ;;  %v1385_v54 = vshll.u32 %v8746_v37, 16  ;;  %v1399_v53 = vshll.u32 %v8748_v28, 16  ;;  %v7767_v39 = vld [vmem:[#allocation2 + $0x14] sm:$0xf0]  ;;  %v1554_v33 = vld [vmem:[#allocation2 + $0x30] sm:$0xe] }
  0x6e   : > { %v2368_v56 = vmax.f32 %v2348_v14, 0.0  ;;  %v1382_v57 = vor.u32 %v1381_v45, %v1378_v44  ;;  %v1392_v4 = vrot.slane %v1390_v47, 4  ;;  %v1395_v59 = vrot.slane %v1393_v48, 5  ;;  %v6555_v31 = vld [vmem:[#allocation2 + $0x20] sm:$0xf] }
  0x6f   : > { %v1457_v51 = vpack.c.b16 %v1451_v40, %v1450_v32  ;;  %v2413_v52 = vpack.c.bf16 %v2393_v41, %v2393_v41  ;;  %v501_v12 = vmul.f32 %v8760_v60, %v477_v35  ;;  %v478_v61 = vunpack.c.l.bf16 %v458_v49  ;;  %v7813_v35 = vld [vmem:[%s10582_s5 + $0x2b0] sm:$0xff]  ;;  %2246 = vmatpush.bf16.msra.mxu0 %v7789_v30  ;;  %v7812_v30 = vld [vmem:[%s10582_s5 + $0x2a8] sm:$0xff] }
  0x70   : > { %1154 = vmatmul.bf16.gmra.mxu2 %v1078_v63  ;;  %v2388_v62 = vmul.f32 %v8300_v38, %v2368_v56  ;;  %v1396_v1 = vor.u32 %v1395_v59, %v1392_v4  ;;  %v1630_v2 = vpack.c.b16 %v1623_v42, %v1622_v36  ;;  %v1387_v5 = vrot.slane %v1385_v54, 5  ;;  %v7814_v63 = vld [vmem:[%s10582_s5 + $0x2b8] sm:$0xff] }
  0x71   : > { %2433 = vst [vmem:[#allocation2 + $0x1c] sm:$0x1] %v2413_v52  ;;  %v1401_v6 = vrot.slane %v1399_v53, 5  ;;  %v525_v10 = vadd.f32 %v8767_v8, %v501_v12  ;;  %v1383_v16 = vrot.slane %v1382_v57, 4  ;;  %v502_v24 = vmul.f32 %v8760_v60, %v478_v61  ;;  %2789 = vmatpush.bf16.msra.mxu2 %v7814_v63  ;;  %v1315_v36 = vld [vmem:[#allocation2 + $0x38] sm:$0xf] }
  0x72   : > { %v2408_v13 = vpack.c.bf16 %v2388_v62, %v2388_v62  ;;  %v1397_v58 = vrot.slane %v1396_v1, 4  ;;  %v6479_v0 = vrot.slane %v1551_v21, 9  ;;  %v1583_v34 = vrot.slane %v8665_v15, 5  ;;  %v6387_v54 = vld [vmem:[#allocation2 + $0x18] sm:$0xf] }
  0x73   : > { %v545_v26 = vmax.f32 %v525_v10, 0.0  ;;  %v526_v32 = vadd.f32 %v8767_v8, %v502_v24  ;;  %v6480_v18 = vrot.slane %v1552_v46, 9  ;;  %v1388_v40 = vsel %vm8480_vm7, %v1383_v16, %v1387_v5  ;;  %v7740_v53 = vld [vmem:[#allocation2 + $0x1c] sm:$0xf0]  ;;  %v8807_v4 = vld [vmem:[#allocation2 + $0x3c] sm:$0x1] }
  0x74   : > { %2428 = vst [vmem:[#allocation2 + $0x8] sm:$0xf] %v2408_v13  ;;  %v1402_v41 = vsel %vm8480_vm7, %v1397_v58, %v1401_v6  ;;  %v1587_v42 = vrot.slane %v8687_v22, 5  ;;  %v1404_v14 = vshrl.u32 %v1315_v36, 16  ;;  %v1407_v45 = vshll.u32 %v1315_v36, 16  ;;  %v7781_v58 = vld [vmem:[%s10582_s5 + $0x1d0] sm:$0xff] }
  0x75   : > { %1525 = vmatmul.bf16.gmra.mxu0 %v1457_v51  ;;  %1274 = vmatmul.bf16.vlgmr.msrb.gmra.mxu3 %v6384_v17  ;;  %v7782_v17 = vld [vmem:[%s10582_s5 + $0x1d8] sm:$0xff]  ;;  %v565_v27 = vmul.f32 %v8300_v38, %v545_v26  ;;  %v546_v15 = vmax.f32 %v526_v32, 0.0  ;;  %v6552_v48 = vor.u32 %v7767_v39, %v6551_v11  ;;  %v1452_v49 = vunpack.c.l.b16 %v1388_v40  ;;  %v1553_v10 = vld [vmem:[#allocation2 + $0x28] sm:$0xe]  ;;  %v7787_v36 = vld [vmem:[%s10582_s5 + $0x200] sm:$0xff] }
  0x76   : > { %2071 = vmatpush.bf16.msra.mxu3 %v7782_v17  ;;  %v1453_v51 = vunpack.c.l.b16 %v1402_v41  ;;  %2790 = vmatpush.bf16.msra.mxu2 %v7813_v35  ;;  %v1584_v22 = vsel %vm8433_vm6, %v6479_v0, %v1583_v34  ;;  %v1588_v56 = vsel %vm8433_vm6, %v6480_v18, %v1587_v42  ;;  %v1406_v59 = vrot.slane %v1404_v14, 4  ;;  %v7788_v26 = vld [vmem:[%s10582_s5 + $0x208] sm:$0xff]  ;;  %v7805_v17 = vld [vmem:[%s10582_s5 + $0x270] sm:$0xff] }
  0x77   : > { %v589_v44 = vmul.f32 %v8319_v50, %v565_v27  ;;  %v566_v47 = vmul.f32 %v8310_v43, %v546_v15  ;;  %v1409_v12 = vrot.slane %v1407_v45, 5  ;;  %v1624_v1 = vunpack.c.l.b16 %v1584_v22  ;;  %v7768_v32 = vld [vmem:[#allocation2 + $0x24] sm:$0xf0]  ;;  %2247 = vmatpush.bf16.msra.mxu0 %v7788_v26  ;;  %2544 = vmatpush.bf16.msra.mxu1 %v7805_v17  ;;  %v7811_v15 = vld [vmem:[%s10582_s5 + $0x2a0] sm:$0xff]  ;;  %v1858_v45 = vld [vmem:[#allocation2 + $0x10] sm:$0xf] }
  0x78   : > { %1694 = vmatmul.bf16.vlgmr.msrb.gmra.mxu1 %v1630_v2  ;;  %v1458_v62 = vpack.c.b16 %v1453_v51, %v1452_v49  ;;  %v1625_v2 = vunpack.c.l.b16 %v1588_v56  ;;  %v6388_v5 = vor.u32 %v7740_v53, %v6387_v54  ;;  %v1413_v6 = vshll.u32 %v8807_v4, 16  ;;  %v7780_v0 = vld [vmem:[%s10582_s5 + $0x1c8] sm:$0xff]  ;;  %v7741_v54 = vld [vmem:[#allocation2 + $0x2c] sm:$0xf0] }
  0x79   : > { %v609_v52 = vpack.c.bf16 %v589_v44, %v589_v44  ;;  %v590_v57 = vmul.f32 %v8319_v50, %v566_v47  ;;  %v1410_v21 = vor.u32 %v1409_v12, %v1406_v59  ;;  %v6481_v27 = vrot.slane %v1553_v10, 9  ;;  %v7804_v42 = vld [vmem:[%s10582_s5 + $0x268] sm:$0xff]  ;;  %v1860_v47 = vld [vmem:[#allocation2 + $0x18] sm:$0xf] }
  0x7a   : > { %v1631_v46 = vpack.c.b16 %v1625_v2, %v1624_v1  ;;  %v1415_v16 = vrot.slane %v1413_v6, 5  ;;  %2072 = vmatpush.bf16.msra.mxu3 %v7781_v58  ;;  %2791 = vmatpush.bf16.msra.mxu2 %v7812_v30  ;;  %v1591_v39 = vrot.slane %v8746_v37, 5  ;;  %v6482_v40 = vrot.slane %v1554_v33, 9  ;;  %v7779_v37 = vld [vmem:[%s10582_s5 + $0x1c0] sm:$0xff]  ;;  %v2104_v6 = vld [vmem:[#allocation2 + $0x10] sm:$0xe] }
  0x7b   : > { %629 = vst [vmem:[#allocation2 + $0x40] sm:$0xf] %v609_v52  ;;  %v610_v61 = vpack.c.bf16 %v590_v57, %v590_v57  ;;  %v1411_v23 = vrot.slane %v1410_v21, 4  ;;  %v1595_v41 = vrot.slane %v8748_v28, 5  ;;  %v1875_v28 = vshrl.u32 %v1858_v45, 16  ;;  %2248 = vmatpush.bf16.msra.mxu0 %v7787_v36  ;;  %2545 = vmatpush.bf16.msra.mxu1 %v7804_v42  ;;  %v7803_v42 = vld [vmem:[%s10582_s5 + $0x260] sm:$0xff] }
  0x7c   : > { %v1878_v51 = vshll.u32 %v1858_v45, 16  ;;  %v6391_v52 = vld [vmem:[#allocation2 + $0x28] sm:$0xf]  ;;  %v6556_v53 = vor.u32 %v7768_v32, %v6555_v31  ;;  %v1889_v56 = vshrl.u32 %v1860_v47, 16  ;;  %v1592_v12 = vsel %vm8433_vm6, %v6481_v27, %v1591_v39  ;;  %v8858_v36 = vld [vmem:[#allocation2 + $0x34] sm:$0xf0] }
  0x7d   : > { %630 = vst [vmem:[#allocation2 + $0x44] sm:$0x1] %v610_v61  ;;  %v1416_v44 = vsel %vm8480_vm7, %v1411_v23, %v1415_v16  ;;  %v1596_v61 = vsel %vm8433_vm6, %v6482_v40, %v1595_v41  ;;  %v1877_v2 = vrot.slane %v1875_v28, 4  ;;  %v6392_v21 = vor.u32 %v7741_v54, %v6391_v52  ;;  %v7834_v41 = vld [vmem:[%s10582_s5 + $0x338] sm:$0xff]  ;;  %v2296_v54 = vld [vmem:[%s8269_s13 + $0x48] sm:$0xf] }
  0x7e   : > { %2073 = vmatpush.bf16.msra.mxu3 %v7780_v0  ;;  %v1454_v59 = vunpack.c.l.b16 %v1416_v44  ;;  %2792 = vmatpush.bf16.msra.mxu2 %v7811_v15  ;;  %v1884_v10 = vshll.u32 %v8694_v29, 16  ;;  %v1626_v16 = vunpack.c.l.b16 %v1592_v12  ;;  %v1627_v58 = vunpack.c.l.b16 %v1596_v61  ;;  %v7810_v15 = vld [vmem:[%s10582_s5 + $0x298] sm:$0xff] }
  0x7f   : > { %v1891_v33 = vrot.slane %v1889_v56, 4  ;;  %v6645_v26 = vrot.slane %v2104_v6, 9  ;;  %v2130_v17 = vrot.slane %v8694_v29, 5  ;;  %v2134_v32 = vrot.slane %v8755_v55, 5  ;;  %3097 = vmatpush.bf16.msrb.mxu0 %v7834_v41  ;;  %2546 = vmatpush.bf16.msra.mxu1 %v7803_v42  ;;  %v7802_v28 = vld [vmem:[%s10582_s5 + $0x258] sm:$0xff]  ;;  %v7800_v41 = vld [vmem:[%s10582_s5 + $0x248] sm:$0xff] }
  0x80   : > { %1829 = vmatmul.bf16.vlgmr.msrb.gmra.mxu2 %v6552_v48  ;;  %v459_v48 = vld [vmem:[%s8236_s12 + $0x48] sm:$0xf]  ;;  %v1632_v27 = vpack.c.b16 %v1627_v58, %v1626_v16  ;;  %v8861_v40 = vrot.slane %v1884_v10, 5  ;;  %v1863_v6 = vld [vmem:[#allocation2 + $0x24] sm:$0x1]  ;;  %v7801_v58 = vld [vmem:[%s10582_s5 + $0x250] sm:$0xff] }
  0x81   : > { %v479_v57 = vunpack.c.l.bf16 %v459_v48  ;;  %v7822_v48 = vld [vmem:[%s10582_s5 + $0x2f8] sm:$0xff] }
  0x82   : > { %v1317_v13 = vld [vmem:[#allocation2 + $0x40] sm:$0xf]  ;;  %2074 = vmatpush.bf16.msra.mxu3 %v7779_v37  ;;  %v1599_v37 = vrot.slane %v8807_v4, 5  ;;  %2793 = vmatpush.bf16.msra.mxu2 %v7810_v15  ;;  %v7809_v4 = vld [vmem:[%s10582_s5 + $0x290] sm:$0xff] }
  0x83   : > { %v1418_v63 = vshrl.u32 %v1317_v13, 16  ;;  %v1421_v24 = vshll.u32 %v1317_v13, 16  ;;  %v2105_v13 = vld [vmem:[#allocation2 + $0x18] sm:$0xe]  ;;  %v503_v23 = vmul.f32 %v8760_v60, %v479_v57  ;;  %v1556_v39 = vld [vmem:[#allocation2 + $0x40] sm:$0xe]  ;;  %v2316_v57 = vunpack.c.l.bf16 %v2296_v54  ;;  %2547 = vmatpush.bf16.msra.mxu1 %v7802_v28 }
  0x84   : > { %v8825_v34 = vld [vmem:[#allocation2 + $0x44] sm:$0x1]  ;;  %v6646_v31 = vrot.slane %v2105_v13, 9  ;;  %v2580_v54 = vld [vmem:[#allocation2] sm:$0xf] }
  0x85   : > { %1530 = vmatmul.bf16.gmra.mxu0 %v1458_v62  ;;  %1279 = vmatmul.bf16.gmra.mxu3 %v6388_v5  ;;  %v1420_v18 = vrot.slane %v1418_v63, 4  ;;  %v1423_v35 = vrot.slane %v1421_v24, 5  ;;  %v1427_v11 = vshll.u32 %v8825_v34, 16  ;;  %v1892_v62 = vshll.u32 %v1860_v47, 16 }
  0x86   : > { %v1880_v5 = vrot.slane %v1878_v51, 5  ;;  %v527_v0 = vadd.f32 %v8767_v8, %v503_v23  ;;  %v8880_v45 = vsel %vm8433_vm6, %v6646_v31, %v2134_v32  ;;  %v7833_v51 = vld [vmem:[%s10582_s5 + $0x330] sm:$0xff]  ;;  %v1603_v56 = vrot.slane %v8825_v34, 5  ;;  %2963 = vmatpush.bf16.msrb.mxu3 %v7822_v48  ;;  %2794 = vmatpush.bf16.msra.mxu2 %v7809_v4 }
  0x87   : > { %v1424_v14 = vor.u32 %v1423_v35, %v1420_v18  ;;  %v1429_v49 = vrot.slane %v1427_v11, 5  ;;  %v1894_v24 = vrot.slane %v1892_v62, 5  ;;  %v8856_v18 = vld [vmem:[#allocation2 + $0x30] sm:$0xf]  ;;  %v1555_v35 = vld [vmem:[#allocation2 + $0x38] sm:$0xe]  ;;  %v2178_v62 = vunpack.c.l.b16 %v8880_v45  ;;  %3098 = vmatpush.bf16.msrb.mxu0 %v7833_v51  ;;  %2548 = vmatpush.bf16.msra.mxu1 %v7801_v58 }
  0x88   : > { %1699 = vmatmul.bf16.gmra.mxu1 %v1631_v46  ;;  %v1881_v30 = vor.u32 %v1880_v5, %v1877_v2  ;;  %v1898_v11 = vshll.u32 %v8755_v55, 16  ;;  %v547_v44 = vmax.f32 %v527_v0, 0.0  ;;  %v6483_v47 = vrot.slane %v1555_v35, 9  ;;  %v1864_v2 = vld [vmem:[#allocation2 + $0x28] sm:$0xf] }
  0x89   : > { %v1425_v22 = vrot.slane %v1424_v14, 4  ;;  %v1895_v29 = vor.u32 %v1894_v24, %v1891_v33  ;;  %v8876_v14 = vsel %vm8433_vm6, %v6645_v26, %v2130_v17  ;;  %v2340_v5 = vmul.f32 %v8715_v3, %v2316_v57  ;;  %v7742_v24 = vld [vmem:[#allocation2 + $0x3c] sm:$0xf0]  ;;  %v2282_v57 = vld [vmem:[%s8269_s13 + $0x10] sm:$0xf] }
  0x8a   : > { %v8872_v55 = vrot.slane %v1881_v30, 4  ;;  %v567_v52 = vmul.f32 0.0, %v547_v44  ;;  %v2177_v61 = vunpack.c.l.b16 %v8876_v14  ;;  %v1600_v13 = vsel %vm8433_vm6, %v6483_v47, %v1599_v37 }
  0x8b   : > { %v1430_v1 = vsel %vm8480_vm7, %v1425_v22, %v1429_v49  ;;  %v6560_v49 = vor.u32 %v8858_v36, %v8856_v18  ;;  %v6484_v22 = vrot.slane %v1556_v39, 9  ;;  %v1896_v12 = vrot.slane %v1895_v29, 4  ;;  %v2106_v39 = vld [vmem:[#allocation2 + $0x20] sm:$0xe]  ;;  %2549 = vmatpush.bf16.msra.mxu1 %v7800_v41  ;;  %v8982_v41 = vld [vmem:[#allocation2 + $0xc] sm:$0x1] }
  0x8c   : > { %v1455_v46 = vunpack.c.l.b16 %v1430_v1  ;;  %v591_v1 = vmul.f32 %v8319_v50, %v567_v52  ;;  %v1887_v34 = vsel %vm8480_vm7, %v8872_v55, %v8861_v40  ;;  %v1917_v33 = vshrl.u32 %v1864_v2, 16  ;;  %v2107_v40 = vld [vmem:[#allocation2 + $0x28] sm:$0xe] }
  0x8d   : > { %v1920_v23 = vshll.u32 %v1864_v2, 16  ;;  %v1604_v26 = vsel %vm8433_vm6, %v6484_v22, %v1603_v56  ;;  %v2364_v17 = vadd.f32 %v8736_v20, %v2340_v5  ;;  %v1912_v32 = vshll.u32 %v1863_v6, 16 }
  0x8e   : > { %v1459_v63 = vpack.c.b16 %v1455_v46, %v1454_v59  ;;  %v1862_v59 = vld [vmem:[#allocation2 + $0x20] sm:$0xf]  ;;  %v611_v16 = vpack.c.bf16 %v591_v1, %v591_v1  ;;  %v1919_v0 = vrot.slane %v1917_v33, 4  ;;  %v2138_v29 = vrot.slane %v1863_v6, 5  ;;  %v2582_v6 = vld [vmem:[#allocation2 + $0x8] sm:$0xf] }
  0x8f   : > { %v1903_v46 = vshrl.u32 %v1862_v59, 16  ;;  %v1906_v10 = vshll.u32 %v1862_v59, 16  ;;  %v1922_v18 = vrot.slane %v1920_v23, 5  ;;  %v2384_v36 = vmax.f32 %v2364_v17, 0.0  ;;  %v7821_v33 = vld [vmem:[%s10582_s5 + $0x2f0] sm:$0xff]  ;;  %v7832_v23 = vld [vmem:[%s10582_s5 + $0x328] sm:$0xff] }
  0x90   : > { %1834 = vmatmul.bf16.gmra.mxu2 %v6556_v53  ;;  %v1900_v53 = vrot.slane %v1898_v11, 5  ;;  %631 = vst [vmem:[#allocation2 + $0x48] sm:$0xf] %v611_v16  ;;  %v6647_v15 = vrot.slane %v2106_v39, 9  ;;  %v6648_v44 = vrot.slane %v2107_v40, 9  ;;  %v2185_v14 = vpack.c.b16 %v2178_v62, %v2177_v61  ;;  %2964 = vmatpush.bf16.msrb.mxu3 %v7821_v33 }
  0x91   : > { %v1905_v30 = vrot.slane %v1903_v46, 4  ;;  %v1908_v31 = vrot.slane %v1906_v10, 5  ;;  %v1923_v42 = vor.u32 %v1922_v18, %v1919_v0  ;;  %v1628_v45 = vunpack.c.l.b16 %v1600_v13  ;;  %v8938_v62 = vld [vmem:[%s8269_s13 + $0x18] sm:$0xf]  ;;  %v2289_v46 = vld [vmem:[%s8269_s13 + $0x2c] sm:$0x1]  ;;  %3099 = vmatpush.bf16.msrb.mxu0 %v7832_v23 }
  0x92   : > { %v1629_v47 = vunpack.c.l.b16 %v1604_v26  ;;  %v2404_v48 = vmul.f32 0.0, %v2384_v36  ;;  %v8920_v28 = vunpack.c.l.b16 %v1887_v34  ;;  %v8924_v52 = vrot.slane %v1912_v32, 5  ;;  %v6563_v18 = vld [vmem:[#allocation2 + $0x40] sm:$0xf] }
  0x93   : > { %v1909_v11 = vor.u32 %v1908_v31, %v1905_v30  ;;  %v2139_v56 = vsel %vm8433_vm6, %v6647_v15, %v2138_v29  ;;  %v8935_v59 = vrot.slane %v1923_v42, 4  ;;  %v2600_v61 = vshll.u32 %v2580_v54, 16  ;;  %v7808_v31 = vld [vmem:[%s10582_s5 + $0x288] sm:$0xff]  ;;  %v7831_v29 = vld [vmem:[%s10582_s5 + $0x320] sm:$0xff] }
  0x94   : > { %v1633_v1 = vpack.c.b16 %v1629_v47, %v1628_v45  ;;  %v2179_v10 = vunpack.c.l.b16 %v2139_v56  ;;  %v2309_v58 = vunpack.c.l.bf16 %v2289_v46  ;;  %v2302_v26 = vunpack.c.l.bf16 %v2282_v57  ;;  %2795 = vmatpush.bf16.msra.mxu2 %v7808_v31  ;;  %v7807_v45 = vld [vmem:[%s10582_s5 + $0x280] sm:$0xff] }
  0x95   : > { %1535 = vmatmul.bf16.gmra.mxu0 %v1459_v63  ;;  %1284 = vmatmul.bf16.gmra.mxu3 %v6392_v21  ;;  %v1865_v21 = vld [vmem:[#allocation2 + $0x2c] sm:$0x1]  ;;  %v6395_v63 = vld [vmem:[#allocation2 + $0x38] sm:$0xf]  ;;  %v8933_v4 = vrot.slane %v1909_v11, 4  ;;  %v2602_v32 = vrot.slane %v2600_v61, 5  ;;  %v2304_v0 = vunpack.c.l.bf16 %v8938_v62 }
  0x96   : > { %v1926_v35 = vshll.u32 %v1865_v21, 16  ;;  %v2142_v55 = vrot.slane %v1865_v21, 5  ;;  %v6396_v37 = vor.u32 %v7742_v24, %v6395_v63  ;;  %v2287_v21 = vld [vmem:[%s8269_s13 + $0x24] sm:$0x1]  ;;  %v2333_v36 = vmul.f32 %v8715_v3, %v2309_v58  ;;  %v7820_v11 = vld [vmem:[%s10582_s5 + $0x2e8] sm:$0xff]  ;;  %3100 = vmatpush.bf16.msrb.mxu0 %v7831_v29 }
  0x97   : > { %v8940_v2 = vld [vmem:[#allocation2 + $0x44] sm:$0xf0]  ;;  %v2307_v16 = vunpack.c.l.bf16 %v2287_v21  ;;  %v7799_v63 = vld [vmem:[%s10582_s5 + $0x240] sm:$0xff]  ;;  %v1915_v30 = vsel %vm8480_vm7, %v8933_v4, %v8924_v52  ;;  %v2606_v39 = vshll.u32 %v8490_v19, 16  ;;  %v2611_v15 = vshrl.u32 %v2582_v6, 16  ;;  %2965 = vmatpush.bf16.msrb.mxu3 %v7820_v11 }
  0x98   : > { %1704 = vmatmul.bf16.gmra.mxu1 %v1632_v27  ;;  %v1901_v27 = vsel %vm8480_vm7, %v1896_v12, %v1900_v53  ;;  %v2424_v53 = vpack.c.bf16 %v2404_v48, %v2404_v48  ;;  %v8926_v22 = vrot.slane %v1926_v35, 5  ;;  %v2597_v12 = vshrl.u32 %v2580_v54, 16  ;;  %v8942_v34 = vld [vmem:[#allocation2 + $0x48] sm:$0xf]  ;;  %v4111_v48 = vld [vmem:[%s8346_s8 + $0xc] sm:$0x1]  ;;  %2796 = vmatpush.bf16.msra.mxu2 %v7807_v45 }
  0x99   : > { %v8922_v51 = vunpack.c.l.b16 %v1901_v27  ;;  %v8944_v5 = vld [vmem:[#allocation2 + $0x48] sm:$0xe]  ;;  %v2331_v27 = vmul.f32 %v8715_v3, %v2307_v16  ;;  %2550 = vmatpush.bf16.msra.mxu1 %v7799_v63  ;;  %v2620_v47 = vshll.u32 %v8982_v41, 16  ;;  %v2326_v54 = vmul.f32 %v8715_v3, %v2302_v26  ;;  %v1868_v16 = vld [vmem:[#allocation2 + $0x38] sm:$0xf] }
  0x9a   : > { %2444 = vst [vmem:[#allocation2 + $0x48] sm:$0xf] %v2424_v53  ;;  %v2599_v24 = vrot.slane %v2597_v12, 4  ;;  %v1929_v35 = vsel %vm8480_vm7, %v8935_v59, %v8926_v22  ;;  %v6564_v53 = vor.u32 %v8940_v2, %v6563_v18  ;;  %v2613_v56 = vrot.slane %v2611_v15, 4  ;;  %v6719_v63 = vld [vmem:[#allocation2] sm:$0xf] }
  0x9b   : > { %v2011_v17 = vpack.c.b16 %v8922_v51, %v8920_v28  ;;  %v4131_v57 = vunpack.c.l.bf16 %v4111_v48  ;;  %v2622_v26 = vrot.slane %v2620_v47, 5  ;;  %v9006_v18 = vld [vmem:[%s10581_s4] ss:$0 sm:$0xff]  ;;  %v1948_v15 = vshll.u32 %v1868_v16, 16  ;;  %v1869_v47 = vld [vmem:[#allocation2 + $0x3c] sm:$0x1] }
  0x9c   : > { %v2603_v42 = vor.u32 %v2602_v32, %v2599_v24  ;;  %v7795_v24 = vld [vmem:[#allocation2 + $0x4] sm:$0xf0]  ;;  %v2109_v48 = vld [vmem:[#allocation2 + $0x38] sm:$0xe]  ;;  %v460_v22 = vld [vmem:[%s8236_s12 + $0x4c] sm:$0x1] }
  0x9d   : > { %v7830_v51 = vld [vmem:[%s10582_s5 + $0x318] sm:$0xff]  ;;  %s6207_s12 = sshll.u32 %s10601_s25, 6 }
  0x9e   : > { %v2604_v46 = vrot.slane %v2603_v42, 4  ;;  %v1945_v42 = vshrl.u32 %v1868_v16, 16  ;;  %3101 = vmatpush.bf16.msrb.mxu0 %v7830_v51 }
  0xa0   : > { %1839 = vmatmul.bf16.gmra.mxu2 %v6560_v49  ;;  %v2143_v49 = vsel %vm8433_vm6, %v6648_v44, %v2142_v55  ;;  %v2614_v44 = vshll.u32 %v2582_v6, 16  ;;  %v2355_v55 = vadd.f32 %v8736_v20, %v2331_v27  ;;  %v8993_v6 = vld [vmem:[#allocation2 + $0x34] sm:$0x1] }
  0xa1   : > { %v2180_v13 = vunpack.c.l.b16 %v2143_v49  ;;  %v1940_v11 = vshll.u32 %v8993_v6, 16 }
  0xa2   : > { %v2616_v49 = vrot.slane %v2614_v44, 5  ;;  %v2375_v12 = vmax.f32 %v2355_v55, 0.0  ;;  %v2108_v44 = vld [vmem:[#allocation2 + $0x30] sm:$0xe] }
  0xa3   : > { %v8977_v40 = vpack.c.b16 %v2180_v13, %v2179_v10  ;;  %v8998_v13 = vld [vmem:[%s10580_s3] ss:$0 sm:$0xff]  ;;  %v6649_v62 = vrot.slane %v2108_v44, 9 }
  0xa4   : > { %v2617_v10 = vor.u32 %v2616_v49, %v2613_v56  ;;  %v4155_v2 = vmul.f32 %v8998_v13, %v4131_v57  ;;  %v2395_v33 = vmul.f32 %v8310_v43, %v2375_v12  ;;  %v2350_v56 = vadd.f32 %v8736_v20, %v2326_v54 }
  0xa5   : > { %2249 = vmatmul.bf16.vlgmr.msra.gmra.mxu0 %v2185_v14  ;;  %1289 = vmatmul.bf16.gmra.mxu3 %v6396_v37  ;;  %v2357_v14 = vadd.f32 %v8736_v20, %v2333_v36  ;;  %v1866_v37 = vld [vmem:[#allocation2 + $0x30] sm:$0xf]  ;;  %v1947_v57 = vrot.slane %v1945_v42, 4  ;;  %v1950_v12 = vrot.slane %v1948_v15, 5  ;;  %v9023_v54 = vrot.slane %v1940_v11, 5  ;;  %v7818_v11 = vld [vmem:[%s10582_s5 + $0x2d8] sm:$0xff] }
  0xa6   : > { %v1931_v21 = vshrl.u32 %v1866_v37, 16  ;;  %v1934_v58 = vshll.u32 %v1866_v37, 16  ;;  %v2618_v32 = vrot.slane %v2617_v10, 4  ;;  %v4179_v27 = vadd.f32 %v9006_v18, %v4155_v2 }
  0xa7   : > { %v2377_v61 = vmax.f32 %v2357_v14, 0.0  ;;  %v6720_v14 = vor.u32 %v7795_v24, %v6719_v63  ;;  %v2328_v37 = vmul.f32 %v8715_v3, %v2304_v0  ;;  %v2146_v0 = vrot.slane %v8993_v6, 5 }
  0xa8   : > { %1709 = vmatmul.bf16.gmra.mxu1 %v1633_v1  ;;  %v2608_v1 = vrot.slane %v2606_v39, 5  ;;  %v1933_v31 = vrot.slane %v1931_v21, 4  ;;  %v1936_v36 = vrot.slane %v1934_v58, 5  ;;  %v2415_v39 = vpack.c.bf16 %v2395_v33, %v2395_v33  ;;  %v2291_v58 = vld [vmem:[%s8269_s13 + $0x34] sm:$0x1] }
  0xa9   : > { %v2397_v23 = vmul.f32 %v8310_v43, %v2377_v61  ;;  %v4199_v45 = vmax.f32 %v4179_v27, 0.0  ;;  %v2623_v61 = vsel %vm8480_vm7, %v2618_v32, %v2622_v26  ;;  %v1951_v10 = vor.u32 %v1950_v12, %v1947_v57  ;;  %v2293_v33 = vld [vmem:[%s8269_s13 + $0x3c] sm:$0x1]  ;;  %v9084_v57 = vld [vmem:[#allocation2 + $0x14] sm:$0x1] }
  0xaa   : > { %2435 = vst [vmem:[#allocation2 + $0x24] sm:$0x1] %v2415_v39  ;;  %v1937_v49 = vor.u32 %v1936_v36, %v1933_v31  ;;  %v2352_v6 = vadd.f32 %v8736_v20, %v2328_v37  ;;  %v9037_v63 = vunpack.c.l.b16 %v2623_v61  ;;  %v2311_v26 = vunpack.c.l.bf16 %v2291_v58  ;;  %v9054_v39 = vld [vmem:[#allocation2 + $0xc] sm:$0x1] }
  0xab   : > { %v2417_v29 = vpack.c.bf16 %v2397_v23, %v2397_v23  ;;  %v4219_v21 = vmul.f32 %v8310_v43, %v4199_v45  ;;  %v2150_v23 = vrot.slane %v1869_v47, 5  ;;  %v2313_v28 = vunpack.c.l.bf16 %v2293_v33  ;;  %v7829_v45 = vld [vmem:[%s10582_s5 + $0x310] sm:$0xff] }
  0xac   : > { %v9039_v24 = vrot.slane %v1937_v49, 4  ;;  %v2147_v32 = vsel %vm8433_vm6, %v6649_v62, %v2146_v0  ;;  %v2370_v36 = vmax.f32 %v2350_v56, 0.0  ;;  %v2335_v15 = vmul.f32 %v8715_v3, %v2311_v26  ;;  %v7849_v56 = vld [vmem:[%s10582_s5 + $0x3b0] sm:$0xff]  ;;  %v9093_v62 = vld [vmem:[#allocation2 + $0x1c] sm:$0x1]  ;;  %3102 = vmatpush.bf16.msrb.mxu0 %v7829_v45 }
  0xad   : > { %v9010_v55 = vpop.f32.mrf.mxu1  ;;  %2437 = vst [vmem:[#allocation2 + $0x2c] sm:$0x1] %v2417_v29  ;;  %v4243_v16 = vmul.f32 %v8353_v9, %v4219_v21  ;;  %v1952_v29 = vrot.slane %v1951_v10, 4  ;;  %v2337_v44 = vmul.f32 %v8715_v3, %v2313_v28  ;;  %v9076_v3 = vunpack.c.l.b16 %v1929_v35 }
  0xae   : > { %v2390_v37 = vmul.f32 %v8300_v38, %v2370_v36  ;;  %v2359_v52 = vadd.f32 %v8736_v20, %v2335_v15  ;;  %v1943_v0 = vsel %vm8480_vm7, %v9039_v24, %v9023_v54  ;;  %v2634_v33 = vshll.u32 %v9084_v57, 16  ;;  %v2286_v24 = vld [vmem:[%s8269_s13 + $0x20] sm:$0xf]  ;;  %v2288_v15 = vld [vmem:[%s8269_s13 + $0x28] sm:$0xf] }
  0xaf   : > { %v4263_v31 = vpack.c.bf16 %v4243_v16, %v4243_v16  ;;  %v2361_v4 = vadd.f32 %v8736_v20, %v2337_v44  ;;  %v1976_v36 = vshll.u32 %v8942_v34, 16 }
  0xb0   : > { %1844 = vmatmul.bf16.gmra.mxu2 %v6564_v53  ;;  %v2609_v53 = vsel %vm8480_vm7, %v2604_v46, %v2608_v1  ;;  %v1954_v1 = vshll.u32 %v1869_v47, 16  ;;  %v6650_v46 = vrot.slane %v2109_v48, 9  ;;  %v7842_v47 = vld [vmem:[%s10582_s5 + $0x378] sm:$0xff]  ;;  %v2372_v48 = vmax.f32 %v2352_v6, 0.0 }
  0xb1   : > { %v9028_v2 = vunpack.c.l.b16 %v2609_v53  ;;  %4283 = vst [vmem:[#allocation2 + $0xc] sm:$0x1] %v4263_v31  ;;  %3343 = vmatpush.bf16.msrb.mxu1 %v7842_v47  ;;  %v2410_v21 = vpack.c.bf16 %v2390_v37, %v2390_v37  ;;  %v9122_v44 = vrot.slane %v2634_v33, 5  ;;  %v9126_v47 = vld [vmem:[#allocation2 + $0x40] sm:$0xe] }
  0xb2   : > { %v2151_v27 = vsel %vm8433_vm6, %v6650_v46, %v2150_v23  ;;  %v1956_v42 = vrot.slane %v1954_v1, 5  ;;  %v2392_v61 = vmul.f32 %v8300_v38, %v2372_v48  ;;  %v2379_v1 = vmax.f32 %v2359_v52, 0.0 }
  0xb3   : > { %v2182_v49 = vunpack.c.l.b16 %v2151_v27  ;;  %v2733_v35 = vpack.c.b16 %v9037_v63, %v9028_v2  ;;  %v2381_v46 = vmax.f32 %v2361_v4, 0.0  ;;  %v9101_v2 = vld [vmem:[#allocation2 + $0x44] sm:$0x1]  ;;  %2430 = vst [vmem:[#allocation2 + $0x10] sm:$0xf] %v2410_v21  ;;  %v480_v23 = vunpack.c.l.bf16 %v460_v22 }
  0xb4   : > { %v1957_v10 = vsel %vm8480_vm7, %v1952_v29, %v1956_v42  ;;  %v2412_v58 = vpack.c.bf16 %v2392_v61, %v2392_v61  ;;  %v2399_v54 = vmul.f32 %v8310_v43, %v2379_v1  ;;  %v2648_v63 = vshll.u32 %v9093_v62, 16  ;;  %v7817_v61 = vld [vmem:[%s10582_s5 + $0x2d0] sm:$0xff]  ;;  %v7828_v1 = vld [vmem:[%s10582_s5 + $0x308] sm:$0xff] }
  0xb5   : > { %2254 = vmatmul.bf16.gmra.mxu0 %v8977_v40  ;;  %2075 = vmatmul.bf16.vlgmr.msra.gmra.mxu3 %v2011_v17  ;;  %v7819_v40 = vld [vmem:[%s10582_s5 + $0x2e0] sm:$0xff]  ;;  %v7850_v17 = vld [vmem:[%s10582_s5 + $0x3b8] sm:$0xff]  ;;  %v9087_v59 = vpop.f32.mrf.mxu1  ;;  %v504_v26 = vmul.f32 %v8760_v60, %v480_v23  ;;  %v1973_v27 = vshrl.u32 %v8942_v34, 16  ;;  %v9116_v29 = vunpack.c.l.b16 %v1943_v0  ;;  %v9118_v42 = vunpack.c.l.b16 %v1957_v10 }
  0xb6   : > { %2966 = vmatpush.bf16.msrb.mxu3 %v7819_v40  ;;  %3517 = vmatpush.bf16.msrb.mxu2 %v7850_v17  ;;  %v2401_v40 = vmul.f32 %v8310_v43, %v2381_v46  ;;  %2432 = vst [vmem:[#allocation2 + $0x18] sm:$0xf] %v2412_v58  ;;  %v1968_v17 = vshll.u32 %v9101_v2, 16  ;;  %v2419_v31 = vpack.c.bf16 %v2399_v54, %v2399_v54  ;;  %v9124_v45 = vrot.slane %v2648_v63, 5  ;;  %v2297_v63 = vld [vmem:[%s8269_s13 + $0x4c] sm:$0x1] }
  0xb7   : > { %v528_v60 = vadd.f32 %v8767_v8, %v504_v26  ;;  %v2306_v48 = vunpack.c.l.bf16 %v2286_v24  ;;  %v9136_v52 = vrot.slane %v1976_v36, 5  ;;  %v2013_v4 = vpack.c.b16 %v9118_v42, %v9116_v29  ;;  %3103 = vmatpush.bf16.msrb.mxu0 %v7828_v1 }
  0xb8   : > { %2551 = vmatmul.bf16.vlgmr.msra.gmra.mxu1 %v6720_v14  ;;  %v9069_v14 = vunpack.c.l.b16 %v1915_v30  ;;  %v2181_v30 = vunpack.c.l.b16 %v2147_v32  ;;  %v2421_v32 = vpack.c.bf16 %v2401_v40, %v2401_v40  ;;  %2439 = vst [vmem:[#allocation2 + $0x34] sm:$0x1] %v2419_v31  ;;  %v6651_v10 = vrot.slane %v9126_v47, 9  ;;  %v7841_v31 = vld [vmem:[%s10582_s5 + $0x370] sm:$0xff] }
  0xb9   : > { %v548_v34 = vmax.f32 %v528_v60, 0.0  ;;  %v2308_v46 = vunpack.c.l.bf16 %v2288_v15  ;;  %v7816_v15 = vld [vmem:[%s10582_s5 + $0x2c8] sm:$0xff]  ;;  %3344 = vmatpush.bf16.msrb.mxu1 %v7841_v31  ;;  %v2290_v31 = vld [vmem:[%s8269_s13 + $0x30] sm:$0xf] }
  0xba   : > { %2967 = vmatpush.bf16.msrb.mxu3 %v7818_v11  ;;  %3518 = vmatpush.bf16.msrb.mxu2 %v7849_v56  ;;  %v2187_v6 = vpack.c.b16 %v2182_v49, %v2181_v30  ;;  %v2012_v11 = vpack.c.b16 %v9076_v3, %v9069_v14  ;;  %2441 = vst [vmem:[#allocation2 + $0x3c] sm:$0x1] %v2421_v32  ;;  %v9132_v3 = vrot.slane %v1968_v17, 5  ;;  %v6723_v8 = vld [vmem:[#allocation2 + $0x10] sm:$0xf]  ;;  %v7848_v32 = vld [vmem:[%s10582_s5 + $0x3a8] sm:$0xff] }
  0xbb   : > { %v870_v53 = vpop.f32.mrf.mxu0  ;;  %v1140_v20 = vpop.f32.mrf.mxu2  ;;  %v2584_v56 = vld [vmem:[#allocation2 + $0x10] sm:$0xf]  ;;  %v2294_v17 = vld [vmem:[%s8269_s13 + $0x40] sm:$0xf] }
  0xbc   : > { %v972_v12 = vadd.f32 %v9010_v55, %v870_v53  ;;  %v1870_v55 = vld [vmem:[#allocation2 + $0x40] sm:$0xf]  ;;  %v9134_v53 = vrot.slane %v1973_v27, 4  ;;  %v2625_v49 = vshrl.u32 %v2584_v56, 16  ;;  %v2628_v22 = vshll.u32 %v2584_v56, 16 }
  0xbd   : > { %v1959_v28 = vshrl.u32 %v1870_v55, 16  ;;  %v1962_v51 = vshll.u32 %v1870_v55, 16  ;;  %v7796_v21 = vld [vmem:[#allocation2 + $0x14] sm:$0xf0]  ;;  %v9153_v55 = vld [vmem:[%s10580_s3] ss:$0 sm:$0xff]  ;;  %v2314_v60 = vunpack.c.l.bf16 %v2294_v17 }
  0xbe   : > { %v9103_v16 = vadd.f32 %v1140_v20, %v972_v12  ;;  %v2295_v12 = vld [vmem:[%s8269_s13 + $0x44] sm:$0x1]  ;;  %v2586_v20 = vld [vmem:[#allocation2 + $0x18] sm:$0xf]  ;;  %v2330_v58 = vmul.f32 %v9153_v55, %v2306_v48  ;;  %v6724_v23 = vor.u32 %v7796_v21, %v6723_v8  ;;  %v2627_v54 = vrot.slane %v2625_v49, 4  ;;  %2968 = vmatpush.bf16.msrb.mxu3 %v7817_v61  ;;  %3519 = vmatpush.bf16.msrb.mxu2 %v7848_v32 }
  0xbf   : > { %v9128_v37 = vrot.slane %v1959_v28, 4  ;;  %v9130_v14 = vrot.slane %v1962_v51, 5  ;;  %v2315_v0 = vunpack.c.l.bf16 %v2295_v12  ;;  %v2630_v40 = vrot.slane %v2628_v22, 5  ;;  %v7827_v48 = vld [vmem:[%s10582_s5 + $0x300] sm:$0xff] }
  0xc0   : > { %2797 = vmatmul.bf16.vlgmr.msra.gmra.mxu2 %v2733_v35  ;;  %v568_v35 = vmul.f32 0.0, %v548_v34  ;;  %v2642_v24 = vshll.u32 %v2586_v20, 16  ;;  %v2317_v51 = vunpack.c.l.bf16 %v2297_v63  ;;  %v2332_v8 = vmul.f32 %v9153_v55, %v2308_v46  ;;  %v9183_v49 = vld [vmem:[%s10581_s4] ss:$0 sm:$0xff]  ;;  %3104 = vmatpush.bf16.msrb.mxu0 %v7827_v48 }
  0xc1   : > { %v1965_v28 = vor.u32 %v9130_v14, %v9128_v37  ;;  %v2631_v36 = vor.u32 %v2630_v40, %v2627_v54  ;;  %v2354_v12 = vadd.f32 %v9183_v49, %v2330_v58 }
  0xc2   : > { %v592_v26 = vmul.f32 %v8319_v50, %v568_v35  ;;  %v2339_v50 = vmul.f32 %v9153_v55, %v2315_v0  ;;  %v2644_v34 = vrot.slane %v2642_v24, 5  ;;  %v2341_v14 = vmul.f32 %v9153_v55, %v2317_v51  ;;  %2969 = vmatpush.bf16.msrb.mxu3 %v7816_v15 }
  0xc3   : > { %v9156_v33 = vpop.f32.mrf.mxu0  ;;  %v9169_v27 = vpop.f32.mrf.mxu2  ;;  %v2632_v56 = vrot.slane %v2631_v36, 4  ;;  %v2338_v35 = vmul.f32 %v9153_v55, %v2314_v60  ;;  %v2356_v0 = vadd.f32 %v9183_v49, %v2332_v8  ;;  %v2374_v54 = vmax.f32 %v2354_v12, 0.0 }
  0xc4   : > { %v612_v37 = vpack.c.bf16 %v592_v26, %v592_v26  ;;  %v2363_v22 = vadd.f32 %v9183_v49, %v2339_v50  ;;  %v2365_v21 = vadd.f32 %v9183_v49, %v2341_v14  ;;  %v1966_v32 = vrot.slane %v1965_v28, 4  ;;  %v7815_v50 = vld [vmem:[%s10582_s5 + $0x2c0] sm:$0xff] }
  0xc5   : > { %2259 = vmatmul.bf16.gmra.mxu0 %v2187_v6  ;;  %2080 = vmatmul.bf16.gmra.mxu3 %v2012_v11  ;;  %v9140_v30 = vpop.f32.mrf.mxu1  ;;  %v2639_v6 = vshrl.u32 %v2586_v20, 16  ;;  %v2154_v20 = vrot.slane %v9101_v2, 5  ;;  %v2637_v46 = vsel %vm8480_vm7, %v2632_v56, %v9122_v44  ;;  %v2362_v58 = vadd.f32 %v9183_v49, %v2338_v35  ;;  %v2292_v35 = vld [vmem:[%s8269_s13 + $0x38] sm:$0xf] }
  0xc6   : > { %632 = vst [vmem:[#allocation2 + $0x4c] sm:$0x1] %v612_v37  ;;  %v2385_v63 = vmax.f32 %v2365_v21, 0.0  ;;  %v2376_v2 = vmax.f32 %v2356_v0, 0.0  ;;  %v2727_v24 = vunpack.c.l.b16 %v2637_v46  ;;  %v2394_v17 = vmul.f32 %v8300_v38, %v2374_v54  ;;  %2970 = vmatpush.bf16.msrb.mxu3 %v7815_v50 }
  0xc7   : > { %v2641_v11 = vrot.slane %v2639_v6, 4  ;;  %v1979_v6 = vor.u32 %v9136_v52, %v9134_v53  ;;  %v2382_v51 = vmax.f32 %v2362_v58, 0.0  ;;  %v7840_v53 = vld [vmem:[%s10582_s5 + $0x368] sm:$0xff]  ;;  %v7847_v52 = vld [vmem:[%s10582_s5 + $0x3a0] sm:$0xff]  ;;  %v2155_v28 = vsel %vm8433_vm6, %v6651_v10, %v2154_v20 }
  0xc8   : > { %2556 = vmatmul.bf16.gmra.mxu1 %v6724_v23  ;;  %v2383_v23 = vmax.f32 %v2363_v22, 0.0  ;;  %v2405_v36 = vmul.f32 0.0, %v2385_v63  ;;  %v6652_v8 = vrot.slane %v8944_v5, 9  ;;  %v2414_v56 = vpack.c.bf16 %v2394_v17, %v2394_v17  ;;  %v9224_v22 = vld [vmem:[#allocation2 + $0x2c] sm:$0x1]  ;;  %3520 = vmatpush.bf16.msrb.mxu2 %v7847_v52 }
  0xc9   : > { %v2645_v61 = vor.u32 %v2644_v34, %v2641_v11  ;;  %v2396_v11 = vmul.f32 %v8300_v38, %v2376_v2  ;;  %v2402_v48 = vmul.f32 %v8300_v38, %v2382_v51  ;;  %v9220_v34 = vld [vmem:[#allocation2 + $0x24] sm:$0x1]  ;;  %3345 = vmatpush.bf16.msrb.mxu1 %v7840_v53  ;;  %v2310_v20 = vunpack.c.l.bf16 %v2290_v31  ;;  %v4108_v2 = vld [vmem:[%s8346_s8] sm:$0xf]  ;;  %v9258_v52 = vld [vmem:[#allocation2 + $0x34] sm:$0x1] }
  0xca   : > { %v2403_v26 = vmul.f32 %v8310_v43, %v2383_v23  ;;  %v2425_v14 = vpack.c.bf16 %v2405_v36, %v2405_v36  ;;  %v2662_v23 = vshll.u32 %v9220_v34, 16  ;;  %v1971_v58 = vsel %vm8480_vm7, %v1966_v32, %v9132_v3  ;;  %2434 = vst [vmem:[#allocation2 + $0x20] sm:$0xf] %v2414_v56  ;;  %v7839_v3 = vld [vmem:[%s10582_s5 + $0x360] sm:$0xff] }
  0xcb   : > { %v2646_v40 = vrot.slane %v2645_v61, 4  ;;  %v2422_v10 = vpack.c.bf16 %v2402_v48, %v2402_v48  ;;  %v2416_v21 = vpack.c.bf16 %v2396_v11, %v2396_v11  ;;  %v2183_v54 = vunpack.c.l.b16 %v2155_v28  ;;  %v9248_v31 = vld [vmem:[#allocation2] sm:$0xe]  ;;  %v9255_v11 = vld [vmem:[#allocation2 + $0x8] sm:$0xe]  ;;  %v7846_v28 = vld [vmem:[%s10582_s5 + $0x398] sm:$0xff] }
  0xcc   : > { %v2676_v63 = vshll.u32 %v9224_v22, 16  ;;  %v1980_v51 = vrot.slane %v1979_v6, 4  ;;  %v2334_v32 = vmul.f32 %v9153_v55, %v2310_v20  ;;  %v9251_v6 = vunpack.c.l.b16 %v1971_v58  ;;  %3521 = vmatpush.bf16.msrb.mxu2 %v7846_v28 }
  0xcd   : > { %v9191_v1 = vpop.f32.mrf.mxu1  ;;  %v2651_v44 = vsel %vm8480_vm7, %v2646_v40, %v9124_v45  ;;  %v2423_v45 = vpack.c.bf16 %v2403_v26, %v2403_v26  ;;  %v1873_v61 = vld [vmem:[#allocation2 + $0x4c] sm:$0x1]  ;;  %2442 = vst [vmem:[#allocation2 + $0x40] sm:$0xf] %v2422_v10  ;;  %v2312_v26 = vunpack.c.l.bf16 %v2292_v35  ;;  %v9253_v36 = vrot.slane %v2662_v23, 5  ;;  %3346 = vmatpush.bf16.msrb.mxu1 %v7839_v3  ;;  %v7869_v35 = vld [vmem:[%s10582_s5 + $0x430] sm:$0xff] }
  0xce   : > { %v2728_v60 = vunpack.c.l.b16 %v2651_v44  ;;  %v1982_v46 = vshll.u32 %v1873_v61, 16  ;;  %2445 = vst [vmem:[#allocation2 + $0x4c] sm:$0x1] %v2425_v14  ;;  %v2158_v5 = vrot.slane %v1873_v61, 5  ;;  %v4128_v44 = vunpack.c.l.bf16 %v4108_v2 }
  0xcf   : > { %2443 = vst [vmem:[#allocation2 + $0x44] sm:$0x1] %v2423_v45  ;;  %v880_v0 = vpop.f32.mrf.mxu3  ;;  %v2336_v53 = vmul.f32 %v9153_v55, %v2312_v26  ;;  %v2358_v48 = vadd.f32 %v9183_v49, %v2334_v32  ;;  %v7862_v55 = vld [vmem:[%s10582_s5 + $0x3f8] sm:$0xff]  ;;  %v2852_v61 = vrot.slane %v8490_v19, 5  ;;  %v6814_v10 = vrot.slane %v9255_v11, 9  ;;  %v7835_v11 = vld [vmem:[%s10582_s5 + $0x340] sm:$0xff] }
  0xd0   : > { %v2734_v12 = vpack.c.b16 %v2728_v60, %v2727_v24  ;;  %v7870_v24 = vld [vmem:[%s10582_s5 + $0x438] sm:$0xff]  ;;  %v1984_v17 = vrot.slane %v1982_v46, 5  ;;  %v2159_v29 = vsel %vm8433_vm6, %v6652_v8, %v2158_v5  ;;  %2436 = vst [vmem:[#allocation2 + $0x28] sm:$0xf] %v2416_v21  ;;  %v4152_v45 = vmul.f32 %v8998_v13, %v4128_v44  ;;  %3651 = vmatpush.bf16.msra.mxu3 %v7862_v55  ;;  %v7837_v5 = vld [vmem:[%s10582_s5 + $0x350] sm:$0xff] }
  0xd1   : > { %3897 = vmatpush.bf16.msra.mxu0 %v7870_v24  ;;  %v6813_v13 = vrot.slane %v9248_v31, 9  ;;  %v2360_v56 = vadd.f32 %v9183_v49, %v2336_v53  ;;  %v2856_v49 = vrot.slane %v8982_v41, 5  ;;  %v2690_v46 = vshll.u32 %v9258_v52, 16  ;;  %v6727_v23 = vld [vmem:[#allocation2 + $0x20] sm:$0xf]  ;;  %v7845_v55 = vld [vmem:[%s10582_s5 + $0x390] sm:$0xff] }
  0xd2   : > { %v875_v15 = vpop.f32.mrf.mxu0  ;;  %2802 = vmatmul.bf16.gmra.mxu2 %v2734_v12  ;;  %v1985_v14 = vsel %vm8480_vm7, %v1980_v51, %v1984_v17  ;;  %v9281_v12 = vld [vmem:[#allocation2 + $0x3c] sm:$0x1]  ;;  %v4176_v21 = vadd.f32 %v9006_v18, %v4152_v45  ;;  %v2588_v18 = vld [vmem:[#allocation2 + $0x20] sm:$0xf] }
  0xd3   : > { %v977_v37 = vadd.f32 %v9140_v30, %v875_v15  ;;  %v1145_v47 = vpop.f32.mrf.mxu2  ;;  %v9260_v15 = vrot.slane %v2676_v63, 5  ;;  %v2010_v19 = vunpack.c.l.b16 %v1985_v14  ;;  %v2704_v41 = vshll.u32 %v9281_v12, 16  ;;  %v7836_v14 = vld [vmem:[%s10582_s5 + $0x348] sm:$0xff]  ;;  %3522 = vmatpush.bf16.msrb.mxu2 %v7845_v55  ;;  %v2829_v55 = vld [vmem:[#allocation2 + $0x18] sm:$0xe] }
  0xd4   : > { %v2653_v26 = vshrl.u32 %v2588_v18, 16  ;;  %v2656_v51 = vshll.u32 %v2588_v18, 16 }
  0xd5   : > { %v9227_v30 = vadd.f32 %v1145_v47, %v977_v37  ;;  %2085 = vmatmul.bf16.gmra.mxu3 %v2013_v4  ;;  %v981_v40 = vpop.f32.mrf.mxu1  ;;  %v2184_v4 = vunpack.c.l.b16 %v2159_v29  ;;  %v7838_v37 = vld [vmem:[%s10582_s5 + $0x358] sm:$0xff]  ;;  %3898 = vmatpush.bf16.msra.mxu0 %v7869_v35  ;;  %v7823_v35 = vld [vmem:[#allocation2 + $0xc] sm:$0xf0] }
  0xd6   : > { %v9243_v42 = vadd.f32 %v981_v40, %v880_v0  ;;  %v2380_v0 = vmax.f32 %v2360_v56, 0.0  ;;  %3347 = vmatpush.bf16.msrb.mxu1 %v7838_v37  ;;  %v2655_v44 = vrot.slane %v2653_v26, 4  ;;  %v2658_v32 = vrot.slane %v2656_v51, 5 }
  0xd7   : > { %v2188_v50 = vpack.c.b16 %v2184_v4, %v2183_v54  ;;  %v4196_v54 = vmax.f32 %v4176_v21, 0.0  ;;  %v9297_v63 = vpop.f32.mrf.mxu3  ;;  %v7797_v2 = vld [vmem:[#allocation2 + $0x24] sm:$0xf0]  ;;  %v9312_v56 = vsel %vm8433_vm6, %v6813_v13, %v2852_v61  ;;  %v9323_v13 = vrot.slane %v2690_v46, 5  ;;  %v7861_v46 = vld [vmem:[%s10582_s5 + $0x3f0] sm:$0xff] }
  0xd8   : > { %v2590_v24 = vld [vmem:[#allocation2 + $0x28] sm:$0xf]  ;;  %v2400_v17 = vmul.f32 %v8300_v38, %v2380_v0  ;;  %v6728_v29 = vor.u32 %v7797_v2, %v6727_v23  ;;  %v9325_v61 = vrot.slane %v2704_v41, 5  ;;  %3652 = vmatpush.bf16.msra.mxu3 %v7861_v46  ;;  %v7843_v46 = vld [vmem:[%s10582_s5 + $0x380] sm:$0xff] }
  0xd9   : > { %2264 = vmatmul.bf16.gmra.mxu0 %v2188_v50  ;;  %v2667_v3 = vshrl.u32 %v2590_v24, 16  ;;  %v2670_v4 = vshll.u32 %v2590_v24, 16  ;;  %v4216_v31 = vmul.f32 0.0, %v4196_v54  ;;  %v3136_v54 = vld [vmem:[#allocation2 + $0x10] sm:$0xf]  ;;  %v7868_v41 = vld [vmem:[%s10582_s5 + $0x428] sm:$0xff] }
  0xda   : > { %v877_v60 = vpop.f32.mrf.mxu0  ;;  %v2420_v50 = vpack.c.bf16 %v2400_v17, %v2400_v17  ;;  %3348 = vmatpush.bf16.msrb.mxu1 %v7837_v5  ;;  %v9318_v5 = vld [vmem:[#allocation2 + $0x10] sm:$0xe]  ;;  %v7844_v24 = vld [vmem:[%s10582_s5 + $0x388] sm:$0xff]  ;;  %3899 = vmatpush.bf16.msra.mxu0 %v7868_v41  ;;  %v7867_v41 = vld [vmem:[%s10582_s5 + $0x420] sm:$0xff] }
  0xdb   : > { %v979_v8 = vadd.f32 %v9191_v1, %v877_v60  ;;  %v1147_v47 = vpop.f32.mrf.mxu2  ;;  %v2378_v1 = vmax.f32 %v2358_v48, 0.0  ;;  %v2014_v60 = vpack.c.b16 %v2010_v19, %v9251_v6  ;;  %2561 = vmatmul.bf16.gmra.mxu1 %v6728_v29  ;;  %v2669_v45 = vrot.slane %v2667_v3, 4  ;;  %v6887_v6 = vld [vmem:[#allocation2 + $0x8] sm:$0xf]  ;;  %3523 = vmatpush.bf16.msrb.mxu2 %v7844_v24 }
  0xdc   : > { %v2672_v28 = vrot.slane %v2670_v4, 5  ;;  %v4240_v37 = vmul.f32 %v8353_v9, %v4216_v31  ;;  %2440 = vst [vmem:[#allocation2 + $0x38] sm:$0xf] %v2420_v50  ;;  %v3134_v19 = vld [vmem:[#allocation2 + $0x8] sm:$0xf]  ;;  %v6888_v2 = vor.u32 %v7823_v35, %v6887_v6  ;;  %v2860_v3 = vrot.slane %v9084_v57, 5 }
  0xdd   : > { %v9286_v20 = vadd.f32 %v1147_v47, %v979_v8  ;;  %v9293_v58 = vpop.f32.mrf.mxu1  ;;  %v2398_v40 = vmul.f32 %v8300_v38, %v2378_v1  ;;  %v2659_v8 = vor.u32 %v2658_v32, %v2655_v44  ;;  %v9316_v47 = vadd.f32 %v9087_v59, %v9156_v33  ;;  %v9354_v44 = vld [vmem:[#allocation2 + $0x14] sm:$0x1] }
  0xde   : > { %v2673_v21 = vor.u32 %v2672_v28, %v2669_v45  ;;  %v4260_v0 = vpack.c.bf16 %v4240_v37, %v4240_v37  ;;  %3349 = vmatpush.bf16.msrb.mxu1 %v7836_v14  ;;  %v9331_v33 = vsel %vm8433_vm6, %v6814_v10, %v2856_v49  ;;  %v6815_v49 = vrot.slane %v9318_v5, 9  ;;  %3900 = vmatpush.bf16.msra.mxu0 %v7867_v41  ;;  %v2830_v5 = vld [vmem:[#allocation2 + $0x20] sm:$0xe] }
  0xdf   : > { %v2418_v53 = vpack.c.bf16 %v2398_v40, %v2398_v40  ;;  %v2660_v23 = vrot.slane %v2659_v8, 4  ;;  %v2899_v40 = vunpack.c.l.b16 %v9312_v56  ;;  %v3151_v26 = vshrl.u32 %v3134_v19, 16  ;;  %3524 = vmatpush.bf16.msrb.mxu2 %v7843_v46  ;;  %v3140_v46 = vld [vmem:[#allocation2 + $0x20] sm:$0xf] }
  0xe0   : > { %v2674_v59 = vrot.slane %v2673_v21, 4  ;;  %4280 = vst [vmem:[#allocation2] sm:$0xf] %v4260_v0  ;;  %v3154_v51 = vshll.u32 %v3134_v19, 16  ;;  %v3165_v4 = vshrl.u32 %v3136_v54, 16  ;;  %v3160_v50 = vshll.u32 %v9054_v39, 16 }
  0xe1   : > { %2438 = vst [vmem:[#allocation2 + $0x30] sm:$0xf] %v2418_v53  ;;  %v2665_v10 = vsel %vm8480_vm7, %v2660_v23, %v9253_v36  ;;  %v3153_v32 = vrot.slane %v3151_v26, 4  ;;  %v3168_v8 = vshll.u32 %v3136_v54, 16  ;;  %v2900_v23 = vunpack.c.l.b16 %v9331_v33  ;;  %v7860_v54 = vld [vmem:[%s10582_s5 + $0x3e8] sm:$0xff] }
  0xe2   : > { %v9301_v48 = vpop.f32.mrf.mxu0  ;;  %v2679_v17 = vsel %vm8480_vm7, %v2674_v59, %v9260_v15  ;;  %v2729_v29 = vunpack.c.l.b16 %v2665_v10  ;;  %3350 = vmatpush.bf16.msrb.mxu1 %v7835_v11  ;;  %v3156_v53 = vrot.slane %v3154_v51, 5  ;;  %v3167_v14 = vrot.slane %v3165_v4, 4  ;;  %3653 = vmatpush.bf16.msra.mxu3 %v7860_v54 }
  0xe3   : > { %v1150_v1 = vpop.f32.mrf.mxu2  ;;  %v2730_v36 = vunpack.c.l.b16 %v2679_v17  ;;  %v7798_v35 = vld [vmem:[#allocation2 + $0x34] sm:$0xf0]  ;;  %v3406_v41 = vrot.slane %v9054_v39, 5  ;;  %v2868_v39 = vrot.slane %v9220_v34, 5 }
  0xe4   : > { %v9321_v18 = vadd.f32 %v1150_v1, %v9243_v42  ;;  %v2594_v21 = vld [vmem:[#allocation2 + $0x38] sm:$0xf]  ;;  %v3157_v19 = vor.u32 %v3156_v53, %v3153_v32  ;;  %v3162_v32 = vrot.slane %v3160_v50, 5  ;;  %v9387_v50 = vadd.f32 %v9169_v27, %v9316_v47 }
  0xe5   : > { %2090 = vmatmul.bf16.gmra.mxu3 %v2014_v60  ;;  %v986_v42 = vpop.f32.mrf.mxu1  ;;  %v984_v60 = vadd.f32 %v9293_v58, %v9297_v63  ;;  %v2735_v6 = vpack.c.b16 %v2730_v36, %v2729_v29  ;;  %v2695_v58 = vshrl.u32 %v2594_v21, 16  ;;  %v2698_v63 = vshll.u32 %v2594_v21, 16  ;;  %v7890_v34 = vld [vmem:[%s10582_s5 + $0x4b8] sm:$0xff] }
  0xe6   : > { %v3174_v29 = vshll.u32 %v9354_v44, 16  ;;  %v3158_v36 = vrot.slane %v3157_v19, 4  ;;  %v7824_v19 = vld [vmem:[#allocation2 + $0x1c] sm:$0xf0]  ;;  %v9405_v27 = vsel %vm8433_vm6, %v6815_v49, %v2860_v3  ;;  %4397 = vmatpush.bf16.msra.mxu2 %v7890_v34 }
  0xe7   : > { %2807 = vmatmul.bf16.gmra.mxu2 %v2735_v6  ;;  %v2697_v26 = vrot.slane %v2695_v58, 4  ;;  %v2700_v51 = vrot.slane %v2698_v63, 5  ;;  %v3138_v58 = vld [vmem:[#allocation2 + $0x18] sm:$0xf] }
  0xe8   : > { %v885_v31 = vpop.f32.mrf.mxu3  ;;  %v6731_v28 = vld [vmem:[#allocation2 + $0x30] sm:$0xf]  ;;  %v3163_v56 = vsel %vm8480_vm7, %v3158_v36, %v3162_v32  ;;  %v3193_v36 = vshrl.u32 %v3140_v46, 16  ;;  %v3196_v32 = vshll.u32 %v3140_v46, 16 }
  0xe9   : > { %v9359_v15 = vadd.f32 %v986_v42, %v885_v31  ;;  %v2592_v37 = vld [vmem:[#allocation2 + $0x30] sm:$0xf]  ;;  %3105 = vmatmul.bf16.vlgmr.msrb.gmra.mxu0 %v6888_v2  ;;  %v3170_v42 = vrot.slane %v3168_v8, 5  ;;  %v6732_v33 = vor.u32 %v7798_v35, %v6731_v28  ;;  %v6816_v31 = vrot.slane %v2829_v55, 9  ;;  %v9383_v55 = vld [vmem:[#allocation2 + $0x8] sm:$0xe] }
  0xea   : > { %v9361_v45 = vpop.f32.mrf.mxu0  ;;  %v2681_v1 = vshrl.u32 %v2592_v37, 16  ;;  %v2684_v0 = vshll.u32 %v2592_v37, 16  ;;  %v2701_v53 = vor.u32 %v2700_v51, %v2697_v26  ;;  %v3176_v28 = vrot.slane %v3174_v29, 5  ;;  %v3139_v51 = vld [vmem:[#allocation2 + $0x1c] sm:$0x1] }
  0xeb   : > { %v1152_v59 = vpop.f32.mrf.mxu2  ;;  %v3171_v17 = vor.u32 %v3170_v42, %v3167_v14  ;;  %v2907_v35 = vpack.c.b16 %v2900_v23, %v2899_v40  ;;  %2566 = vmatmul.bf16.gmra.mxu1 %v6732_v33  ;;  %v9394_v40 = vld [vmem:[#allocation2 + $0x10] sm:$0xe]  ;;  %v6981_v57 = vrot.slane %v9383_v55, 9  ;;  %v9417_v54 = vunpack.c.l.b16 %v3163_v56 }
  0xec   : > { %v9373_v11 = vadd.f32 %v1152_v59, %v984_v60  ;;  %v2683_v2 = vrot.slane %v2681_v1, 4  ;;  %v2686_v10 = vrot.slane %v2684_v0, 5  ;;  %v2864_v60 = vrot.slane %v9093_v62, 5  ;;  %v6891_v0 = vld [vmem:[#allocation2 + $0x18] sm:$0xf] }
  0xed   : > { %v988_v24 = vpop.f32.mrf.mxu1  ;;  %v3172_v37 = vrot.slane %v3171_v17, 4  ;;  %v2702_v21 = vrot.slane %v2701_v53, 4  ;;  %v6892_v49 = vor.u32 %v7824_v19, %v6891_v0  ;;  %v6982_v33 = vrot.slane %v9394_v40, 9  ;;  %v7858_v0 = vld [vmem:[%s10582_s5 + $0x3d8] sm:$0xff]  ;;  %v7865_v19 = vld [vmem:[%s10582_s5 + $0x410] sm:$0xff] }
  0xee   : > { %v2687_v4 = vor.u32 %v2686_v10, %v2683_v2  ;;  %v9409_v47 = vsel %vm8433_vm6, %v6816_v31, %v2864_v60  ;;  %v2831_v2 = vld [vmem:[#allocation2 + $0x28] sm:$0xe]  ;;  %v7859_v10 = vld [vmem:[%s10582_s5 + $0x3e0] sm:$0xff]  ;;  %v3410_v26 = vrot.slane %v9354_v44, 5  ;;  %v3179_v17 = vshrl.u32 %v3138_v58, 16 }
  0xef   : > { %v2707_v23 = vsel %vm8480_vm7, %v2702_v21, %v9325_v61  ;;  %v3182_v29 = vshll.u32 %v3138_v58, 16  ;;  %3654 = vmatpush.bf16.msra.mxu3 %v7859_v10  ;;  %v9431_v31 = vld [vmem:[#allocation2 + $0x24] sm:$0x1]  ;;  %v2872_v21 = vrot.slane %v9224_v22, 5  ;;  %v3195_v55 = vrot.slane %v3193_v36, 4 }
  0xf0   : > { %v887_v8 = vpop.f32.mrf.mxu3  ;;  %v2688_v6 = vrot.slane %v2687_v4, 4  ;;  %v2732_v42 = vunpack.c.l.b16 %v2707_v23  ;;  %v6817_v4 = vrot.slane %v2830_v5, 9  ;;  %v3188_v40 = vshll.u32 %v3139_v51, 16  ;;  %v3383_v58 = vld [vmem:[#allocation2 + $0x20] sm:$0xe] }
  0xf1   : > { %v9379_v14 = vadd.f32 %v988_v24, %v887_v8  ;;  %v3184_v8 = vrot.slane %v3182_v29, 5  ;;  %v3202_v22 = vshll.u32 %v9431_v31, 16  ;;  %v2902_v5 = vunpack.c.l.b16 %v9409_v47 }
  0xf2   : > { %v9381_v1 = vpop.f32.mrf.mxu0  ;;  %v2693_v62 = vsel %vm8480_vm7, %v2688_v6, %v9323_v13  ;;  %v3177_v13 = vsel %vm8480_vm7, %v3172_v37, %v3176_v28  ;;  %v6818_v37 = vrot.slane %v2831_v2, 9  ;;  %v3181_v28 = vrot.slane %v3179_v17, 4  ;;  %v3382_v6 = vld [vmem:[#allocation2 + $0x18] sm:$0xe] }
  0xf3   : > { %v1155_v59 = vpop.f32.mrf.mxu2  ;;  %v2731_v63 = vunpack.c.l.b16 %v2693_v62  ;;  %v9427_v24 = vunpack.c.l.b16 %v3177_v13  ;;  %v3198_v62 = vrot.slane %v3196_v32, 5  ;;  %3655 = vmatpush.bf16.msra.mxu3 %v7858_v0  ;;  %v9465_v47 = vsel %vm8433_vm6, %v6817_v4, %v2868_v39 }
  0xf4   : > { %v9414_v61 = vadd.f32 %v1155_v59, %v9359_v15  ;;  %v7866_v15 = vld [vmem:[%s10582_s5 + $0x418] sm:$0xff]  ;;  %v3185_v56 = vor.u32 %v3184_v8, %v3181_v28 }
  0xf5   : > { %2971 = vmatmul.bf16.vlgmr.msrb.gmra.mxu3 %v2907_v35  ;;  %v1695_v3 = vpop.f32.mrf.mxu1  ;;  %3901 = vmatpush.bf16.msra.mxu0 %v7866_v15  ;;  %v2736_v60 = vpack.c.b16 %v2732_v42, %v2731_v63  ;;  %v3199_v13 = vor.u32 %v3198_v62, %v3195_v55  ;;  %v6983_v63 = vrot.slane %v3382_v6, 9  ;;  %v3414_v42 = vrot.slane %v3139_v51, 5  ;;  %v7878_v6 = vld [vmem:[%s10582_s5 + $0x478] sm:$0xff] }
  0xf6   : > { %v3287_v10 = vpack.c.b16 %v9427_v24, %v9417_v54  ;;  %v3418_v51 = vrot.slane %v9431_v31, 5  ;;  %v3204_v24 = vrot.slane %v3202_v22, 5  ;;  %v2903_v31 = vunpack.c.l.b16 %v9465_v47  ;;  %4071 = vmatpush.bf16.msra.mxu1 %v7878_v6  ;;  %v9500_v22 = vld [vmem:[#allocation2 + $0x2c] sm:$0x1]  ;;  %v7863_v6 = vld [vmem:[%s10582_s5 + $0x400] sm:$0xff] }
  0xf7   : > { %2812 = vmatmul.bf16.gmra.mxu2 %v2736_v60  ;;  %v3200_v54 = vrot.slane %v3199_v13, 4  ;;  %v3415_v17 = vsel %vm8433_vm6, %v6983_v63, %v3414_v42  ;;  %v9504_v13 = vld [vmem:[#allocation2 + $0x34] sm:$0x1] }
  0xf8   : > { %v1275_v53 = vpop.f32.mrf.mxu3  ;;  %v3455_v55 = vunpack.c.l.b16 %v3415_v17  ;;  %v3688_v17 = vld [vmem:[#allocation2 + $0x10] sm:$0xf] }
  0xf9   : > { %v1295_v44 = vadd.f32 %v1275_v53, %v9103_v16  ;;  %v2901_v16 = vunpack.c.l.b16 %v9405_v27  ;;  %3110 = vmatmul.bf16.gmra.mxu0 %v6892_v49  ;;  %v9455_v27 = vsel %vm8433_vm6, %v6981_v57, %v3406_v41  ;;  %v9459_v49 = vsel %vm8433_vm6, %v6982_v33, %v3410_v26  ;;  %v9471_v57 = vld [vmem:[#allocation2 + $0x28] sm:$0xf]  ;;  %v9473_v41 = vld [vmem:[#allocation2 + $0x2c] sm:$0xf0] }
  0xfa   : > { %v9434_v35 = vpop.f32.mrf.mxu0  ;;  %3902 = vmatpush.bf16.msra.mxu0 %v7865_v19  ;;  %v3186_v33 = vrot.slane %v3185_v56, 4  ;;  %v3190_v26 = vrot.slane %v3188_v40, 5  ;;  %v3453_v36 = vunpack.c.l.b16 %v9455_v27  ;;  %v3454_v32 = vunpack.c.l.b16 %v9459_v49  ;;  %v2832_v53 = vld [vmem:[#allocation2 + $0x30] sm:$0xe]  ;;  %v2833_v56 = vld [vmem:[#allocation2 + $0x38] sm:$0xe] }
  0xfb   : > { %v1541_v23 = vadd.f32 %v9301_v48, %v1295_v44  ;;  %v1157_v59 = vpop.f32.mrf.mxu2  ;;  %v3142_v48 = vld [vmem:[#allocation2 + $0x28] sm:$0xf]  ;;  %v2908_v39 = vpack.c.b16 %v2902_v5, %v2901_v16  ;;  %3351 = vmatmul.bf16.vlgmr.msrb.gmra.mxu1 %v3287_v10  ;;  %v6896_v8 = vor.u32 %v9473_v41, %v9471_v57  ;;  %v7889_v44 = vld [vmem:[%s10582_s5 + $0x4b0] sm:$0xff]  ;;  %v3205_v16 = vsel %vm8480_vm7, %v3200_v54, %v3204_v24 }
  0xfc   : > { %v9451_v46 = vadd.f32 %v1157_v59, %v9379_v14  ;;  %v9469_v14 = vsel %vm8433_vm6, %v6818_v37, %v2872_v21  ;;  %v3207_v29 = vshrl.u32 %v3142_v48, 16  ;;  %v3144_v21 = vld [vmem:[#allocation2 + $0x30] sm:$0xf]  ;;  %v3210_v62 = vshll.u32 %v3142_v48, 16  ;;  %4398 = vmatpush.bf16.msra.mxu2 %v7889_v44  ;;  %v3384_v24 = vld [vmem:[#allocation2 + $0x28] sm:$0xe] }
  0xfd   : > { %v1715_v2 = vadd.f32 %v1695_v3, %v1541_v23  ;;  %v1697_v15 = vpop.f32.mrf.mxu1  ;;  %v6984_v3 = vrot.slane %v3383_v58, 9  ;;  %v2904_v28 = vunpack.c.l.b16 %v9469_v14  ;;  %v6819_v40 = vrot.slane %v2832_v53, 9  ;;  %v7857_v10 = vld [vmem:[%s10582_s5 + $0x3d0] sm:$0xff] }
  0xfe   : > { %v3209_v23 = vrot.slane %v3207_v29, 4  ;;  %v3212_v58 = vrot.slane %v3210_v62, 5  ;;  %v3221_v63 = vshrl.u32 %v3144_v21, 16  ;;  %v3224_v42 = vshll.u32 %v3144_v21, 16  ;;  %3656 = vmatpush.bf16.msra.mxu3 %v7857_v10  ;;  %v7877_v53 = vld [vmem:[%s10582_s5 + $0x470] sm:$0xff] }
  0xff   : > { %v3419_v34 = vsel %vm8433_vm6, %v6984_v3, %v3418_v51  ;;  %v2876_v48 = vrot.slane %v9258_v52, 5  ;;  %v9515_v47 = vunpack.c.l.b16 %v3205_v16  ;;  %v3216_v14 = vshll.u32 %v9500_v22, 16  ;;  %v3385_v44 = vld [vmem:[#allocation2 + $0x30] sm:$0xe]  ;;  %v9552_v62 = vld [vmem:[#allocation2 + $0x38] sm:$0xf]  ;;  %4072 = vmatpush.bf16.msra.mxu1 %v7877_v53 }
 0x100   : > { %v1277_v4 = vpop.f32.mrf.mxu3  ;;  %v3456_v49 = vunpack.c.l.b16 %v3419_v34  ;;  %v3223_v57 = vrot.slane %v3221_v63, 4  ;;  %v6820_v41 = vrot.slane %v2833_v56, 9  ;;  %v3213_v52 = vor.u32 %v3212_v58, %v3209_v23  ;;  %v9558_v16 = vld [vmem:[#allocation2 + $0x14] sm:$0x1]  ;;  %v3690_v56 = vld [vmem:[#allocation2 + $0x18] sm:$0xf] }
 0x101   : > { %v1296_v60 = vadd.f32 %v1277_v4, %v9387_v50  ;;  %v3191_v50 = vsel %vm8480_vm7, %v3186_v33, %v3190_v26  ;;  %v2880_v33 = vrot.slane %v9281_v12, 5  ;;  %v3230_v26 = vshll.u32 %v9504_v13, 16  ;;  %v3146_v58 = vld [vmem:[#allocation2 + $0x38] sm:$0xf] }
 0x102   : > { %v9481_v37 = vpop.f32.mrf.mxu0  ;;  %v9506_v27 = vunpack.c.l.b16 %v3191_v50  ;;  %v3461_v51 = vpack.c.b16 %v3454_v32, %v3453_v36  ;;  %v9520_v54 = vpack.c.b16 %v2904_v28, %v2903_v31  ;;  %v9529_v12 = vsel %vm8433_vm6, %v6819_v40, %v2876_v48  ;;  %v7888_v36 = vld [vmem:[%s10582_s5 + $0x4a8] sm:$0xff] }
 0x103   : > { %v1542_v0 = vadd.f32 %v9361_v45, %v1296_v60  ;;  %v1830_v19 = vpop.f32.mrf.mxu2  ;;  %v3705_v32 = vshrl.u32 %v3688_v17, 16  ;;  %v9542_v31 = vrot.slane %v3216_v14, 5  ;;  %v3708_v21 = vshll.u32 %v3688_v17, 16  ;;  %4399 = vmatpush.bf16.msra.mxu2 %v7888_v36  ;;  %v7876_v36 = vld [vmem:[%s10582_s5 + $0x468] sm:$0xff] }
 0x104   : > { %v9502_v59 = vadd.f32 %v1830_v19, %v1715_v2  ;;  %v7864_v2 = vld [vmem:[%s10582_s5 + $0x408] sm:$0xff]  ;;  %v3288_v60 = vpack.c.b16 %v9515_v47, %v9506_v27  ;;  %v9556_v19 = vrot.slane %v3230_v26, 5  ;;  %v9563_v27 = vld [vmem:[#allocation2 + $0x3c] sm:$0xf0]  ;;  %v3426_v48 = vrot.slane %v9504_v13, 5  ;;  %4073 = vmatpush.bf16.msra.mxu1 %v7876_v36 }
 0x105   : > { %2976 = vmatmul.bf16.gmra.mxu3 %v2908_v39  ;;  %v1716_v45 = vadd.f32 %v1697_v15, %v1542_v0  ;;  %v1700_v5 = vpop.f32.mrf.mxu1  ;;  %v3226_v15 = vrot.slane %v3224_v42, 5  ;;  %3903 = vmatpush.bf16.msra.mxu0 %v7864_v2  ;;  %v9525_v39 = vpack.c.b16 %v3456_v49, %v3455_v55  ;;  %v9550_v55 = vsel %vm8433_vm6, %v6820_v41, %v2880_v33  ;;  %v9566_v47 = vld [vmem:[#allocation2 + $0x1c] sm:$0x1]  ;;  %v7855_v26 = vld [vmem:[%s10582_s5 + $0x3c0] sm:$0xff]  ;;  %v3386_v36 = vld [vmem:[#allocation2 + $0x38] sm:$0xe] }
 0x106   : > { %v9554_v0 = vrot.slane %v3213_v52, 4  ;;  %v3707_v23 = vrot.slane %v3705_v32, 4  ;;  %v6986_v49 = vrot.slane %v3385_v44, 9  ;;  %v3710_v10 = vrot.slane %v3708_v21, 5 }
 0x107   : > { %v3227_v28 = vor.u32 %v3226_v15, %v3223_v57  ;;  %3525 = vmatmul.bf16.vlgmr.msrb.gmra.mxu2 %v3461_v51  ;;  %v3719_v14 = vshrl.u32 %v3690_v56, 16  ;;  %v3722_v57 = vshll.u32 %v3690_v56, 16  ;;  %v3235_v41 = vshrl.u32 %v3146_v58, 16 }
 0x108   : > { %v1280_v3 = vpop.f32.mrf.mxu3  ;;  %v3711_v15 = vor.u32 %v3710_v10, %v3707_v23  ;;  %v6900_v52 = vor.u32 %v9563_v27, %v9552_v62  ;;  %v3219_v13 = vsel %vm8480_vm7, %v9554_v0, %v9542_v31  ;;  %v3427_v53 = vsel %vm8433_vm6, %v6986_v49, %v3426_v48  ;;  %v4113_v48 = vld [vmem:[%s8346_s8 + $0x14] sm:$0x1]  ;;  %v4115_v10 = vld [vmem:[%s8346_s8 + $0x1c] sm:$0x1] }
 0x109   : > { %v1297_v29 = vadd.f32 %v1280_v3, %v9227_v30  ;;  %v7856_v30 = vld [vmem:[%s10582_s5 + $0x3c8] sm:$0xff]  ;;  %3115 = vmatmul.bf16.gmra.mxu0 %v6896_v8  ;;  %v3422_v8 = vrot.slane %v9500_v22, 5  ;;  %v3228_v2 = vrot.slane %v3227_v28, 4  ;;  %v2905_v22 = vunpack.c.l.b16 %v9529_v12 }
 0x10a   : > { %v9523_v4 = vpop.f32.mrf.mxu0  ;;  %3657 = vmatpush.bf16.msra.mxu3 %v7856_v30  ;;  %3904 = vmatpush.bf16.msra.mxu0 %v7863_v6  ;;  %v3721_v3 = vrot.slane %v3719_v14, 4  ;;  %v3724_v51 = vrot.slane %v3722_v57, 5  ;;  %v7887_v30 = vld [vmem:[%s10582_s5 + $0x4a0] sm:$0xff]  ;;  %v3728_v32 = vshll.u32 %v9566_v47, 16  ;;  %v3238_v28 = vshll.u32 %v3146_v58, 16 }
 0x10b   : > { %v1543_v50 = vadd.f32 %v9381_v1, %v1297_v29  ;;  %v1832_v34 = vpop.f32.mrf.mxu2  ;;  %v6985_v1 = vrot.slane %v3384_v24, 9  ;;  %v3148_v24 = vld [vmem:[#allocation2 + $0x40] sm:$0xf]  ;;  %3356 = vmatmul.bf16.gmra.mxu1 %v3288_v60  ;;  %v3712_v60 = vrot.slane %v3711_v15, 4  ;;  %4400 = vmatpush.bf16.msra.mxu2 %v7887_v30  ;;  %v4135_v14 = vunpack.c.l.bf16 %v4115_v10 }
 0x10c   : > { %v9560_v40 = vadd.f32 %v1832_v34, %v1716_v45  ;;  %v3714_v45 = vshll.u32 %v9558_v16, 16  ;;  %v3725_v21 = vor.u32 %v3724_v51, %v3721_v3  ;;  %v3237_v34 = vrot.slane %v3235_v41, 4 }
 0x10d   : > { %v1717_v63 = vadd.f32 %v1700_v5, %v1543_v50  ;;  %v1702_v42 = vpop.f32.mrf.mxu1  ;;  %v2906_v5 = vunpack.c.l.b16 %v9550_v55  ;;  %v3423_v12 = vsel %vm8433_vm6, %v6985_v1, %v3422_v8  ;;  %v9598_v50 = vld [vmem:[#allocation2 + $0x3c] sm:$0x1]  ;;  %v3249_v55 = vshrl.u32 %v3148_v24, 16 }
 0x10e   : > { %3658 = vmatpush.bf16.msra.mxu3 %v7855_v26  ;;  %v3716_v31 = vrot.slane %v3714_v45, 5  ;;  %v3457_v56 = vunpack.c.l.b16 %v3423_v12  ;;  %v3240_v1 = vrot.slane %v3238_v28, 5  ;;  %v9607_v49 = vrot.slane %v3728_v32, 5  ;;  %v9653_v28 = vld [vmem:[%s10581_s4] ss:$0 sm:$0xff] }
 0x10f   : > { %v4133_v45 = vunpack.c.l.bf16 %v4113_v48  ;;  %v3244_v57 = vshll.u32 %v9598_v50, 16  ;;  %v3726_v15 = vrot.slane %v3725_v21, 4  ;;  %v9622_v3 = vpack.c.b16 %v2906_v5, %v2905_v22  ;;  %v7886_v5 = vld [vmem:[%s10582_s5 + $0x498] sm:$0xff]  ;;  %v3692_v48 = vld [vmem:[#allocation2 + $0x20] sm:$0xf] }
 0x110   : > { %v1282_v33 = vpop.f32.mrf.mxu3  ;;  %v3241_v41 = vor.u32 %v3240_v1, %v3237_v34  ;;  %v7905_v34 = vld [vmem:[%s10582_s5 + $0x530] sm:$0xff]  ;;  %4401 = vmatpush.bf16.msra.mxu2 %v7886_v5  ;;  %v6987_v27 = vrot.slane %v3386_v36, 9 }
 0x111   : > { %v1298_v17 = vadd.f32 %v1282_v33, %v9286_v20  ;;  %v3233_v20 = vsel %vm8480_vm7, %v3228_v2, %v9556_v19  ;;  %v3458_v19 = vunpack.c.l.b16 %v3427_v53  ;;  %v3717_v2 = vsel %vm8480_vm7, %v3712_v60, %v3716_v31  ;;  %v7874_v60 = vld [vmem:[%s10582_s5 + $0x458] sm:$0xff] }
 0x112   : > { %v9581_v29 = vpop.f32.mrf.mxu0  ;;  %v9605_v58 = vunpack.c.l.b16 %v3233_v20  ;;  %v3251_v33 = vrot.slane %v3249_v55, 4  ;;  %v9648_v31 = vunpack.c.l.b16 %v3717_v2  ;;  %v9657_v21 = vrot.slane %v3244_v57, 5 }
 0x113   : > { %v1544_v6 = vadd.f32 %v9434_v35, %v1298_v17  ;;  %v1835_v44 = vpop.f32.mrf.mxu2  ;;  %v9603_v35 = vunpack.c.l.b16 %v3219_v13  ;;  %v3252_v13 = vshll.u32 %v3148_v24, 16  ;;  %v9624_v51 = vpack.c.b16 %v3458_v19, %v3457_v56  ;;  %v9629_v17 = vld [vmem:[%s10580_s3] ss:$0 sm:$0xff] }
 0x114   : > { %v9600_v0 = vadd.f32 %v1835_v44, %v1717_v63  ;;  %v7906_v63 = vld [vmem:[%s10582_s5 + $0x538] sm:$0xff]  ;;  %v4157_v12 = vmul.f32 %v9629_v17, %v4133_v45  ;;  %v4159_v53 = vmul.f32 %v9629_v17, %v4135_v14  ;;  %v3731_v19 = vsel %vm8480_vm7, %v3726_v15, %v9607_v49 }
 0x115   : > { %2981 = vmatmul.bf16.gmra.mxu3 %v9520_v54  ;;  %v1718_v8 = vadd.f32 %v1702_v42, %v1544_v6  ;;  %v1705_v23 = vpop.f32.mrf.mxu1  ;;  %v7875_v54 = vld [vmem:[%s10582_s5 + $0x460] sm:$0xff]  ;;  %4817 = vmatpush.bf16.msrb.mxu0 %v7906_v63  ;;  %v3289_v22 = vpack.c.b16 %v9605_v58, %v9603_v35  ;;  %v3254_v24 = vrot.slane %v3252_v13, 5  ;;  %v9669_v1 = vrot.slane %v3241_v41, 4 }
 0x116   : > { %v9619_v42 = vld [vmem:[#allocation2 + $0x44] sm:$0x1]  ;;  %4074 = vmatpush.bf16.msra.mxu1 %v7875_v54  ;;  %v4181_v6 = vadd.f32 %v9653_v28, %v4157_v12  ;;  %v4183_v44 = vadd.f32 %v9653_v28, %v4159_v53  ;;  %v3387_v58 = vld [vmem:[#allocation2 + $0x40] sm:$0xe]  ;;  %v3733_v15 = vshrl.u32 %v3692_v48, 16  ;;  %v3736_v41 = vshll.u32 %v3692_v48, 16 }
 0x117   : > { %v3258_v20 = vshll.u32 %v9619_v42, 16  ;;  %v3255_v35 = vor.u32 %v3254_v24, %v3251_v33  ;;  %3530 = vmatmul.bf16.gmra.mxu2 %v9525_v39  ;;  %v3430_v39 = vrot.slane %v9598_v50, 5  ;;  %v9686_v33 = vunpack.c.l.b16 %v3731_v19  ;;  %v4110_v12 = vld [vmem:[%s8346_s8 + $0x8] sm:$0xf] }
 0x118   : > { %v1285_v26 = vpop.f32.mrf.mxu3  ;;  %v4201_v63 = vmax.f32 %v4181_v6, 0.0  ;;  %v4203_v62 = vmax.f32 %v4183_v44, 0.0  ;;  %v3434_v13 = vrot.slane %v9619_v42, 5  ;;  %v9710_v6 = vld [vmem:[#allocation2 + $0x2c] sm:$0x1]  ;;  %v3735_v44 = vrot.slane %v3733_v15, 4 }
 0x119   : > { %v1299_v30 = vadd.f32 %v1285_v26, %v9321_v18  ;;  %v7898_v18 = vld [vmem:[%s10582_s5 + $0x4f8] sm:$0xff]  ;;  %3120 = vmatmul.bf16.gmra.mxu0 %v6900_v52  ;;  %v9677_v52 = vld [vmem:[#allocation2 + $0x24] sm:$0x1]  ;;  %v9679_v45 = vrot.slane %v3255_v35, 4  ;;  %v9681_v14 = vrot.slane %v3258_v20, 5  ;;  %v9702_v42 = vsel %vm8433_vm6, %v6987_v27, %v3430_v39 }
 0x11a   : > { %v9634_v32 = vpop.f32.mrf.mxu0  ;;  %4075 = vmatpush.bf16.msra.mxu1 %v7874_v60  ;;  %4643 = vmatpush.bf16.msrb.mxu3 %v7898_v18  ;;  %v4221_v54 = vmul.f32 %v8310_v43, %v4201_v63  ;;  %v4223_v57 = vmul.f32 %v8310_v43, %v4203_v62  ;;  %v3742_v26 = vshll.u32 %v9677_v52, 16  ;;  %v7885_v60 = vld [vmem:[%s10582_s5 + $0x490] sm:$0xff]  ;;  %v7872_v18 = vld [vmem:[%s10582_s5 + $0x448] sm:$0xff]  ;;  %v4130_v19 = vunpack.c.l.bf16 %v4110_v12  ;;  %v4117_v15 = vld [vmem:[%s8346_s8 + $0x24] sm:$0x1] }
 0x11b   : > { %v1545_v55 = vadd.f32 %v9481_v37, %v1299_v30  ;;  %v1837_v56 = vpop.f32.mrf.mxu2  ;;  %v7873_v37 = vld [vmem:[%s10582_s5 + $0x450] sm:$0xff]  ;;  %4818 = vmatpush.bf16.msrb.mxu0 %v7905_v34  ;;  %v3247_v30 = vsel %vm8480_vm7, %v9669_v1, %v9657_v21  ;;  %3361 = vmatmul.bf16.gmra.mxu1 %v3289_v22  ;;  %v3738_v21 = vrot.slane %v3736_v41, 5  ;;  %v9714_v22 = vld [vmem:[#allocation2 + $0x14] sm:$0xf0]  ;;  %v3459_v12 = vunpack.c.l.b16 %v9702_v42  ;;  %v9842_v42 = vld [vmem:[#allocation2 + $0x20] sm:$0xe] }
 0x11c   : > { %v9672_v10 = vadd.f32 %v1837_v56, %v1718_v8  ;;  %v3694_v8 = vld [vmem:[#allocation2 + $0x28] sm:$0xf]  ;;  %v4245_v36 = vmul.f32 %v8353_v9, %v4221_v54  ;;  %v4247_v50 = vmul.f32 %v8353_v9, %v4223_v57  ;;  %v3261_v56 = vsel %vm8480_vm7, %v9679_v45, %v9681_v14  ;;  %4402 = vmatpush.bf16.msra.mxu2 %v7885_v60  ;;  %v9728_v14 = vld [vmem:[#allocation2 + $0x10] sm:$0xe] }
 0x11d   : > { %v1719_v49 = vadd.f32 %v1705_v23, %v1545_v55  ;;  %v1707_v2 = vpop.f32.mrf.mxu1  ;;  %v6988_v23 = vrot.slane %v3387_v58, 9  ;;  %v3747_v5 = vshrl.u32 %v3694_v8, 16  ;;  %v3739_v48 = vor.u32 %v3738_v21, %v3735_v44  ;;  %v3696_v21 = vld [vmem:[#allocation2 + $0x30] sm:$0xf] }
 0x11e   : > { %4076 = vmatpush.bf16.msra.mxu1 %v7873_v37  ;;  %v4265_v34 = vpack.c.bf16 %v4245_v36, %v4245_v36  ;;  %v4267_v55 = vpack.c.bf16 %v4247_v50, %v4247_v50  ;;  %v3744_v63 = vrot.slane %v3742_v26, 5  ;;  %v3750_v37 = vshll.u32 %v3694_v8, 16  ;;  %v7897_v8 = vld [vmem:[%s10582_s5 + $0x4f0] sm:$0xff]  ;;  %v7884_v50 = vld [vmem:[%s10582_s5 + $0x488] sm:$0xff] }
 0x11f   : > { %v9723_v58 = vsel %vm8433_vm6, %v6988_v23, %v3434_v13  ;;  %v3749_v27 = vrot.slane %v3747_v5, 4  ;;  %v3756_v45 = vshll.u32 %v9710_v6, 16  ;;  %v3841_v54 = vpack.c.b16 %v9686_v33, %v9648_v31  ;;  %v4119_v13 = vld [vmem:[%s8346_s8 + $0x2c] sm:$0x1]  ;;  %v7871_v31 = vld [vmem:[%s10582_s5 + $0x440] sm:$0xff]  ;;  %4644 = vmatpush.bf16.msrb.mxu3 %v7897_v8 }
 0x120   : > { %v1287_v53 = vpop.f32.mrf.mxu3  ;;  %4285 = vst [vmem:[#allocation2 + $0x14] sm:$0x1] %v4265_v34  ;;  %v3740_v57 = vrot.slane %v3739_v48, 4  ;;  %v9739_v41 = vunpack.c.l.b16 %v3247_v30  ;;  %v3752_v23 = vrot.slane %v3750_v37, 5  ;;  %v4154_v33 = vmul.f32 %v9629_v17, %v4130_v19  ;;  %v3935_v30 = vld [vmem:[#allocation2 + $0x18] sm:$0xe]  ;;  %4403 = vmatpush.bf16.msra.mxu2 %v7884_v50 }
 0x121   : > { %v1300_v24 = vadd.f32 %v1287_v53, %v9373_v11  ;;  %v9712_v11 = vld [vmem:[#allocation2 + $0x10] sm:$0xf]  ;;  %4287 = vst [vmem:[#allocation2 + $0x1c] sm:$0x1] %v4267_v55  ;;  %v9749_v26 = vunpack.c.l.b16 %v3261_v56  ;;  %v3460_v53 = vunpack.c.l.b16 %v9723_v58  ;;  %v4139_v36 = vunpack.c.l.bf16 %v4119_v13  ;;  %v7896_v48 = vld [vmem:[%s10582_s5 + $0x4e8] sm:$0xff] }
 0x122   : > { %v9698_v20 = vpop.f32.mrf.mxu0  ;;  %4077 = vmatpush.bf16.msra.mxu1 %v7872_v18  ;;  %v7056_v39 = vor.u32 %v9714_v22, %v9712_v11  ;;  %v3753_v60 = vor.u32 %v3752_v23, %v3749_v27  ;;  %v3758_v18 = vrot.slane %v3756_v45, 5  ;;  %v7149_v19 = vrot.slane %v9728_v14, 9  ;;  %v7895_v11 = vld [vmem:[%s10582_s5 + $0x4e0] sm:$0xff]  ;;  %v7902_v22 = vld [vmem:[%s10582_s5 + $0x518] sm:$0xff] }
 0x123   : > { %v1546_v1 = vadd.f32 %v9523_v4, %v1300_v24  ;;  %v1840_v35 = vpop.f32.mrf.mxu2  ;;  %v3745_v24 = vsel %vm8480_vm7, %v3740_v57, %v3744_v63  ;;  %v4163_v56 = vmul.f32 %v9629_v17, %v4139_v36  ;;  %v7150_v37 = vrot.slane %v3935_v30, 9  ;;  %4645 = vmatpush.bf16.msrb.mxu3 %v7896_v48 }
 0x124   : > { %v9725_v62 = vadd.f32 %v1840_v35, %v1719_v49  ;;  %v7883_v35 = vld [vmem:[%s10582_s5 + $0x480] sm:$0xff]  ;;  %v3754_v63 = vrot.slane %v3753_v60, 4  ;;  %v4178_v45 = vadd.f32 %v9653_v28, %v4154_v33  ;;  %v3761_v8 = vshrl.u32 %v3696_v21, 16 }
 0x125   : > { %2986 = vmatmul.bf16.gmra.mxu3 %v9622_v3  ;;  %v1720_v4 = vadd.f32 %v1707_v2, %v1546_v1  ;;  %v1710_v49 = vpop.f32.mrf.mxu1  ;;  %v4137_v3 = vunpack.c.l.bf16 %v4117_v15  ;;  %v7904_v2 = vld [vmem:[%s10582_s5 + $0x528] sm:$0xff]  ;;  %v3960_v1 = vrot.slane %v9558_v16, 5  ;;  %v4187_v57 = vadd.f32 %v9653_v28, %v4163_v56  ;;  %4404 = vmatpush.bf16.msra.mxu2 %v7883_v35 }
 0x126   : > { %4819 = vmatpush.bf16.msrb.mxu0 %v7904_v2  ;;  %4078 = vmatpush.bf16.msra.mxu1 %v7871_v31  ;;  %v3964_v15 = vrot.slane %v9566_v47, 5  ;;  %v3290_v13 = vpack.c.b16 %v9749_v26, %v9739_v41  ;;  %v3759_v36 = vsel %vm8480_vm7, %v3754_v63, %v3758_v18  ;;  %v3763_v26 = vrot.slane %v3761_v8, 4 }
 0x127   : > { %v4161_v44 = vmul.f32 %v9629_v17, %v4137_v3  ;;  %3535 = vmatmul.bf16.gmra.mxu2 %v9624_v51  ;;  %v9784_v3 = vunpack.c.l.b16 %v3745_v24  ;;  %v4207_v33 = vmax.f32 %v4187_v57, 0.0  ;;  %v9790_v47 = vsel %vm8433_vm6, %v7149_v19, %v3960_v1  ;;  %4646 = vmatpush.bf16.msrb.mxu3 %v7895_v11 }
 0x128   : > { %v1290_v5 = vpop.f32.mrf.mxu3  ;;  %v4198_v51 = vmax.f32 %v4178_v45, 0.0  ;;  %v3764_v50 = vshll.u32 %v3696_v21, 16  ;;  %v3836_v1 = vunpack.c.l.b16 %v3759_v36 }
 0x129   : > { %v1301_v34 = vadd.f32 %v1290_v5, %v9414_v61  ;;  %v7903_v61 = vld [vmem:[%s10582_s5 + $0x520] sm:$0xff]  ;;  %v4185_v27 = vadd.f32 %v9653_v28, %v4161_v44  ;;  %3905 = vmatmul.bf16.vlgmr.msra.gmra.mxu0 %v3841_v54  ;;  %v9786_v54 = vld [vmem:[#allocation2 + $0x34] sm:$0x1]  ;;  %v4227_v30 = vmul.f32 %v8310_v43, %v4207_v33 }
 0x12a   : > { %v9760_v55 = vpop.f32.mrf.mxu0  ;;  %4820 = vmatpush.bf16.msrb.mxu0 %v7903_v61  ;;  %v4218_v5 = vmul.f32 %v8300_v38, %v4198_v51  ;;  %v3770_v24 = vshll.u32 %v9786_v54, 16  ;;  %v3766_v18 = vrot.slane %v3764_v50, 5  ;;  %v9808_v61 = vld [vmem:[#allocation2 + $0x3c] sm:$0x1] }
 0x12b   : > { %v1547_v16 = vadd.f32 %v9581_v29, %v1301_v34  ;;  %v1842_v14 = vpop.f32.mrf.mxu2  ;;  %v4205_v2 = vmax.f32 %v4185_v27, 0.0  ;;  %3366 = vmatmul.bf16.gmra.mxu1 %v3290_v13  ;;  %v4251_v35 = vmul.f32 %v8353_v9, %v4227_v30  ;;  %v3784_v51 = vshll.u32 %v9808_v61, 16 }
 0x12c   : > { %v9780_v23 = vadd.f32 %v1842_v14, %v1720_v4  ;;  %v3698_v4 = vld [vmem:[#allocation2 + $0x38] sm:$0xf]  ;;  %v4242_v48 = vmul.f32 %v8353_v9, %v4218_v5  ;;  %v3767_v27 = vor.u32 %v3766_v18, %v3763_v26  ;;  %v4121_v26 = vld [vmem:[%s8346_s8 + $0x34] sm:$0x1]  ;;  %v4007_v5 = vunpack.c.l.b16 %v9790_v47  ;;  %v9835_v47 = vld [vmem:[#allocation2 + $0x24] sm:$0xf0] }
 0x12d   : > { %v1721_v29 = vadd.f32 %v1710_v49, %v1547_v16  ;;  %v1712_v31 = vpop.f32.mrf.mxu1  ;;  %v4225_v41 = vmul.f32 %v8310_v43, %v4205_v2  ;;  %v9798_v49 = vsel %vm8433_vm6, %v7150_v37, %v3964_v15  ;;  %v3775_v34 = vshrl.u32 %v3698_v4, 16  ;;  %v4112_v16 = vld [vmem:[%s8346_s8 + $0x10] sm:$0xf]  ;;  %v4114_v14 = vld [vmem:[%s8346_s8 + $0x18] sm:$0xf] }
 0x12e   : > { %v3778_v56 = vshll.u32 %v3698_v4, 16  ;;  %v3772_v37 = vrot.slane %v3770_v24, 5  ;;  %v4271_v15 = vpack.c.bf16 %v4251_v35, %v4251_v35  ;;  %v4262_v8 = vpack.c.bf16 %v4242_v48, %v4242_v48  ;;  %4821 = vmatpush.bf16.msrb.mxu0 %v7902_v22  ;;  %v7901_v35 = vld [vmem:[%s10582_s5 + $0x510] sm:$0xff] }
 0x12f   : > { %v4249_v44 = vmul.f32 %v8353_v9, %v4225_v41  ;;  %v3777_v45 = vrot.slane %v3775_v34, 4  ;;  %v3768_v33 = vrot.slane %v3767_v27, 4  ;;  %v4132_v50 = vunpack.c.l.bf16 %v4112_v16 }
 0x130   : > { %v1292_v60 = vpop.f32.mrf.mxu3  ;;  %v3780_v13 = vrot.slane %v3778_v56, 5  ;;  %4291 = vst [vmem:[#allocation2 + $0x2c] sm:$0x1] %v4271_v15  ;;  %v4134_v30 = vunpack.c.l.bf16 %v4114_v14  ;;  %v4141_v24 = vunpack.c.l.bf16 %v4121_v26  ;;  %v7151_v15 = vrot.slane %v9842_v42, 9 }
 0x131   : > { %v1302_v21 = vadd.f32 %v1292_v60, %v9451_v46  ;;  %v4269_v63 = vpack.c.bf16 %v4249_v44, %v4249_v44  ;;  %4282 = vst [vmem:[#allocation2 + $0x8] sm:$0xf] %v4262_v8  ;;  %v3773_v44 = vsel %vm8480_vm7, %v3768_v33, %v3772_v37  ;;  %v4156_v58 = vmul.f32 %v9629_v17, %v4132_v50 }
 0x132   : > { %v9804_v19 = vpop.f32.mrf.mxu0  ;;  %v3781_v41 = vor.u32 %v3780_v13, %v3777_v45  ;;  %v4165_v34 = vmul.f32 %v9629_v17, %v4141_v24  ;;  %v4158_v48 = vmul.f32 %v9629_v17, %v4134_v30  ;;  %v3700_v13 = vld [vmem:[#allocation2 + $0x40] sm:$0xf]  ;;  %v3968_v26 = vrot.slane %v9677_v52, 5  ;;  %4822 = vmatpush.bf16.msrb.mxu0 %v7901_v35 }
 0x133   : > { %v1548_v46 = vadd.f32 %v9634_v32, %v1302_v21  ;;  %v1845_v57 = vpop.f32.mrf.mxu2  ;;  %4289 = vst [vmem:[#allocation2 + $0x24] sm:$0x1] %v4269_v63  ;;  %v4123_v32 = vld [vmem:[%s8346_s8 + $0x3c] sm:$0x1]  ;;  %v3786_v21 = vrot.slane %v3784_v51, 5  ;;  %v4180_v8 = vadd.f32 %v9653_v28, %v4156_v58  ;;  %v3789_v11 = vshrl.u32 %v3700_v13, 16 }
 0x134   : > { %v9813_v2 = vadd.f32 %v1845_v57, %v1721_v29  ;;  %v4008_v29 = vunpack.c.l.b16 %v9798_v49  ;;  %v4143_v60 = vunpack.c.l.bf16 %v4123_v32  ;;  %v3842_v49 = vpack.c.b16 %v3836_v1, %v9784_v3  ;;  %v7926_v3 = vld [vmem:[%s10582_s5 + $0x5b8] sm:$0xff]  ;;  %v9865_v57 = vld [vmem:[#allocation2 + $0x28] sm:$0xe] }
 0x135   : > { %3659 = vmatmul.bf16.vlgmr.msra.gmra.mxu3 %v7056_v39  ;;  %v1722_v4 = vadd.f32 %v1712_v31, %v1548_v46  ;;  %v2552_v36 = vpop.f32.mrf.mxu1  ;;  %v3464_v39 = vpack.c.b16 %v3460_v53, %v3459_v12  ;;  %v9833_v31 = vld [vmem:[#allocation2 + $0x20] sm:$0xf]  ;;  %v3782_v53 = vrot.slane %v3781_v41, 4  ;;  %v7894_v1 = vld [vmem:[%s10582_s5 + $0x4d8] sm:$0xff]  ;;  %v4189_v37 = vadd.f32 %v9653_v28, %v4165_v34  ;;  %5197 = vmatpush.bf16.msrb.mxu2 %v7926_v3 }
 0x136   : > { %v4167_v56 = vmul.f32 %v9629_v17, %v4143_v60  ;;  %v7060_v63 = vor.u32 %v9835_v47, %v9833_v31  ;;  %v4015_v27 = vpack.c.b16 %v4008_v29, %v4007_v5  ;;  %v9863_v46 = vunpack.c.l.b16 %v3773_v44  ;;  %4647 = vmatpush.bf16.msrb.mxu3 %v7894_v1  ;;  %v3702_v5 = vld [vmem:[#allocation2 + $0x48] sm:$0xf] }
 0x137   : > { %3540 = vmatmul.bf16.gmra.mxu2 %v3464_v39  ;;  %v4209_v51 = vmax.f32 %v4189_v37, 0.0  ;;  %v3787_v32 = vsel %vm8480_vm7, %v3782_v53, %v3786_v21  ;;  %v4182_v50 = vadd.f32 %v9653_v28, %v4158_v48  ;;  %v4200_v30 = vmax.f32 %v4180_v8, 0.0  ;;  %v7925_v53 = vld [vmem:[%s10582_s5 + $0x5b0] sm:$0xff]  ;;  %v4116_v8 = vld [vmem:[%s8346_s8 + $0x20] sm:$0xf] }
 0x138   : > { %v2076_v18 = vpop.f32.mrf.mxu3  ;;  %v4191_v45 = vadd.f32 %v9653_v28, %v4167_v56  ;;  %v7152_v60 = vrot.slane %v9865_v57, 9  ;;  %v3972_v52 = vrot.slane %v9710_v6, 5  ;;  %v3792_v39 = vshll.u32 %v3700_v13, 16  ;;  %v7918_v6 = vld [vmem:[%s10582_s5 + $0x578] sm:$0xff]  ;;  %v7879_v13 = vld [vmem:[#allocation2 + $0x4] sm:$0xf0] }
 0x139   : > { %v2096_v12 = vadd.f32 %v2076_v18, %v9502_v59  ;;  %3910 = vmatmul.bf16.gmra.mxu0 %v3842_v49  ;;  %v4229_v24 = vmul.f32 %v8310_v43, %v4209_v51  ;;  %v4202_v22 = vmax.f32 %v4182_v50, 0.0  ;;  %v9880_v44 = vunpack.c.l.b16 %v3787_v32  ;;  %4951 = vmatpush.bf16.msrb.mxu1 %v7918_v6  ;;  %v9906_v32 = vld [vmem:[#allocation2 + $0x4c] sm:$0x1]  ;;  %v4118_v50 = vld [vmem:[%s8346_s8 + $0x28] sm:$0xf]  ;;  %v7917_v6 = vld [vmem:[%s10582_s5 + $0x570] sm:$0xff] }
 0x13a   : > { %v9858_v59 = vpop.f32.mrf.mxu0  ;;  %v4211_v41 = vmax.f32 %v4191_v45, 0.0  ;;  %v3803_v56 = vshrl.u32 %v3702_v5, 16  ;;  %v3791_v21 = vrot.slane %v3789_v11, 4  ;;  %v3794_v35 = vrot.slane %v3792_v39, 5  ;;  %5198 = vmatpush.bf16.msrb.mxu2 %v7925_v53  ;;  %v7893_v11 = vld [vmem:[%s10582_s5 + $0x4d0] sm:$0xff]  ;;  %v7924_v53 = vld [vmem:[%s10582_s5 + $0x5a8] sm:$0xff] }
 0x13b   : > { %v2270_v16 = vadd.f32 %v9698_v20, %v2096_v12  ;;  %v1847_v14 = vpop.f32.mrf.mxu2  ;;  %v4253_v18 = vmul.f32 %v8353_v9, %v4229_v24  ;;  %4079 = vmatmul.bf16.vlgmr.msra.gmra.mxu1 %v4015_v27  ;;  %v4222_v58 = vmul.f32 %v8300_v38, %v4202_v22  ;;  %v9894_v27 = vld [vmem:[#allocation2] sm:$0xf]  ;;  %v3806_v57 = vshll.u32 %v3702_v5, 16  ;;  %v4127_v22 = vld [vmem:[%s8346_s8 + $0x4c] sm:$0x1]  ;;  %4648 = vmatpush.bf16.msrb.mxu3 %v7893_v11 }
 0x13c   : > { %v9869_v33 = vadd.f32 %v1847_v14, %v1722_v4  ;;  %v4231_v4 = vmul.f32 %v8310_v43, %v4211_v41  ;;  %v3805_v48 = vrot.slane %v3803_v56, 4  ;;  %v9897_v14 = vld [vmem:[#allocation2 + $0x44] sm:$0x1]  ;;  %v3973_v5 = vsel %vm8433_vm6, %v7152_v60, %v3972_v52  ;;  %v7900_v52 = vld [vmem:[%s10582_s5 + $0x508] sm:$0xff] }
 0x13d   : > { %v2572_v20 = vadd.f32 %v2552_v36, %v2270_v16  ;;  %v2554_v29 = vpop.f32.mrf.mxu1  ;;  %v4220_v36 = vmul.f32 %v8300_v38, %v4200_v30  ;;  %v4273_v3 = vpack.c.bf16 %v4253_v18, %v4253_v18  ;;  %v4246_v45 = vmul.f32 %v8353_v9, %v4222_v58  ;;  %v9927_v18 = vld [vmem:[#allocation2 + $0x30] sm:$0xf]  ;;  %4823 = vmatpush.bf16.msrb.mxu0 %v7900_v52 }
 0x13e   : > { %v4255_v34 = vmul.f32 %v8353_v9, %v4231_v4  ;;  %v4125_v4 = vld [vmem:[%s8346_s8 + $0x44] sm:$0x1]  ;;  %v4136_v31 = vunpack.c.l.bf16 %v4116_v8  ;;  %v3843_v47 = vpack.c.b16 %v9880_v44, %v9863_v46  ;;  %v4147_v60 = vunpack.c.l.bf16 %v4127_v22  ;;  %4952 = vmatpush.bf16.msrb.mxu1 %v7917_v6  ;;  %v9950_v8 = vld [vmem:[#allocation2 + $0x30] sm:$0xe]  ;;  %5199 = vmatpush.bf16.msrb.mxu2 %v7924_v53 }
 0x13f   : > { %v4244_v12 = vmul.f32 %v8353_v9, %v4220_v36  ;;  %4293 = vst [vmem:[#allocation2 + $0x34] sm:$0x1] %v4273_v3  ;;  %v4266_v24 = vpack.c.bf16 %v4246_v45, %v4246_v45  ;;  %v4145_v36 = vunpack.c.l.bf16 %v4125_v4  ;;  %v4010_v46 = vunpack.c.l.b16 %v3973_v5 }
 0x140   : > { %v2078_v49 = vpop.f32.mrf.mxu3  ;;  %v4275_v1 = vpack.c.bf16 %v4255_v34, %v4255_v34  ;;  %v9929_v34 = vld [vmem:[#allocation2 + $0x34] sm:$0xf0]  ;;  %v4138_v3 = vunpack.c.l.bf16 %v4118_v50 }
 0x141   : > { %v2097_v42 = vadd.f32 %v2078_v49, %v9560_v40  ;;  %v4264_v16 = vpack.c.bf16 %v4244_v12, %v4244_v12  ;;  %4286 = vst [vmem:[#allocation2 + $0x18] sm:$0xf] %v4266_v24  ;;  %v7224_v49 = vor.u32 %v7879_v13, %v9894_v27  ;;  %v4169_v44 = vmul.f32 %v9629_v17, %v4145_v36 }
 0x142   : > { %v9900_v51 = vpop.f32.mrf.mxu0  ;;  %4295 = vst [vmem:[#allocation2 + $0x3c] sm:$0x1] %v4275_v1  ;;  %v4171_v12 = vmul.f32 %v9629_v17, %v4147_v60  ;;  %v7064_v13 = vor.u32 %v9929_v34, %v9927_v18  ;;  %v4162_v4 = vmul.f32 %v9629_v17, %v4138_v3  ;;  %v7153_v36 = vrot.slane %v9950_v8, 9  ;;  %v7891_v18 = vld [vmem:[%s10582_s5 + $0x4c0] sm:$0xff] }
 0x143   : > { %v2271_v40 = vadd.f32 %v9760_v55, %v2097_v42  ;;  %v2798_v37 = vpop.f32.mrf.mxu2  ;;  %v3969_v55 = vsel %vm8433_vm6, %v7151_v15, %v3968_v26  ;;  %4284 = vst [vmem:[#allocation2 + $0x10] sm:$0xf] %v4264_v16  ;;  %v3795_v15 = vor.u32 %v3794_v35, %v3791_v21  ;;  %v3798_v26 = vshll.u32 %v9897_v14, 16  ;;  %v7892_v21 = vld [vmem:[%s10582_s5 + $0x4c8] sm:$0xff] }
 0x144   : > { %v9902_v41 = vadd.f32 %v2798_v37, %v2572_v20  ;;  %v3808_v20 = vrot.slane %v3806_v57, 5  ;;  %v4009_v42 = vunpack.c.l.b16 %v3969_v55  ;;  %v4195_v57 = vadd.f32 %v9653_v28, %v4171_v12  ;;  %4649 = vmatpush.bf16.msrb.mxu3 %v7892_v21  ;;  %v4436_v12 = vld [vmem:[#allocation2 + $0x8] sm:$0xf] }
 0x145   : > { %3664 = vmatmul.bf16.gmra.mxu3 %v7060_v63  ;;  %v2573_v30 = vadd.f32 %v2554_v29, %v2271_v40  ;;  %v3812_v29 = vshll.u32 %v9906_v32, 16  ;;  %v2557_v56 = vpop.f32.mrf.mxu1  ;;  %v3796_v1 = vrot.slane %v3795_v15, 4  ;;  %v3800_v35 = vrot.slane %v3798_v26, 5  ;;  %v4434_v15 = vld [vmem:[#allocation2] sm:$0xf] }
 0x146   : > { %v3809_v63 = vor.u32 %v3808_v20, %v3805_v48  ;;  %v7899_v48 = vld [vmem:[%s10582_s5 + $0x500] sm:$0xff]  ;;  %v4160_v40 = vmul.f32 %v9629_v17, %v4136_v31  ;;  %v4016_v50 = vpack.c.b16 %v4010_v46, %v4009_v42  ;;  %v3939_v20 = vld [vmem:[#allocation2 + $0x38] sm:$0xe]  ;;  %v3976_v31 = vrot.slane %v9786_v54, 5 }
 0x147   : > { %v3814_v16 = vrot.slane %v3812_v29, 5  ;;  %4405 = vmatmul.bf16.vlgmr.msra.gmra.mxu2 %v7224_v49  ;;  %4824 = vmatpush.bf16.msrb.mxu0 %v7899_v48  ;;  %v4186_v29 = vadd.f32 %v9653_v28, %v4162_v4  ;;  %v7154_v49 = vrot.slane %v3939_v20, 9  ;;  %v4454_v34 = vshll.u32 %v4434_v15, 16  ;;  %v9998_v20 = vld [vmem:[#allocation2 + $0x40] sm:$0xf] }
 0x148   : > { %v2081_v39 = vpop.f32.mrf.mxu3  ;;  %v3810_v45 = vrot.slane %v3809_v63, 4  ;;  %v4184_v11 = vadd.f32 %v9653_v28, %v4160_v40  ;;  %4650 = vmatpush.bf16.msrb.mxu3 %v7891_v18  ;;  %v10000_v4 = vld [vmem:[#allocation2 + $0x44] sm:$0xf0] }
 0x149   : > { %v2098_v58 = vadd.f32 %v2081_v39, %v9600_v0  ;;  %v4193_v0 = vadd.f32 %v9653_v28, %v4169_v44  ;;  %3915 = vmatmul.bf16.gmra.mxu0 %v3843_v47  ;;  %v4206_v42 = vmax.f32 %v4186_v29, 0.0  ;;  %v7916_v44 = vld [vmem:[%s10582_s5 + $0x568] sm:$0xff] }
 0x14a   : > { %v9960_v26 = vpop.f32.mrf.mxu0  ;;  %v3815_v47 = vsel %vm8480_vm7, %v3810_v45, %v3814_v16  ;;  %v4204_v60 = vmax.f32 %v4184_v11, 0.0  ;;  %4953 = vmatpush.bf16.msrb.mxu1 %v7916_v44  ;;  %v4465_v16 = vshrl.u32 %v4436_v12, 16  ;;  %v7914_v44 = vld [vmem:[%s10582_s5 + $0x558] sm:$0xff] }
 0x14b   : > { %v2272_v27 = vadd.f32 %v9804_v19, %v2098_v58  ;;  %v2800_v37 = vpop.f32.mrf.mxu2  ;;  %v4213_v5 = vmax.f32 %v4193_v0, 0.0  ;;  %v4215_v19 = vmax.f32 %v4195_v57, 0.0  ;;  %4084 = vmatmul.bf16.gmra.mxu1 %v4016_v50  ;;  %v7923_v58 = vld [vmem:[%s10582_s5 + $0x5a0] sm:$0xff]  ;;  %v3840_v21 = vunpack.c.l.b16 %v3815_v47  ;;  %v7880_v0 = vld [vmem:[#allocation2 + $0x14] sm:$0xf0] }
 0x14c   : > { %v9954_v55 = vadd.f32 %v2800_v37, %v2573_v30  ;;  %v3801_v30 = vsel %vm8480_vm7, %v3796_v1, %v3800_v35  ;;  %v4224_v46 = vmul.f32 %v8300_v38, %v4204_v60  ;;  %v7227_v35 = vld [vmem:[#allocation2 + $0x10] sm:$0xf]  ;;  %v4226_v40 = vmul.f32 %v8300_v38, %v4206_v42  ;;  %v9987_v37 = vld [vmem:[#allocation2 + $0x4] sm:$0x1]  ;;  %5200 = vmatpush.bf16.msrb.mxu2 %v7923_v58  ;;  %v4680_v47 = vld [vmem:[#allocation2] sm:$0xe] }
 0x14d   : > { %v9956_v24 = vadd.f32 %v2557_v56, %v2272_v27  ;;  %v4233_v22 = vmul.f32 %v8310_v43, %v4213_v5  ;;  %v4235_v63 = vmul.f32 0.0, %v4215_v19  ;;  %v4451_v43 = vshrl.u32 %v4434_v15, 16  ;;  %v2559_v6 = vpop.f32.mrf.mxu1  ;;  %v7946_v5 = vld [vmem:[%s10582_s5 + $0x638] sm:$0xff]  ;;  %v7915_v19 = vld [vmem:[%s10582_s5 + $0x560] sm:$0xff] }
 0x14e   : > { %v3839_v53 = vunpack.c.l.b16 %v3801_v30  ;;  %v4248_v27 = vmul.f32 %v8353_v9, %v4224_v46  ;;  %v4468_v57 = vshll.u32 %v4436_v12, 16  ;;  %v4456_v50 = vrot.slane %v4454_v34, 5  ;;  %5505 = vmatpush.bf16.msra.mxu0 %v7946_v5  ;;  %4954 = vmatpush.bf16.msrb.mxu1 %v7915_v19  ;;  %v7922_v42 = vld [vmem:[%s10582_s5 + $0x598] sm:$0xff]  ;;  %v4126_v46 = vld [vmem:[%s8346_s8 + $0x48] sm:$0xf] }
 0x14f   : > { %v4257_v39 = vmul.f32 %v8353_v9, %v4233_v22  ;;  %v4259_v54 = vmul.f32 %v8353_v9, %v4235_v63  ;;  %v4453_v45 = vrot.slane %v4451_v43, 4  ;;  %v4437_v22 = vld [vmem:[#allocation2 + $0xc] sm:$0x1]  ;;  %v4120_v63 = vld [vmem:[%s8346_s8 + $0x30] sm:$0xf]  ;;  %v7228_v60 = vor.u32 %v7880_v0, %v7227_v35 }
 0x150   : > { %v2083_v52 = vpop.f32.mrf.mxu3  ;;  %v4268_v8 = vpack.c.bf16 %v4248_v27, %v4248_v27  ;;  %v3844_v15 = vpack.c.b16 %v3840_v21, %v3839_v53  ;;  %v4467_v18 = vrot.slane %v4465_v16, 4  ;;  %v4474_v12 = vshll.u32 %v4437_v22, 16  ;;  %v7945_v53 = vld [vmem:[%s10582_s5 + $0x630] sm:$0xff]  ;;  %v4122_v21 = vld [vmem:[%s8346_s8 + $0x38] sm:$0xf]  ;;  %5201 = vmatpush.bf16.msrb.mxu2 %v7922_v42 }
 0x151   : > { %v2099_v56 = vadd.f32 %v2083_v52, %v9672_v10  ;;  %v4277_v3 = vpack.c.bf16 %v4257_v39, %v4257_v39  ;;  %v3980_v10 = vrot.slane %v9808_v61, 5  ;;  %v4279_v48 = vpack.c.bf16 %v4259_v54, %v4259_v54  ;;  %v3940_v35 = vld [vmem:[#allocation2 + $0x40] sm:$0xe]  ;;  %v4438_v42 = vld [vmem:[#allocation2 + $0x10] sm:$0xf] }
 0x152   : > { %4288 = vst [vmem:[#allocation2 + $0x20] sm:$0xf] %v4268_v8  ;;  %v4460_v39 = vshll.u32 %v9987_v37, 16  ;;  %v4457_v54 = vor.u32 %v4456_v50, %v4453_v45  ;;  %4955 = vmatpush.bf16.msrb.mxu1 %v7914_v44  ;;  %v4140_v27 = vunpack.c.l.bf16 %v4120_v63  ;;  %v7913_v45 = vld [vmem:[%s10582_s5 + $0x550] sm:$0xff]  ;;  %5506 = vmatpush.bf16.msra.mxu0 %v7945_v53  ;;  %v10039_v8 = vrot.slane %v4474_v12, 5 }
 0x153   : > { %v2273_v1 = vadd.f32 %v9858_v59, %v2099_v56  ;;  %4297 = vst [vmem:[#allocation2 + $0x44] sm:$0x1] %v4277_v3  ;;  %v4250_v59 = vmul.f32 %v8353_v9, %v4226_v40  ;;  %v3981_v11 = vsel %vm8433_vm6, %v7154_v49, %v3980_v10  ;;  %v7317_v10 = vrot.slane %v4680_v47, 9  ;;  %v3941_v50 = vld [vmem:[#allocation2 + $0x48] sm:$0xe] }
 0x154   : > { %4299 = vst [vmem:[#allocation2 + $0x4c] sm:$0x1] %v4279_v48  ;;  %v4012_v56 = vunpack.c.l.b16 %v3981_v11  ;;  %v4710_v48 = vrot.slane %v4437_v22, 5  ;;  %v4146_v40 = vunpack.c.l.bf16 %v4126_v46  ;;  %v7155_v5 = vrot.slane %v3940_v35, 9 }
 0x155   : > { %3669 = vmatmul.bf16.gmra.mxu3 %v7064_v13  ;;  %v9989_v61 = vadd.f32 %v2559_v6, %v2273_v1  ;;  %v3977_v13 = vsel %vm8433_vm6, %v7153_v36, %v3976_v31  ;;  %v4270_v30 = vpack.c.bf16 %v4250_v59, %v4250_v59  ;;  %v4470_v36 = vrot.slane %v4468_v57, 5  ;;  %v4681_v31 = vld [vmem:[#allocation2 + $0x8] sm:$0xe]  ;;  %v2803_v43 = vpop.f32.mrf.mxu2  ;;  %v7934_v6 = vld [vmem:[%s10582_s5 + $0x5f8] sm:$0xff] }
 0x156   : > { %v10007_v52 = vpop.f32.mrf.mxu0  ;;  %v4011_v34 = vunpack.c.l.b16 %v3977_v13  ;;  %v10019_v58 = vadd.f32 %v2803_v43, %v9956_v24  ;;  %v4706_v24 = vrot.slane %v9987_v37, 5  ;;  %v7318_v1 = vrot.slane %v4681_v31, 9  ;;  %5371 = vmatpush.bf16.msra.mxu3 %v7934_v6  ;;  %4956 = vmatpush.bf16.msrb.mxu1 %v7913_v45  ;;  %v7921_v43 = vld [vmem:[%s10582_s5 + $0x590] sm:$0xff]  ;;  %v4440_v6 = vld [vmem:[#allocation2 + $0x18] sm:$0xf] }
 0x157   : > { %4290 = vst [vmem:[#allocation2 + $0x28] sm:$0xf] %v4270_v30  ;;  %4410 = vmatmul.bf16.gmra.mxu2 %v7228_v60  ;;  %v4471_v0 = vor.u32 %v4470_v36, %v4467_v18  ;;  %v10035_v57 = vrot.slane %v4457_v54, 4  ;;  %v4142_v37 = vunpack.c.l.bf16 %v4122_v21  ;;  %v4170_v19 = vmul.f32 %v9629_v17, %v4146_v40  ;;  %v7944_v40 = vld [vmem:[%s10582_s5 + $0x628] sm:$0xff] }
 0x158   : > { %v2086_v29 = vpop.f32.mrf.mxu3  ;;  %v4017_v16 = vpack.c.b16 %v4012_v56, %v4011_v34  ;;  %v2562_v59 = vpop.f32.mrf.mxu1  ;;  %v4164_v13 = vmul.f32 %v9629_v17, %v4140_v27  ;;  %v3984_v30 = vrot.slane %v9897_v14, 5  ;;  %v4711_v60 = vsel %vm8433_vm6, %v7318_v1, %v4710_v48  ;;  %v7912_v34 = vld [vmem:[%s10582_s5 + $0x548] sm:$0xff]  ;;  %5202 = vmatpush.bf16.msrb.mxu2 %v7921_v43  ;;  %v7933_v48 = vld [vmem:[%s10582_s5 + $0x5f0] sm:$0xff]  ;;  %5507 = vmatpush.bf16.msra.mxu0 %v7944_v40 }
 0x159   : > { %v2100_v49 = vadd.f32 %v2086_v29, %v9725_v62  ;;  %v7068_v62 = vor.u32 %v10000_v4, %v9998_v20  ;;  %3920 = vmatmul.bf16.gmra.mxu0 %v3844_v15  ;;  %v4707_v15 = vsel %vm8433_vm6, %v7317_v10, %v4706_v24  ;;  %v4166_v22 = vmul.f32 %v9629_v17, %v4142_v37  ;;  %v7231_v53 = vld [vmem:[#allocation2 + $0x20] sm:$0xf]  ;;  %v7920_v37 = vld [vmem:[%s10582_s5 + $0x588] sm:$0xff] }
 0x15a   : > { %v10051_v29 = vrot.slane %v4471_v0, 4  ;;  %v4188_v18 = vadd.f32 %v9653_v28, %v4164_v13  ;;  %v7156_v14 = vrot.slane %v3941_v50, 9  ;;  %v3988_v17 = vrot.slane %v9906_v32, 5  ;;  %4957 = vmatpush.bf16.msrb.mxu1 %v7912_v34  ;;  %v7911_v20 = vld [vmem:[%s10582_s5 + $0x540] sm:$0xff]  ;;  %5372 = vmatpush.bf16.msra.mxu3 %v7933_v48  ;;  %v7932_v43 = vld [vmem:[%s10582_s5 + $0x5e8] sm:$0xff] }
 0x15b   : > { %v2274_v3 = vadd.f32 %v9900_v51, %v2100_v49  ;;  %v10037_v51 = vrot.slane %v4460_v39, 5  ;;  %v4194_v39 = vadd.f32 %v9653_v28, %v4170_v19  ;;  %4089 = vmatmul.bf16.gmra.mxu1 %v4017_v16  ;;  %v4190_v49 = vadd.f32 %v9653_v28, %v4166_v22  ;;  %v4682_v19 = vld [vmem:[#allocation2 + $0x10] sm:$0xe]  ;;  %v7943_v34 = vld [vmem:[%s10582_s5 + $0x620] sm:$0xff] }
 0x15c   : > { %v4208_v32 = vmax.f32 %v4188_v18, 0.0  ;;  %v4753_v46 = vunpack.c.l.b16 %v4707_v15  ;;  %v4754_v44 = vunpack.c.l.b16 %v4711_v60  ;;  %v4479_v35 = vshrl.u32 %v4438_v42, 16  ;;  %v4439_v60 = vld [vmem:[#allocation2 + $0x14] sm:$0x1]  ;;  %v4683_v18 = vld [vmem:[#allocation2 + $0x18] sm:$0xe]  ;;  %5203 = vmatpush.bf16.msrb.mxu2 %v7920_v37  ;;  %5508 = vmatpush.bf16.msra.mxu0 %v7943_v34 }
 0x15d   : > { %v10043_v11 = vadd.f32 %v2562_v59, %v2274_v3  ;;  %v2805_v31 = vpop.f32.mrf.mxu2  ;;  %v4214_v54 = vmax.f32 %v4194_v39, 0.0  ;;  %v4210_v12 = vmax.f32 %v4190_v49, 0.0  ;;  %v3985_v3 = vsel %vm8433_vm6, %v7155_v5, %v3984_v30  ;;  %v4441_v39 = vld [vmem:[#allocation2 + $0x1c] sm:$0x1]  ;;  %v7919_v49 = vld [vmem:[%s10582_s5 + $0x580] sm:$0xff] }
 0x15e   : > { %v10049_v63 = vpop.f32.mrf.mxu0  ;;  %v10067_v56 = vadd.f32 %v2805_v31, %v9989_v61  ;;  %v7881_v21 = vld [vmem:[#allocation2 + $0x24] sm:$0xf0]  ;;  %v4477_v61 = vsel %vm8480_vm7, %v10051_v29, %v10039_v8  ;;  %v4228_v24 = vmul.f32 %v8300_v38, %v4208_v32  ;;  %v4482_v0 = vshll.u32 %v4438_v42, 16  ;;  %4958 = vmatpush.bf16.msrb.mxu1 %v7911_v20  ;;  %5373 = vmatpush.bf16.msra.mxu3 %v7932_v43  ;;  %v7931_v43 = vld [vmem:[%s10582_s5 + $0x5e0] sm:$0xff] }
 0x15f   : > { %v4234_v10 = vmul.f32 0.0, %v4214_v54  ;;  %v4230_v1 = vmul.f32 %v8300_v38, %v4210_v12  ;;  %v4493_v45 = vshrl.u32 %v4440_v6, 16  ;;  %v4496_v16 = vshll.u32 %v4440_v6, 16  ;;  %v4988_v54 = vld [vmem:[#allocation2 + $0x8] sm:$0xf] }
 0x160   : > { %v2088_v47 = vpop.f32.mrf.mxu3  ;;  %v2564_v4 = vpop.f32.mrf.mxu1  ;;  %v4252_v27 = vmul.f32 %v8353_v9, %v4228_v24  ;;  %v4761_v8 = vpack.c.b16 %v4754_v44, %v4753_v46  ;;  %v4013_v50 = vunpack.c.l.b16 %v3985_v3  ;;  %v7232_v15 = vor.u32 %v7881_v21, %v7231_v53  ;;  %5204 = vmatpush.bf16.msrb.mxu2 %v7919_v49 }
 0x161   : > { %v2101_v36 = vadd.f32 %v2088_v47, %v9780_v23  ;;  %v4463_v23 = vsel %vm8480_vm7, %v10035_v57, %v10037_v51  ;;  %v4254_v5 = vmul.f32 %v8353_v9, %v4230_v1  ;;  %v4495_v32 = vrot.slane %v4493_v45, 4  ;;  %v4442_v45 = vld [vmem:[#allocation2 + $0x20] sm:$0xf] }
 0x162   : > { %v4272_v29 = vpack.c.bf16 %v4252_v27, %v4252_v27  ;;  %v4498_v42 = vrot.slane %v4496_v16, 5  ;;  %v4714_v46 = vrot.slane %v4439_v60, 5  ;;  %v7320_v44 = vrot.slane %v4683_v18, 9  ;;  %5374 = vmatpush.bf16.msra.mxu3 %v7931_v43 }
 0x163   : > { %v2275_v28 = vadd.f32 %v9960_v26, %v2101_v36  ;;  %v3989_v26 = vsel %vm8433_vm6, %v7156_v14, %v3988_v17  ;;  %v4274_v31 = vpack.c.bf16 %v4254_v5, %v4254_v5  ;;  %v4481_v14 = vrot.slane %v4479_v35, 4 }
 0x164   : > { %v4014_v22 = vunpack.c.l.b16 %v3989_v26  ;;  %v4484_v17 = vrot.slane %v4482_v0, 5  ;;  %4292 = vst [vmem:[#allocation2 + $0x30] sm:$0xf] %v4272_v29  ;;  %v4718_v12 = vrot.slane %v4441_v39, 5  ;;  %v4579_v6 = vunpack.c.l.b16 %v4463_v23 }
 0x165   : > { %3674 = vmatmul.bf16.gmra.mxu3 %v7068_v62  ;;  %v4258_v62 = vmul.f32 %v8353_v9, %v4234_v10  ;;  %v10101_v59 = vadd.f32 %v2564_v4, %v2275_v28  ;;  %v4580_v53 = vunpack.c.l.b16 %v4477_v61  ;;  %4294 = vst [vmem:[#allocation2 + $0x38] sm:$0xf] %v4274_v31  ;;  %v4488_v10 = vshll.u32 %v4439_v60, 16 }
 0x166   : > { %v10104_v30 = vpop.f32.mrf.mxu0  ;;  %v4018_v21 = vpack.c.b16 %v4014_v22, %v4013_v50  ;;  %v4485_v3 = vor.u32 %v4484_v17, %v4481_v14  ;;  %v4502_v24 = vshll.u32 %v4441_v39, 16  ;;  %v4499_v1 = vor.u32 %v4498_v42, %v4495_v32  ;;  %v4444_v22 = vld [vmem:[#allocation2 + $0x28] sm:$0xf] }
 0x167   : > { %v4278_v47 = vpack.c.bf16 %v4258_v62, %v4258_v62  ;;  %4415 = vmatmul.bf16.gmra.mxu2 %v7232_v15  ;;  %v5005_v35 = vshrl.u32 %v4988_v54, 16  ;;  %v4719_v57 = vsel %vm8433_vm6, %v7320_v44, %v4718_v12  ;;  %v5008_v51 = vshll.u32 %v4988_v54, 16  ;;  %v10154_v12 = vld [vmem:[#allocation2 + $0xc] sm:$0xf0] }
 0x168   : > { %v2091_v13 = vpop.f32.mrf.mxu3  ;;  %v2567_v26 = vpop.f32.mrf.mxu1  ;;  %v4587_v20 = vpack.c.b16 %v4580_v53, %v4579_v6  ;;  %v4486_v37 = vrot.slane %v4485_v3, 4  ;;  %v4504_v50 = vrot.slane %v4502_v24, 5  ;;  %v4500_v5 = vrot.slane %v4499_v1, 4  ;;  %v4443_v53 = vld [vmem:[#allocation2 + $0x24] sm:$0x1] }
 0x169   : > { %v2102_v36 = vadd.f32 %v2091_v13, %v9813_v2  ;;  %4298 = vst [vmem:[#allocation2 + $0x48] sm:$0xf] %v4278_v47  ;;  %v7319_v2 = vrot.slane %v4682_v19, 9  ;;  %4825 = vmatmul.bf16.vlgmr.msrb.gmra.mxu0 %v4761_v8  ;;  %v4490_v8 = vrot.slane %v4488_v10, 5  ;;  %v4756_v13 = vunpack.c.l.b16 %v4719_v57  ;;  %v10135_v47 = vld [vmem:[#allocation2 + $0xc] sm:$0x1] }
 0x16a   : > { %v2808_v0 = vpop.f32.mrf.mxu2  ;;  %v5007_v15 = vrot.slane %v5005_v35, 4  ;;  %v5010_v29 = vrot.slane %v5008_v51, 5  ;;  %v4507_v60 = vshrl.u32 %v4442_v45, 16  ;;  %v4510_v39 = vshll.u32 %v4442_v45, 16  ;;  %v4684_v35 = vld [vmem:[#allocation2 + $0x20] sm:$0xe] }
 0x16b   : > { %v2276_v28 = vadd.f32 %v10007_v52, %v2102_v36  ;;  %v4990_v52 = vld [vmem:[#allocation2 + $0x10] sm:$0xf]  ;;  %v4715_v40 = vsel %vm8433_vm6, %v7319_v2, %v4714_v46  ;;  %v10129_v61 = vadd.f32 %v2808_v0, %v10043_v11  ;;  %4094 = vmatmul.bf16.gmra.mxu1 %v4018_v21  ;;  %v10137_v36 = vld [vmem:[#allocation2 + $0x14] sm:$0x1]  ;;  %v4521_v17 = vshrl.u32 %v4444_v22, 16 }
 0x16c   : > { %v5019_v62 = vshrl.u32 %v4990_v52, 16  ;;  %v5022_v27 = vshll.u32 %v4990_v52, 16  ;;  %v4755_v19 = vunpack.c.l.b16 %v4715_v40  ;;  %v7235_v18 = vld [vmem:[#allocation2 + $0x30] sm:$0xf]  ;;  %v7882_v14 = vld [vmem:[#allocation2 + $0x34] sm:$0xf0]  ;;  %v4491_v54 = vsel %vm8480_vm7, %v4486_v37, %v4490_v8 }
 0x16d   : > { %v10122_v48 = vadd.f32 %v2567_v26, %v2276_v28  ;;  %v4524_v49 = vshll.u32 %v4444_v22, 16  ;;  %v4505_v32 = vsel %vm8480_vm7, %v4500_v5, %v4504_v50  ;;  %v10149_v2 = vld [vmem:[#allocation2 + $0x8] sm:$0xf]  ;;  %v5014_v28 = vshll.u32 %v10135_v47, 16  ;;  %v4445_v37 = vld [vmem:[#allocation2 + $0x2c] sm:$0x1] }
 0x16e   : > { %v10131_v4 = vpop.f32.mrf.mxu0  ;;  %v5024_v31 = vrot.slane %v5022_v27, 5  ;;  %v4762_v42 = vpack.c.b16 %v4756_v13, %v4755_v19  ;;  %v5011_v6 = vor.u32 %v5010_v29, %v5007_v15  ;;  %v4509_v21 = vrot.slane %v4507_v60, 4  ;;  %v4685_v0 = vld [vmem:[#allocation2 + $0x28] sm:$0xe]  ;;  %v4992_v13 = vld [vmem:[#allocation2 + $0x18] sm:$0xf] }
 0x16f   : > { %v4512_v3 = vrot.slane %v4510_v39, 5  ;;  %v7236_v52 = vor.u32 %v7882_v14, %v7235_v18  ;;  %v5028_v1 = vshll.u32 %v10137_v36, 16  ;;  %v4523_v51 = vrot.slane %v4521_v17, 4  ;;  %v4994_v15 = vld [vmem:[#allocation2 + $0x20] sm:$0xf] }
 0x170   : > { %v2093_v23 = vpop.f32.mrf.mxu3  ;;  %v2569_v34 = vpop.f32.mrf.mxu1  ;;  %v10174_v27 = vunpack.c.l.b16 %v4491_v54  ;;  %v10176_v45 = vunpack.c.l.b16 %v4505_v32  ;;  %v5012_v50 = vrot.slane %v5011_v6, 4  ;;  %v4516_v19 = vshll.u32 %v4443_v53, 16 }
 0x171   : > { %v2103_v16 = vadd.f32 %v2093_v23, %v9869_v33  ;;  %v5021_v33 = vrot.slane %v5019_v62, 4  ;;  %v4526_v23 = vrot.slane %v4524_v49, 5  ;;  %v7941_v62 = vld [vmem:[%s10582_s5 + $0x610] sm:$0xff]  ;;  %v4513_v5 = vor.u32 %v4512_v3, %v4509_v21  ;;  %v10197_v21 = vld [vmem:[#allocation2 + $0x1c] sm:$0x1] }
 0x172   : > { %v2810_v46 = vpop.f32.mrf.mxu2  ;;  %v7321_v22 = vrot.slane %v4684_v35, 9  ;;  %v7322_v29 = vrot.slane %v4685_v0, 9  ;;  %v4726_v60 = vrot.slane %v4445_v37, 5  ;;  %v5030_v18 = vrot.slane %v5028_v1, 5  ;;  %v10202_v1 = vld [vmem:[#allocation2 + $0x24] sm:$0x1] }
 0x173   : > { %v2277_v11 = vadd.f32 %v10049_v63, %v2103_v16  ;;  %v7942_v63 = vld [vmem:[%s10582_s5 + $0x618] sm:$0xff]  ;;  %v10157_v24 = vadd.f32 %v2810_v46, %v10101_v59  ;;  %v5025_v57 = vor.u32 %v5024_v31, %v5021_v33  ;;  %v5016_v16 = vrot.slane %v5014_v28, 5  ;;  %v10212_v0 = vld [vmem:[%s10582_s5 + $0x6b0] sm:$0xff] }
 0x174   : > { %5509 = vmatpush.bf16.msra.mxu0 %v7942_v63  ;;  %v7930_v59 = vld [vmem:[%s10582_s5 + $0x5d8] sm:$0xff]  ;;  %v4527_v33 = vor.u32 %v4526_v23, %v4523_v51  ;;  %v4530_v31 = vshll.u32 %v4445_v37, 16  ;;  %v5036_v17 = vshll.u32 %v4992_v13, 16  ;;  %v5047_v49 = vshrl.u32 %v4994_v15, 16  ;;  %v4446_v23 = vld [vmem:[#allocation2 + $0x30] sm:$0xf] }
 0x175   : > { %4651 = vmatmul.bf16.vlgmr.msrb.gmra.mxu3 %v4587_v20  ;;  %v10152_v44 = vadd.f32 %v2569_v34, %v2277_v11  ;;  %v10166_v20 = vld [vmem:[%s10582_s5 + $0x6b8] sm:$0xff]  ;;  %v4722_v11 = vrot.slane %v4443_v53, 5  ;;  %v5026_v39 = vrot.slane %v5025_v57, 4  ;;  %v5050_v43 = vshll.u32 %v4994_v15, 16 }
 0x176   : > { %v10159_v26 = vpop.f32.mrf.mxu0  ;;  %5925 = vmatpush.bf16.msra.mxu2 %v10166_v20  ;;  %5375 = vmatpush.bf16.msra.mxu3 %v7930_v59  ;;  %v4588_v34 = vpack.c.b16 %v10176_v45, %v10174_v27  ;;  %v5017_v32 = vsel %vm8480_vm7, %v5012_v50, %v5016_v16  ;;  %v4727_v53 = vsel %vm8433_vm6, %v7322_v29, %v4726_v60  ;;  %v10207_v35 = vld [vmem:[%s10582_s5 + $0x678] sm:$0xff]  ;;  %v5049_v57 = vrot.slane %v5047_v49, 4 }
 0x177   : > { %4420 = vmatmul.bf16.gmra.mxu2 %v7236_v52  ;;  %v4723_v6 = vsel %vm8433_vm6, %v7321_v22, %v4722_v11  ;;  %v4528_v52 = vrot.slane %v4527_v33, 4  ;;  %v5052_v51 = vrot.slane %v5050_v43, 5  ;;  %v4758_v27 = vunpack.c.l.b16 %v4727_v53  ;;  %7994 = vmatpush.bf16.msra.mxu1 %v10207_v35  ;;  %v4448_v45 = vld [vmem:[#allocation2 + $0x38] sm:$0xf] }
 0x178   : > { %v2972_v10 = vpop.f32.mrf.mxu3  ;;  %5510 = vmatpush.bf16.msra.mxu0 %v7941_v62  ;;  %v3352_v14 = vpop.f32.mrf.mxu1  ;;  %v4757_v62 = vunpack.c.l.b16 %v4723_v6  ;;  %v5042_v50 = vshll.u32 %v10197_v21, 16  ;;  %v4538_v29 = vshll.u32 %v4446_v23, 16  ;;  %v4549_v60 = vshrl.u32 %v4448_v45, 16  ;;  %v4124_v6 = vld [vmem:[%s8346_s8 + $0x40] sm:$0xf]  ;;  %s407_s8 = sadd.s32 %s6207_s12, %s6206_s10 }
 0x179   : > { %v2992_v40 = vadd.f32 %v2972_v10, %v9902_v41  ;;  %v7392_v41 = vor.u32 %v10154_v12, %v10149_v2  ;;  %4830 = vmatmul.bf16.gmra.mxu0 %v4762_v42  ;;  %v4518_v42 = vrot.slane %v4516_v19, 5  ;;  %v4514_v12 = vrot.slane %v4513_v5, 4  ;;  %v7929_v19 = vld [vmem:[%s10582_s5 + $0x5d0] sm:$0xff]  ;;  %s6208_s11 = sshll.u32 %s407_s8, 2 }
 0x17a   : > { %v2813_v63 = vpop.f32.mrf.mxu2  ;;  %v5031_v10 = vsel %vm8480_vm7, %v5026_v39, %v5030_v18  ;;  %5926 = vmatpush.bf16.msra.mxu2 %v10212_v0  ;;  %v4535_v5 = vshrl.u32 %v4446_v23, 16  ;;  %v5053_v11 = vor.u32 %v5052_v51, %v5049_v57  ;;  %v4763_v33 = vpack.c.b16 %v4758_v27, %v4757_v62  ;;  %5376 = vmatpush.bf16.msra.mxu3 %v7929_v19  ;;  %v7939_v23 = vld [vmem:[%s10582_s5 + $0x600] sm:$0xff]  ;;  %v4449_v62 = vld [vmem:[#allocation2 + $0x3c] sm:$0x1]  ;;  %s10549_s17 = scalar_lea.vmem %s10583_s6, %s6208_s11 }
 0x17b   : > { %v3126_v8 = vadd.f32 %v10104_v30, %v2992_v40  ;;  %v5033_v30 = vshrl.u32 %v4992_v13, 16  ;;  %v10189_v28 = vadd.f32 %v2813_v63, %v10122_v48  ;;  %4959 = vmatmul.bf16.vlgmr.msrb.gmra.mxu1 %v7392_v41  ;;  %v4532_v48 = vrot.slane %v4530_v31, 5  ;;  %v7940_v13 = vld [vmem:[%s10582_s5 + $0x608] sm:$0xff] }
 0x17c   : > { %v5133_v41 = vunpack.c.l.b16 %v5017_v32  ;;  %v5134_v16 = vunpack.c.l.b16 %v5031_v10  ;;  %v4519_v37 = vsel %vm8480_vm7, %v4514_v12, %v4518_v42  ;;  %v4552_v31 = vshll.u32 %v4448_v45, 16  ;;  %5511 = vmatpush.bf16.msra.mxu0 %v7940_v13  ;;  %v7908_v32 = vld [vmem:[#allocation2 + $0x1c] sm:$0xf0]  ;;  %v10240_v42 = vld [vmem:[#allocation2 + $0x34] sm:$0x1] }
 0x17d   : > { %v10184_v54 = vadd.f32 %v3352_v14, %v3126_v8  ;;  %v5035_v40 = vrot.slane %v5033_v30, 4  ;;  %v4533_v8 = vsel %vm8480_vm7, %v4528_v52, %v4532_v48  ;;  %v10236_v43 = vunpack.c.l.b16 %v4519_v37  ;;  %v4687_v12 = vld [vmem:[#allocation2 + $0x38] sm:$0xe]  ;;  %v7953_v52 = vld [vmem:[%s10582_s5 + $0x670] sm:$0xff]  ;;  %v10250_v48 = vld [vmem:[%s10582_s5 + $0x6a8] sm:$0xff] }
 0x17e   : > { %v10191_v46 = vpop.f32.mrf.mxu0  ;;  %v10238_v63 = vunpack.c.l.b16 %v4533_v8  ;;  %v5054_v57 = vrot.slane %v5053_v11, 4  ;;  %v4540_v51 = vrot.slane %v4538_v29, 5  ;;  %v4554_v27 = vrot.slane %v4552_v31, 5  ;;  %7995 = vmatpush.bf16.msra.mxu1 %v7953_v52  ;;  %5927 = vmatpush.bf16.msra.mxu2 %v10250_v48  ;;  %v4998_v11 = vld [vmem:[#allocation2 + $0x30] sm:$0xf] }
 0x17f   : > { %v4734_v37 = vrot.slane %v4449_v62, 5 }
 0x180   : > { %v2974_v2 = vpop.f32.mrf.mxu3  ;;  %v3354_v15 = vpop.f32.mrf.mxu1  ;;  %v4589_v8 = vpack.c.b16 %v10238_v63, %v10236_v43  ;;  %5512 = vmatpush.bf16.msra.mxu0 %v7939_v23 }
 0x181   : > { %v2993_v3 = vadd.f32 %v2974_v2, %v9954_v55  ;;  %v5038_v55 = vrot.slane %v5036_v17, 5  ;;  %v5141_v17 = vpack.c.b16 %v5134_v16, %v5133_v41  ;;  %v4686_v2 = vld [vmem:[#allocation2 + $0x30] sm:$0xe]  ;;  %v4730_v41 = vrot.slane %v10240_v42, 5 }
 0x182   : > { %v2815_v39 = vpop.f32.mrf.mxu2  ;;  %v7323_v45 = vrot.slane %v4686_v2, 9  ;;  %v7324_v16 = vrot.slane %v4687_v12, 9  ;;  %v5075_v12 = vshrl.u32 %v4998_v11, 16 }
 0x183   : > { %v3127_v59 = vadd.f32 %v10131_v4, %v2993_v3  ;;  %v5056_v4 = vshll.u32 %v10202_v1, 16  ;;  %v5039_v22 = vor.u32 %v5038_v55, %v5035_v40  ;;  %v10232_v30 = vadd.f32 %v2815_v39, %v10152_v44  ;;  %v7928_v40 = vld [vmem:[%s10582_s5 + $0x5c8] sm:$0xff] }
 0x184   : > { %v5044_v3 = vrot.slane %v5042_v50, 5  ;;  %v4537_v44 = vrot.slane %v4535_v5, 4  ;;  %5377 = vmatpush.bf16.msra.mxu3 %v7928_v40  ;;  %v4144_v5 = vunpack.c.l.bf16 %v4124_v6  ;;  %5751 = vmatpush.bf16.msrb.mxu0 %v10207_v35  ;;  %v4731_v31 = vsel %vm8433_vm6, %v7323_v45, %v4730_v41 }
 0x185   : > { %4656 = vmatmul.bf16.gmra.mxu3 %v4588_v34  ;;  %v10229_v18 = vadd.f32 %v3354_v15, %v3127_v59  ;;  %v7395_v34 = vld [vmem:[#allocation2 + $0x18] sm:$0xf]  ;;  %v5058_v10 = vrot.slane %v5056_v4, 5  ;;  %v5040_v55 = vrot.slane %v5039_v22, 4  ;;  %v4996_v4 = vld [vmem:[#allocation2 + $0x28] sm:$0xf]  ;;  %v4735_v63 = vsel %vm8433_vm6, %v7324_v16, %v4734_v37 }
 0x186   : > { %v10234_v49 = vpop.f32.mrf.mxu0  ;;  %v7396_v50 = vor.u32 %v7908_v32, %v7395_v34  ;;  %v4541_v13 = vor.u32 %v4540_v51, %v4537_v44  ;;  %v4544_v15 = vshll.u32 %v10240_v42, 16  ;;  %v4558_v22 = vshll.u32 %v4449_v62, 16  ;;  %v7927_v34 = vld [vmem:[%s10582_s5 + $0x5c0] sm:$0xff] }
 0x187   : > { %5205 = vmatmul.bf16.vlgmr.msrb.gmra.mxu2 %v5141_v17  ;;  %v5045_v19 = vsel %vm8480_vm7, %v5040_v55, %v5044_v3  ;;  %v5059_v39 = vsel %vm8480_vm7, %v5054_v57, %v5058_v10  ;;  %v5061_v35 = vshrl.u32 %v4996_v4, 16  ;;  %v8071_v32 = vld [vmem:[%s10580_s3] ss:$0 sm:$0xff]  ;;  %v5078_v6 = vshll.u32 %v4998_v11, 16 }
 0x188   : > { %v2977_v14 = vpop.f32.mrf.mxu3  ;;  %v4168_v42 = vmul.f32 %v8071_v32, %v4144_v5  ;;  %v10293_v3 = vld [vmem:[%s10582_s5 + $0x6a0] sm:$0xff]  ;;  %v5135_v10 = vunpack.c.l.b16 %v5045_v19  ;;  %v5136_v44 = vunpack.c.l.b16 %v5059_v39  ;;  %v4542_v40 = vrot.slane %v4541_v13, 4  ;;  %5378 = vmatpush.bf16.msra.mxu3 %v7927_v34  ;;  %5752 = vmatpush.bf16.msrb.mxu0 %v7953_v52  ;;  %v10303_v52 = vld [vmem:[#allocation2 + $0x34] sm:$0x1] }
 0x189   : > { %v2994_v53 = vadd.f32 %v2977_v14, %v10019_v58  ;;  %v4551_v58 = vrot.slane %v4549_v60, 4  ;;  %4835 = vmatmul.bf16.gmra.mxu0 %v4763_v33  ;;  %v4546_v55 = vrot.slane %v4544_v15, 5  ;;  %v4759_v57 = vunpack.c.l.b16 %v4731_v31  ;;  %5928 = vmatpush.bf16.msra.mxu2 %v10293_v3 }
 0x18a   : > { %v3526_v29 = vpop.f32.mrf.mxu2  ;;  %v4760_v51 = vunpack.c.l.b16 %v4735_v63  ;;  %v4560_v62 = vrot.slane %v4558_v22, 5  ;;  %v5063_v45 = vrot.slane %v5061_v35, 4  ;;  %v5077_v41 = vrot.slane %v5075_v12, 4  ;;  %v10327_v35 = vld [vmem:[%s10582_s5 + $0x698] sm:$0xff]  ;;  %v5234_v12 = vld [vmem:[#allocation2 + $0x8] sm:$0xe] }
 0x18b   : > { %v3128_v59 = vadd.f32 %v10159_v26, %v2994_v53  ;;  %v3357_v26 = vpop.f32.mrf.mxu1  ;;  %v4555_v33 = vor.u32 %v4554_v27, %v4551_v58  ;;  %v10274_v17 = vadd.f32 %v3526_v29, %v10184_v54  ;;  %4964 = vmatmul.bf16.gmra.mxu1 %v7396_v50  ;;  %v5064_v54 = vshll.u32 %v4996_v4, 16  ;;  %v7952_v53 = vld [vmem:[%s10582_s5 + $0x668] sm:$0xff]  ;;  %v8072_v58 = vld [vmem:[%s10581_s4] ss:$0 sm:$0xff] }
 0x18c   : > { %7996 = vmatpush.bf16.msra.mxu1 %v7952_v53  ;;  %v4192_v23 = vadd.f32 %v8072_v58, %v4168_v42  ;;  %v10300_v27 = vld [vmem:[#allocation2 + $0x2c] sm:$0x1]  ;;  %8002 = vmatpush.bf16.msrb.mxu3 %v10166_v20  ;;  %v5080_v16 = vrot.slane %v5078_v6, 5  ;;  %v4547_v4 = vsel %vm8480_vm7, %v4542_v40, %v4546_v55  ;;  %v5142_v19 = vpack.c.b16 %v5136_v44, %v5135_v10  ;;  %v7399_v29 = vld [vmem:[#allocation2 + $0x28] sm:$0xf] }
 0x18d   : > { %v10267_v60 = vadd.f32 %v3357_v26, %v3128_v59  ;;  %v4556_v59 = vrot.slane %v4555_v33, 4  ;;  %5753 = vmatpush.bf16.msrb.mxu0 %v7952_v53  ;;  %v4764_v13 = vpack.c.b16 %v4760_v51, %v4759_v57  ;;  %v5070_v39 = vshll.u32 %v10300_v27, 16  ;;  %v5235_v6 = vld [vmem:[#allocation2 + $0x10] sm:$0xe]  ;;  %5929 = vmatpush.bf16.msra.mxu2 %v10327_v35 }
 0x18e   : > { %v10276_v43 = vpop.f32.mrf.mxu0  ;;  %v4212_v37 = vmax.f32 %v4192_v23, 0.0  ;;  %v5084_v33 = vshll.u32 %v10303_v52, 16  ;;  %v5081_v63 = vor.u32 %v5080_v16, %v5077_v41  ;;  %v4585_v32 = vunpack.c.l.b16 %v4547_v4  ;;  %v5546_v4 = vld [vmem:[#allocation2 + $0x20] sm:$0xf] }
 0x18f   : > { %v4561_v11 = vsel %vm8480_vm7, %v4556_v59, %v4560_v62  ;;  %v5072_v10 = vrot.slane %v5070_v39, 5 }
 0x190   : > { %v2979_v14 = vpop.f32.mrf.mxu3  ;;  %v4232_v15 = vmul.f32 %v8300_v38, %v4212_v37  ;;  %8003 = vmatpush.bf16.msrb.mxu3 %v10212_v0  ;;  %v4586_v42 = vunpack.c.l.b16 %v4561_v11  ;;  %v5082_v44 = vrot.slane %v5081_v63, 4  ;;  %v5086_v40 = vrot.slane %v5084_v33, 5 }
 0x191   : > { %v2995_v2 = vadd.f32 %v2979_v14, %v10067_v56  ;;  %v7909_v14 = vld [vmem:[#allocation2 + $0x2c] sm:$0xf0]  ;;  %v5587_v33 = vshrl.u32 %v5546_v4, 16 }
 0x192   : > { %v3528_v5 = vpop.f32.mrf.mxu2  ;;  %v4256_v34 = vmul.f32 %v8353_v9, %v4232_v15  ;;  %v4590_v51 = vpack.c.b16 %v4586_v42, %v4585_v32  ;;  %v5087_v37 = vsel %vm8480_vm7, %v5082_v44, %v5086_v40  ;;  %v7935_v15 = vld [vmem:[#allocation2 + $0x14] sm:$0xf0] }
 0x193   : > { %v3129_v56 = vadd.f32 %v10191_v46, %v2995_v2  ;;  %v5066_v46 = vrot.slane %v5064_v54, 5  ;;  %v3359_v50 = vpop.f32.mrf.mxu1  ;;  %v5000_v2 = vld [vmem:[#allocation2 + $0x38] sm:$0xf]  ;;  %v7400_v54 = vor.u32 %v7909_v14, %v7399_v29  ;;  %v5138_v29 = vunpack.c.l.b16 %v5087_v37 }
 0x194   : > { %8004 = vmatpush.bf16.msrb.mxu3 %v10250_v48  ;;  %v5089_v55 = vshrl.u32 %v5000_v2, 16  ;;  %v5260_v48 = vrot.slane %v10135_v47, 5  ;;  %v7949_v47 = vld [vmem:[%s10582_s5 + $0x650] sm:$0xff] }
 0x195   : > { %4661 = vmatmul.bf16.gmra.mxu3 %v4589_v8  ;;  %v10307_v26 = vadd.f32 %v3359_v50, %v3129_v56  ;;  %v10311_v8 = vadd.f32 %v3528_v5, %v10229_v18  ;;  %v5067_v38 = vor.u32 %v5066_v46, %v5063_v45  ;;  %v7951_v18 = vld [vmem:[%s10582_s5 + $0x660] sm:$0xff]  ;;  %v7950_v56 = vld [vmem:[%s10582_s5 + $0x658] sm:$0xff]  ;;  %v7485_v45 = vrot.slane %v5234_v12, 9  ;;  %v7957_v50 = vld [vmem:[%s10582_s5 + $0x690] sm:$0xff] }
 0x196   : > { %v10313_v22 = vpop.f32.mrf.mxu0  ;;  %7997 = vmatpush.bf16.msra.mxu1 %v7951_v18  ;;  %5754 = vmatpush.bf16.msrb.mxu0 %v7951_v18  ;;  %v7486_v46 = vrot.slane %v5235_v6, 9  ;;  %v5091_v5 = vrot.slane %v5089_v55, 4 }
 0x197   : > { %5210 = vmatmul.bf16.gmra.mxu2 %v5142_v19  ;;  %v5068_v53 = vrot.slane %v5067_v38, 4 }
 0x198   : > { %v2982_v20 = vpop.f32.mrf.mxu3  ;;  %8005 = vmatpush.bf16.msrb.mxu3 %v10293_v3  ;;  %5930 = vmatpush.bf16.msra.mxu2 %v7957_v50  ;;  %v5261_v3 = vsel %vm8433_vm6, %v7485_v45, %v5260_v48  ;;  %v10389_v45 = vld [vmem:[#allocation2 + $0x24] sm:$0x1] }
 0x199   : > { %v2996_v31 = vadd.f32 %v2982_v20, %v10129_v61  ;;  %4840 = vmatmul.bf16.gmra.mxu0 %v4764_v13  ;;  %v4276_v61 = vpack.c.bf16 %v4256_v34, %v4256_v34  ;;  %v5073_v16 = vsel %vm8480_vm7, %v5068_v53, %v5072_v10  ;;  %v10358_v20 = vld [vmem:[#allocation2 + $0x3c] sm:$0x1]  ;;  %v10364_v34 = vld [vmem:[#allocation2 + $0x44] sm:$0x1]  ;;  %v5307_v48 = vunpack.c.l.b16 %v5261_v3 }
 0x19a   : > { %v3531_v57 = vpop.f32.mrf.mxu2  ;;  %7998 = vmatpush.bf16.msra.mxu1 %v7950_v56  ;;  %5755 = vmatpush.bf16.msrb.mxu0 %v7950_v56  ;;  %v5137_v11 = vunpack.c.l.b16 %v5073_v16  ;;  %v5098_v42 = vshll.u32 %v10358_v20, 16 }
 0x19b   : > { %v3130_v0 = vadd.f32 %v10234_v49, %v2996_v31  ;;  %4296 = vst [vmem:[#allocation2 + $0x40] sm:$0xf] %v4276_v61  ;;  %v3362_v9 = vpop.f32.mrf.mxu1  ;;  %v5092_v49 = vshll.u32 %v5000_v2, 16  ;;  %v10339_v59 = vadd.f32 %v3531_v57, %v10267_v60  ;;  %4969 = vmatmul.bf16.gmra.mxu1 %v7400_v54  ;;  %v5264_v60 = vrot.slane %v10137_v36, 5  ;;  %v5548_v36 = vld [vmem:[#allocation2 + $0x28] sm:$0xf] }
 0x19c   : > { %v5590_v31 = vshll.u32 %v5546_v4, 16  ;;  %v7956_v61 = vld [vmem:[%s10582_s5 + $0x688] sm:$0xff]  ;;  %v5601_v2 = vshrl.u32 %v5548_v36, 16  ;;  %8006 = vmatpush.bf16.msrb.mxu3 %v10327_v35  ;;  %v5604_v10 = vshll.u32 %v5548_v36, 16  ;;  %v5100_v4 = vrot.slane %v5098_v42, 5 }
 0x19d   : > { %v10336_v58 = vadd.f32 %v3362_v9, %v3130_v0  ;;  %v5094_v19 = vrot.slane %v5092_v49, 5  ;;  %v5265_v14 = vsel %vm8433_vm6, %v7486_v46, %v5264_v60  ;;  %v7948_v0 = vld [vmem:[%s10582_s5 + $0x648] sm:$0xff]  ;;  %v5143_v9 = vpack.c.b16 %v5138_v29, %v5137_v11  ;;  %5931 = vmatpush.bf16.msra.mxu2 %v7956_v61  ;;  %v7403_v46 = vld [vmem:[#allocation2 + $0x38] sm:$0xf]  ;;  %v5237_v29 = vld [vmem:[#allocation2 + $0x20] sm:$0xe] }
 0x19e   : > { %v10341_v62 = vpop.f32.mrf.mxu0  ;;  %7999 = vmatpush.bf16.msra.mxu1 %v7949_v47  ;;  %5756 = vmatpush.bf16.msrb.mxu0 %v7949_v47  ;;  %v5589_v49 = vrot.slane %v5587_v33, 4  ;;  %v5592_v56 = vrot.slane %v5590_v31, 5  ;;  %v5603_v16 = vrot.slane %v5601_v2, 4  ;;  %v5606_v37 = vrot.slane %v5604_v10, 5  ;;  %v7563_v10 = vld [vmem:[#allocation2 + $0x20] sm:$0xf] }
 0x19f   : > { %v5095_v32 = vor.u32 %v5094_v19, %v5091_v5  ;;  %v5236_v5 = vld [vmem:[#allocation2 + $0x18] sm:$0xe] }
 0x1a0   : > { %v2984_v23 = vpop.f32.mrf.mxu3  ;;  %8007 = vmatpush.bf16.msrb.mxu3 %v7957_v50  ;;  %v5593_v19 = vor.u32 %v5592_v56, %v5589_v49  ;;  %v7936_v56 = vld [vmem:[#allocation2 + $0x24] sm:$0xf0] }
 0x1a1   : > { %v2997_v41 = vadd.f32 %v2984_v23, %v10157_v24  ;;  %v7559_v24 = vld [vmem:[#allocation2 + $0x10] sm:$0xf]  ;;  %v7947_v23 = vld [vmem:[%s10582_s5 + $0x640] sm:$0xff]  ;;  %v5096_v47 = vrot.slane %v5095_v32, 4  ;;  %v5268_v32 = vrot.slane %v10197_v21, 5 }
 0x1a2   : > { %v5002_v39 = vld [vmem:[#allocation2 + $0x40] sm:$0xf]  ;;  %v7560_v18 = vor.u32 %v7935_v15, %v7559_v24  ;;  %v3533_v54 = vpop.f32.mrf.mxu2  ;;  %8000 = vmatpush.bf16.msra.mxu1 %v7948_v0  ;;  %5757 = vmatpush.bf16.msrb.mxu0 %v7948_v0  ;;  %v10392_v24 = vld [vmem:[#allocation2 + $0x2c] sm:$0x1]  ;;  %v5594_v42 = vrot.slane %v5593_v19, 4 }
 0x1a3   : > { %v3131_v13 = vadd.f32 %v10276_v43, %v2997_v41  ;;  %v5103_v43 = vshrl.u32 %v5002_v39, 16  ;;  %v5106_v38 = vshll.u32 %v5002_v39, 16  ;;  %v3364_v63 = vpop.f32.mrf.mxu1  ;;  %v10377_v40 = vadd.f32 %v3533_v54, %v10307_v26  ;;  %v7955_v26 = vld [vmem:[%s10582_s5 + $0x680] sm:$0xff] }
 0x1a4   : > { %v7910_v41 = vld [vmem:[#allocation2 + $0x3c] sm:$0xf0]  ;;  %5932 = vmatpush.bf16.msra.mxu2 %v7955_v26  ;;  %v5607_v39 = vor.u32 %v5606_v37, %v5603_v16  ;;  %8008 = vmatpush.bf16.msrb.mxu3 %v7956_v61  ;;  %v7488_v54 = vrot.slane %v5237_v29, 9 }
 0x1a5   : > { %4666 = vmatmul.bf16.gmra.mxu3 %v4590_v51  ;;  %v10374_v12 = vadd.f32 %v3364_v63, %v3131_v13  ;;  %v5105_v6 = vrot.slane %v5103_v43, 4  ;;  %v5108_v53 = vrot.slane %v5106_v38, 5  ;;  %v5112_v51 = vshll.u32 %v10364_v34, 16 }
 0x1a6   : > { %v10379_v55 = vpop.f32.mrf.mxu0  ;;  %8001 = vmatpush.bf16.msra.mxu1 %v7947_v23  ;;  %v5596_v13 = vshll.u32 %v10389_v45, 16  ;;  %v7404_v15 = vor.u32 %v7910_v41, %v7403_v46  ;;  %5758 = vmatpush.bf16.msrb.mxu0 %v7947_v23  ;;  %v7487_v43 = vrot.slane %v5236_v5, 9  ;;  %v10415_v23 = vld [vmem:[#allocation2 + $0x1c] sm:$0x1] }
 0x1a7   : > { %v5109_v35 = vor.u32 %v5108_v53, %v5105_v6  ;;  %5215 = vmatmul.bf16.gmra.mxu2 %v5143_v9  ;;  %v5114_v11 = vrot.slane %v5112_v51, 5  ;;  %v5272_v6 = vrot.slane %v10202_v1, 5  ;;  %v5550_v53 = vld [vmem:[#allocation2 + $0x30] sm:$0xf]  ;;  %v5552_v9 = vld [vmem:[#allocation2 + $0x38] sm:$0xf] }
 0x1a8   : > { %v2987_v44 = vpop.f32.mrf.mxu3  ;;  %v5598_v0 = vrot.slane %v5596_v13, 5  ;;  %8009 = vmatpush.bf16.msrb.mxu3 %v7955_v26  ;;  %v5789_v1 = vld [vmem:[#allocation2 + $0x18] sm:$0xe]  ;;  %v5618_v46 = vshll.u32 %v5550_v53, 16  ;;  %v5269_v26 = vsel %vm8433_vm6, %v7487_v43, %v5268_v32  ;;  %v5629_v41 = vshrl.u32 %v5552_v9, 16 }
 0x1a9   : > { %v2998_v57 = vadd.f32 %v2987_v44, %v10189_v28  ;;  %v5308_v28 = vunpack.c.l.b16 %v5265_v14  ;;  %5513 = vmatmul.bf16.vlgmr.msra.gmra.mxu0 %v7560_v18  ;;  %v5110_v36 = vrot.slane %v5109_v35, 4  ;;  %v5101_v14 = vsel %vm8480_vm7, %v5096_v47, %v5100_v4  ;;  %v10433_v32 = vld [vmem:[#allocation2 + $0x34] sm:$0x1] }
 0x1aa   : > { %v3536_v33 = vpop.f32.mrf.mxu2  ;;  %v5608_v44 = vrot.slane %v5607_v39, 4  ;;  %v5139_v21 = vunpack.c.l.b16 %v5101_v14  ;;  %v5599_v51 = vsel %vm8480_vm7, %v5594_v42, %v5598_v0  ;;  %v5632_v16 = vshll.u32 %v5552_v9, 16  ;;  %v10435_v42 = vld [vmem:[#allocation2 + $0x3c] sm:$0x1] }
 0x1ab   : > { %v3132_v60 = vadd.f32 %v10313_v22, %v2998_v57  ;;  %v3367_v50 = vpop.f32.mrf.mxu1  ;;  %v5610_v22 = vshll.u32 %v10392_v24, 16  ;;  %v5315_v31 = vpack.c.b16 %v5308_v28, %v5307_v48  ;;  %v10401_v63 = vadd.f32 %v3536_v33, %v10336_v58  ;;  %4974 = vmatmul.bf16.gmra.mxu1 %v7404_v15  ;;  %v10411_v57 = vld [vmem:[#allocation2 + $0x14] sm:$0x1] }
 0x1ac   : > { %v5115_v2 = vsel %vm8480_vm7, %v5110_v36, %v5114_v11  ;;  %v5615_v48 = vshrl.u32 %v5550_v53, 16  ;;  %v7564_v28 = vor.u32 %v7936_v56, %v7563_v10  ;;  %v5814_v4 = vrot.slane %v10411_v57, 5 }
 0x1ad   : > { %v10396_v3 = vadd.f32 %v3367_v50, %v3132_v60  ;;  %v5612_v58 = vrot.slane %v5610_v22, 5  ;;  %v5140_v35 = vunpack.c.l.b16 %v5115_v2  ;;  %v5689_v13 = vunpack.c.l.b16 %v5599_v51 }
 0x1ae   : > { %v10403_v18 = vpop.f32.mrf.mxu0  ;;  %v7654_v15 = vrot.slane %v5789_v1, 9  ;;  %v5818_v36 = vrot.slane %v10415_v23, 5  ;;  %v5617_v22 = vrot.slane %v5615_v48, 4  ;;  %v5620_v33 = vrot.slane %v5618_v46, 5  ;;  %v5239_v48 = vld [vmem:[#allocation2 + $0x30] sm:$0xe] }
 0x1af   : > { %v5613_v60 = vsel %vm8480_vm7, %v5608_v44, %v5612_v58  ;;  %v5144_v29 = vpack.c.b16 %v5140_v35, %v5139_v21  ;;  %v5631_v43 = vrot.slane %v5629_v41, 4  ;;  %v5309_v0 = vunpack.c.l.b16 %v5269_v26 }
 0x1b0   : > { %v2989_v38 = vpop.f32.mrf.mxu3  ;;  %v5690_v14 = vunpack.c.l.b16 %v5613_v60  ;;  %v5624_v53 = vshll.u32 %v10433_v32, 16  ;;  %v5638_v44 = vshll.u32 %v10435_v42, 16 }
 0x1b1   : > { %v2999_v61 = vadd.f32 %v2989_v38, %v10232_v30  ;;  %v5788_v30 = vld [vmem:[#allocation2 + $0x10] sm:$0xe]  ;;  %v5634_v38 = vrot.slane %v5632_v16, 5 }
 0x1b2   : > { %v7653_v47 = vrot.slane %v5788_v30, 9  ;;  %v3538_v5 = vpop.f32.mrf.mxu2  ;;  %v5640_v16 = vrot.slane %v5638_v44, 5 }
 0x1b3   : > { %v3133_v49 = vadd.f32 %v10341_v62, %v2999_v61  ;;  %v5273_v62 = vsel %vm8433_vm6, %v7488_v54, %v5272_v6  ;;  %v3369_v37 = vpop.f32.mrf.mxu1  ;;  %v10428_v50 = vadd.f32 %v3538_v5, %v10374_v12  ;;  %v5819_v54 = vsel %vm8433_vm6, %v7654_v15, %v5818_v36  ;;  %v5556_v5 = vld [vmem:[#allocation2 + $0x48] sm:$0xf]  ;;  %v7937_v15 = vld [vmem:[#allocation2 + $0x34] sm:$0xf0] }
 0x1b4   : > { %v5310_v61 = vunpack.c.l.b16 %v5273_v62  ;;  %v5815_v2 = vsel %vm8433_vm6, %v7653_v47, %v5814_v4  ;;  %v5696_v6 = vpack.c.b16 %v5690_v14, %v5689_v13  ;;  %v5635_v10 = vor.u32 %v5634_v38, %v5631_v43  ;;  %v5554_v4 = vld [vmem:[#allocation2 + $0x40] sm:$0xf]  ;;  %v7567_v13 = vld [vmem:[#allocation2 + $0x30] sm:$0xf] }
 0x1b5   : > { %5379 = vmatmul.bf16.vlgmr.msra.gmra.mxu3 %v5315_v31  ;;  %v10424_v19 = vadd.f32 %v3369_v37, %v3133_v49  ;;  %v5861_v51 = vunpack.c.l.b16 %v5815_v2  ;;  %v5862_v1 = vunpack.c.l.b16 %v5819_v54  ;;  %v5626_v62 = vrot.slane %v5624_v53, 5 }
 0x1b6   : > { %v10430_v39 = vpop.f32.mrf.mxu0  ;;  %v5316_v49 = vpack.c.b16 %v5310_v61, %v5309_v0  ;;  %v5636_v41 = vrot.slane %v5635_v10, 4  ;;  %v7490_v47 = vrot.slane %v5239_v48, 9  ;;  %v5660_v14 = vshll.u32 %v5556_v5, 16 }
 0x1b7   : > { %5220 = vmatmul.bf16.gmra.mxu2 %v5144_v29  ;;  %v5869_v36 = vpack.c.b16 %v5862_v1, %v5861_v51  ;;  %v5790_v29 = vld [vmem:[#allocation2 + $0x20] sm:$0xe]  ;;  %v7568_v61 = vor.u32 %v7937_v15, %v7567_v13 }
 0x1b8   : > { %v3660_v11 = vpop.f32.mrf.mxu3  ;;  %v5662_v51 = vrot.slane %v5660_v14, 5 }
 0x1b9   : > { %v3680_v31 = vadd.f32 %v3660_v11, %v10274_v17  ;;  %5518 = vmatmul.bf16.gmra.mxu0 %v7564_v28  ;;  %v5621_v17 = vor.u32 %v5620_v33, %v5617_v22  ;;  %v5276_v28 = vrot.slane %v10300_v27, 5  ;;  %v5641_v11 = vsel %vm8480_vm7, %v5636_v41, %v5640_v16  ;;  %v5791_v22 = vld [vmem:[#allocation2 + $0x28] sm:$0xe]  ;;  %v5544_v41 = vld [vmem:[#allocation2 + $0x18] sm:$0xf] }
 0x1ba   : > { %v3541_v9 = vpop.f32.mrf.mxu2  ;;  %v5643_v33 = vshrl.u32 %v5554_v4, 16  ;;  %v7656_v53 = vrot.slane %v5791_v22, 9 }
 0x1bb   : > { %v3926_v12 = vadd.f32 %v10379_v55, %v3680_v31  ;;  %v4080_v58 = vpop.f32.mrf.mxu1  ;;  %v5238_v55 = vld [vmem:[#allocation2 + $0x28] sm:$0xe]  ;;  %v10447_v30 = vadd.f32 %v3541_v9, %v10396_v3  ;;  %v5622_v46 = vrot.slane %v5621_v17, 4  ;;  %5764 = vmatmul.bf16.vlgmr.msra.gmra.mxu1 %v5696_v6  ;;  %v5280_v3 = vrot.slane %v10303_v52, 5 }
 0x1bc   : > { %v7489_v37 = vrot.slane %v5238_v55, 9  ;;  %v5657_v31 = vshrl.u32 %v5556_v5, 16  ;;  %v7655_v17 = vrot.slane %v5790_v29, 9  ;;  %v5822_v6 = vrot.slane %v10389_v45, 5  ;;  %v5542_v45 = vld [vmem:[#allocation2 + $0x10] sm:$0xf] }
 0x1bd   : > { %v10444_v21 = vadd.f32 %v4080_v58, %v3926_v12  ;;  %v5281_v0 = vsel %vm8433_vm6, %v7490_v47, %v5280_v3  ;;  %v5692_v58 = vunpack.c.l.b16 %v5641_v11  ;;  %v5826_v9 = vrot.slane %v10392_v24, 5  ;;  %v5241_v29 = vld [vmem:[#allocation2 + $0x40] sm:$0xe] }
 0x1be   : > { %v10449_v35 = vpop.f32.mrf.mxu0  ;;  %v5277_v38 = vsel %vm8433_vm6, %v7489_v37, %v5276_v28  ;;  %v5312_v48 = vunpack.c.l.b16 %v5281_v0  ;;  %v5240_v37 = vld [vmem:[#allocation2 + $0x38] sm:$0xe]  ;;  %v5559_v15 = vshrl.u32 %v5542_v45, 16  ;;  %v5562_v22 = vshll.u32 %v5542_v45, 16 }
 0x1bf   : > { %v5311_v1 = vunpack.c.l.b16 %v5277_v38  ;;  %v5827_v24 = vsel %vm8433_vm6, %v7656_v53, %v5826_v9  ;;  %v7491_v14 = vrot.slane %v5240_v37, 9  ;;  %v7571_v53 = vld [vmem:[#allocation2 + $0x40] sm:$0xf]  ;;  %v5582_v37 = vshll.u32 %v10415_v23, 16 }
 0x1c0   : > { %v3662_v56 = vpop.f32.mrf.mxu3 }
 0x1c1   : > { %v3681_v26 = vadd.f32 %v3662_v56, %v10311_v8  ;;  %v5627_v8 = vsel %vm8480_vm7, %v5622_v46, %v5626_v62  ;;  %v5659_v56 = vrot.slane %v5657_v31, 4  ;;  %v10474_v46 = vld [vmem:[#allocation2 + $0x44] sm:$0x1]  ;;  %v5864_v31 = vunpack.c.l.b16 %v5827_v24  ;;  %v5792_v24 = vld [vmem:[#allocation2 + $0x30] sm:$0xe] }
 0x1c2   : > { %v3543_v52 = vpop.f32.mrf.mxu2  ;;  %v5691_v44 = vunpack.c.l.b16 %v5627_v8 }
 0x1c3   : > { %v3927_v60 = vadd.f32 %v10403_v18, %v3681_v26  ;;  %v4082_v27 = vpop.f32.mrf.mxu1  ;;  %v5646_v18 = vshll.u32 %v5554_v4, 16  ;;  %v10466_v2 = vadd.f32 %v3543_v52, %v10424_v19  ;;  %v10476_v26 = vld [vmem:[#allocation2 + $0x4c] sm:$0x1]  ;;  %v5317_v4 = vpack.c.b16 %v5312_v48, %v5311_v1 }
 0x1c4   : > { %v5697_v62 = vpack.c.b16 %v5692_v58, %v5691_v44  ;;  %v5666_v47 = vshll.u32 %v10476_v26, 16  ;;  %v5284_v52 = vrot.slane %v10358_v20, 5  ;;  %v5561_v44 = vrot.slane %v5559_v15, 4 }
 0x1c5   : > { %5384 = vmatmul.bf16.gmra.mxu3 %v5316_v49  ;;  %v10459_v43 = vadd.f32 %v4082_v27, %v3927_v60  ;;  %v5645_v49 = vrot.slane %v5643_v33, 4  ;;  %v5648_v55 = vrot.slane %v5646_v18, 5  ;;  %v5652_v60 = vshll.u32 %v10474_v46, 16 }
 0x1c6   : > { %v10468_v54 = vpop.f32.mrf.mxu0  ;;  %v5573_v27 = vshrl.u32 %v5544_v41, 16  ;;  %v5576_v33 = vshll.u32 %v5544_v41, 16  ;;  %v5564_v58 = vrot.slane %v5562_v22, 5  ;;  %v5285_v20 = vsel %vm8433_vm6, %v7491_v14, %v5284_v52 }
 0x1c7   : > { %5933 = vmatmul.bf16.vlgmr.msra.gmra.mxu2 %v5869_v36  ;;  %v5649_v28 = vor.u32 %v5648_v55, %v5645_v49  ;;  %v5654_v0 = vrot.slane %v5652_v60, 5 }
 0x1c8   : > { %v3665_v12 = vpop.f32.mrf.mxu3  ;;  %v5575_v9 = vrot.slane %v5573_v27, 4  ;;  %v5565_v41 = vor.u32 %v5564_v58, %v5561_v44  ;;  %v5830_v27 = vrot.slane %v10433_v32, 5  ;;  %v5842_v58 = vrot.slane %v10476_v26, 5 }
 0x1c9   : > { %v3682_v10 = vadd.f32 %v3665_v12, %v10339_v59  ;;  %5523 = vmatmul.bf16.gmra.mxu0 %v7568_v61  ;;  %v5823_v59 = vsel %vm8433_vm6, %v7655_v17, %v5822_v6  ;;  %v5650_v38 = vrot.slane %v5649_v28, 4  ;;  %v5668_v12 = vrot.slane %v5666_v47, 5  ;;  %v5793_v47 = vld [vmem:[#allocation2 + $0x38] sm:$0xe] }
 0x1ca   : > { %v4406_v3 = vpop.f32.mrf.mxu2  ;;  %v5863_v13 = vunpack.c.l.b16 %v5823_v59  ;;  %v7492_v17 = vrot.slane %v5241_v29, 9  ;;  %v5288_v6 = vrot.slane %v10364_v34, 5  ;;  %v5584_v29 = vrot.slane %v5582_v37, 5 }
 0x1cb   : > { %v3928_v19 = vadd.f32 %v10430_v39, %v3682_v10  ;;  %v4085_v16 = vpop.f32.mrf.mxu1  ;;  %v5663_v39 = vor.u32 %v5662_v51, %v5659_v56  ;;  %v10487_v8 = vadd.f32 %v4406_v3, %v10444_v21  ;;  %5769 = vmatmul.bf16.gmra.mxu1 %v5697_v62  ;;  %v7938_v10 = vld [vmem:[#allocation2 + $0x44] sm:$0xf0]  ;;  %v5655_v56 = vsel %vm8480_vm7, %v5650_v38, %v5654_v0 }
 0x1cc   : > { %v5870_v55 = vpack.c.b16 %v5864_v31, %v5863_v13  ;;  %v5289_v1 = vsel %vm8433_vm6, %v7492_v17, %v5288_v6  ;;  %v7572_v48 = vor.u32 %v7938_v10, %v7571_v53  ;;  %v5693_v60 = vunpack.c.l.b16 %v5655_v56  ;;  %v5794_v6 = vld [vmem:[#allocation2 + $0x40] sm:$0xe]  ;;  %v5795_v53 = vld [vmem:[#allocation2 + $0x48] sm:$0xe] }
 0x1cd   : > { %v10484_v5 = vadd.f32 %v4085_v16, %v3928_v19  ;;  %v5664_v61 = vrot.slane %v5663_v39, 4  ;;  %v5568_v19 = vshll.u32 %v10411_v57, 16  ;;  %v5313_v3 = vunpack.c.l.b16 %v5285_v20 }
 0x1ce   : > { %v10489_v11 = vpop.f32.mrf.mxu0  ;;  %v7657_v13 = vrot.slane %v5792_v24, 9  ;;  %v7658_v23 = vrot.slane %v5793_v47, 9 }
 0x1cf   : > { %v5570_v15 = vrot.slane %v5568_v19, 5 }
 0x1d0   : > { %v3667_v36 = vpop.f32.mrf.mxu3 }
 0x1d1   : > { %v3683_v18 = vadd.f32 %v3667_v36, %v10377_v40  ;;  %v5578_v40 = vrot.slane %v5576_v33, 5 }
 0x1d2   : > { %v4408_v51 = vpop.f32.mrf.mxu2 }
 0x1d3   : > { %v3929_v21 = vadd.f32 %v10449_v35, %v3683_v18  ;;  %v4087_v49 = vpop.f32.mrf.mxu1  ;;  %v5669_v35 = vsel %vm8480_vm7, %v5664_v61, %v5668_v12  ;;  %v10505_v45 = vadd.f32 %v4408_v51, %v10459_v43  ;;  %v5579_v16 = vor.u32 %v5578_v40, %v5575_v9 }
 0x1d4   : > { %v5694_v39 = vunpack.c.l.b16 %v5669_v35  ;;  %v5566_v43 = vrot.slane %v5565_v41, 4  ;;  %v7659_v9 = vrot.slane %v5794_v6, 9  ;;  %v7660_v40 = vrot.slane %v5795_v53, 9 }
 0x1d5   : > { %5389 = vmatmul.bf16.gmra.mxu3 %v5317_v4  ;;  %v4103_v34 = vadd.f32 %v4087_v49, %v3929_v21  ;;  %v5314_v4 = vunpack.c.l.b16 %v5289_v1  ;;  %v5580_v36 = vrot.slane %v5579_v16, 4 }
 0x1d6   : > { %v3921_v62 = vpop.f32.mrf.mxu0  ;;  %v5698_v22 = vpack.c.b16 %v5694_v39, %v5693_v60  ;;  %v5571_v38 = vsel %vm8480_vm7, %v5566_v43, %v5570_v15  ;;  %v5843_v19 = vsel %vm8433_vm6, %v7660_v40, %v5842_v58 }
 0x1d7   : > { %5938 = vmatmul.bf16.gmra.mxu2 %v5870_v55  ;;  %v5585_v0 = vsel %vm8480_vm7, %v5580_v36, %v5584_v29  ;;  %v5318_v32 = vpack.c.b16 %v5314_v4, %v5313_v3  ;;  %v5687_v21 = vunpack.c.l.b16 %v5571_v38 }
 0x1d8   : > { %v3670_v59 = vpop.f32.mrf.mxu3  ;;  %v5688_v17 = vunpack.c.l.b16 %v5585_v0 }
 0x1d9   : > { %v3684_v28 = vadd.f32 %v3670_v59, %v10401_v63  ;;  %5528 = vmatmul.bf16.gmra.mxu0 %v7572_v48  ;;  %v5834_v63 = vrot.slane %v10435_v42, 5  ;;  %v5831_v42 = vsel %vm8433_vm6, %v7657_v13, %v5830_v27  ;;  %v5868_v59 = vunpack.c.l.b16 %v5843_v19 }
 0x1da   : > { %v4411_v18 = vpop.f32.mrf.mxu2  ;;  %v5865_v10 = vunpack.c.l.b16 %v5831_v42  ;;  %v5695_v20 = vpack.c.b16 %v5688_v17, %v5687_v21 }
 0x1db   : > { %v3930_v57 = vadd.f32 %v10468_v54, %v3684_v28  ;;  %v4090_v33 = vpop.f32.mrf.mxu1  ;;  %v10513_v52 = vadd.f32 %v4411_v18, %v10484_v5  ;;  %5774 = vmatmul.bf16.gmra.mxu1 %v5698_v22  ;;  %v5835_v12 = vsel %vm8433_vm6, %v7658_v23, %v5834_v63 }
 0x1dc   : > { %v5866_v44 = vunpack.c.l.b16 %v5835_v12 }
 0x1dd   : > { %v4104_v31 = vadd.f32 %v4090_v33, %v3930_v57 }
 0x1de   : > { %v3923_v54 = vpop.f32.mrf.mxu0 }
 0x1e0   : > { %v3672_v14 = vpop.f32.mrf.mxu3 }
 0x1e1   : > { %v3685_v61 = vadd.f32 %v3672_v14, %v10428_v50  ;;  %v5838_v50 = vrot.slane %v10474_v46, 5 }
 0x1e2   : > { %v4413_v49 = vpop.f32.mrf.mxu2 }
 0x1e3   : > { %v3931_v5 = vadd.f32 %v10489_v11, %v3685_v61  ;;  %v4092_v7 = vpop.f32.mrf.mxu1  ;;  %v4429_v35 = vadd.f32 %v4413_v49, %v4103_v34  ;;  %v5871_v11 = vpack.c.b16 %v5866_v44, %v5865_v10  ;;  %v5839_v48 = vsel %vm8433_vm6, %v7659_v9, %v5838_v50 }
 0x1e4   : > { %v5867_v26 = vunpack.c.l.b16 %v5839_v48 }
 0x1e5   : > { %5394 = vmatmul.bf16.gmra.mxu3 %v5318_v32  ;;  %v4105_v55 = vadd.f32 %v4092_v7, %v3931_v5 }
 0x1e6   : > { %v4826_v51 = vpop.f32.mrf.mxu0 }
 0x1e7   : > { %5943 = vmatmul.bf16.gmra.mxu2 %v5871_v11 }
 0x1e8   : > { %v3675_v56 = vpop.f32.mrf.mxu3 }
 0x1e9   : > { %v3686_v1 = vadd.f32 %v3675_v56, %v10447_v30  ;;  %5759 = vmatmul.bf16.vlgmr.msrb.gmra.mxu0 %v5695_v20  ;;  %v5872_v30 = vpack.c.b16 %v5868_v59, %v5867_v26 }
 0x1ea   : > { %v4416_v41 = vpop.f32.mrf.mxu2 }
 0x1eb   : > { %v3932_v46 = vadd.f32 %v3921_v62, %v3686_v1  ;;  %v4095_v24 = vpop.f32.mrf.mxu1  ;;  %v4430_v34 = vadd.f32 %v4416_v41, %v4104_v31 }
 0x1ed   : > { %v4106_v16 = vadd.f32 %v4095_v24, %v3932_v46 }
 0x1ee   : > { %v4828_v28 = vpop.f32.mrf.mxu0 }
 0x1f0   : > { %v3677_v37 = vpop.f32.mrf.mxu3 }
 0x1f1   : > { %v3687_v60 = vadd.f32 %v3677_v37, %v10466_v2 }
 0x1f2   : > { %v4418_v3 = vpop.f32.mrf.mxu2 }
 0x1f3   : > { %v3933_v39 = vadd.f32 %v3923_v54, %v3687_v60  ;;  %v4097_v47 = vpop.f32.mrf.mxu1  ;;  %v4431_v57 = vadd.f32 %v4418_v3, %v4105_v55 }
 0x1f5   : > { %5948 = vmatmul.bf16.vlgmr.msrb.gmra.mxu3 %v5872_v30  ;;  %v4107_v25 = vadd.f32 %v4097_v47, %v3933_v39 }
 0x1f6   : > { %v4831_v62 = vpop.f32.mrf.mxu0 }
 0x1f8   : > { %v4652_v4 = vpop.f32.mrf.mxu3 }
 0x1f9   : > { %v4672_v13 = vadd.f32 %v4652_v4, %v10487_v8 }
 0x1fa   : > { %v4421_v36 = vpop.f32.mrf.mxu2 }
 0x1fb   : > { %v4846_v43 = vadd.f32 %v4826_v51, %v4672_v13  ;;  %v4960_v15 = vpop.f32.mrf.mxu1  ;;  %v4432_v27 = vadd.f32 %v4421_v36, %v4106_v16 }
 0x1fd   : > { %v4980_v29 = vadd.f32 %v4960_v15, %v4846_v43 }
 0x1fe   : > { %v4833_v23 = vpop.f32.mrf.mxu0 }
 0x200   : > { %v4654_v22 = vpop.f32.mrf.mxu3 }
 0x201   : > { %v4673_v2 = vadd.f32 %v4654_v22, %v10505_v45 }
 0x202   : > { %v4423_v18 = vpop.f32.mrf.mxu2 }
 0x203   : > { %v4847_v63 = vadd.f32 %v4828_v28, %v4673_v2  ;;  %v4962_v33 = vpop.f32.mrf.mxu1  ;;  %v4433_v54 = vadd.f32 %v4423_v18, %v4107_v25 }
 0x205   : > { %v4981_v31 = vadd.f32 %v4962_v33, %v4847_v63 }
 0x206   : > { %v4836_v38 = vpop.f32.mrf.mxu0 }
 0x208   : > { %v4657_v14 = vpop.f32.mrf.mxu3 }
 0x209   : > { %v4674_v0 = vadd.f32 %v4657_v14, %v10513_v52 }
 0x20a   : > { %v5206_v8 = vpop.f32.mrf.mxu2 }
 0x20b   : > { %v4848_v61 = vadd.f32 %v4831_v62, %v4674_v0  ;;  %v4965_v32 = vpop.f32.mrf.mxu1  ;;  %v5226_v12 = vadd.f32 %v5206_v8, %v4980_v29 }
 0x20d   : > { %v4982_v58 = vadd.f32 %v4965_v32, %v4848_v61 }
 0x20e   : > { %v4838_v5 = vpop.f32.mrf.mxu0 }
 0x210   : > { %v4659_v42 = vpop.f32.mrf.mxu3 }
 0x211   : > { %v4675_v21 = vadd.f32 %v4659_v42, %v4429_v35 }
 0x212   : > { %v5208_v6 = vpop.f32.mrf.mxu2 }
 0x213   : > { %v4849_v17 = vadd.f32 %v4833_v23, %v4675_v21  ;;  %v10536_v45 = vadd.f32 %v5208_v6, %v4981_v31  ;;  %v4967_v7 = vpop.f32.mrf.mxu1 }
 0x215   : > { %v4983_v33 = vadd.f32 %v4967_v7, %v4849_v17 }
 0x216   : > { %v4841_v10 = vpop.f32.mrf.mxu0 }
 0x218   : > { %v4662_v53 = vpop.f32.mrf.mxu3 }
 0x219   : > { %v4676_v44 = vadd.f32 %v4662_v53, %v4430_v34 }
 0x21a   : > { %v5211_v9 = vpop.f32.mrf.mxu2 }
 0x21b   : > { %v4850_v50 = vadd.f32 %v4836_v38, %v4676_v44  ;;  %v5228_v52 = vadd.f32 %v5211_v9, %v4982_v58  ;;  %v4970_v20 = vpop.f32.mrf.mxu1 }
 0x21d   : > { %v4984_v46 = vadd.f32 %v4970_v20, %v4850_v50 }
 0x21e   : > { %v4843_v49 = vpop.f32.mrf.mxu0 }
 0x220   : > { %v4664_v40 = vpop.f32.mrf.mxu3 }
 0x221   : > { %v4677_v55 = vadd.f32 %v4664_v40, %v4431_v57 }
 0x222   : > { %v5213_v11 = vpop.f32.mrf.mxu2 }
 0x223   : > { %v4851_v56 = vadd.f32 %v4838_v5, %v4677_v55  ;;  %v4972_v19 = vpop.f32.mrf.mxu1  ;;  %v5229_v18 = vadd.f32 %v5213_v11, %v4983_v33 }
 0x225   : > { %v4985_v44 = vadd.f32 %v4972_v19, %v4851_v56 }
 0x226   : > { %v5514_v35 = vpop.f32.mrf.mxu0 }
 0x228   : > { %v4667_v51 = vpop.f32.mrf.mxu3 }
 0x229   : > { %v4678_v1 = vadd.f32 %v4667_v51, %v4432_v27 }
 0x22a   : > { %v5216_v26 = vpop.f32.mrf.mxu2 }
 0x22b   : > { %v4852_v48 = vadd.f32 %v4841_v10, %v4678_v1  ;;  %v5230_v24 = vadd.f32 %v5216_v26, %v4984_v46  ;;  %v4975_v34 = vpop.f32.mrf.mxu1 }
 0x22d   : > { %v4986_v58 = vadd.f32 %v4975_v34, %v4852_v48 }
 0x22e   : > { %v5516_v41 = vpop.f32.mrf.mxu0 }
 0x230   : > { %v4669_v59 = vpop.f32.mrf.mxu3 }
 0x231   : > { %v4679_v16 = vadd.f32 %v4669_v59, %v4433_v54 }
 0x232   : > { %v5218_v28 = vpop.f32.mrf.mxu2 }
 0x233   : > { %v10538_v37 = vadd.f32 %v4843_v49, %v4679_v16  ;;  %v4977_v57 = vpop.f32.mrf.mxu1  ;;  %v5231_v9 = vadd.f32 %v5218_v28, %v4985_v44 }
 0x235   : > { %v4987_v56 = vadd.f32 %v4977_v57, %v10538_v37 }
 0x236   : > { %v5519_v30 = vpop.f32.mrf.mxu0 }
 0x238   : > { %v5380_v60 = vpop.f32.mrf.mxu3 }
 0x239   : > { %v5400_v39 = vadd.f32 %v5380_v60, %v5226_v12 }
 0x23a   : > { %v5221_v3 = vpop.f32.mrf.mxu2 }
 0x23b   : > { %v5534_v47 = vadd.f32 %v5514_v35, %v5400_v39  ;;  %v5765_v15 = vpop.f32.mrf.mxu1  ;;  %v5232_v49 = vadd.f32 %v5221_v3, %v4986_v58 }
 0x23e   : > { %v5521_v4 = vpop.f32.mrf.mxu0 }
 0x240   : > { %v5382_v25 = vpop.f32.mrf.mxu3 }
 0x241   : > { %v5401_v50 = vadd.f32 %v5382_v25, %v10536_v45 }
 0x242   : > { %v5223_v62 = vpop.f32.mrf.mxu2 }
 0x243   : > { %v5767_v27 = vpop.f32.mrf.mxu1  ;;  %v5535_v11 = vadd.f32 %v5516_v41, %v5401_v50  ;;  %v5233_v16 = vadd.f32 %v5223_v62, %v4987_v56 }
 0x246   : > { %v5524_v43 = vpop.f32.mrf.mxu0 }
 0x248   : > { %v5385_v13 = vpop.f32.mrf.mxu3 }
 0x249   : > { %v5402_v14 = vadd.f32 %v5385_v13, %v5228_v52 }
 0x24a   : > { %v5934_v36 = vpop.f32.mrf.mxu2 }
 0x24b   : > { %v5770_v31 = vpop.f32.mrf.mxu1  ;;  %v5536_v8 = vadd.f32 %v5519_v30, %v5402_v14 }
 0x24d   : > { %v5782_v42 = vadd.f32 %v5765_v15, %v5536_v8 }
 0x24e   : > { %v5526_v22 = vpop.f32.mrf.mxu0 }
 0x250   : > { %v5387_v29 = vpop.f32.mrf.mxu3 }
 0x251   : > { %v5403_v54 = vadd.f32 %v5387_v29, %v5229_v18 }
 0x252   : > { %v5936_v23 = vpop.f32.mrf.mxu2 }
 0x253   : > { %v5537_v32 = vadd.f32 %v5521_v4, %v5403_v54  ;;  %v5772_v5 = vpop.f32.mrf.mxu1 }
 0x255   : > { %v5783_v12 = vadd.f32 %v5767_v27, %v5537_v32 }
 0x256   : > { %v5529_v63 = vpop.f32.mrf.mxu0 }
 0x258   : > { %v5390_v2 = vpop.f32.mrf.mxu3 }
 0x259   : > { %v5404_v40 = vadd.f32 %v5390_v2, %v5230_v24 }
 0x25a   : > { %v5939_v38 = vpop.f32.mrf.mxu2 }
 0x25b   : > { %v5956_v17 = vadd.f32 %v5939_v38, %v5782_v42  ;;  %v5538_v51 = vadd.f32 %v5524_v43, %v5404_v40  ;;  %v5775_v45 = vpop.f32.mrf.mxu1 }
 0x25d   : > { %v5784_v24 = vadd.f32 %v5770_v31, %v5538_v51  ;;  %v5978_v3 = vmul.f32 %v5956_v17, %v5956_v17 }
 0x25e   : > { %v5531_v61 = vpop.f32.mrf.mxu0 }
 0x260   : > { %v5392_v0 = vpop.f32.mrf.mxu3 }
 0x261   : > { %v5405_v55 = vadd.f32 %v5392_v0, %v5231_v9 }
 0x262   : > { %v5941_v21 = vpop.f32.mrf.mxu2 }
 0x263   : > { %v5957_v53 = vadd.f32 %v5941_v21, %v5783_v12  ;;  %v5539_v19 = vadd.f32 %v5526_v22, %v5405_v55  ;;  %v5777_v18 = vpop.f32.mrf.mxu1 }
 0x265   : > { %v7971_v7 = vpack.c.bf16 %v5957_v53, %v5956_v17  ;;  %v5785_v41 = vadd.f32 %v5772_v5, %v5539_v19  ;;  %v5979_v15 = vmul.f32 %v5957_v53, %v5957_v53 }
 0x266   : > { %v5760_v10 = vpop.f32.mrf.mxu0 }
 0x267   : > { %7983 = vst [vmem:[%s10549_s17 + $0x8] sm:$0xff] %v7971_v7   ;;  %v5780_v52 = vadd.f32 %v5760_v10, %v5534_v47 }
 0x268   : > { %v5395_v6 = vpop.f32.mrf.mxu3 }
 0x269   : > { %v5406_v35 = vadd.f32 %v5395_v6, %v5232_v49  ;;  %v5954_v26 = vadd.f32 %v5934_v36, %v5780_v52 }
 0x26a   : > { %v5944_v20 = vpop.f32.mrf.mxu2 }
 0x26b   : > { %v5540_v34 = vadd.f32 %v5529_v63, %v5406_v35  ;;  %v5976_v28 = vmul.f32 %v5954_v26, %v5954_v26  ;;  %v5958_v47 = vadd.f32 %v5944_v20, %v5784_v24 }
 0x26d   : > { %v5786_v36 = vadd.f32 %v5775_v45, %v5540_v34  ;;  %v5980_v22 = vmul.f32 %v5958_v47, %v5958_v47 }
 0x26e   : > { %v5762_v46 = vpop.f32.mrf.mxu0 }
 0x26f   : > { %v5781_v59 = vadd.f32 %v5762_v46, %v5535_v11 }
 0x270   : > { %v5397_v1 = vpop.f32.mrf.mxu3 }
 0x271   : > { %v5955_v48 = vadd.f32 %v5936_v23, %v5781_v59  ;;  %v5407_v25 = vadd.f32 %v5397_v1, %v5233_v16 }
 0x272   : > { %v5946_v37 = vpop.f32.mrf.mxu2 }
 0x273   : > { %v5962_v60 = vadd.f32 %v5955_v48, %v5954_v26  ;;  %v5977_v30 = vmul.f32 %v5955_v48, %v5955_v48  ;;  %v7966_v39 = vpack.c.bf16 %v5955_v48, %v5954_v26  ;;  %v5959_v43 = vadd.f32 %v5946_v37, %v5785_v41 }
 0x274   : > { %v5541_v23 = vadd.f32 %v5531_v61, %v5407_v25 }
 0x275   : > { %v5963_v4 = vadd.f32 %v5962_v60, %v5956_v17  ;;  %v5984_v13 = vadd.f32 %v5977_v30, %v5976_v28  ;;  %7967 = vst [vmem:[%s10549_s17] sm:$0xff] %v7966_v39   ;;  %v7976_v27 = vpack.c.bf16 %v5959_v43, %v5958_v47  ;;  %v5981_v14 = vmul.f32 %v5959_v43, %v5959_v43 }
 0x276   : > { %v5787_v38 = vadd.f32 %v5777_v18, %v5541_v23 }
 0x277   : > { %v5985_v62 = vadd.f32 %v5984_v13, %v5978_v3  ;;  %v5964_v29 = vadd.f32 %v5963_v4, %v5957_v53  ;;  %7984 = vst [vmem:[%s10549_s17 + $0x10] sm:$0xff] %v7976_v27  }
 0x278   : > { %v5949_v57 = vpop.f32.mrf.mxu3 }
 0x279   : > { %v5960_v2 = vadd.f32 %v5949_v57, %v5786_v36  ;;  %v5965_v63 = vadd.f32 %v5964_v29, %v5958_v47  ;;  %v5986_v33 = vadd.f32 %v5985_v62, %v5979_v15 }
 0x27b   : > { %v5966_v31 = vadd.f32 %v5965_v63, %v5959_v43  ;;  %v5987_v54 = vadd.f32 %v5986_v33, %v5980_v22  ;;  %v5982_v0 = vmul.f32 %v5960_v2, %v5960_v2 }
 0x27d   : > { %v5988_v8 = vadd.f32 %v5987_v54, %v5981_v14  ;;  %v5967_v32 = vadd.f32 %v5966_v31, %v5960_v2 }
 0x27f   : > { %v5989_v5 = vadd.f32 %v5988_v8, %v5982_v0 }
 0x280   : > { %v5951_v42 = vpop.f32.mrf.mxu3 }
 0x281   : > { %v5961_v12 = vadd.f32 %v5951_v42, %v5787_v38 }
 0x283   : > { %v5968_v21 = vadd.f32 %v5967_v32, %v5961_v12  ;;  %v5983_v61 = vmul.f32 %v5961_v12, %v5961_v12  ;;  %v7981_v17 = vpack.c.bf16 %v5961_v12, %v5960_v2 }
 0x285   : > { %v5969_v6 = vrot.slane %v5968_v21, 4  ;;  %v5990_v53 = vadd.f32 %v5989_v5, %v5983_v61  ;;  %7985 = vst [vmem:[%s10549_s17 + $0x18] sm:$0xff] %v7981_v17  }
 0x287   : > { %v5970_v10 = vadd.f32 %v5969_v6, %v5968_v21  ;;  %v5991_v44 = vrot.slane %v5990_v53, 4 }
 0x289   : > { %v5971_v7 = vrot.slane %v5970_v10, 2  ;;  %v5992_v50 = vadd.f32 %v5991_v44, %v5990_v53 }
 0x28b   : > { %v5972_v58 = vadd.f32 %v5971_v7, %v5970_v10  ;;  %v5993_v9 = vrot.slane %v5992_v50, 2 }
 0x28d   : > { %v5973_v40 = vrot.slane %v5972_v58, 1  ;;  %v5994_v52 = vadd.f32 %v5993_v9, %v5992_v50 }
 0x28f   : > { %v5974_v49 = vadd.f32 %v5973_v40, %v5972_v58  ;;  %v5995_v55 = vrot.slane %v5994_v52, 1 }
 0x291   : > { %5975 = vst [vmem:[%s417_s20] sm:$0x1] %v5974_v49  ;;  %v5996_v20 = vadd.f32 %v5995_v55, %v5994_v52 }
 0x293   : > { %5997 = vst [vmem:[%s417_s20 + $0x1] sm:$0x1] %v5996_v20 }
 0x294 PF: > { %s18_s28 = sadd.s32 1, %s8111_s28   ;;  %s10590_s24 = smov %s8103_s26 }
 0x295   : > { %p15_p12 = scmp.ge.s32.totalorder %s18_s28, 18   ;;  %s10591_s25 = smov %s8107_s27 }
 0x296   : > { %s10592_s26 = smov %s10595_s29  ;;  %s10593_s27 = smov %s10599_s30 }
 0x297   :  { %17 = sbr.rel (!%p15_p12) target bundleno = 3 (0x3), region = 120 }

</bundles_post_ra>
